<compile_context>
chip_gen: v7x
topology: tpu7x:2x2x1
jax: 0.10.0
libtpu: 0.0.40
codegen_flags: <defaults>
</compile_context>

<pallas_src>
import functools

import numpy as np

import jax
import jax.numpy as jnp
from jax import lax
from jax.experimental import pallas as pl
from jax.experimental.pallas import tpu as pltpu


# Set to jnp.bfloat16 on v6e/v7x for 2x MXU throughput at large channel
# counts (f32 accumulation is kept via preferred_element_type).
MXU_DTYPE = jnp.float32
BN_EPS = 1e-5
LEAKY_SLOPE = 0.01                       # F.leaky_relu default in forward()
VMEM_LIMIT = 32 * 1024 * 1024


# ---------------------------------------------------------------------------
# Host-side helpers (static, trace-time constants).
# ---------------------------------------------------------------------------
def _make_row_masks(K, H, W):
    """(K, H*W) float32 masks. Row kw zeroes flat pixels whose column index w
    would leave [0, W) under the horizontal shift dw = kw - K//2 (i.e. pixels
    that would wrap across an image row in the flattened representation)."""
    p = K // 2
    col = np.arange(H * W) % W
    rows = [((col + (kw - p) >= 0) & (col + (kw - p) < W)).astype(np.float32)
            for kw in range(K)]
    return jnp.asarray(np.stack(rows, axis=0))


# ---------------------------------------------------------------------------
# In-kernel "same" conv: channels-major, flattened spatial, one im2col matmul.
# ---------------------------------------------------------------------------
def _conv_same_flat(x, w_ref, b_ref, mask_ref, pad_ref, patches_ref, *, K, H, W):
    """K x K 'same' conv (stride 1, zero pad) on channels-major flat tiles.

    x           : (Cin, H*W) f32 value (channels on sublanes, pixels on lanes).
    w_ref       : (Cout, K*K*Cin) Ref; columns ordered (kh, kw, cin).
    b_ref       : (Cout, 1) Ref.
    mask_ref    : (K, H*W) Ref of per-column validity masks (row wrap killer).
    pad_ref     : (Cin, H*W + 2*pf) f32 VMEM scratch, pf = (K//2)*(W+1); the
                  zero head/tail emulates the vertical zero padding.
    patches_ref : (K*K, Cin, H*W) f32 VMEM scratch (im2col slab).
    Returns (Cout, H*W) f32.  One MXU matmul per conv; bias hoisted out of the
    tap loop.
    """
    HW = H * W
    if K == 1:
        acc = jnp.dot(w_ref[...].astype(MXU_DTYPE), x.astype(MXU_DTYPE),
                      preferred_element_type=jnp.float32)
    else:
        cin = x.shape[0]
        p = K // 2
        pf = p * (W + 1)
        # Zero-padded, flattened copy of the image (padding lives in VMEM only).
        pad_ref[...] = jnp.zeros_like(pad_ref)
        pad_ref[:, pf:pf + HW] = x
        # im2col: each tap is a shifted window of the flat image; the mask
        # zeroes the lanes that wrapped across an image row (left/right pad).
        for kh in range(K):
            for kw in range(K):
                start = pf + (kh - p) * W + (kw - p)
                tap = pad_ref[:, start:start + HW]
                if kw != p:
                    tap = tap * mask_ref[kw:kw + 1, :]
                patches_ref[kh * K + kw] = tap
        patches = patches_ref[...].reshape(K * K * cin, HW)
        acc = jnp.dot(w_ref[...].astype(MXU_DTYPE), patches.astype(MXU_DTYPE),
                      preferred_element_type=jnp.float32)
    return acc + b_ref[...].astype(jnp.float32)


# ---------------------------------------------------------------------------
# Fused kernel: SPADE(x, seg) -> optional ReLU -> consumer conv.
# ---------------------------------------------------------------------------
def _make_spade_conv_kernel(*, C, ks, kc, H, W, pre_relu):
    def kernel(x_ref, seg_ref, stats_ref, mask_s_ref, mask_c_ref,
               w_sh_ref, b_sh_ref, w_gb_ref, b_gb_ref, w_c_ref, b_c_ref,
               o_ref, *scratch):
        it = iter(scratch)
        if ks > 1:
            seg_pad, seg_patches, actv_pad, actv_patches = (
                next(it), next(it), next(it), next(it))
        else:
            seg_pad = seg_patches = actv_pad = actv_patches = None
        if kc > 1:
            act_pad, act_patches = next(it), next(it)
        else:
            act_pad = act_patches = None

        # -- SPADE mlp_shared: actv = ReLU(conv_ks(seg)) -------------------
        # TODO(synk): F.interpolate(seg, mode='nearest') is an identity here
        # because seg is supplied at x's spatial resolution.
        actv = _conv_same_flat(seg_ref[...].astype(jnp.float32),
                               w_sh_ref, b_sh_ref, mask_s_ref,
                               seg_pad, seg_patches, K=ks, H=H, W=W)
        actv = jnp.maximum(actv, 0.0)                          # (nh, HW)

        # -- mlp_gamma + mlp_beta fused into ONE conv (Cout = 2*C) ---------
        gb = _conv_same_flat(actv, w_gb_ref, b_gb_ref, mask_s_ref,
                             actv_pad, actv_patches, K=ks, H=H, W=W)
        gamma, beta = gb[:C, :], gb[C:, :]

        # -- param-free batch-norm (precomputed stats) + modulation --------
        xhat = (x_ref[...].astype(jnp.float32) - stats_ref[:, 0:1]) \
            * stats_ref[:, 1:2]
        act = xhat * (1.0 + gamma) + beta
        if pre_relu:
            act = jnp.maximum(act, 0.0)     # F.relu before conv_0 / conv_1

        # -- consumer conv (conv_s / conv_0 / conv_1), bias fused ----------
        out = _conv_same_flat(act, w_c_ref, b_c_ref, mask_c_ref,
                              act_pad, act_patches, K=kc, H=H, W=W)
        o_ref[...] = out.astype(o_ref.dtype)

    return kernel


def spade_conv(x, seg, stats, norm_p, w_c, b_c, *, ks, kc, H, W, pre_relu):
    """One fused pallas_call: SPADE(x, seg) -> optional ReLU -> Conv2d(kc).

    x     : (N, C, H*W)   seg: (N, semC, H*W)     (channels-major, flat spatial)
    stats : (C, 2) per-channel [mean | 1/sqrt(var+eps)] over (N, H, W)
    norm_p: prepped SPADE params (w_sh, b_sh, w_gb, b_gb)
    w_c   : (Cout, kc*kc*C)   b_c: (Cout, 1)
    Returns (N, Cout, H*W).
    """
    N, C, HW = x.shape
    semC = seg.shape[1]
    nh = norm_p["w_sh"].shape[0]
    Cout = w_c.shape[0]

    mask_s = _make_row_masks(ks, H, W)
    mask_c = mask_s if kc == ks else _make_row_masks(kc, H, W)

    scratch = []
    if ks > 1:
        pf_s = (ks // 2) * (W + 1)
        scratch += [pltpu.VMEM((semC, HW + 2 * pf_s), jnp.float32),
                    pltpu.VMEM((ks * ks, semC, HW), jnp.float32),
                    pltpu.VMEM((nh, HW + 2 * pf_s), jnp.float32),
                    pltpu.VMEM((ks * ks, nh, HW), jnp.float32)]
    if kc > 1:
        pf_c = (kc // 2) * (W + 1)
        scratch += [pltpu.VMEM((C, HW + 2 * pf_c), jnp.float32),
                    pltpu.VMEM((kc * kc, C, HW), jnp.float32)]

    def full2(a):                              # whole 2-D array, grid-invariant
        return pl.BlockSpec(a.shape, lambda n: (0, 0))

    kernel = _make_spade_conv_kernel(C=C, ks=ks, kc=kc, H=H, W=W,
                                     pre_relu=pre_relu)
    return pl.pallas_call(
        kernel,
        grid=(N,),
        in_specs=[pl.BlockSpec((None, C, HW), lambda n: (n, 0, 0)),
                  pl.BlockSpec((None, semC, HW), lambda n: (n, 0, 0)),
                  full2(stats), full2(mask_s), full2(mask_c),
                  full2(norm_p["w_sh"]), full2(norm_p["b_sh"]),
                  full2(norm_p["w_gb"]), full2(norm_p["b_gb"]),
                  full2(w_c), full2(b_c)],
        out_specs=pl.BlockSpec((None, Cout, HW), lambda n: (n, 0, 0)),
        out_shape=jax.ShapeDtypeStruct((N, Cout, HW), x.dtype),
        scratch_shapes=scratch,
        compiler_params=pltpu.CompilerParams(
            dimension_semantics=("parallel",),     # batch across megacore TCs
            vmem_limit_bytes=VMEM_LIMIT),
    )(x, seg, stats, mask_s, mask_c,
      norm_p["w_sh"], norm_p["b_sh"], norm_p["w_gb"], norm_p["b_gb"], w_c, b_c)


# ---------------------------------------------------------------------------
# Per-channel batch statistics (param-free BatchNorm), gridded reduction.
# ---------------------------------------------------------------------------
def _stats_kernel(x_ref, o_ref, *, count, eps):
    n = pl.program_id(0)
    x = x_ref[...].astype(jnp.float32)                     # (C, HW)
    s = jnp.sum(x, axis=1, keepdims=True)                  # (C, 1)
    ss = jnp.sum(x * x, axis=1, keepdims=True)             # (C, 1)

    @pl.when(n == 0)
    def _():
        o_ref[...] = jnp.zeros_like(o_ref)

    o_ref[:, 0:1] = o_ref[:, 0:1] + s
    o_ref[:, 1:2] = o_ref[:, 1:2] + ss

    @pl.when(n == pl.num_programs(0) - 1)
    def _():
        mean = o_ref[:, 0:1] / count
        var = o_ref[:, 1:2] / count - mean * mean
        o_ref[:, 0:1] = mean
        o_ref[:, 1:2] = lax.rsqrt(var + eps)


def batch_stats(x_flat, *, eps=BN_EPS):
    """x_flat: (N, C, H*W) -> (C, 2) = [mean | 1/sqrt(var+eps)] over (N, H, W)."""
    N, C, HW = x_flat.shape
    return pl.pallas_call(
        functools.partial(_stats_kernel, count=float(N * HW), eps=eps),
        grid=(N,),
        in_specs=[pl.BlockSpec((None, C, HW), lambda n: (n, 0, 0))],
        out_specs=pl.BlockSpec((C, 2), lambda n: (0, 0)),
        out_shape=jax.ShapeDtypeStruct((C, 2), jnp.float32),
        compiler_params=pltpu.CompilerParams(
            dimension_semantics=("arbitrary",),    # output-resident accumulator
            vmem_limit_bytes=VMEM_LIMIT),
    )(x_flat)


# ---------------------------------------------------------------------------
# Final: out = leaky_relu(conv1x1(x_s + dx) + b)   (fused residual add).
# ---------------------------------------------------------------------------
def _final_kernel(dx_ref, xs_ref, w_ref, b_ref, o_ref, *, slope):
    s = dx_ref[...].astype(jnp.float32) + xs_ref[...].astype(jnp.float32)
    out = jnp.dot(w_ref[...].astype(MXU_DTYPE), s.astype(MXU_DTYPE),
                  preferred_element_type=jnp.float32) + b_ref[...].astype(jnp.float32)
    out = jnp.where(out >= 0.0, out, slope * out)
    o_ref[...] = out.astype(o_ref.dtype)


def final_conv(dx, x_s, w, b, *, slope=LEAKY_SLOPE):
    N, C, HW = dx.shape
    Cout = w.shape[0]
    return pl.pallas_call(
        functools.partial(_final_kernel, slope=slope),
        grid=(N,),
        in_specs=[pl.BlockSpec((None, C, HW), lambda n: (n, 0, 0)),
                  pl.BlockSpec((None, C, HW), lambda n: (n, 0, 0)),
                  pl.BlockSpec(w.shape, lambda n: (0, 0)),
                  pl.BlockSpec(b.shape, lambda n: (0, 0))],
        out_specs=pl.BlockSpec((None, Cout, HW), lambda n: (n, 0, 0)),
        out_shape=jax.ShapeDtypeStruct((N, Cout, HW), dx.dtype),
        compiler_params=pltpu.CompilerParams(
            dimension_semantics=("parallel",),
            vmem_limit_bytes=VMEM_LIMIT),
    )(dx, x_s, w, b)


# ---------------------------------------------------------------------------
# SPADEResnetBlock forward (NCHW in / NCHW out, like PyTorch).
# ---------------------------------------------------------------------------
def spade_resnet_block(x_nchw, seg_nchw, P, *, spade_ks):
    N, fin, H, W = x_nchw.shape
    HW = H * W
    x = x_nchw.reshape(N, fin, HW)                 # free reshapes, stays NCHW-major
    seg = seg_nchw.reshape(N, seg_nchw.shape[1], HW)

    # Train-mode param-free BatchNorm statistics (matches the original kernel's
    # SPADE definition); norm_0 and norm_s share them since both normalize x.
    stats_x = batch_stats(x)

    if P["conv_s"] is not None:                    # learned shortcut
        x_s = spade_conv(x, seg, stats_x, P["norm_s"],
                         P["conv_s"]["w"], P["conv_s"]["b"],
                         ks=spade_ks, kc=1, H=H, W=W, pre_relu=False)
    else:
        x_s = x

    dx = spade_conv(x, seg, stats_x, P["norm_0"],
                    P["conv_0"]["w"], P["conv_0"]["b"],
                    ks=spade_ks, kc=3, H=H, W=W, pre_relu=True)
    stats_dx = batch_stats(dx)
    dx = spade_conv(dx, seg, stats_dx, P["norm_1"],
                    P["conv_1"]["w"], P["conv_1"]["b"],
                    ks=spade_ks, kc=3, H=H, W=W, pre_relu=True)

    out = final_conv(dx, x_s, P["final"]["w"], P["final"]["b"])
    fout = P["final"]["w"].shape[0]
    return out.reshape(N, fout, H, W)


# ---------------------------------------------------------------------------
# Deterministic synthetic parameters (PyTorch-style shapes) + kernel prep.
# ---------------------------------------------------------------------------
def _conv_init(key, k, cin, cout, bias=True):
    kw_, kb_ = jax.random.split(key)
    w = 0.1 * jax.random.normal(kw_, (k, k, cin, cout), jnp.float32)
    b = 0.05 * jax.random.normal(kb_, (cout,), jnp.float32) if bias else None
    return w, b


def _spade_init(key, ks, norm_c, cond_c, nhidden):
    k1, k2, k3 = jax.random.split(key, 3)
    w_sh, b_sh = _conv_init(k1, ks, cond_c, nhidden)
    w_g, b_g = _conv_init(k2, ks, nhidden, norm_c)
    w_b, b_b = _conv_init(k3, ks, nhidden, norm_c)
    return dict(w_sh=w_sh, b_sh=b_sh, w_g=w_g, b_g=b_g, w_b=w_b, b_b=b_b)


def init_params(key, fin, fout, sem_c, ks, nhidden):
    fmiddle = min(fin, fout)
    learned = fin != fout
    keys = jax.random.split(key, 7)
    R = {}
    R["conv_0_w"], R["conv_0_b"] = _conv_init(keys[0], 3, fin, fmiddle)
    R["conv_1_w"], R["conv_1_b"] = _conv_init(keys[1], 3, fmiddle, fout)
    R["conv_s_w"] = (_conv_init(keys[2], 1, fin, fout, bias=False)[0]
                     if learned else None)
    R["final_w"], R["final_b"] = _conv_init(keys[3], 1, fout, fout)
    R["norm_0"] = _spade_init(keys[4], ks, fin, sem_c, nhidden)
    R["norm_1"] = _spade_init(keys[5], ks, fmiddle, sem_c, nhidden)
    R["norm_s"] = _spade_init(keys[6], ks, fin, sem_c, nhidden) if learned else None
    return R


def _prep_conv(w, b):
    """(K,K,Cin,Cout)+(Cout,) -> matmul form (Cout, K*K*Cin), (Cout, 1)."""
    k, _, cin, cout = w.shape
    w2 = w.reshape(k * k * cin, cout).T            # columns ordered (kh, kw, cin)
    b2 = jnp.zeros((cout, 1), w.dtype) if b is None else b.reshape(cout, 1)
    return w2, b2


def _prep_norm(n):
    if n is None:
        return None
    w_sh, b_sh = _prep_conv(n["w_sh"], n["b_sh"])
    w_g, b_g = _prep_conv(n["w_g"], n["b_g"])
    w_b, b_b = _prep_conv(n["w_b"], n["b_b"])
    # mlp_gamma and mlp_beta fused into a single conv: concat along Cout.
    return dict(w_sh=w_sh, b_sh=b_sh,
                w_gb=jnp.concatenate([w_g, w_b], axis=0),
                b_gb=jnp.concatenate([b_g, b_b], axis=0))


def prep_params(R):
    P = {}
    for name in ("conv_0", "conv_1", "final"):
        w, b = _prep_conv(R[name + "_w"], R[name + "_b"])
        P[name] = dict(w=w, b=b)
    if R["conv_s_w"] is not None:
        w, b = _prep_conv(R["conv_s_w"], None)     # conv_s has no bias
        P["conv_s"] = dict(w=w, b=b)
    else:
        P["conv_s"] = None
    P["norm_0"] = _prep_norm(R["norm_0"])
    P["norm_1"] = _prep_norm(R["norm_1"])
    P["norm_s"] = _prep_norm(R["norm_s"])
    return P


# ---------------------------------------------------------------------------
# Pure-JAX reference (for correctness checking only).
# ---------------------------------------------------------------------------
def _ref_conv(x, w, b):
    out = lax.conv_general_dilated(
        x, w, window_strides=(1, 1), padding="SAME",
        dimension_numbers=("NCHW", "HWIO", "NCHW"))
    if b is not None:
        out = out + b.reshape(1, -1, 1, 1)
    return out


def _ref_spade(x, seg, n, eps=BN_EPS):
    mean = jnp.mean(x, axis=(0, 2, 3), keepdims=True)
    var = jnp.mean(jnp.square(x - mean), axis=(0, 2, 3), keepdims=True)
    xhat = (x - mean) * lax.rsqrt(var + eps)
    actv = jnp.maximum(_ref_conv(seg, n["w_sh"], n["b_sh"]), 0.0)
    gamma = _ref_conv(actv, n["w_g"], n["b_g"])
    beta = _ref_conv(actv, n["w_b"], n["b_b"])
    return xhat * (1.0 + gamma) + beta


def _ref_block(x, seg, R):
    if R["conv_s_w"] is not None:
        x_s = _ref_conv(_ref_spade(x, seg, R["norm_s"]), R["conv_s_w"], None)
    else:
        x_s = x
    dx = _ref_conv(jnp.maximum(_ref_spade(x, seg, R["norm_0"]), 0.0),
                   R["conv_0_w"], R["conv_0_b"])
    dx = _ref_conv(jnp.maximum(_ref_spade(dx, seg, R["norm_1"]), 0.0),
                   R["conv_1_w"], R["conv_1_b"])
    out = _ref_conv(x_s + dx, R["final_w"], R["final_b"])
    return jnp.where(out >= 0.0, out, LEAKY_SLOPE * out)


if __name__ == "__main__":
    key = jax.random.PRNGKey(0)
    N, H, W = 2, 16, 16
    fin, fout = 4, 8                       # fin != fout -> learned shortcut path
    num_layers, embedding_size = 2, 4
    spade_ks = 3                           # opts.spade_k_size
    sem_c = num_layers * embedding_size    # opts.num_layers * opts.embedding_size
    nhidden = 32                           # SPADE MLP hidden width

    kx, kseg, kp = jax.random.split(key, 3)
    # PyTorch-convention NCHW inputs (no transposes needed for the kernels).
    x = jax.random.normal(kx, (N, fin, H, W), jnp.float32)
    seg = jax.random.normal(kseg, (N, sem_c, H, W), jnp.float32)

    R = init_params(kp, fin, fout, sem_c, spade_ks, nhidden)
    P = prep_params(R)

    fwd = jax.jit(functools.partial(spade_resnet_block, spade_ks=spade_ks))
    out = fwd(x, seg, P)
    jax.block_until_ready(out)

    assert out.shape == (N, fout, H, W), out.shape
    assert bool(jnp.all(jnp.isfinite(out)))

    # Cross-check against a pure-JAX reference of the same forward pass.
    ref = _ref_block(x, seg, R)
    err = float(jnp.max(jnp.abs(out - ref)))
    assert err < 5e-2, f"kernel/reference mismatch: max abs err {err}"

    print("KERNEL_OK")
</pallas_src>

<mosaic_0001>
module attributes {stable_mosaic.version = 11 : i64} {
  func.func @_stats_kernel(%arg0: i32, %arg1: memref<1x4x256xf32, #tpu.memory_space<vmem>>, %arg2: memref<4x2xf32, #tpu.memory_space<vmem>>) attributes {dimension_semantics = [#tpu.dimension_semantics<arbitrary>], iteration_bounds = array<i64: 2>, scalar_prefetch = 0 : i64, scratch_operands = 0 : i64, tpu.core_type = #tpu.core_type<tc>, window_params = [{transform_indices = @transform_0, window_bounds = array<i64: 1, 4, 256>}, {pipeline_mode = #tpu.pipeline_mode<synchronous>, transform_indices = @transform_1, window_bounds = array<i64: 4, 2>}]} {
    %c0 = arith.constant 0 : index
    %c0_0 = arith.constant 0 : index
    %c0_1 = arith.constant 0 : index
    %0 = vector.load %arg1[%c0, %c0_0, %c0_1] : memref<1x4x256xf32, #tpu.memory_space<vmem>>, vector<1x4x256xf32>
    %1 = vector.shape_cast %0 : vector<1x4x256xf32> to vector<4x256xf32>
    %cst = arith.constant dense<0.000000e+00> : vector<4xf32>
    %2 = vector.multi_reduction <add>, %1, %cst [1] : vector<4x256xf32> to vector<4xf32>
    %3 = vector.shape_cast %2 : vector<4xf32> to vector<4x1xf32>
    %4 = arith.mulf %1, %1 : vector<4x256xf32>
    %cst_2 = arith.constant dense<0.000000e+00> : vector<4xf32>
    %5 = vector.multi_reduction <add>, %4, %cst_2 [1] : vector<4x256xf32> to vector<4xf32>
    %6 = vector.shape_cast %5 : vector<4xf32> to vector<4x1xf32>
    %c0_i32 = arith.constant 0 : i32
    %7 = arith.cmpi eq, %arg0, %c0_i32 : i32
    %8 = arith.extui %7 : i1 to i32
    %c0_i32_3 = arith.constant 0 : i32
    %9 = arith.cmpi ne, %8, %c0_i32_3 : i32
    scf.if %9 {
      %cst_12 = arith.constant 0.000000e+00 : f32
      %19 = vector.broadcast %cst_12 : f32 to vector<4x2xf32>
      %c0_13 = arith.constant 0 : index
      %c0_14 = arith.constant 0 : index
      %20 = vector.load %arg2[%c0_13, %c0_14] : memref<4x2xf32, #tpu.memory_space<vmem>>, vector<4x2xf32>
      tpu.vector_store %arg2[%c0_13, %c0_14], %19 {strides = array<i32>} : memref<4x2xf32, #tpu.memory_space<vmem>>, vector<4x2xf32>,
    } else {
    }
    %c0_4 = arith.constant 0 : index
    %c0_5 = arith.constant 0 : index
    %10 = vector.load %arg2[%c0_4, %c0_5] : memref<4x2xf32, #tpu.memory_space<vmem>>, vector<4x1xf32>
    %11 = arith.addf %10, %3 : vector<4x1xf32>
    %c0_6 = arith.constant 0 : index
    %c0_7 = arith.constant 0 : index
    %12 = vector.load %arg2[%c0_6, %c0_7] : memref<4x2xf32, #tpu.memory_space<vmem>>, vector<4x1xf32>
    tpu.vector_store %arg2[%c0_6, %c0_7], %11 {strides = array<i32>} : memref<4x2xf32, #tpu.memory_space<vmem>>, vector<4x1xf32>,
    %c0_8 = arith.constant 0 : index
    %c1 = arith.constant 1 : index
    %13 = vector.load %arg2[%c0_8, %c1] : memref<4x2xf32, #tpu.memory_space<vmem>>, vector<4x1xf32>
    %14 = arith.addf %13, %6 : vector<4x1xf32>
    %c0_9 = arith.constant 0 : index
    %c1_10 = arith.constant 1 : index
    %15 = vector.load %arg2[%c0_9, %c1_10] : memref<4x2xf32, #tpu.memory_space<vmem>>, vector<4x1xf32>
    tpu.vector_store %arg2[%c0_9, %c1_10], %14 {strides = array<i32>} : memref<4x2xf32, #tpu.memory_space<vmem>>, vector<4x1xf32>,
    %c1_i32 = arith.constant 1 : i32
    %16 = arith.cmpi eq, %arg0, %c1_i32 : i32
    %17 = arith.extui %16 : i1 to i32
    %c0_i32_11 = arith.constant 0 : i32
    %18 = arith.cmpi ne, %17, %c0_i32_11 : i32
    scf.if %18 {
      %c0_12 = arith.constant 0 : index
      %c0_13 = arith.constant 0 : index
      %19 = vector.load %arg2[%c0_12, %c0_13] : memref<4x2xf32, #tpu.memory_space<vmem>>, vector<4x1xf32>
      %cst_14 = arith.constant 5.120000e+02 : f32
      %20 = vector.broadcast %cst_14 : f32 to vector<4x1xf32>
      %21 = arith.divf %19, %20 : vector<4x1xf32>
      %c0_15 = arith.constant 0 : index
      %c1_16 = arith.constant 1 : index
      %22 = vector.load %arg2[%c0_15, %c1_16] : memref<4x2xf32, #tpu.memory_space<vmem>>, vector<4x1xf32>
      %cst_17 = arith.constant 5.120000e+02 : f32
      %23 = vector.broadcast %cst_17 : f32 to vector<4x1xf32>
      %24 = arith.divf %22, %23 : vector<4x1xf32>
      %25 = arith.mulf %21, %21 : vector<4x1xf32>
      %26 = arith.subf %24, %25 : vector<4x1xf32>
      %c0_18 = arith.constant 0 : index
      %c0_19 = arith.constant 0 : index
      %27 = vector.load %arg2[%c0_18, %c0_19] : memref<4x2xf32, #tpu.memory_space<vmem>>, vector<4x1xf32>
      tpu.vector_store %arg2[%c0_18, %c0_19], %21 {strides = array<i32>} : memref<4x2xf32, #tpu.memory_space<vmem>>, vector<4x1xf32>,
      %cst_20 = arith.constant 9.99999974E-6 : f32
      %28 = vector.broadcast %cst_20 : f32 to vector<4x1xf32>
      %29 = arith.addf %26, %28 : vector<4x1xf32>
      %30 = math.rsqrt %29 : vector<4x1xf32>
      %c0_21 = arith.constant 0 : index
      %c1_22 = arith.constant 1 : index
      %31 = vector.load %arg2[%c0_21, %c1_22] : memref<4x2xf32, #tpu.memory_space<vmem>>, vector<4x1xf32>
      tpu.vector_store %arg2[%c0_21, %c1_22], %30 {strides = array<i32>} : memref<4x2xf32, #tpu.memory_space<vmem>>, vector<4x1xf32>,
    } else {
    }
    return
  }
  func.func @transform_0(%arg0: i32) -> (i32, i32, i32) {
    %c0_i32 = arith.constant 0 : i32
    %c0_i32_0 = arith.constant 0 : i32
    %c0_i32_1 = arith.constant 0 : i32
    return %arg0, %c0_i32, %c0_i32_0 : i32, i32, i32
  }
  func.func @transform_1(%arg0: i32) -> (i32, i32) {
    %c0_i32 = arith.constant 0 : i32
    %c0_i32_0 = arith.constant 0 : i32
    %c0_i32_1 = arith.constant 0 : i32
    return %c0_i32, %c0_i32_0 : i32, i32
  }
}

module attributes {stable_mosaic.version = 11 : i64} {
  func.func @kernel(%arg0: i32, %arg1: memref<1x4x256xf32, #tpu.memory_space<vmem>>, %arg2: memref<1x8x256xf32, #tpu.memory_space<vmem>>, %arg3: memref<4x2xf32, #tpu.memory_space<vmem>>, %arg4: memref<3x256xf32, #tpu.memory_space<vmem>>, %arg5: memref<3x256xf32, #tpu.memory_space<vmem>>, %arg6: memref<32x72xf32, #tpu.memory_space<vmem>>, %arg7: memref<32x1xf32, #tpu.memory_space<vmem>>, %arg8: memref<8x288xf32, #tpu.memory_space<vmem>>, %arg9: memref<8x1xf32, #tpu.memory_space<vmem>>, %arg10: memref<4x36xf32, #tpu.memory_space<vmem>>, %arg11: memref<4x1xf32, #tpu.memory_space<vmem>>, %arg12: memref<1x4x256xf32, #tpu.memory_space<vmem>>, %arg13: memref<8x290xf32, #tpu.memory_space<vmem>>, %arg14: memref<9x8x256xf32, #tpu.memory_space<vmem>>, %arg15: memref<32x290xf32, #tpu.memory_space<vmem>>, %arg16: memref<9x32x256xf32, #tpu.memory_space<vmem>>, %arg17: memref<4x290xf32, #tpu.memory_space<vmem>>, %arg18: memref<9x4x256xf32, #tpu.memory_space<vmem>>) attributes {dimension_semantics = [#tpu.dimension_semantics<parallel>], iteration_bounds = array<i64: 2>, scalar_prefetch = 0 : i64, scratch_operands = 6 : i64, tpu.core_type = #tpu.core_type<tc>, window_params = [{transform_indices = @transform_0, window_bounds = array<i64: 1, 4, 256>}, {transform_indices = @transform_1, window_bounds = array<i64: 1, 8, 256>}, {pipeline_mode = #tpu.pipeline_mode<synchronous>, transform_indices = @transform_2, window_bounds = array<i64: 4, 2>}, {pipeline_mode = #tpu.pipeline_mode<synchronous>, transform_indices = @transform_3, window_bounds = array<i64: 3, 256>}, {pipeline_mode = #tpu.pipeline_mode<synchronous>, transform_indices = @transform_4, window_bounds = array<i64: 3, 256>}, {pipeline_mode = #tpu.pipeline_mode<synchronous>, transform_indices = @transform_5, window_bounds = array<i64: 32, 72>}, {pipeline_mode = #tpu.pipeline_mode<synchronous>, transform_indices = @transform_6, window_bounds = array<i64: 32, 1>}, {pipeline_mode = #tpu.pipeline_mode<synchronous>, transform_indices = @transform_7, window_bounds = array<i64: 8, 288>}, {pipeline_mode = #tpu.pipeline_mode<synchronous>, transform_indices = @transform_8, window_bounds = array<i64: 8, 1>}, {pipeline_mode = #tpu.pipeline_mode<synchronous>, transform_indices = @transform_9, window_bounds = array<i64: 4, 36>}, {pipeline_mode = #tpu.pipeline_mode<synchronous>, transform_indices = @transform_10, window_bounds = array<i64: 4, 1>}, {transform_indices = @transform_11, window_bounds = array<i64: 1, 4, 256>}]} {
    %c0 = arith.constant 0 : index
    %c0_0 = arith.constant 0 : index
    %c0_1 = arith.constant 0 : index
    %0 = vector.load %arg2[%c0, %c0_0, %c0_1] : memref<1x8x256xf32, #tpu.memory_space<vmem>>, vector<1x8x256xf32>
    %1 = vector.shape_cast %0 : vector<1x8x256xf32> to vector<8x256xf32>
    %cst = arith.constant 0.000000e+00 : f32
    %2 = vector.broadcast %cst : f32 to vector<8x290xf32>
    %c0_2 = arith.constant 0 : index
    %c0_3 = arith.constant 0 : index
    %3 = vector.load %arg13[%c0_2, %c0_3] : memref<8x290xf32, #tpu.memory_space<vmem>>, vector<8x290xf32>
    tpu.vector_store %arg13[%c0_2, %c0_3], %2 {strides = array<i32>} : memref<8x290xf32, #tpu.memory_space<vmem>>, vector<8x290xf32>,
    %c0_4 = arith.constant 0 : index
    %c17 = arith.constant 17 : index
    %4 = vector.load %arg13[%c0_4, %c17] : memref<8x290xf32, #tpu.memory_space<vmem>>, vector<8x256xf32>
    tpu.vector_store %arg13[%c0_4, %c17], %1 {strides = array<i32>} : memref<8x290xf32, #tpu.memory_space<vmem>>, vector<8x256xf32>,
    %c0_5 = arith.constant 0 : index
    %c0_6 = arith.constant 0 : index
    %5 = vector.load %arg13[%c0_5, %c0_6] : memref<8x290xf32, #tpu.memory_space<vmem>>, vector<8x256xf32>
    %c0_7 = arith.constant 0 : index
    %c0_8 = arith.constant 0 : index
    %6 = vector.load %arg4[%c0_7, %c0_8] : memref<3x256xf32, #tpu.memory_space<vmem>>, vector<1x256xf32>
    %7 = vector.broadcast %6 : vector<1x256xf32> to vector<8x256xf32>
    %8 = arith.mulf %5, %7 : vector<8x256xf32>
    %c0_9 = arith.constant 0 : index
    %c0_10 = arith.constant 0 : index
    %c0_11 = arith.constant 0 : index
    %9 = vector.load %arg14[%c0_9, %c0_10, %c0_11] : memref<9x8x256xf32, #tpu.memory_space<vmem>>, vector<1x8x256xf32>
    %10 = vector.shape_cast %9 : vector<1x8x256xf32> to vector<8x256xf32>
    %11 = vector.shape_cast %8 : vector<8x256xf32> to vector<1x8x256xf32>
    tpu.vector_store %arg14[%c0_9, %c0_10, %c0_11], %11 {strides = array<i32>} : memref<9x8x256xf32, #tpu.memory_space<vmem>>, vector<1x8x256xf32>,
    %c0_12 = arith.constant 0 : index
    %c1 = arith.constant 1 : index
    %12 = vector.load %arg13[%c0_12, %c1] : memref<8x290xf32, #tpu.memory_space<vmem>>, vector<8x256xf32>
    %c1_13 = arith.constant 1 : index
    %c0_14 = arith.constant 0 : index
    %c0_15 = arith.constant 0 : index
    %13 = vector.load %arg14[%c1_13, %c0_14, %c0_15] : memref<9x8x256xf32, #tpu.memory_space<vmem>>, vector<1x8x256xf32>
    %14 = vector.shape_cast %13 : vector<1x8x256xf32> to vector<8x256xf32>
    %15 = vector.shape_cast %12 : vector<8x256xf32> to vector<1x8x256xf32>
    tpu.vector_store %arg14[%c1_13, %c0_14, %c0_15], %15 {strides = array<i32>} : memref<9x8x256xf32, #tpu.memory_space<vmem>>, vector<1x8x256xf32>,
    %c0_16 = arith.constant 0 : index
    %c2 = arith.constant 2 : index
    %16 = vector.load %arg13[%c0_16, %c2] : memref<8x290xf32, #tpu.memory_space<vmem>>, vector<8x256xf32>
    %c2_17 = arith.constant 2 : index
    %c0_18 = arith.constant 0 : index
    %17 = vector.load %arg4[%c2_17, %c0_18] : memref<3x256xf32, #tpu.memory_space<vmem>>, vector<1x256xf32>
    %18 = vector.broadcast %17 : vector<1x256xf32> to vector<8x256xf32>
    %19 = arith.mulf %16, %18 : vector<8x256xf32>
    %c2_19 = arith.constant 2 : index
    %c0_20 = arith.constant 0 : index
    %c0_21 = arith.constant 0 : index
    %20 = vector.load %arg14[%c2_19, %c0_20, %c0_21] : memref<9x8x256xf32, #tpu.memory_space<vmem>>, vector<1x8x256xf32>
    %21 = vector.shape_cast %20 : vector<1x8x256xf32> to vector<8x256xf32>
    %22 = vector.shape_cast %19 : vector<8x256xf32> to vector<1x8x256xf32>
    tpu.vector_store %arg14[%c2_19, %c0_20, %c0_21], %22 {strides = array<i32>} : memref<9x8x256xf32, #tpu.memory_space<vmem>>, vector<1x8x256xf32>,
    %c0_22 = arith.constant 0 : index
    %c16 = arith.constant 16 : index
    %23 = vector.load %arg13[%c0_22, %c16] : memref<8x290xf32, #tpu.memory_space<vmem>>, vector<8x256xf32>
    %c0_23 = arith.constant 0 : index
    %c0_24 = arith.constant 0 : index
    %24 = vector.load %arg4[%c0_23, %c0_24] : memref<3x256xf32, #tpu.memory_space<vmem>>, vector<1x256xf32>
    %25 = vector.broadcast %24 : vector<1x256xf32> to vector<8x256xf32>
    %26 = arith.mulf %23, %25 : vector<8x256xf32>
    %c3 = arith.constant 3 : index
    %c0_25 = arith.constant 0 : index
    %c0_26 = arith.constant 0 : index
    %27 = vector.load %arg14[%c3, %c0_25, %c0_26] : memref<9x8x256xf32, #tpu.memory_space<vmem>>, vector<1x8x256xf32>
    %28 = vector.shape_cast %27 : vector<1x8x256xf32> to vector<8x256xf32>
    %29 = vector.shape_cast %26 : vector<8x256xf32> to vector<1x8x256xf32>
    tpu.vector_store %arg14[%c3, %c0_25, %c0_26], %29 {strides = array<i32>} : memref<9x8x256xf32, #tpu.memory_space<vmem>>, vector<1x8x256xf32>,
    %c0_27 = arith.constant 0 : index
    %c17_28 = arith.constant 17 : index
    %30 = vector.load %arg13[%c0_27, %c17_28] : memref<8x290xf32, #tpu.memory_space<vmem>>, vector<8x256xf32>
    %c4 = arith.constant 4 : index
    %c0_29 = arith.constant 0 : index
    %c0_30 = arith.constant 0 : index
    %31 = vector.load %arg14[%c4, %c0_29, %c0_30] : memref<9x8x256xf32, #tpu.memory_space<vmem>>, vector<1x8x256xf32>
    %32 = vector.shape_cast %31 : vector<1x8x256xf32> to vector<8x256xf32>
    %33 = vector.shape_cast %30 : vector<8x256xf32> to vector<1x8x256xf32>
    tpu.vector_store %arg14[%c4, %c0_29, %c0_30], %33 {strides = array<i32>} : memref<9x8x256xf32, #tpu.memory_space<vmem>>, vector<1x8x256xf32>,
    %c0_31 = arith.constant 0 : index
    %c18 = arith.constant 18 : index
    %34 = vector.load %arg13[%c0_31, %c18] : memref<8x290xf32, #tpu.memory_space<vmem>>, vector<8x256xf32>
    %c2_32 = arith.constant 2 : index
    %c0_33 = arith.constant 0 : index
    %35 = vector.load %arg4[%c2_32, %c0_33] : memref<3x256xf32, #tpu.memory_space<vmem>>, vector<1x256xf32>
    %36 = vector.broadcast %35 : vector<1x256xf32> to vector<8x256xf32>
    %37 = arith.mulf %34, %36 : vector<8x256xf32>
    %c5 = arith.constant 5 : index
    %c0_34 = arith.constant 0 : index
    %c0_35 = arith.constant 0 : index
    %38 = vector.load %arg14[%c5, %c0_34, %c0_35] : memref<9x8x256xf32, #tpu.memory_space<vmem>>, vector<1x8x256xf32>
    %39 = vector.shape_cast %38 : vector<1x8x256xf32> to vector<8x256xf32>
    %40 = vector.shape_cast %37 : vector<8x256xf32> to vector<1x8x256xf32>
    tpu.vector_store %arg14[%c5, %c0_34, %c0_35], %40 {strides = array<i32>} : memref<9x8x256xf32, #tpu.memory_space<vmem>>, vector<1x8x256xf32>,
    %c0_36 = arith.constant 0 : index
    %c32 = arith.constant 32 : index
    %41 = vector.load %arg13[%c0_36, %c32] : memref<8x290xf32, #tpu.memory_space<vmem>>, vector<8x256xf32>
    %c0_37 = arith.constant 0 : index
    %c0_38 = arith.constant 0 : index
    %42 = vector.load %arg4[%c0_37, %c0_38] : memref<3x256xf32, #tpu.memory_space<vmem>>, vector<1x256xf32>
    %43 = vector.broadcast %42 : vector<1x256xf32> to vector<8x256xf32>
    %44 = arith.mulf %41, %43 : vector<8x256xf32>
    %c6 = arith.constant 6 : index
    %c0_39 = arith.constant 0 : index
    %c0_40 = arith.constant 0 : index
    %45 = vector.load %arg14[%c6, %c0_39, %c0_40] : memref<9x8x256xf32, #tpu.memory_space<vmem>>, vector<1x8x256xf32>
    %46 = vector.shape_cast %45 : vector<1x8x256xf32> to vector<8x256xf32>
    %47 = vector.shape_cast %44 : vector<8x256xf32> to vector<1x8x256xf32>
    tpu.vector_store %arg14[%c6, %c0_39, %c0_40], %47 {strides = array<i32>} : memref<9x8x256xf32, #tpu.memory_space<vmem>>, vector<1x8x256xf32>,
    %c0_41 = arith.constant 0 : index
    %c33 = arith.constant 33 : index
    %48 = vector.load %arg13[%c0_41, %c33] : memref<8x290xf32, #tpu.memory_space<vmem>>, vector<8x256xf32>
    %c7 = arith.constant 7 : index
    %c0_42 = arith.constant 0 : index
    %c0_43 = arith.constant 0 : index
    %49 = vector.load %arg14[%c7, %c0_42, %c0_43] : memref<9x8x256xf32, #tpu.memory_space<vmem>>, vector<1x8x256xf32>
    %50 = vector.shape_cast %49 : vector<1x8x256xf32> to vector<8x256xf32>
    %51 = vector.shape_cast %48 : vector<8x256xf32> to vector<1x8x256xf32>
    tpu.vector_store %arg14[%c7, %c0_42, %c0_43], %51 {strides = array<i32>} : memref<9x8x256xf32, #tpu.memory_space<vmem>>, vector<1x8x256xf32>,
    %c0_44 = arith.constant 0 : index
    %c34 = arith.constant 34 : index
    %52 = vector.load %arg13[%c0_44, %c34] : memref<8x290xf32, #tpu.memory_space<vmem>>, vector<8x256xf32>
    %c2_45 = arith.constant 2 : index
    %c0_46 = arith.constant 0 : index
    %53 = vector.load %arg4[%c2_45, %c0_46] : memref<3x256xf32, #tpu.memory_space<vmem>>, vector<1x256xf32>
    %54 = vector.broadcast %53 : vector<1x256xf32> to vector<8x256xf32>
    %55 = arith.mulf %52, %54 : vector<8x256xf32>
    %c8 = arith.constant 8 : index
    %c0_47 = arith.constant 0 : index
    %c0_48 = arith.constant 0 : index
    %56 = vector.load %arg14[%c8, %c0_47, %c0_48] : memref<9x8x256xf32, #tpu.memory_space<vmem>>, vector<1x8x256xf32>
    %57 = vector.shape_cast %56 : vector<1x8x256xf32> to vector<8x256xf32>
    %58 = vector.shape_cast %55 : vector<8x256xf32> to vector<1x8x256xf32>
    tpu.vector_store %arg14[%c8, %c0_47, %c0_48], %58 {strides = array<i32>} : memref<9x8x256xf32, #tpu.memory_space<vmem>>, vector<1x8x256xf32>,
    %c0_49 = arith.constant 0 : index
    %c0_50 = arith.constant 0 : index
    %c0_51 = arith.constant 0 : index
    %59 = vector.load %arg14[%c0_49, %c0_50, %c0_51] : memref<9x8x256xf32, #tpu.memory_space<vmem>>, vector<9x8x256xf32>
    %60 = vector.shape_cast %59 : vector<9x8x256xf32> to vector<72x256xf32>
    %c0_52 = arith.constant 0 : index
    %c0_53 = arith.constant 0 : index
    %61 = vector.load %arg6[%c0_52, %c0_53] : memref<32x72xf32, #tpu.memory_space<vmem>>, vector<32x72xf32>
    %cst_54 = arith.constant dense<0.000000e+00> : vector<32x256xf32>
    %62 = tpu.matmul %61, %60, %cst_54 {dimension_numbers = #tpu.dot_dimension_numbers<[1], [0], [0], [1], [0, 0, 1, 1], [], []>} : vector<32x72xf32>, vector<72x256xf32>, vector<32x256xf32> -> vector<32x256xf32>
    %c0_55 = arith.constant 0 : index
    %c0_56 = arith.constant 0 : index
    %63 = vector.load %arg7[%c0_55, %c0_56] : memref<32x1xf32, #tpu.memory_space<vmem>>, vector<32x1xf32>
    %64 = vector.broadcast %63 : vector<32x1xf32> to vector<32x256xf32>
    %65 = arith.addf %62, %64 : vector<32x256xf32>
    %cst_57 = arith.constant 0.000000e+00 : f32
    %66 = vector.broadcast %cst_57 : f32 to vector<32x256xf32>
    %67 = arith.maximumf %65, %66 : vector<32x256xf32>
    %cst_58 = arith.constant 0.000000e+00 : f32
    %68 = vector.broadcast %cst_58 : f32 to vector<32x290xf32>
    %c0_59 = arith.constant 0 : index
    %c0_60 = arith.constant 0 : index
    %69 = vector.load %arg15[%c0_59, %c0_60] : memref<32x290xf32, #tpu.memory_space<vmem>>, vector<32x290xf32>
    tpu.vector_store %arg15[%c0_59, %c0_60], %68 {strides = array<i32>} : memref<32x290xf32, #tpu.memory_space<vmem>>, vector<32x290xf32>,
    %c0_61 = arith.constant 0 : index
    %c17_62 = arith.constant 17 : index
    %70 = vector.load %arg15[%c0_61, %c17_62] : memref<32x290xf32, #tpu.memory_space<vmem>>, vector<32x256xf32>
    tpu.vector_store %arg15[%c0_61, %c17_62], %67 {strides = array<i32>} : memref<32x290xf32, #tpu.memory_space<vmem>>, vector<32x256xf32>,
    %c0_63 = arith.constant 0 : index
    %c0_64 = arith.constant 0 : index
    %71 = vector.load %arg15[%c0_63, %c0_64] : memref<32x290xf32, #tpu.memory_space<vmem>>, vector<32x256xf32>
    %c0_65 = arith.constant 0 : index
    %c0_66 = arith.constant 0 : index
    %72 = vector.load %arg4[%c0_65, %c0_66] : memref<3x256xf32, #tpu.memory_space<vmem>>, vector<1x256xf32>
    %73 = vector.broadcast %72 : vector<1x256xf32> to vector<32x256xf32>
    %74 = arith.mulf %71, %73 : vector<32x256xf32>
    %c0_67 = arith.constant 0 : index
    %c0_68 = arith.constant 0 : index
    %c0_69 = arith.constant 0 : index
    %75 = vector.load %arg16[%c0_67, %c0_68, %c0_69] : memref<9x32x256xf32, #tpu.memory_space<vmem>>, vector<1x32x256xf32>
    %76 = vector.shape_cast %75 : vector<1x32x256xf32> to vector<32x256xf32>
    %77 = vector.shape_cast %74 : vector<32x256xf32> to vector<1x32x256xf32>
    tpu.vector_store %arg16[%c0_67, %c0_68, %c0_69], %77 {strides = array<i32>} : memref<9x32x256xf32, #tpu.memory_space<vmem>>, vector<1x32x256xf32>,
    %c0_70 = arith.constant 0 : index
    %c1_71 = arith.constant 1 : index
    %78 = vector.load %arg15[%c0_70, %c1_71] : memref<32x290xf32, #tpu.memory_space<vmem>>, vector<32x256xf32>
    %c1_72 = arith.constant 1 : index
    %c0_73 = arith.constant 0 : index
    %c0_74 = arith.constant 0 : index
    %79 = vector.load %arg16[%c1_72, %c0_73, %c0_74] : memref<9x32x256xf32, #tpu.memory_space<vmem>>, vector<1x32x256xf32>
    %80 = vector.shape_cast %79 : vector<1x32x256xf32> to vector<32x256xf32>
    %81 = vector.shape_cast %78 : vector<32x256xf32> to vector<1x32x256xf32>
    tpu.vector_store %arg16[%c1_72, %c0_73, %c0_74], %81 {strides = array<i32>} : memref<9x32x256xf32, #tpu.memory_space<vmem>>, vector<1x32x256xf32>,
    %c0_75 = arith.constant 0 : index
    %c2_76 = arith.constant 2 : index
    %82 = vector.load %arg15[%c0_75, %c2_76] : memref<32x290xf32, #tpu.memory_space<vmem>>, vector<32x256xf32>
    %c2_77 = arith.constant 2 : index
    %c0_78 = arith.constant 0 : index
    %83 = vector.load %arg4[%c2_77, %c0_78] : memref<3x256xf32, #tpu.memory_space<vmem>>, vector<1x256xf32>
    %84 = vector.broadcast %83 : vector<1x256xf32> to vector<32x256xf32>
    %85 = arith.mulf %82, %84 : vector<32x256xf32>
    %c2_79 = arith.constant 2 : index
    %c0_80 = arith.constant 0 : index
    %c0_81 = arith.constant 0 : index
    %86 = vector.load %arg16[%c2_79, %c0_80, %c0_81] : memref<9x32x256xf32, #tpu.memory_space<vmem>>, vector<1x32x256xf32>
    %87 = vector.shape_cast %86 : vector<1x32x256xf32> to vector<32x256xf32>
    %88 = vector.shape_cast %85 : vector<32x256xf32> to vector<1x32x256xf32>
    tpu.vector_store %arg16[%c2_79, %c0_80, %c0_81], %88 {strides = array<i32>} : memref<9x32x256xf32, #tpu.memory_space<vmem>>, vector<1x32x256xf32>,
    %c0_82 = arith.constant 0 : index
    %c16_83 = arith.constant 16 : index
    %89 = vector.load %arg15[%c0_82, %c16_83] : memref<32x290xf32, #tpu.memory_space<vmem>>, vector<32x256xf32>
    %c0_84 = arith.constant 0 : index
    %c0_85 = arith.constant 0 : index
    %90 = vector.load %arg4[%c0_84, %c0_85] : memref<3x256xf32, #tpu.memory_space<vmem>>, vector<1x256xf32>
    %91 = vector.broadcast %90 : vector<1x256xf32> to vector<32x256xf32>
    %92 = arith.mulf %89, %91 : vector<32x256xf32>
    %c3_86 = arith.constant 3 : index
    %c0_87 = arith.constant 0 : index
    %c0_88 = arith.constant 0 : index
    %93 = vector.load %arg16[%c3_86, %c0_87, %c0_88] : memref<9x32x256xf32, #tpu.memory_space<vmem>>, vector<1x32x256xf32>
    %94 = vector.shape_cast %93 : vector<1x32x256xf32> to vector<32x256xf32>
    %95 = vector.shape_cast %92 : vector<32x256xf32> to vector<1x32x256xf32>
    tpu.vector_store %arg16[%c3_86, %c0_87, %c0_88], %95 {strides = array<i32>} : memref<9x32x256xf32, #tpu.memory_space<vmem>>, vector<1x32x256xf32>,
    %c0_89 = arith.constant 0 : index
    %c17_90 = arith.constant 17 : index
    %96 = vector.load %arg15[%c0_89, %c17_90] : memref<32x290xf32, #tpu.memory_space<vmem>>, vector<32x256xf32>
    %c4_91 = arith.constant 4 : index
    %c0_92 = arith.constant 0 : index
    %c0_93 = arith.constant 0 : index
    %97 = vector.load %arg16[%c4_91, %c0_92, %c0_93] : memref<9x32x256xf32, #tpu.memory_space<vmem>>, vector<1x32x256xf32>
    %98 = vector.shape_cast %97 : vector<1x32x256xf32> to vector<32x256xf32>
    %99 = vector.shape_cast %96 : vector<32x256xf32> to vector<1x32x256xf32>
    tpu.vector_store %arg16[%c4_91, %c0_92, %c0_93], %99 {strides = array<i32>} : memref<9x32x256xf32, #tpu.memory_space<vmem>>, vector<1x32x256xf32>,
    %c0_94 = arith.constant 0 : index
    %c18_95 = arith.constant 18 : index
    %100 = vector.load %arg15[%c0_94, %c18_95] : memref<32x290xf32, #tpu.memory_space<vmem>>, vector<32x256xf32>
    %c2_96 = arith.constant 2 : index
    %c0_97 = arith.constant 0 : index
    %101 = vector.load %arg4[%c2_96, %c0_97] : memref<3x256xf32, #tpu.memory_space<vmem>>, vector<1x256xf32>
    %102 = vector.broadcast %101 : vector<1x256xf32> to vector<32x256xf32>
    %103 = arith.mulf %100, %102 : vector<32x256xf32>
    %c5_98 = arith.constant 5 : index
    %c0_99 = arith.constant 0 : index
    %c0_100 = arith.constant 0 : index
    %104 = vector.load %arg16[%c5_98, %c0_99, %c0_100] : memref<9x32x256xf32, #tpu.memory_space<vmem>>, vector<1x32x256xf32>
    %105 = vector.shape_cast %104 : vector<1x32x256xf32> to vector<32x256xf32>
    %106 = vector.shape_cast %103 : vector<32x256xf32> to vector<1x32x256xf32>
    tpu.vector_store %arg16[%c5_98, %c0_99, %c0_100], %106 {strides = array<i32>} : memref<9x32x256xf32, #tpu.memory_space<vmem>>, vector<1x32x256xf32>,
    %c0_101 = arith.constant 0 : index
    %c32_102 = arith.constant 32 : index
    %107 = vector.load %arg15[%c0_101, %c32_102] : memref<32x290xf32, #tpu.memory_space<vmem>>, vector<32x256xf32>
    %c0_103 = arith.constant 0 : index
    %c0_104 = arith.constant 0 : index
    %108 = vector.load %arg4[%c0_103, %c0_104] : memref<3x256xf32, #tpu.memory_space<vmem>>, vector<1x256xf32>
    %109 = vector.broadcast %108 : vector<1x256xf32> to vector<32x256xf32>
    %110 = arith.mulf %107, %109 : vector<32x256xf32>
    %c6_105 = arith.constant 6 : index
    %c0_106 = arith.constant 0 : index
    %c0_107 = arith.constant 0 : index
    %111 = vector.load %arg16[%c6_105, %c0_106, %c0_107] : memref<9x32x256xf32, #tpu.memory_space<vmem>>, vector<1x32x256xf32>
    %112 = vector.shape_cast %111 : vector<1x32x256xf32> to vector<32x256xf32>
    %113 = vector.shape_cast %110 : vector<32x256xf32> to vector<1x32x256xf32>
    tpu.vector_store %arg16[%c6_105, %c0_106, %c0_107], %113 {strides = array<i32>} : memref<9x32x256xf32, #tpu.memory_space<vmem>>, vector<1x32x256xf32>,
    %c0_108 = arith.constant 0 : index
    %c33_109 = arith.constant 33 : index
    %114 = vector.load %arg15[%c0_108, %c33_109] : memref<32x290xf32, #tpu.memory_space<vmem>>, vector<32x256xf32>
    %c7_110 = arith.constant 7 : index
    %c0_111 = arith.constant 0 : index
    %c0_112 = arith.constant 0 : index
    %115 = vector.load %arg16[%c7_110, %c0_111, %c0_112] : memref<9x32x256xf32, #tpu.memory_space<vmem>>, vector<1x32x256xf32>
    %116 = vector.shape_cast %115 : vector<1x32x256xf32> to vector<32x256xf32>
    %117 = vector.shape_cast %114 : vector<32x256xf32> to vector<1x32x256xf32>
    tpu.vector_store %arg16[%c7_110, %c0_111, %c0_112], %117 {strides = array<i32>} : memref<9x32x256xf32, #tpu.memory_space<vmem>>, vector<1x32x256xf32>,
    %c0_113 = arith.constant 0 : index
    %c34_114 = arith.constant 34 : index
    %118 = vector.load %arg15[%c0_113, %c34_114] : memref<32x290xf32, #tpu.memory_space<vmem>>, vector<32x256xf32>
    %c2_115 = arith.constant 2 : index
    %c0_116 = arith.constant 0 : index
    %119 = vector.load %arg4[%c2_115, %c0_116] : memref<3x256xf32, #tpu.memory_space<vmem>>, vector<1x256xf32>
    %120 = vector.broadcast %119 : vector<1x256xf32> to vector<32x256xf32>
    %121 = arith.mulf %118, %120 : vector<32x256xf32>
    %c8_117 = arith.constant 8 : index
    %c0_118 = arith.constant 0 : index
    %c0_119 = arith.constant 0 : index
    %122 = vector.load %arg16[%c8_117, %c0_118, %c0_119] : memref<9x32x256xf32, #tpu.memory_space<vmem>>, vector<1x32x256xf32>
    %123 = vector.shape_cast %122 : vector<1x32x256xf32> to vector<32x256xf32>
    %124 = vector.shape_cast %121 : vector<32x256xf32> to vector<1x32x256xf32>
    tpu.vector_store %arg16[%c8_117, %c0_118, %c0_119], %124 {strides = array<i32>} : memref<9x32x256xf32, #tpu.memory_space<vmem>>, vector<1x32x256xf32>,
    %c0_120 = arith.constant 0 : index
    %c0_121 = arith.constant 0 : index
    %c0_122 = arith.constant 0 : index
    %125 = vector.load %arg16[%c0_120, %c0_121, %c0_122] : memref<9x32x256xf32, #tpu.memory_space<vmem>>, vector<9x32x256xf32>
    %126 = vector.shape_cast %125 : vector<9x32x256xf32> to vector<288x256xf32>
    %c0_123 = arith.constant 0 : index
    %c0_124 = arith.constant 0 : index
    %127 = vector.load %arg8[%c0_123, %c0_124] : memref<8x288xf32, #tpu.memory_space<vmem>>, vector<8x288xf32>
    %cst_125 = arith.constant dense<0.000000e+00> : vector<8x256xf32>
    %128 = tpu.matmul %127, %126, %cst_125 {dimension_numbers = #tpu.dot_dimension_numbers<[1], [0], [0], [1], [0, 0, 1, 1], [], []>} : vector<8x288xf32>, vector<288x256xf32>, vector<8x256xf32> -> vector<8x256xf32>
    %c0_126 = arith.constant 0 : index
    %c0_127 = arith.constant 0 : index
    %129 = vector.load %arg9[%c0_126, %c0_127] : memref<8x1xf32, #tpu.memory_space<vmem>>, vector<8x1xf32>
    %130 = vector.broadcast %129 : vector<8x1xf32> to vector<8x256xf32>
    %131 = arith.addf %128, %130 : vector<8x256xf32>
    %132 = vector.extract_strided_slice %131 {offsets = [0, 0], sizes = [4, 256], strides = [1, 1]} : vector<8x256xf32> to vector<4x256xf32>
    %133 = vector.extract_strided_slice %131 {offsets = [4, 0], sizes = [4, 256], strides = [1, 1]} : vector<8x256xf32> to vector<4x256xf32>
    %c0_128 = arith.constant 0 : index
    %c0_129 = arith.constant 0 : index
    %c0_130 = arith.constant 0 : index
    %134 = vector.load %arg1[%c0_128, %c0_129, %c0_130] : memref<1x4x256xf32, #tpu.memory_space<vmem>>, vector<1x4x256xf32>
    %135 = vector.shape_cast %134 : vector<1x4x256xf32> to vector<4x256xf32>
    %c0_131 = arith.constant 0 : index
    %c0_132 = arith.constant 0 : index
    %136 = vector.load %arg3[%c0_131, %c0_132] : memref<4x2xf32, #tpu.memory_space<vmem>>, vector<4x1xf32>
    %137 = vector.broadcast %136 : vector<4x1xf32> to vector<4x256xf32>
    %138 = arith.subf %135, %137 : vector<4x256xf32>
    %c0_133 = arith.constant 0 : index
    %c1_134 = arith.constant 1 : index
    %139 = vector.load %arg3[%c0_133, %c1_134] : memref<4x2xf32, #tpu.memory_space<vmem>>, vector<4x1xf32>
    %140 = vector.broadcast %139 : vector<4x1xf32> to vector<4x256xf32>
    %141 = arith.mulf %138, %140 : vector<4x256xf32>
    %cst_135 = arith.constant 1.000000e+00 : f32
    %142 = vector.broadcast %cst_135 : f32 to vector<4x256xf32>
    %143 = arith.addf %142, %132 : vector<4x256xf32>
    %144 = arith.mulf %141, %143 : vector<4x256xf32>
    %145 = arith.addf %144, %133 : vector<4x256xf32>
    %cst_136 = arith.constant 0.000000e+00 : f32
    %146 = vector.broadcast %cst_136 : f32 to vector<4x256xf32>
    %147 = arith.maximumf %145, %146 : vector<4x256xf32>
    %cst_137 = arith.constant 0.000000e+00 : f32
    %148 = vector.broadcast %cst_137 : f32 to vector<4x290xf32>
    %c0_138 = arith.constant 0 : index
    %c0_139 = arith.constant 0 : index
    %149 = vector.load %arg17[%c0_138, %c0_139] : memref<4x290xf32, #tpu.memory_space<vmem>>, vector<4x290xf32>
    tpu.vector_store %arg17[%c0_138, %c0_139], %148 {strides = array<i32>} : memref<4x290xf32, #tpu.memory_space<vmem>>, vector<4x290xf32>,
    %c0_140 = arith.constant 0 : index
    %c17_141 = arith.constant 17 : index
    %150 = vector.load %arg17[%c0_140, %c17_141] : memref<4x290xf32, #tpu.memory_space<vmem>>, vector<4x256xf32>
    tpu.vector_store %arg17[%c0_140, %c17_141], %147 {strides = array<i32>} : memref<4x290xf32, #tpu.memory_space<vmem>>, vector<4x256xf32>,
    %c0_142 = arith.constant 0 : index
    %c0_143 = arith.constant 0 : index
    %151 = vector.load %arg17[%c0_142, %c0_143] : memref<4x290xf32, #tpu.memory_space<vmem>>, vector<4x256xf32>
    %c0_144 = arith.constant 0 : index
    %c0_145 = arith.constant 0 : index
    %152 = vector.load %arg5[%c0_144, %c0_145] : memref<3x256xf32, #tpu.memory_space<vmem>>, vector<1x256xf32>
    %153 = vector.broadcast %152 : vector<1x256xf32> to vector<4x256xf32>
    %154 = arith.mulf %151, %153 : vector<4x256xf32>
    %c0_146 = arith.constant 0 : index
    %c0_147 = arith.constant 0 : index
    %c0_148 = arith.constant 0 : index
    %155 = vector.load %arg18[%c0_146, %c0_147, %c0_148] : memref<9x4x256xf32, #tpu.memory_space<vmem>>, vector<1x4x256xf32>
    %156 = vector.shape_cast %155 : vector<1x4x256xf32> to vector<4x256xf32>
    %157 = vector.shape_cast %154 : vector<4x256xf32> to vector<1x4x256xf32>
    tpu.vector_store %arg18[%c0_146, %c0_147, %c0_148], %157 {strides = array<i32>} : memref<9x4x256xf32, #tpu.memory_space<vmem>>, vector<1x4x256xf32>,
    %c0_149 = arith.constant 0 : index
    %c1_150 = arith.constant 1 : index
    %158 = vector.load %arg17[%c0_149, %c1_150] : memref<4x290xf32, #tpu.memory_space<vmem>>, vector<4x256xf32>
    %c1_151 = arith.constant 1 : index
    %c0_152 = arith.constant 0 : index
    %c0_153 = arith.constant 0 : index
    %159 = vector.load %arg18[%c1_151, %c0_152, %c0_153] : memref<9x4x256xf32, #tpu.memory_space<vmem>>, vector<1x4x256xf32>
    %160 = vector.shape_cast %159 : vector<1x4x256xf32> to vector<4x256xf32>
    %161 = vector.shape_cast %158 : vector<4x256xf32> to vector<1x4x256xf32>
    tpu.vector_store %arg18[%c1_151, %c0_152, %c0_153], %161 {strides = array<i32>} : memref<9x4x256xf32, #tpu.memory_space<vmem>>, vector<1x4x256xf32>,
    %c0_154 = arith.constant 0 : index
    %c2_155 = arith.constant 2 : index
    %162 = vector.load %arg17[%c0_154, %c2_155] : memref<4x290xf32, #tpu.memory_space<vmem>>, vector<4x256xf32>
    %c2_156 = arith.constant 2 : index
    %c0_157 = arith.constant 0 : index
    %163 = vector.load %arg5[%c2_156, %c0_157] : memref<3x256xf32, #tpu.memory_space<vmem>>, vector<1x256xf32>
    %164 = vector.broadcast %163 : vector<1x256xf32> to vector<4x256xf32>
    %165 = arith.mulf %162, %164 : vector<4x256xf32>
    %c2_158 = arith.constant 2 : index
    %c0_159 = arith.constant 0 : index
    %c0_160 = arith.constant 0 : index
    %166 = vector.load %arg18[%c2_158, %c0_159, %c0_160] : memref<9x4x256xf32, #tpu.memory_space<vmem>>, vector<1x4x256xf32>
    %167 = vector.shape_cast %166 : vector<1x4x256xf32> to vector<4x256xf32>
    %168 = vector.shape_cast %165 : vector<4x256xf32> to vector<1x4x256xf32>
    tpu.vector_store %arg18[%c2_158, %c0_159, %c0_160], %168 {strides = array<i32>} : memref<9x4x256xf32, #tpu.memory_space<vmem>>, vector<1x4x256xf32>,
    %c0_161 = arith.constant 0 : index
    %c16_162 = arith.constant 16 : index
    %169 = vector.load %arg17[%c0_161, %c16_162] : memref<4x290xf32, #tpu.memory_space<vmem>>, vector<4x256xf32>
    %c0_163 = arith.constant 0 : index
    %c0_164 = arith.constant 0 : index
    %170 = vector.load %arg5[%c0_163, %c0_164] : memref<3x256xf32, #tpu.memory_space<vmem>>, vector<1x256xf32>
    %171 = vector.broadcast %170 : vector<1x256xf32> to vector<4x256xf32>
    %172 = arith.mulf %169, %171 : vector<4x256xf32>
    %c3_165 = arith.constant 3 : index
    %c0_166 = arith.constant 0 : index
    %c0_167 = arith.constant 0 : index
    %173 = vector.load %arg18[%c3_165, %c0_166, %c0_167] : memref<9x4x256xf32, #tpu.memory_space<vmem>>, vector<1x4x256xf32>
    %174 = vector.shape_cast %173 : vector<1x4x256xf32> to vector<4x256xf32>
    %175 = vector.shape_cast %172 : vector<4x256xf32> to vector<1x4x256xf32>
    tpu.vector_store %arg18[%c3_165, %c0_166, %c0_167], %175 {strides = array<i32>} : memref<9x4x256xf32, #tpu.memory_space<vmem>>, vector<1x4x256xf32>,
    %c0_168 = arith.constant 0 : index
    %c17_169 = arith.constant 17 : index
    %176 = vector.load %arg17[%c0_168, %c17_169] : memref<4x290xf32, #tpu.memory_space<vmem>>, vector<4x256xf32>
    %c4_170 = arith.constant 4 : index
    %c0_171 = arith.constant 0 : index
    %c0_172 = arith.constant 0 : index
    %177 = vector.load %arg18[%c4_170, %c0_171, %c0_172] : memref<9x4x256xf32, #tpu.memory_space<vmem>>, vector<1x4x256xf32>
    %178 = vector.shape_cast %177 : vector<1x4x256xf32> to vector<4x256xf32>
    %179 = vector.shape_cast %176 : vector<4x256xf32> to vector<1x4x256xf32>
    tpu.vector_store %arg18[%c4_170, %c0_171, %c0_172], %179 {strides = array<i32>} : memref<9x4x256xf32, #tpu.memory_space<vmem>>, vector<1x4x256xf32>,
    %c0_173 = arith.constant 0 : index
    %c18_174 = arith.constant 18 : index
    %180 = vector.load %arg17[%c0_173, %c18_174] : memref<4x290xf32, #tpu.memory_space<vmem>>, vector<4x256xf32>
    %c2_175 = arith.constant 2 : index
    %c0_176 = arith.constant 0 : index
    %181 = vector.load %arg5[%c2_175, %c0_176] : memref<3x256xf32, #tpu.memory_space<vmem>>, vector<1x256xf32>
    %182 = vector.broadcast %181 : vector<1x256xf32> to vector<4x256xf32>
    %183 = arith.mulf %180, %182 : vector<4x256xf32>
    %c5_177 = arith.constant 5 : index
    %c0_178 = arith.constant 0 : index
    %c0_179 = arith.constant 0 : index
    %184 = vector.load %arg18[%c5_177, %c0_178, %c0_179] : memref<9x4x256xf32, #tpu.memory_space<vmem>>, vector<1x4x256xf32>
    %185 = vector.shape_cast %184 : vector<1x4x256xf32> to vector<4x256xf32>
    %186 = vector.shape_cast %183 : vector<4x256xf32> to vector<1x4x256xf32>
    tpu.vector_store %arg18[%c5_177, %c0_178, %c0_179], %186 {strides = array<i32>} : memref<9x4x256xf32, #tpu.memory_space<vmem>>, vector<1x4x256xf32>,
    %c0_180 = arith.constant 0 : index
    %c32_181 = arith.constant 32 : index
    %187 = vector.load %arg17[%c0_180, %c32_181] : memref<4x290xf32, #tpu.memory_space<vmem>>, vector<4x256xf32>
    %c0_182 = arith.constant 0 : index
    %c0_183 = arith.constant 0 : index
    %188 = vector.load %arg5[%c0_182, %c0_183] : memref<3x256xf32, #tpu.memory_space<vmem>>, vector<1x256xf32>
    %189 = vector.broadcast %188 : vector<1x256xf32> to vector<4x256xf32>
    %190 = arith.mulf %187, %189 : vector<4x256xf32>
    %c6_184 = arith.constant 6 : index
    %c0_185 = arith.constant 0 : index
    %c0_186 = arith.constant 0 : index
    %191 = vector.load %arg18[%c6_184, %c0_185, %c0_186] : memref<9x4x256xf32, #tpu.memory_space<vmem>>, vector<1x4x256xf32>
    %192 = vector.shape_cast %191 : vector<1x4x256xf32> to vector<4x256xf32>
    %193 = vector.shape_cast %190 : vector<4x256xf32> to vector<1x4x256xf32>
    tpu.vector_store %arg18[%c6_184, %c0_185, %c0_186], %193 {strides = array<i32>} : memref<9x4x256xf32, #tpu.memory_space<vmem>>, vector<1x4x256xf32>,
    %c0_187 = arith.constant 0 : index
    %c33_188 = arith.constant 33 : index
    %194 = vector.load %arg17[%c0_187, %c33_188] : memref<4x290xf32, #tpu.memory_space<vmem>>, vector<4x256xf32>
    %c7_189 = arith.constant 7 : index
    %c0_190 = arith.constant 0 : index
    %c0_191 = arith.constant 0 : index
    %195 = vector.load %arg18[%c7_189, %c0_190, %c0_191] : memref<9x4x256xf32, #tpu.memory_space<vmem>>, vector<1x4x256xf32>
    %196 = vector.shape_cast %195 : vector<1x4x256xf32> to vector<4x256xf32>
    %197 = vector.shape_cast %194 : vector<4x256xf32> to vector<1x4x256xf32>
    tpu.vector_store %arg18[%c7_189, %c0_190, %c0_191], %197 {strides = array<i32>} : memref<9x4x256xf32, #tpu.memory_space<vmem>>, vector<1x4x256xf32>,
    %c0_192 = arith.constant 0 : index
    %c34_193 = arith.constant 34 : index
    %198 = vector.load %arg17[%c0_192, %c34_193] : memref<4x290xf32, #tpu.memory_space<vmem>>, vector<4x256xf32>
    %c2_194 = arith.constant 2 : index
    %c0_195 = arith.constant 0 : index
    %199 = vector.load %arg5[%c2_194, %c0_195] : memref<3x256xf32, #tpu.memory_space<vmem>>, vector<1x256xf32>
    %200 = vector.broadcast %199 : vector<1x256xf32> to vector<4x256xf32>
    %201 = arith.mulf %198, %200 : vector<4x256xf32>
    %c8_196 = arith.constant 8 : index
    %c0_197 = arith.constant 0 : index
    %c0_198 = arith.constant 0 : index
    %202 = vector.load %arg18[%c8_196, %c0_197, %c0_198] : memref<9x4x256xf32, #tpu.memory_space<vmem>>, vector<1x4x256xf32>
    %203 = vector.shape_cast %202 : vector<1x4x256xf32> to vector<4x256xf32>
    %204 = vector.shape_cast %201 : vector<4x256xf32> to vector<1x4x256xf32>
    tpu.vector_store %arg18[%c8_196, %c0_197, %c0_198], %204 {strides = array<i32>} : memref<9x4x256xf32, #tpu.memory_space<vmem>>, vector<1x4x256xf32>,
    %c0_199 = arith.constant 0 : index
    %c0_200 = arith.constant 0 : index
    %c0_201 = arith.constant 0 : index
    %205 = vector.load %arg18[%c0_199, %c0_200, %c0_201] : memref<9x4x256xf32, #tpu.memory_space<vmem>>, vector<9x4x256xf32>
    %206 = vector.shape_cast %205 : vector<9x4x256xf32> to vector<36x256xf32>
    %c0_202 = arith.constant 0 : index
    %c0_203 = arith.constant 0 : index
    %207 = vector.load %arg10[%c0_202, %c0_203] : memref<4x36xf32, #tpu.memory_space<vmem>>, vector<4x36xf32>
    %cst_204 = arith.constant dense<0.000000e+00> : vector<4x256xf32>
    %208 = tpu.matmul %207, %206, %cst_204 {dimension_numbers = #tpu.dot_dimension_numbers<[1], [0], [0], [1], [0, 0, 1, 1], [], []>} : vector<4x36xf32>, vector<36x256xf32>, vector<4x256xf32> -> vector<4x256xf32>
    %c0_205 = arith.constant 0 : index
    %c0_206 = arith.constant 0 : index
    %209 = vector.load %arg11[%c0_205, %c0_206] : memref<4x1xf32, #tpu.memory_space<vmem>>, vector<4x1xf32>
    %210 = vector.broadcast %209 : vector<4x1xf32> to vector<4x256xf32>
    %211 = arith.addf %208, %210 : vector<4x256xf32>
    %c0_207 = arith.constant 0 : index
    %c0_208 = arith.constant 0 : index
    %c0_209 = arith.constant 0 : index
    %212 = vector.load %arg12[%c0_207, %c0_208, %c0_209] : memref<1x4x256xf32, #tpu.memory_space<vmem>>, vector<1x4x256xf32>
    %213 = vector.shape_cast %212 : vector<1x4x256xf32> to vector<4x256xf32>
    %214 = vector.shape_cast %211 : vector<4x256xf32> to vector<1x4x256xf32>
    tpu.vector_store %arg12[%c0_207, %c0_208, %c0_209], %214 {strides = array<i32>} : memref<1x4x256xf32, #tpu.memory_space<vmem>>, vector<1x4x256xf32>,
    return
  }
  func.func @transform_0(%arg0: i32) -> (i32, i32, i32) {
    %c0_i32 = arith.constant 0 : i32
    %c0_i32_0 = arith.constant 0 : i32
    %c0_i32_1 = arith.constant 0 : i32
    return %arg0, %c0_i32, %c0_i32_0 : i32, i32, i32
  }
  func.func @transform_1(%arg0: i32) -> (i32, i32, i32) {
    %c0_i32 = arith.constant 0 : i32
    %c0_i32_0 = arith.constant 0 : i32
    %c0_i32_1 = arith.constant 0 : i32
    return %arg0, %c0_i32, %c0_i32_0 : i32, i32, i32
  }
  func.func @transform_2(%arg0: i32) -> (i32, i32) {
    %c0_i32 = arith.constant 0 : i32
    %c0_i32_0 = arith.constant 0 : i32
    %c0_i32_1 = arith.constant 0 : i32
    return %c0_i32, %c0_i32_0 : i32, i32
  }
  func.func @transform_3(%arg0: i32) -> (i32, i32) {
    %c0_i32 = arith.constant 0 : i32
    %c0_i32_0 = arith.constant 0 : i32
    %c0_i32_1 = arith.constant 0 : i32
    return %c0_i32, %c0_i32_0 : i32, i32
  }
  func.func @transform_4(%arg0: i32) -> (i32, i32) {
    %c0_i32 = arith.constant 0 : i32
    %c0_i32_0 = arith.constant 0 : i32
    %c0_i32_1 = arith.constant 0 : i32
    return %c0_i32, %c0_i32_0 : i32, i32
  }
  func.func @transform_5(%arg0: i32) -> (i32, i32) {
    %c0_i32 = arith.constant 0 : i32
    %c0_i32_0 = arith.constant 0 : i32
    %c0_i32_1 = arith.constant 0 : i32
    return %c0_i32, %c0_i32_0 : i32, i32
  }
  func.func @transform_6(%arg0: i32) -> (i32, i32) {
    %c0_i32 = arith.constant 0 : i32
    %c0_i32_0 = arith.constant 0 : i32
    %c0_i32_1 = arith.constant 0 : i32
    return %c0_i32, %c0_i32_0 : i32, i32
  }
  func.func @transform_7(%arg0: i32) -> (i32, i32) {
    %c0_i32 = arith.constant 0 : i32
    %c0_i32_0 = arith.constant 0 : i32
    %c0_i32_1 = arith.constant 0 : i32
    return %c0_i32, %c0_i32_0 : i32, i32
  }
  func.func @transform_8(%arg0: i32) -> (i32, i32) {
    %c0_i32 = arith.constant 0 : i32
    %c0_i32_0 = arith.constant 0 : i32
    %c0_i32_1 = arith.constant 0 : i32
    return %c0_i32, %c0_i32_0 : i32, i32
  }
  func.func @transform_9(%arg0: i32) -> (i32, i32) {
    %c0_i32 = arith.constant 0 : i32
    %c0_i32_0 = arith.constant 0 : i32
    %c0_i32_1 = arith.constant 0 : i32
    return %c0_i32, %c0_i32_0 : i32, i32
  }
  func.func @transform_10(%arg0: i32) -> (i32, i32) {
    %c0_i32 = arith.constant 0 : i32
    %c0_i32_0 = arith.constant 0 : i32
    %c0_i32_1 = arith.constant 0 : i32
    return %c0_i32, %c0_i32_0 : i32, i32
  }
  func.func @transform_11(%arg0: i32) -> (i32, i32, i32) {
    %c0_i32 = arith.constant 0 : i32
    %c0_i32_0 = arith.constant 0 : i32
    %c0_i32_1 = arith.constant 0 : i32
    return %arg0, %c0_i32, %c0_i32_0 : i32, i32, i32
  }
}

module attributes {stable_mosaic.version = 11 : i64} {
  func.func @kernel(%arg0: i32, %arg1: memref<1x4x256xf32, #tpu.memory_space<vmem>>, %arg2: memref<1x8x256xf32, #tpu.memory_space<vmem>>, %arg3: memref<4x2xf32, #tpu.memory_space<vmem>>, %arg4: memref<3x256xf32, #tpu.memory_space<vmem>>, %arg5: memref<1x256xf32, #tpu.memory_space<vmem>>, %arg6: memref<32x72xf32, #tpu.memory_space<vmem>>, %arg7: memref<32x1xf32, #tpu.memory_space<vmem>>, %arg8: memref<8x288xf32, #tpu.memory_space<vmem>>, %arg9: memref<8x1xf32, #tpu.memory_space<vmem>>, %arg10: memref<8x4xf32, #tpu.memory_space<vmem>>, %arg11: memref<8x1xf32, #tpu.memory_space<vmem>>, %arg12: memref<1x8x256xf32, #tpu.memory_space<vmem>>, %arg13: memref<8x290xf32, #tpu.memory_space<vmem>>, %arg14: memref<9x8x256xf32, #tpu.memory_space<vmem>>, %arg15: memref<32x290xf32, #tpu.memory_space<vmem>>, %arg16: memref<9x32x256xf32, #tpu.memory_space<vmem>>) attributes {dimension_semantics = [#tpu.dimension_semantics<parallel>], iteration_bounds = array<i64: 2>, scalar_prefetch = 0 : i64, scratch_operands = 4 : i64, tpu.core_type = #tpu.core_type<tc>, window_params = [{transform_indices = @transform_0, window_bounds = array<i64: 1, 4, 256>}, {transform_indices = @transform_1, window_bounds = array<i64: 1, 8, 256>}, {pipeline_mode = #tpu.pipeline_mode<synchronous>, transform_indices = @transform_2, window_bounds = array<i64: 4, 2>}, {pipeline_mode = #tpu.pipeline_mode<synchronous>, transform_indices = @transform_3, window_bounds = array<i64: 3, 256>}, {pipeline_mode = #tpu.pipeline_mode<synchronous>, transform_indices = @transform_4, window_bounds = array<i64: 1, 256>}, {pipeline_mode = #tpu.pipeline_mode<synchronous>, transform_indices = @transform_5, window_bounds = array<i64: 32, 72>}, {pipeline_mode = #tpu.pipeline_mode<synchronous>, transform_indices = @transform_6, window_bounds = array<i64: 32, 1>}, {pipeline_mode = #tpu.pipeline_mode<synchronous>, transform_indices = @transform_7, window_bounds = array<i64: 8, 288>}, {pipeline_mode = #tpu.pipeline_mode<synchronous>, transform_indices = @transform_8, window_bounds = array<i64: 8, 1>}, {pipeline_mode = #tpu.pipeline_mode<synchronous>, transform_indices = @transform_9, window_bounds = array<i64: 8, 4>}, {pipeline_mode = #tpu.pipeline_mode<synchronous>, transform_indices = @transform_10, window_bounds = array<i64: 8, 1>}, {transform_indices = @transform_11, window_bounds = array<i64: 1, 8, 256>}]} {
    %c0 = arith.constant 0 : index
    %c0_0 = arith.constant 0 : index
    %c0_1 = arith.constant 0 : index
    %0 = vector.load %arg2[%c0, %c0_0, %c0_1] : memref<1x8x256xf32, #tpu.memory_space<vmem>>, vector<1x8x256xf32>
    %1 = vector.shape_cast %0 : vector<1x8x256xf32> to vector<8x256xf32>
    %cst = arith.constant 0.000000e+00 : f32
    %2 = vector.broadcast %cst : f32 to vector<8x290xf32>
    %c0_2 = arith.constant 0 : index
    %c0_3 = arith.constant 0 : index
    %3 = vector.load %arg13[%c0_2, %c0_3] : memref<8x290xf32, #tpu.memory_space<vmem>>, vector<8x290xf32>
    tpu.vector_store %arg13[%c0_2, %c0_3], %2 {strides = array<i32>} : memref<8x290xf32, #tpu.memory_space<vmem>>, vector<8x290xf32>,
    %c0_4 = arith.constant 0 : index
    %c17 = arith.constant 17 : index
    %4 = vector.load %arg13[%c0_4, %c17] : memref<8x290xf32, #tpu.memory_space<vmem>>, vector<8x256xf32>
    tpu.vector_store %arg13[%c0_4, %c17], %1 {strides = array<i32>} : memref<8x290xf32, #tpu.memory_space<vmem>>, vector<8x256xf32>,
    %c0_5 = arith.constant 0 : index
    %c0_6 = arith.constant 0 : index
    %5 = vector.load %arg13[%c0_5, %c0_6] : memref<8x290xf32, #tpu.memory_space<vmem>>, vector<8x256xf32>
    %c0_7 = arith.constant 0 : index
    %c0_8 = arith.constant 0 : index
    %6 = vector.load %arg4[%c0_7, %c0_8] : memref<3x256xf32, #tpu.memory_space<vmem>>, vector<1x256xf32>
    %7 = vector.broadcast %6 : vector<1x256xf32> to vector<8x256xf32>
    %8 = arith.mulf %5, %7 : vector<8x256xf32>
    %c0_9 = arith.constant 0 : index
    %c0_10 = arith.constant 0 : index
    %c0_11 = arith.constant 0 : index
    %9 = vector.load %arg14[%c0_9, %c0_10, %c0_11] : memref<9x8x256xf32, #tpu.memory_space<vmem>>, vector<1x8x256xf32>
    %10 = vector.shape_cast %9 : vector<1x8x256xf32> to vector<8x256xf32>
    %11 = vector.shape_cast %8 : vector<8x256xf32> to vector<1x8x256xf32>
    tpu.vector_store %arg14[%c0_9, %c0_10, %c0_11], %11 {strides = array<i32>} : memref<9x8x256xf32, #tpu.memory_space<vmem>>, vector<1x8x256xf32>,
    %c0_12 = arith.constant 0 : index
    %c1 = arith.constant 1 : index
    %12 = vector.load %arg13[%c0_12, %c1] : memref<8x290xf32, #tpu.memory_space<vmem>>, vector<8x256xf32>
    %c1_13 = arith.constant 1 : index
    %c0_14 = arith.constant 0 : index
    %c0_15 = arith.constant 0 : index
    %13 = vector.load %arg14[%c1_13, %c0_14, %c0_15] : memref<9x8x256xf32, #tpu.memory_space<vmem>>, vector<1x8x256xf32>
    %14 = vector.shape_cast %13 : vector<1x8x256xf32> to vector<8x256xf32>
    %15 = vector.shape_cast %12 : vector<8x256xf32> to vector<1x8x256xf32>
    tpu.vector_store %arg14[%c1_13, %c0_14, %c0_15], %15 {strides = array<i32>} : memref<9x8x256xf32, #tpu.memory_space<vmem>>, vector<1x8x256xf32>,
    %c0_16 = arith.constant 0 : index
    %c2 = arith.constant 2 : index
    %16 = vector.load %arg13[%c0_16, %c2] : memref<8x290xf32, #tpu.memory_space<vmem>>, vector<8x256xf32>
    %c2_17 = arith.constant 2 : index
    %c0_18 = arith.constant 0 : index
    %17 = vector.load %arg4[%c2_17, %c0_18] : memref<3x256xf32, #tpu.memory_space<vmem>>, vector<1x256xf32>
    %18 = vector.broadcast %17 : vector<1x256xf32> to vector<8x256xf32>
    %19 = arith.mulf %16, %18 : vector<8x256xf32>
    %c2_19 = arith.constant 2 : index
    %c0_20 = arith.constant 0 : index
    %c0_21 = arith.constant 0 : index
    %20 = vector.load %arg14[%c2_19, %c0_20, %c0_21] : memref<9x8x256xf32, #tpu.memory_space<vmem>>, vector<1x8x256xf32>
    %21 = vector.shape_cast %20 : vector<1x8x256xf32> to vector<8x256xf32>
    %22 = vector.shape_cast %19 : vector<8x256xf32> to vector<1x8x256xf32>
    tpu.vector_store %arg14[%c2_19, %c0_20, %c0_21], %22 {strides = array<i32>} : memref<9x8x256xf32, #tpu.memory_space<vmem>>, vector<1x8x256xf32>,
    %c0_22 = arith.constant 0 : index
    %c16 = arith.constant 16 : index
    %23 = vector.load %arg13[%c0_22, %c16] : memref<8x290xf32, #tpu.memory_space<vmem>>, vector<8x256xf32>
    %c0_23 = arith.constant 0 : index
    %c0_24 = arith.constant 0 : index
    %24 = vector.load %arg4[%c0_23, %c0_24] : memref<3x256xf32, #tpu.memory_space<vmem>>, vector<1x256xf32>
    %25 = vector.broadcast %24 : vector<1x256xf32> to vector<8x256xf32>
    %26 = arith.mulf %23, %25 : vector<8x256xf32>
    %c3 = arith.constant 3 : index
    %c0_25 = arith.constant 0 : index
    %c0_26 = arith.constant 0 : index
    %27 = vector.load %arg14[%c3, %c0_25, %c0_26] : memref<9x8x256xf32, #tpu.memory_space<vmem>>, vector<1x8x256xf32>
    %28 = vector.shape_cast %27 : vector<1x8x256xf32> to vector<8x256xf32>
    %29 = vector.shape_cast %26 : vector<8x256xf32> to vector<1x8x256xf32>
    tpu.vector_store %arg14[%c3, %c0_25, %c0_26], %29 {strides = array<i32>} : memref<9x8x256xf32, #tpu.memory_space<vmem>>, vector<1x8x256xf32>,
    %c0_27 = arith.constant 0 : index
    %c17_28 = arith.constant 17 : index
    %30 = vector.load %arg13[%c0_27, %c17_28] : memref<8x290xf32, #tpu.memory_space<vmem>>, vector<8x256xf32>
    %c4 = arith.constant 4 : index
    %c0_29 = arith.constant 0 : index
    %c0_30 = arith.constant 0 : index
    %31 = vector.load %arg14[%c4, %c0_29, %c0_30] : memref<9x8x256xf32, #tpu.memory_space<vmem>>, vector<1x8x256xf32>
    %32 = vector.shape_cast %31 : vector<1x8x256xf32> to vector<8x256xf32>
    %33 = vector.shape_cast %30 : vector<8x256xf32> to vector<1x8x256xf32>
    tpu.vector_store %arg14[%c4, %c0_29, %c0_30], %33 {strides = array<i32>} : memref<9x8x256xf32, #tpu.memory_space<vmem>>, vector<1x8x256xf32>,
    %c0_31 = arith.constant 0 : index
    %c18 = arith.constant 18 : index
    %34 = vector.load %arg13[%c0_31, %c18] : memref<8x290xf32, #tpu.memory_space<vmem>>, vector<8x256xf32>
    %c2_32 = arith.constant 2 : index
    %c0_33 = arith.constant 0 : index
    %35 = vector.load %arg4[%c2_32, %c0_33] : memref<3x256xf32, #tpu.memory_space<vmem>>, vector<1x256xf32>
    %36 = vector.broadcast %35 : vector<1x256xf32> to vector<8x256xf32>
    %37 = arith.mulf %34, %36 : vector<8x256xf32>
    %c5 = arith.constant 5 : index
    %c0_34 = arith.constant 0 : index
    %c0_35 = arith.constant 0 : index
    %38 = vector.load %arg14[%c5, %c0_34, %c0_35] : memref<9x8x256xf32, #tpu.memory_space<vmem>>, vector<1x8x256xf32>
    %39 = vector.shape_cast %38 : vector<1x8x256xf32> to vector<8x256xf32>
    %40 = vector.shape_cast %37 : vector<8x256xf32> to vector<1x8x256xf32>
    tpu.vector_store %arg14[%c5, %c0_34, %c0_35], %40 {strides = array<i32>} : memref<9x8x256xf32, #tpu.memory_space<vmem>>, vector<1x8x256xf32>,
    %c0_36 = arith.constant 0 : index
    %c32 = arith.constant 32 : index
    %41 = vector.load %arg13[%c0_36, %c32] : memref<8x290xf32, #tpu.memory_space<vmem>>, vector<8x256xf32>
    %c0_37 = arith.constant 0 : index
    %c0_38 = arith.constant 0 : index
    %42 = vector.load %arg4[%c0_37, %c0_38] : memref<3x256xf32, #tpu.memory_space<vmem>>, vector<1x256xf32>
    %43 = vector.broadcast %42 : vector<1x256xf32> to vector<8x256xf32>
    %44 = arith.mulf %41, %43 : vector<8x256xf32>
    %c6 = arith.constant 6 : index
    %c0_39 = arith.constant 0 : index
    %c0_40 = arith.constant 0 : index
    %45 = vector.load %arg14[%c6, %c0_39, %c0_40] : memref<9x8x256xf32, #tpu.memory_space<vmem>>, vector<1x8x256xf32>
    %46 = vector.shape_cast %45 : vector<1x8x256xf32> to vector<8x256xf32>
    %47 = vector.shape_cast %44 : vector<8x256xf32> to vector<1x8x256xf32>
    tpu.vector_store %arg14[%c6, %c0_39, %c0_40], %47 {strides = array<i32>} : memref<9x8x256xf32, #tpu.memory_space<vmem>>, vector<1x8x256xf32>,
    %c0_41 = arith.constant 0 : index
    %c33 = arith.constant 33 : index
    %48 = vector.load %arg13[%c0_41, %c33] : memref<8x290xf32, #tpu.memory_space<vmem>>, vector<8x256xf32>
    %c7 = arith.constant 7 : index
    %c0_42 = arith.constant 0 : index
    %c0_43 = arith.constant 0 : index
    %49 = vector.load %arg14[%c7, %c0_42, %c0_43] : memref<9x8x256xf32, #tpu.memory_space<vmem>>, vector<1x8x256xf32>
    %50 = vector.shape_cast %49 : vector<1x8x256xf32> to vector<8x256xf32>
    %51 = vector.shape_cast %48 : vector<8x256xf32> to vector<1x8x256xf32>
    tpu.vector_store %arg14[%c7, %c0_42, %c0_43], %51 {strides = array<i32>} : memref<9x8x256xf32, #tpu.memory_space<vmem>>, vector<1x8x256xf32>,
    %c0_44 = arith.constant 0 : index
    %c34 = arith.constant 34 : index
    %52 = vector.load %arg13[%c0_44, %c34] : memref<8x290xf32, #tpu.memory_space<vmem>>, vector<8x256xf32>
    %c2_45 = arith.constant 2 : index
    %c0_46 = arith.constant 0 : index
    %53 = vector.load %arg4[%c2_45, %c0_46] : memref<3x256xf32, #tpu.memory_space<vmem>>, vector<1x256xf32>
    %54 = vector.broadcast %53 : vector<1x256xf32> to vector<8x256xf32>
    %55 = arith.mulf %52, %54 : vector<8x256xf32>
    %c8 = arith.constant 8 : index
    %c0_47 = arith.constant 0 : index
    %c0_48 = arith.constant 0 : index
    %56 = vector.load %arg14[%c8, %c0_47, %c0_48] : memref<9x8x256xf32, #tpu.memory_space<vmem>>, vector<1x8x256xf32>
    %57 = vector.shape_cast %56 : vector<1x8x256xf32> to vector<8x256xf32>
    %58 = vector.shape_cast %55 : vector<8x256xf32> to vector<1x8x256xf32>
    tpu.vector_store %arg14[%c8, %c0_47, %c0_48], %58 {strides = array<i32>} : memref<9x8x256xf32, #tpu.memory_space<vmem>>, vector<1x8x256xf32>,
    %c0_49 = arith.constant 0 : index
    %c0_50 = arith.constant 0 : index
    %c0_51 = arith.constant 0 : index
    %59 = vector.load %arg14[%c0_49, %c0_50, %c0_51] : memref<9x8x256xf32, #tpu.memory_space<vmem>>, vector<9x8x256xf32>
    %60 = vector.shape_cast %59 : vector<9x8x256xf32> to vector<72x256xf32>
    %c0_52 = arith.constant 0 : index
    %c0_53 = arith.constant 0 : index
    %61 = vector.load %arg6[%c0_52, %c0_53] : memref<32x72xf32, #tpu.memory_space<vmem>>, vector<32x72xf32>
    %cst_54 = arith.constant dense<0.000000e+00> : vector<32x256xf32>
    %62 = tpu.matmul %61, %60, %cst_54 {dimension_numbers = #tpu.dot_dimension_numbers<[1], [0], [0], [1], [0, 0, 1, 1], [], []>} : vector<32x72xf32>, vector<72x256xf32>, vector<32x256xf32> -> vector<32x256xf32>
    %c0_55 = arith.constant 0 : index
    %c0_56 = arith.constant 0 : index
    %63 = vector.load %arg7[%c0_55, %c0_56] : memref<32x1xf32, #tpu.memory_space<vmem>>, vector<32x1xf32>
    %64 = vector.broadcast %63 : vector<32x1xf32> to vector<32x256xf32>
    %65 = arith.addf %62, %64 : vector<32x256xf32>
    %cst_57 = arith.constant 0.000000e+00 : f32
    %66 = vector.broadcast %cst_57 : f32 to vector<32x256xf32>
    %67 = arith.maximumf %65, %66 : vector<32x256xf32>
    %cst_58 = arith.constant 0.000000e+00 : f32
    %68 = vector.broadcast %cst_58 : f32 to vector<32x290xf32>
    %c0_59 = arith.constant 0 : index
    %c0_60 = arith.constant 0 : index
    %69 = vector.load %arg15[%c0_59, %c0_60] : memref<32x290xf32, #tpu.memory_space<vmem>>, vector<32x290xf32>
    tpu.vector_store %arg15[%c0_59, %c0_60], %68 {strides = array<i32>} : memref<32x290xf32, #tpu.memory_space<vmem>>, vector<32x290xf32>,
    %c0_61 = arith.constant 0 : index
    %c17_62 = arith.constant 17 : index
    %70 = vector.load %arg15[%c0_61, %c17_62] : memref<32x290xf32, #tpu.memory_space<vmem>>, vector<32x256xf32>
    tpu.vector_store %arg15[%c0_61, %c17_62], %67 {strides = array<i32>} : memref<32x290xf32, #tpu.memory_space<vmem>>, vector<32x256xf32>,
    %c0_63 = arith.constant 0 : index
    %c0_64 = arith.constant 0 : index
    %71 = vector.load %arg15[%c0_63, %c0_64] : memref<32x290xf32, #tpu.memory_space<vmem>>, vector<32x256xf32>
    %c0_65 = arith.constant 0 : index
    %c0_66 = arith.constant 0 : index
    %72 = vector.load %arg4[%c0_65, %c0_66] : memref<3x256xf32, #tpu.memory_space<vmem>>, vector<1x256xf32>
    %73 = vector.broadcast %72 : vector<1x256xf32> to vector<32x256xf32>
    %74 = arith.mulf %71, %73 : vector<32x256xf32>
    %c0_67 = arith.constant 0 : index
    %c0_68 = arith.constant 0 : index
    %c0_69 = arith.constant 0 : index
    %75 = vector.load %arg16[%c0_67, %c0_68, %c0_69] : memref<9x32x256xf32, #tpu.memory_space<vmem>>, vector<1x32x256xf32>
    %76 = vector.shape_cast %75 : vector<1x32x256xf32> to vector<32x256xf32>
    %77 = vector.shape_cast %74 : vector<32x256xf32> to vector<1x32x256xf32>
    tpu.vector_store %arg16[%c0_67, %c0_68, %c0_69], %77 {strides = array<i32>} : memref<9x32x256xf32, #tpu.memory_space<vmem>>, vector<1x32x256xf32>,
    %c0_70 = arith.constant 0 : index
    %c1_71 = arith.constant 1 : index
    %78 = vector.load %arg15[%c0_70, %c1_71] : memref<32x290xf32, #tpu.memory_space<vmem>>, vector<32x256xf32>
    %c1_72 = arith.constant 1 : index
    %c0_73 = arith.constant 0 : index
    %c0_74 = arith.constant 0 : index
    %79 = vector.load %arg16[%c1_72, %c0_73, %c0_74] : memref<9x32x256xf32, #tpu.memory_space<vmem>>, vector<1x32x256xf32>
    %80 = vector.shape_cast %79 : vector<1x32x256xf32> to vector<32x256xf32>
    %81 = vector.shape_cast %78 : vector<32x256xf32> to vector<1x32x256xf32>
    tpu.vector_store %arg16[%c1_72, %c0_73, %c0_74], %81 {strides = array<i32>} : memref<9x32x256xf32, #tpu.memory_space<vmem>>, vector<1x32x256xf32>,
    %c0_75 = arith.constant 0 : index
    %c2_76 = arith.constant 2 : index
    %82 = vector.load %arg15[%c0_75, %c2_76] : memref<32x290xf32, #tpu.memory_space<vmem>>, vector<32x256xf32>
    %c2_77 = arith.constant 2 : index
    %c0_78 = arith.constant 0 : index
    %83 = vector.load %arg4[%c2_77, %c0_78] : memref<3x256xf32, #tpu.memory_space<vmem>>, vector<1x256xf32>
    %84 = vector.broadcast %83 : vector<1x256xf32> to vector<32x256xf32>
    %85 = arith.mulf %82, %84 : vector<32x256xf32>
    %c2_79 = arith.constant 2 : index
    %c0_80 = arith.constant 0 : index
    %c0_81 = arith.constant 0 : index
    %86 = vector.load %arg16[%c2_79, %c0_80, %c0_81] : memref<9x32x256xf32, #tpu.memory_space<vmem>>, vector<1x32x256xf32>
    %87 = vector.shape_cast %86 : vector<1x32x256xf32> to vector<32x256xf32>
    %88 = vector.shape_cast %85 : vector<32x256xf32> to vector<1x32x256xf32>
    tpu.vector_store %arg16[%c2_79, %c0_80, %c0_81], %88 {strides = array<i32>} : memref<9x32x256xf32, #tpu.memory_space<vmem>>, vector<1x32x256xf32>,
    %c0_82 = arith.constant 0 : index
    %c16_83 = arith.constant 16 : index
    %89 = vector.load %arg15[%c0_82, %c16_83] : memref<32x290xf32, #tpu.memory_space<vmem>>, vector<32x256xf32>
    %c0_84 = arith.constant 0 : index
    %c0_85 = arith.constant 0 : index
    %90 = vector.load %arg4[%c0_84, %c0_85] : memref<3x256xf32, #tpu.memory_space<vmem>>, vector<1x256xf32>
    %91 = vector.broadcast %90 : vector<1x256xf32> to vector<32x256xf32>
    %92 = arith.mulf %89, %91 : vector<32x256xf32>
    %c3_86 = arith.constant 3 : index
    %c0_87 = arith.constant 0 : index
    %c0_88 = arith.constant 0 : index
    %93 = vector.load %arg16[%c3_86, %c0_87, %c0_88] : memref<9x32x256xf32, #tpu.memory_space<vmem>>, vector<1x32x256xf32>
    %94 = vector.shape_cast %93 : vector<1x32x256xf32> to vector<32x256xf32>
    %95 = vector.shape_cast %92 : vector<32x256xf32> to vector<1x32x256xf32>
    tpu.vector_store %arg16[%c3_86, %c0_87, %c0_88], %95 {strides = array<i32>} : memref<9x32x256xf32, #tpu.memory_space<vmem>>, vector<1x32x256xf32>,
    %c0_89 = arith.constant 0 : index
    %c17_90 = arith.constant 17 : index
    %96 = vector.load %arg15[%c0_89, %c17_90] : memref<32x290xf32, #tpu.memory_space<vmem>>, vector<32x256xf32>
    %c4_91 = arith.constant 4 : index
    %c0_92 = arith.constant 0 : index
    %c0_93 = arith.constant 0 : index
    %97 = vector.load %arg16[%c4_91, %c0_92, %c0_93] : memref<9x32x256xf32, #tpu.memory_space<vmem>>, vector<1x32x256xf32>
    %98 = vector.shape_cast %97 : vector<1x32x256xf32> to vector<32x256xf32>
    %99 = vector.shape_cast %96 : vector<32x256xf32> to vector<1x32x256xf32>
    tpu.vector_store %arg16[%c4_91, %c0_92, %c0_93], %99 {strides = array<i32>} : memref<9x32x256xf32, #tpu.memory_space<vmem>>, vector<1x32x256xf32>,
    %c0_94 = arith.constant 0 : index
    %c18_95 = arith.constant 18 : index
    %100 = vector.load %arg15[%c0_94, %c18_95] : memref<32x290xf32, #tpu.memory_space<vmem>>, vector<32x256xf32>
    %c2_96 = arith.constant 2 : index
    %c0_97 = arith.constant 0 : index
    %101 = vector.load %arg4[%c2_96, %c0_97] : memref<3x256xf32, #tpu.memory_space<vmem>>, vector<1x256xf32>
    %102 = vector.broadcast %101 : vector<1x256xf32> to vector<32x256xf32>
    %103 = arith.mulf %100, %102 : vector<32x256xf32>
    %c5_98 = arith.constant 5 : index
    %c0_99 = arith.constant 0 : index
    %c0_100 = arith.constant 0 : index
    %104 = vector.load %arg16[%c5_98, %c0_99, %c0_100] : memref<9x32x256xf32, #tpu.memory_space<vmem>>, vector<1x32x256xf32>
    %105 = vector.shape_cast %104 : vector<1x32x256xf32> to vector<32x256xf32>
    %106 = vector.shape_cast %103 : vector<32x256xf32> to vector<1x32x256xf32>
    tpu.vector_store %arg16[%c5_98, %c0_99, %c0_100], %106 {strides = array<i32>} : memref<9x32x256xf32, #tpu.memory_space<vmem>>, vector<1x32x256xf32>,
    %c0_101 = arith.constant 0 : index
    %c32_102 = arith.constant 32 : index
    %107 = vector.load %arg15[%c0_101, %c32_102] : memref<32x290xf32, #tpu.memory_space<vmem>>, vector<32x256xf32>
    %c0_103 = arith.constant 0 : index
    %c0_104 = arith.constant 0 : index
    %108 = vector.load %arg4[%c0_103, %c0_104] : memref<3x256xf32, #tpu.memory_space<vmem>>, vector<1x256xf32>
    %109 = vector.broadcast %108 : vector<1x256xf32> to vector<32x256xf32>
    %110 = arith.mulf %107, %109 : vector<32x256xf32>
    %c6_105 = arith.constant 6 : index
    %c0_106 = arith.constant 0 : index
    %c0_107 = arith.constant 0 : index
    %111 = vector.load %arg16[%c6_105, %c0_106, %c0_107] : memref<9x32x256xf32, #tpu.memory_space<vmem>>, vector<1x32x256xf32>
    %112 = vector.shape_cast %111 : vector<1x32x256xf32> to vector<32x256xf32>
    %113 = vector.shape_cast %110 : vector<32x256xf32> to vector<1x32x256xf32>
    tpu.vector_store %arg16[%c6_105, %c0_106, %c0_107], %113 {strides = array<i32>} : memref<9x32x256xf32, #tpu.memory_space<vmem>>, vector<1x32x256xf32>,
    %c0_108 = arith.constant 0 : index
    %c33_109 = arith.constant 33 : index
    %114 = vector.load %arg15[%c0_108, %c33_109] : memref<32x290xf32, #tpu.memory_space<vmem>>, vector<32x256xf32>
    %c7_110 = arith.constant 7 : index
    %c0_111 = arith.constant 0 : index
    %c0_112 = arith.constant 0 : index
    %115 = vector.load %arg16[%c7_110, %c0_111, %c0_112] : memref<9x32x256xf32, #tpu.memory_space<vmem>>, vector<1x32x256xf32>
    %116 = vector.shape_cast %115 : vector<1x32x256xf32> to vector<32x256xf32>
    %117 = vector.shape_cast %114 : vector<32x256xf32> to vector<1x32x256xf32>
    tpu.vector_store %arg16[%c7_110, %c0_111, %c0_112], %117 {strides = array<i32>} : memref<9x32x256xf32, #tpu.memory_space<vmem>>, vector<1x32x256xf32>,
    %c0_113 = arith.constant 0 : index
    %c34_114 = arith.constant 34 : index
    %118 = vector.load %arg15[%c0_113, %c34_114] : memref<32x290xf32, #tpu.memory_space<vmem>>, vector<32x256xf32>
    %c2_115 = arith.constant 2 : index
    %c0_116 = arith.constant 0 : index
    %119 = vector.load %arg4[%c2_115, %c0_116] : memref<3x256xf32, #tpu.memory_space<vmem>>, vector<1x256xf32>
    %120 = vector.broadcast %119 : vector<1x256xf32> to vector<32x256xf32>
    %121 = arith.mulf %118, %120 : vector<32x256xf32>
    %c8_117 = arith.constant 8 : index
    %c0_118 = arith.constant 0 : index
    %c0_119 = arith.constant 0 : index
    %122 = vector.load %arg16[%c8_117, %c0_118, %c0_119] : memref<9x32x256xf32, #tpu.memory_space<vmem>>, vector<1x32x256xf32>
    %123 = vector.shape_cast %122 : vector<1x32x256xf32> to vector<32x256xf32>
    %124 = vector.shape_cast %121 : vector<32x256xf32> to vector<1x32x256xf32>
    tpu.vector_store %arg16[%c8_117, %c0_118, %c0_119], %124 {strides = array<i32>} : memref<9x32x256xf32, #tpu.memory_space<vmem>>, vector<1x32x256xf32>,
    %c0_120 = arith.constant 0 : index
    %c0_121 = arith.constant 0 : index
    %c0_122 = arith.constant 0 : index
    %125 = vector.load %arg16[%c0_120, %c0_121, %c0_122] : memref<9x32x256xf32, #tpu.memory_space<vmem>>, vector<9x32x256xf32>
    %126 = vector.shape_cast %125 : vector<9x32x256xf32> to vector<288x256xf32>
    %c0_123 = arith.constant 0 : index
    %c0_124 = arith.constant 0 : index
    %127 = vector.load %arg8[%c0_123, %c0_124] : memref<8x288xf32, #tpu.memory_space<vmem>>, vector<8x288xf32>
    %cst_125 = arith.constant dense<0.000000e+00> : vector<8x256xf32>
    %128 = tpu.matmul %127, %126, %cst_125 {dimension_numbers = #tpu.dot_dimension_numbers<[1], [0], [0], [1], [0, 0, 1, 1], [], []>} : vector<8x288xf32>, vector<288x256xf32>, vector<8x256xf32> -> vector<8x256xf32>
    %c0_126 = arith.constant 0 : index
    %c0_127 = arith.constant 0 : index
    %129 = vector.load %arg9[%c0_126, %c0_127] : memref<8x1xf32, #tpu.memory_space<vmem>>, vector<8x1xf32>
    %130 = vector.broadcast %129 : vector<8x1xf32> to vector<8x256xf32>
    %131 = arith.addf %128, %130 : vector<8x256xf32>
    %132 = vector.extract_strided_slice %131 {offsets = [0, 0], sizes = [4, 256], strides = [1, 1]} : vector<8x256xf32> to vector<4x256xf32>
    %133 = vector.extract_strided_slice %131 {offsets = [4, 0], sizes = [4, 256], strides = [1, 1]} : vector<8x256xf32> to vector<4x256xf32>
    %c0_128 = arith.constant 0 : index
    %c0_129 = arith.constant 0 : index
    %c0_130 = arith.constant 0 : index
    %134 = vector.load %arg1[%c0_128, %c0_129, %c0_130] : memref<1x4x256xf32, #tpu.memory_space<vmem>>, vector<1x4x256xf32>
    %135 = vector.shape_cast %134 : vector<1x4x256xf32> to vector<4x256xf32>
    %c0_131 = arith.constant 0 : index
    %c0_132 = arith.constant 0 : index
    %136 = vector.load %arg3[%c0_131, %c0_132] : memref<4x2xf32, #tpu.memory_space<vmem>>, vector<4x1xf32>
    %137 = vector.broadcast %136 : vector<4x1xf32> to vector<4x256xf32>
    %138 = arith.subf %135, %137 : vector<4x256xf32>
    %c0_133 = arith.constant 0 : index
    %c1_134 = arith.constant 1 : index
    %139 = vector.load %arg3[%c0_133, %c1_134] : memref<4x2xf32, #tpu.memory_space<vmem>>, vector<4x1xf32>
    %140 = vector.broadcast %139 : vector<4x1xf32> to vector<4x256xf32>
    %141 = arith.mulf %138, %140 : vector<4x256xf32>
    %cst_135 = arith.constant 1.000000e+00 : f32
    %142 = vector.broadcast %cst_135 : f32 to vector<4x256xf32>
    %143 = arith.addf %142, %132 : vector<4x256xf32>
    %144 = arith.mulf %141, %143 : vector<4x256xf32>
    %145 = arith.addf %144, %133 : vector<4x256xf32>
    %c0_136 = arith.constant 0 : index
    %c0_137 = arith.constant 0 : index
    %146 = vector.load %arg10[%c0_136, %c0_137] : memref<8x4xf32, #tpu.memory_space<vmem>>, vector<8x4xf32>
    %cst_138 = arith.constant dense<0.000000e+00> : vector<8x256xf32>
    %147 = tpu.matmul %146, %145, %cst_138 {dimension_numbers = #tpu.dot_dimension_numbers<[1], [0], [0], [1], [0, 0, 1, 1], [], []>} : vector<8x4xf32>, vector<4x256xf32>, vector<8x256xf32> -> vector<8x256xf32>
    %c0_139 = arith.constant 0 : index
    %c0_140 = arith.constant 0 : index
    %148 = vector.load %arg11[%c0_139, %c0_140] : memref<8x1xf32, #tpu.memory_space<vmem>>, vector<8x1xf32>
    %149 = vector.broadcast %148 : vector<8x1xf32> to vector<8x256xf32>
    %150 = arith.addf %147, %149 : vector<8x256xf32>
    %c0_141 = arith.constant 0 : index
    %c0_142 = arith.constant 0 : index
    %c0_143 = arith.constant 0 : index
    %151 = vector.load %arg12[%c0_141, %c0_142, %c0_143] : memref<1x8x256xf32, #tpu.memory_space<vmem>>, vector<1x8x256xf32>
    %152 = vector.shape_cast %151 : vector<1x8x256xf32> to vector<8x256xf32>
    %153 = vector.shape_cast %150 : vector<8x256xf32> to vector<1x8x256xf32>
    tpu.vector_store %arg12[%c0_141, %c0_142, %c0_143], %153 {strides = array<i32>} : memref<1x8x256xf32, #tpu.memory_space<vmem>>, vector<1x8x256xf32>,
    return
  }
  func.func @transform_0(%arg0: i32) -> (i32, i32, i32) {
    %c0_i32 = arith.constant 0 : i32
    %c0_i32_0 = arith.constant 0 : i32
    %c0_i32_1 = arith.constant 0 : i32
    return %arg0, %c0_i32, %c0_i32_0 : i32, i32, i32
  }
  func.func @transform_1(%arg0: i32) -> (i32, i32, i32) {
    %c0_i32 = arith.constant 0 : i32
    %c0_i32_0 = arith.constant 0 : i32
    %c0_i32_1 = arith.constant 0 : i32
    return %arg0, %c0_i32, %c0_i32_0 : i32, i32, i32
  }
  func.func @transform_2(%arg0: i32) -> (i32, i32) {
    %c0_i32 = arith.constant 0 : i32
    %c0_i32_0 = arith.constant 0 : i32
    %c0_i32_1 = arith.constant 0 : i32
    return %c0_i32, %c0_i32_0 : i32, i32
  }
  func.func @transform_3(%arg0: i32) -> (i32, i32) {
    %c0_i32 = arith.constant 0 : i32
    %c0_i32_0 = arith.constant 0 : i32
    %c0_i32_1 = arith.constant 0 : i32
    return %c0_i32, %c0_i32_0 : i32, i32
  }
  func.func @transform_4(%arg0: i32) -> (i32, i32) {
    %c0_i32 = arith.constant 0 : i32
    %c0_i32_0 = arith.constant 0 : i32
    %c0_i32_1 = arith.constant 0 : i32
    return %c0_i32, %c0_i32_0 : i32, i32
  }
  func.func @transform_5(%arg0: i32) -> (i32, i32) {
    %c0_i32 = arith.constant 0 : i32
    %c0_i32_0 = arith.constant 0 : i32
    %c0_i32_1 = arith.constant 0 : i32
    return %c0_i32, %c0_i32_0 : i32, i32
  }
  func.func @transform_6(%arg0: i32) -> (i32, i32) {
    %c0_i32 = arith.constant 0 : i32
    %c0_i32_0 = arith.constant 0 : i32
    %c0_i32_1 = arith.constant 0 : i32
    return %c0_i32, %c0_i32_0 : i32, i32
  }
  func.func @transform_7(%arg0: i32) -> (i32, i32) {
    %c0_i32 = arith.constant 0 : i32
    %c0_i32_0 = arith.constant 0 : i32
    %c0_i32_1 = arith.constant 0 : i32
    return %c0_i32, %c0_i32_0 : i32, i32
  }
  func.func @transform_8(%arg0: i32) -> (i32, i32) {
    %c0_i32 = arith.constant 0 : i32
    %c0_i32_0 = arith.constant 0 : i32
    %c0_i32_1 = arith.constant 0 : i32
    return %c0_i32, %c0_i32_0 : i32, i32
  }
  func.func @transform_9(%arg0: i32) -> (i32, i32) {
    %c0_i32 = arith.constant 0 : i32
    %c0_i32_0 = arith.constant 0 : i32
    %c0_i32_1 = arith.constant 0 : i32
    return %c0_i32, %c0_i32_0 : i32, i32
  }
  func.func @transform_10(%arg0: i32) -> (i32, i32) {
    %c0_i32 = arith.constant 0 : i32
    %c0_i32_0 = arith.constant 0 : i32
    %c0_i32_1 = arith.constant 0 : i32
    return %c0_i32, %c0_i32_0 : i32, i32
  }
  func.func @transform_11(%arg0: i32) -> (i32, i32, i32) {
    %c0_i32 = arith.constant 0 : i32
    %c0_i32_0 = arith.constant 0 : i32
    %c0_i32_1 = arith.constant 0 : i32
    return %arg0, %c0_i32, %c0_i32_0 : i32, i32, i32
  }
}

module attributes {stable_mosaic.version = 11 : i64} {
  func.func @kernel(%arg0: i32, %arg1: memref<1x4x256xf32, #tpu.memory_space<vmem>>, %arg2: memref<1x8x256xf32, #tpu.memory_space<vmem>>, %arg3: memref<4x2xf32, #tpu.memory_space<vmem>>, %arg4: memref<3x256xf32, #tpu.memory_space<vmem>>, %arg5: memref<3x256xf32, #tpu.memory_space<vmem>>, %arg6: memref<32x72xf32, #tpu.memory_space<vmem>>, %arg7: memref<32x1xf32, #tpu.memory_space<vmem>>, %arg8: memref<8x288xf32, #tpu.memory_space<vmem>>, %arg9: memref<8x1xf32, #tpu.memory_space<vmem>>, %arg10: memref<8x36xf32, #tpu.memory_space<vmem>>, %arg11: memref<8x1xf32, #tpu.memory_space<vmem>>, %arg12: memref<1x8x256xf32, #tpu.memory_space<vmem>>, %arg13: memref<8x290xf32, #tpu.memory_space<vmem>>, %arg14: memref<9x8x256xf32, #tpu.memory_space<vmem>>, %arg15: memref<32x290xf32, #tpu.memory_space<vmem>>, %arg16: memref<9x32x256xf32, #tpu.memory_space<vmem>>, %arg17: memref<4x290xf32, #tpu.memory_space<vmem>>, %arg18: memref<9x4x256xf32, #tpu.memory_space<vmem>>) attributes {dimension_semantics = [#tpu.dimension_semantics<parallel>], iteration_bounds = array<i64: 2>, scalar_prefetch = 0 : i64, scratch_operands = 6 : i64, tpu.core_type = #tpu.core_type<tc>, window_params = [{transform_indices = @transform_0, window_bounds = array<i64: 1, 4, 256>}, {transform_indices = @transform_1, window_bounds = array<i64: 1, 8, 256>}, {pipeline_mode = #tpu.pipeline_mode<synchronous>, transform_indices = @transform_2, window_bounds = array<i64: 4, 2>}, {pipeline_mode = #tpu.pipeline_mode<synchronous>, transform_indices = @transform_3, window_bounds = array<i64: 3, 256>}, {pipeline_mode = #tpu.pipeline_mode<synchronous>, transform_indices = @transform_4, window_bounds = array<i64: 3, 256>}, {pipeline_mode = #tpu.pipeline_mode<synchronous>, transform_indices = @transform_5, window_bounds = array<i64: 32, 72>}, {pipeline_mode = #tpu.pipeline_mode<synchronous>, transform_indices = @transform_6, window_bounds = array<i64: 32, 1>}, {pipeline_mode = #tpu.pipeline_mode<synchronous>, transform_indices = @transform_7, window_bounds = array<i64: 8, 288>}, {pipeline_mode = #tpu.pipeline_mode<synchronous>, transform_indices = @transform_8, window_bounds = array<i64: 8, 1>}, {pipeline_mode = #tpu.pipeline_mode<synchronous>, transform_indices = @transform_9, window_bounds = array<i64: 8, 36>}, {pipeline_mode = #tpu.pipeline_mode<synchronous>, transform_indices = @transform_10, window_bounds = array<i64: 8, 1>}, {transform_indices = @transform_11, window_bounds = array<i64: 1, 8, 256>}]} {
    %c0 = arith.constant 0 : index
    %c0_0 = arith.constant 0 : index
    %c0_1 = arith.constant 0 : index
    %0 = vector.load %arg2[%c0, %c0_0, %c0_1] : memref<1x8x256xf32, #tpu.memory_space<vmem>>, vector<1x8x256xf32>
    %1 = vector.shape_cast %0 : vector<1x8x256xf32> to vector<8x256xf32>
    %cst = arith.constant 0.000000e+00 : f32
    %2 = vector.broadcast %cst : f32 to vector<8x290xf32>
    %c0_2 = arith.constant 0 : index
    %c0_3 = arith.constant 0 : index
    %3 = vector.load %arg13[%c0_2, %c0_3] : memref<8x290xf32, #tpu.memory_space<vmem>>, vector<8x290xf32>
    tpu.vector_store %arg13[%c0_2, %c0_3], %2 {strides = array<i32>} : memref<8x290xf32, #tpu.memory_space<vmem>>, vector<8x290xf32>,
    %c0_4 = arith.constant 0 : index
    %c17 = arith.constant 17 : index
    %4 = vector.load %arg13[%c0_4, %c17] : memref<8x290xf32, #tpu.memory_space<vmem>>, vector<8x256xf32>
    tpu.vector_store %arg13[%c0_4, %c17], %1 {strides = array<i32>} : memref<8x290xf32, #tpu.memory_space<vmem>>, vector<8x256xf32>,
    %c0_5 = arith.constant 0 : index
    %c0_6 = arith.constant 0 : index
    %5 = vector.load %arg13[%c0_5, %c0_6] : memref<8x290xf32, #tpu.memory_space<vmem>>, vector<8x256xf32>
    %c0_7 = arith.constant 0 : index
    %c0_8 = arith.constant 0 : index
    %6 = vector.load %arg4[%c0_7, %c0_8] : memref<3x256xf32, #tpu.memory_space<vmem>>, vector<1x256xf32>
    %7 = vector.broadcast %6 : vector<1x256xf32> to vector<8x256xf32>
    %8 = arith.mulf %5, %7 : vector<8x256xf32>
    %c0_9 = arith.constant 0 : index
    %c0_10 = arith.constant 0 : index
    %c0_11 = arith.constant 0 : index
    %9 = vector.load %arg14[%c0_9, %c0_10, %c0_11] : memref<9x8x256xf32, #tpu.memory_space<vmem>>, vector<1x8x256xf32>
    %10 = vector.shape_cast %9 : vector<1x8x256xf32> to vector<8x256xf32>
    %11 = vector.shape_cast %8 : vector<8x256xf32> to vector<1x8x256xf32>
    tpu.vector_store %arg14[%c0_9, %c0_10, %c0_11], %11 {strides = array<i32>} : memref<9x8x256xf32, #tpu.memory_space<vmem>>, vector<1x8x256xf32>,
    %c0_12 = arith.constant 0 : index
    %c1 = arith.constant 1 : index
    %12 = vector.load %arg13[%c0_12, %c1] : memref<8x290xf32, #tpu.memory_space<vmem>>, vector<8x256xf32>
    %c1_13 = arith.constant 1 : index
    %c0_14 = arith.constant 0 : index
    %c0_15 = arith.constant 0 : index
    %13 = vector.load %arg14[%c1_13, %c0_14, %c0_15] : memref<9x8x256xf32, #tpu.memory_space<vmem>>, vector<1x8x256xf32>
    %14 = vector.shape_cast %13 : vector<1x8x256xf32> to vector<8x256xf32>
    %15 = vector.shape_cast %12 : vector<8x256xf32> to vector<1x8x256xf32>
    tpu.vector_store %arg14[%c1_13, %c0_14, %c0_15], %15 {strides = array<i32>} : memref<9x8x256xf32, #tpu.memory_space<vmem>>, vector<1x8x256xf32>,
    %c0_16 = arith.constant 0 : index
    %c2 = arith.constant 2 : index
    %16 = vector.load %arg13[%c0_16, %c2] : memref<8x290xf32, #tpu.memory_space<vmem>>, vector<8x256xf32>
    %c2_17 = arith.constant 2 : index
    %c0_18 = arith.constant 0 : index
    %17 = vector.load %arg4[%c2_17, %c0_18] : memref<3x256xf32, #tpu.memory_space<vmem>>, vector<1x256xf32>
    %18 = vector.broadcast %17 : vector<1x256xf32> to vector<8x256xf32>
    %19 = arith.mulf %16, %18 : vector<8x256xf32>
    %c2_19 = arith.constant 2 : index
    %c0_20 = arith.constant 0 : index
    %c0_21 = arith.constant 0 : index
    %20 = vector.load %arg14[%c2_19, %c0_20, %c0_21] : memref<9x8x256xf32, #tpu.memory_space<vmem>>, vector<1x8x256xf32>
    %21 = vector.shape_cast %20 : vector<1x8x256xf32> to vector<8x256xf32>
    %22 = vector.shape_cast %19 : vector<8x256xf32> to vector<1x8x256xf32>
    tpu.vector_store %arg14[%c2_19, %c0_20, %c0_21], %22 {strides = array<i32>} : memref<9x8x256xf32, #tpu.memory_space<vmem>>, vector<1x8x256xf32>,
    %c0_22 = arith.constant 0 : index
    %c16 = arith.constant 16 : index
    %23 = vector.load %arg13[%c0_22, %c16] : memref<8x290xf32, #tpu.memory_space<vmem>>, vector<8x256xf32>
    %c0_23 = arith.constant 0 : index
    %c0_24 = arith.constant 0 : index
    %24 = vector.load %arg4[%c0_23, %c0_24] : memref<3x256xf32, #tpu.memory_space<vmem>>, vector<1x256xf32>
    %25 = vector.broadcast %24 : vector<1x256xf32> to vector<8x256xf32>
    %26 = arith.mulf %23, %25 : vector<8x256xf32>
    %c3 = arith.constant 3 : index
    %c0_25 = arith.constant 0 : index
    %c0_26 = arith.constant 0 : index
    %27 = vector.load %arg14[%c3, %c0_25, %c0_26] : memref<9x8x256xf32, #tpu.memory_space<vmem>>, vector<1x8x256xf32>
    %28 = vector.shape_cast %27 : vector<1x8x256xf32> to vector<8x256xf32>
    %29 = vector.shape_cast %26 : vector<8x256xf32> to vector<1x8x256xf32>
    tpu.vector_store %arg14[%c3, %c0_25, %c0_26], %29 {strides = array<i32>} : memref<9x8x256xf32, #tpu.memory_space<vmem>>, vector<1x8x256xf32>,
    %c0_27 = arith.constant 0 : index
    %c17_28 = arith.constant 17 : index
    %30 = vector.load %arg13[%c0_27, %c17_28] : memref<8x290xf32, #tpu.memory_space<vmem>>, vector<8x256xf32>
    %c4 = arith.constant 4 : index
    %c0_29 = arith.constant 0 : index
    %c0_30 = arith.constant 0 : index
    %31 = vector.load %arg14[%c4, %c0_29, %c0_30] : memref<9x8x256xf32, #tpu.memory_space<vmem>>, vector<1x8x256xf32>
    %32 = vector.shape_cast %31 : vector<1x8x256xf32> to vector<8x256xf32>
    %33 = vector.shape_cast %30 : vector<8x256xf32> to vector<1x8x256xf32>
    tpu.vector_store %arg14[%c4, %c0_29, %c0_30], %33 {strides = array<i32>} : memref<9x8x256xf32, #tpu.memory_space<vmem>>, vector<1x8x256xf32>,
    %c0_31 = arith.constant 0 : index
    %c18 = arith.constant 18 : index
    %34 = vector.load %arg13[%c0_31, %c18] : memref<8x290xf32, #tpu.memory_space<vmem>>, vector<8x256xf32>
    %c2_32 = arith.constant 2 : index
    %c0_33 = arith.constant 0 : index
    %35 = vector.load %arg4[%c2_32, %c0_33] : memref<3x256xf32, #tpu.memory_space<vmem>>, vector<1x256xf32>
    %36 = vector.broadcast %35 : vector<1x256xf32> to vector<8x256xf32>
    %37 = arith.mulf %34, %36 : vector<8x256xf32>
    %c5 = arith.constant 5 : index
    %c0_34 = arith.constant 0 : index
    %c0_35 = arith.constant 0 : index
    %38 = vector.load %arg14[%c5, %c0_34, %c0_35] : memref<9x8x256xf32, #tpu.memory_space<vmem>>, vector<1x8x256xf32>
    %39 = vector.shape_cast %38 : vector<1x8x256xf32> to vector<8x256xf32>
    %40 = vector.shape_cast %37 : vector<8x256xf32> to vector<1x8x256xf32>
    tpu.vector_store %arg14[%c5, %c0_34, %c0_35], %40 {strides = array<i32>} : memref<9x8x256xf32, #tpu.memory_space<vmem>>, vector<1x8x256xf32>,
    %c0_36 = arith.constant 0 : index
    %c32 = arith.constant 32 : index
    %41 = vector.load %arg13[%c0_36, %c32] : memref<8x290xf32, #tpu.memory_space<vmem>>, vector<8x256xf32>
    %c0_37 = arith.constant 0 : index
    %c0_38 = arith.constant 0 : index
    %42 = vector.load %arg4[%c0_37, %c0_38] : memref<3x256xf32, #tpu.memory_space<vmem>>, vector<1x256xf32>
    %43 = vector.broadcast %42 : vector<1x256xf32> to vector<8x256xf32>
    %44 = arith.mulf %41, %43 : vector<8x256xf32>
    %c6 = arith.constant 6 : index
    %c0_39 = arith.constant 0 : index
    %c0_40 = arith.constant 0 : index
    %45 = vector.load %arg14[%c6, %c0_39, %c0_40] : memref<9x8x256xf32, #tpu.memory_space<vmem>>, vector<1x8x256xf32>
    %46 = vector.shape_cast %45 : vector<1x8x256xf32> to vector<8x256xf32>
    %47 = vector.shape_cast %44 : vector<8x256xf32> to vector<1x8x256xf32>
    tpu.vector_store %arg14[%c6, %c0_39, %c0_40], %47 {strides = array<i32>} : memref<9x8x256xf32, #tpu.memory_space<vmem>>, vector<1x8x256xf32>,
    %c0_41 = arith.constant 0 : index
    %c33 = arith.constant 33 : index
    %48 = vector.load %arg13[%c0_41, %c33] : memref<8x290xf32, #tpu.memory_space<vmem>>, vector<8x256xf32>
    %c7 = arith.constant 7 : index
    %c0_42 = arith.constant 0 : index
    %c0_43 = arith.constant 0 : index
    %49 = vector.load %arg14[%c7, %c0_42, %c0_43] : memref<9x8x256xf32, #tpu.memory_space<vmem>>, vector<1x8x256xf32>
    %50 = vector.shape_cast %49 : vector<1x8x256xf32> to vector<8x256xf32>
    %51 = vector.shape_cast %48 : vector<8x256xf32> to vector<1x8x256xf32>
    tpu.vector_store %arg14[%c7, %c0_42, %c0_43], %51 {strides = array<i32>} : memref<9x8x256xf32, #tpu.memory_space<vmem>>, vector<1x8x256xf32>,
    %c0_44 = arith.constant 0 : index
    %c34 = arith.constant 34 : index
    %52 = vector.load %arg13[%c0_44, %c34] : memref<8x290xf32, #tpu.memory_space<vmem>>, vector<8x256xf32>
    %c2_45 = arith.constant 2 : index
    %c0_46 = arith.constant 0 : index
    %53 = vector.load %arg4[%c2_45, %c0_46] : memref<3x256xf32, #tpu.memory_space<vmem>>, vector<1x256xf32>
    %54 = vector.broadcast %53 : vector<1x256xf32> to vector<8x256xf32>
    %55 = arith.mulf %52, %54 : vector<8x256xf32>
    %c8 = arith.constant 8 : index
    %c0_47 = arith.constant 0 : index
    %c0_48 = arith.constant 0 : index
    %56 = vector.load %arg14[%c8, %c0_47, %c0_48] : memref<9x8x256xf32, #tpu.memory_space<vmem>>, vector<1x8x256xf32>
    %57 = vector.shape_cast %56 : vector<1x8x256xf32> to vector<8x256xf32>
    %58 = vector.shape_cast %55 : vector<8x256xf32> to vector<1x8x256xf32>
    tpu.vector_store %arg14[%c8, %c0_47, %c0_48], %58 {strides = array<i32>} : memref<9x8x256xf32, #tpu.memory_space<vmem>>, vector<1x8x256xf32>,
    %c0_49 = arith.constant 0 : index
    %c0_50 = arith.constant 0 : index
    %c0_51 = arith.constant 0 : index
    %59 = vector.load %arg14[%c0_49, %c0_50, %c0_51] : memref<9x8x256xf32, #tpu.memory_space<vmem>>, vector<9x8x256xf32>
    %60 = vector.shape_cast %59 : vector<9x8x256xf32> to vector<72x256xf32>
    %c0_52 = arith.constant 0 : index
    %c0_53 = arith.constant 0 : index
    %61 = vector.load %arg6[%c0_52, %c0_53] : memref<32x72xf32, #tpu.memory_space<vmem>>, vector<32x72xf32>
    %cst_54 = arith.constant dense<0.000000e+00> : vector<32x256xf32>
    %62 = tpu.matmul %61, %60, %cst_54 {dimension_numbers = #tpu.dot_dimension_numbers<[1], [0], [0], [1], [0, 0, 1, 1], [], []>} : vector<32x72xf32>, vector<72x256xf32>, vector<32x256xf32> -> vector<32x256xf32>
    %c0_55 = arith.constant 0 : index
    %c0_56 = arith.constant 0 : index
    %63 = vector.load %arg7[%c0_55, %c0_56] : memref<32x1xf32, #tpu.memory_space<vmem>>, vector<32x1xf32>
    %64 = vector.broadcast %63 : vector<32x1xf32> to vector<32x256xf32>
    %65 = arith.addf %62, %64 : vector<32x256xf32>
    %cst_57 = arith.constant 0.000000e+00 : f32
    %66 = vector.broadcast %cst_57 : f32 to vector<32x256xf32>
    %67 = arith.maximumf %65, %66 : vector<32x256xf32>
    %cst_58 = arith.constant 0.000000e+00 : f32
    %68 = vector.broadcast %cst_58 : f32 to vector<32x290xf32>
    %c0_59 = arith.constant 0 : index
    %c0_60 = arith.constant 0 : index
    %69 = vector.load %arg15[%c0_59, %c0_60] : memref<32x290xf32, #tpu.memory_space<vmem>>, vector<32x290xf32>
    tpu.vector_store %arg15[%c0_59, %c0_60], %68 {strides = array<i32>} : memref<32x290xf32, #tpu.memory_space<vmem>>, vector<32x290xf32>,
    %c0_61 = arith.constant 0 : index
    %c17_62 = arith.constant 17 : index
    %70 = vector.load %arg15[%c0_61, %c17_62] : memref<32x290xf32, #tpu.memory_space<vmem>>, vector<32x256xf32>
    tpu.vector_store %arg15[%c0_61, %c17_62], %67 {strides = array<i32>} : memref<32x290xf32, #tpu.memory_space<vmem>>, vector<32x256xf32>,
    %c0_63 = arith.constant 0 : index
    %c0_64 = arith.constant 0 : index
    %71 = vector.load %arg15[%c0_63, %c0_64] : memref<32x290xf32, #tpu.memory_space<vmem>>, vector<32x256xf32>
    %c0_65 = arith.constant 0 : index
    %c0_66 = arith.constant 0 : index
    %72 = vector.load %arg4[%c0_65, %c0_66] : memref<3x256xf32, #tpu.memory_space<vmem>>, vector<1x256xf32>
    %73 = vector.broadcast %72 : vector<1x256xf32> to vector<32x256xf32>
    %74 = arith.mulf %71, %73 : vector<32x256xf32>
    %c0_67 = arith.constant 0 : index
    %c0_68 = arith.constant 0 : index
    %c0_69 = arith.constant 0 : index
    %75 = vector.load %arg16[%c0_67, %c0_68, %c0_69] : memref<9x32x256xf32, #tpu.memory_space<vmem>>, vector<1x32x256xf32>
    %76 = vector.shape_cast %75 : vector<1x32x256xf32> to vector<32x256xf32>
    %77 = vector.shape_cast %74 : vector<32x256xf32> to vector<1x32x256xf32>
    tpu.vector_store %arg16[%c0_67, %c0_68, %c0_69], %77 {strides = array<i32>} : memref<9x32x256xf32, #tpu.memory_space<vmem>>, vector<1x32x256xf32>,
    %c0_70 = arith.constant 0 : index
    %c1_71 = arith.constant 1 : index
    %78 = vector.load %arg15[%c0_70, %c1_71] : memref<32x290xf32, #tpu.memory_space<vmem>>, vector<32x256xf32>
    %c1_72 = arith.constant 1 : index
    %c0_73 = arith.constant 0 : index
    %c0_74 = arith.constant 0 : index
    %79 = vector.load %arg16[%c1_72, %c0_73, %c0_74] : memref<9x32x256xf32, #tpu.memory_space<vmem>>, vector<1x32x256xf32>
    %80 = vector.shape_cast %79 : vector<1x32x256xf32> to vector<32x256xf32>
    %81 = vector.shape_cast %78 : vector<32x256xf32> to vector<1x32x256xf32>
    tpu.vector_store %arg16[%c1_72, %c0_73, %c0_74], %81 {strides = array<i32>} : memref<9x32x256xf32, #tpu.memory_space<vmem>>, vector<1x32x256xf32>,
    %c0_75 = arith.constant 0 : index
    %c2_76 = arith.constant 2 : index
    %82 = vector.load %arg15[%c0_75, %c2_76] : memref<32x290xf32, #tpu.memory_space<vmem>>, vector<32x256xf32>
    %c2_77 = arith.constant 2 : index
    %c0_78 = arith.constant 0 : index
    %83 = vector.load %arg4[%c2_77, %c0_78] : memref<3x256xf32, #tpu.memory_space<vmem>>, vector<1x256xf32>
    %84 = vector.broadcast %83 : vector<1x256xf32> to vector<32x256xf32>
    %85 = arith.mulf %82, %84 : vector<32x256xf32>
    %c2_79 = arith.constant 2 : index
    %c0_80 = arith.constant 0 : index
    %c0_81 = arith.constant 0 : index
    %86 = vector.load %arg16[%c2_79, %c0_80, %c0_81] : memref<9x32x256xf32, #tpu.memory_space<vmem>>, vector<1x32x256xf32>
    %87 = vector.shape_cast %86 : vector<1x32x256xf32> to vector<32x256xf32>
    %88 = vector.shape_cast %85 : vector<32x256xf32> to vector<1x32x256xf32>
    tpu.vector_store %arg16[%c2_79, %c0_80, %c0_81], %88 {strides = array<i32>} : memref<9x32x256xf32, #tpu.memory_space<vmem>>, vector<1x32x256xf32>,
    %c0_82 = arith.constant 0 : index
    %c16_83 = arith.constant 16 : index
    %89 = vector.load %arg15[%c0_82, %c16_83] : memref<32x290xf32, #tpu.memory_space<vmem>>, vector<32x256xf32>
    %c0_84 = arith.constant 0 : index
    %c0_85 = arith.constant 0 : index
    %90 = vector.load %arg4[%c0_84, %c0_85] : memref<3x256xf32, #tpu.memory_space<vmem>>, vector<1x256xf32>
    %91 = vector.broadcast %90 : vector<1x256xf32> to vector<32x256xf32>
    %92 = arith.mulf %89, %91 : vector<32x256xf32>
    %c3_86 = arith.constant 3 : index
    %c0_87 = arith.constant 0 : index
    %c0_88 = arith.constant 0 : index
    %93 = vector.load %arg16[%c3_86, %c0_87, %c0_88] : memref<9x32x256xf32, #tpu.memory_space<vmem>>, vector<1x32x256xf32>
    %94 = vector.shape_cast %93 : vector<1x32x256xf32> to vector<32x256xf32>
    %95 = vector.shape_cast %92 : vector<32x256xf32> to vector<1x32x256xf32>
    tpu.vector_store %arg16[%c3_86, %c0_87, %c0_88], %95 {strides = array<i32>} : memref<9x32x256xf32, #tpu.memory_space<vmem>>, vector<1x32x256xf32>,
    %c0_89 = arith.constant 0 : index
    %c17_90 = arith.constant 17 : index
    %96 = vector.load %arg15[%c0_89, %c17_90] : memref<32x290xf32, #tpu.memory_space<vmem>>, vector<32x256xf32>
    %c4_91 = arith.constant 4 : index
    %c0_92 = arith.constant 0 : index
    %c0_93 = arith.constant 0 : index
    %97 = vector.load %arg16[%c4_91, %c0_92, %c0_93] : memref<9x32x256xf32, #tpu.memory_space<vmem>>, vector<1x32x256xf32>
    %98 = vector.shape_cast %97 : vector<1x32x256xf32> to vector<32x256xf32>
    %99 = vector.shape_cast %96 : vector<32x256xf32> to vector<1x32x256xf32>
    tpu.vector_store %arg16[%c4_91, %c0_92, %c0_93], %99 {strides = array<i32>} : memref<9x32x256xf32, #tpu.memory_space<vmem>>, vector<1x32x256xf32>,
    %c0_94 = arith.constant 0 : index
    %c18_95 = arith.constant 18 : index
    %100 = vector.load %arg15[%c0_94, %c18_95] : memref<32x290xf32, #tpu.memory_space<vmem>>, vector<32x256xf32>
    %c2_96 = arith.constant 2 : index
    %c0_97 = arith.constant 0 : index
    %101 = vector.load %arg4[%c2_96, %c0_97] : memref<3x256xf32, #tpu.memory_space<vmem>>, vector<1x256xf32>
    %102 = vector.broadcast %101 : vector<1x256xf32> to vector<32x256xf32>
    %103 = arith.mulf %100, %102 : vector<32x256xf32>
    %c5_98 = arith.constant 5 : index
    %c0_99 = arith.constant 0 : index
    %c0_100 = arith.constant 0 : index
    %104 = vector.load %arg16[%c5_98, %c0_99, %c0_100] : memref<9x32x256xf32, #tpu.memory_space<vmem>>, vector<1x32x256xf32>
    %105 = vector.shape_cast %104 : vector<1x32x256xf32> to vector<32x256xf32>
    %106 = vector.shape_cast %103 : vector<32x256xf32> to vector<1x32x256xf32>
    tpu.vector_store %arg16[%c5_98, %c0_99, %c0_100], %106 {strides = array<i32>} : memref<9x32x256xf32, #tpu.memory_space<vmem>>, vector<1x32x256xf32>,
    %c0_101 = arith.constant 0 : index
    %c32_102 = arith.constant 32 : index
    %107 = vector.load %arg15[%c0_101, %c32_102] : memref<32x290xf32, #tpu.memory_space<vmem>>, vector<32x256xf32>
    %c0_103 = arith.constant 0 : index
    %c0_104 = arith.constant 0 : index
    %108 = vector.load %arg4[%c0_103, %c0_104] : memref<3x256xf32, #tpu.memory_space<vmem>>, vector<1x256xf32>
    %109 = vector.broadcast %108 : vector<1x256xf32> to vector<32x256xf32>
    %110 = arith.mulf %107, %109 : vector<32x256xf32>
    %c6_105 = arith.constant 6 : index
    %c0_106 = arith.constant 0 : index
    %c0_107 = arith.constant 0 : index
    %111 = vector.load %arg16[%c6_105, %c0_106, %c0_107] : memref<9x32x256xf32, #tpu.memory_space<vmem>>, vector<1x32x256xf32>
    %112 = vector.shape_cast %111 : vector<1x32x256xf32> to vector<32x256xf32>
    %113 = vector.shape_cast %110 : vector<32x256xf32> to vector<1x32x256xf32>
    tpu.vector_store %arg16[%c6_105, %c0_106, %c0_107], %113 {strides = array<i32>} : memref<9x32x256xf32, #tpu.memory_space<vmem>>, vector<1x32x256xf32>,
    %c0_108 = arith.constant 0 : index
    %c33_109 = arith.constant 33 : index
    %114 = vector.load %arg15[%c0_108, %c33_109] : memref<32x290xf32, #tpu.memory_space<vmem>>, vector<32x256xf32>
    %c7_110 = arith.constant 7 : index
    %c0_111 = arith.constant 0 : index
    %c0_112 = arith.constant 0 : index
    %115 = vector.load %arg16[%c7_110, %c0_111, %c0_112] : memref<9x32x256xf32, #tpu.memory_space<vmem>>, vector<1x32x256xf32>
    %116 = vector.shape_cast %115 : vector<1x32x256xf32> to vector<32x256xf32>
    %117 = vector.shape_cast %114 : vector<32x256xf32> to vector<1x32x256xf32>
    tpu.vector_store %arg16[%c7_110, %c0_111, %c0_112], %117 {strides = array<i32>} : memref<9x32x256xf32, #tpu.memory_space<vmem>>, vector<1x32x256xf32>,
    %c0_113 = arith.constant 0 : index
    %c34_114 = arith.constant 34 : index
    %118 = vector.load %arg15[%c0_113, %c34_114] : memref<32x290xf32, #tpu.memory_space<vmem>>, vector<32x256xf32>
    %c2_115 = arith.constant 2 : index
    %c0_116 = arith.constant 0 : index
    %119 = vector.load %arg4[%c2_115, %c0_116] : memref<3x256xf32, #tpu.memory_space<vmem>>, vector<1x256xf32>
    %120 = vector.broadcast %119 : vector<1x256xf32> to vector<32x256xf32>
    %121 = arith.mulf %118, %120 : vector<32x256xf32>
    %c8_117 = arith.constant 8 : index
    %c0_118 = arith.constant 0 : index
    %c0_119 = arith.constant 0 : index
    %122 = vector.load %arg16[%c8_117, %c0_118, %c0_119] : memref<9x32x256xf32, #tpu.memory_space<vmem>>, vector<1x32x256xf32>
    %123 = vector.shape_cast %122 : vector<1x32x256xf32> to vector<32x256xf32>
    %124 = vector.shape_cast %121 : vector<32x256xf32> to vector<1x32x256xf32>
    tpu.vector_store %arg16[%c8_117, %c0_118, %c0_119], %124 {strides = array<i32>} : memref<9x32x256xf32, #tpu.memory_space<vmem>>, vector<1x32x256xf32>,
    %c0_120 = arith.constant 0 : index
    %c0_121 = arith.constant 0 : index
    %c0_122 = arith.constant 0 : index
    %125 = vector.load %arg16[%c0_120, %c0_121, %c0_122] : memref<9x32x256xf32, #tpu.memory_space<vmem>>, vector<9x32x256xf32>
    %126 = vector.shape_cast %125 : vector<9x32x256xf32> to vector<288x256xf32>
    %c0_123 = arith.constant 0 : index
    %c0_124 = arith.constant 0 : index
    %127 = vector.load %arg8[%c0_123, %c0_124] : memref<8x288xf32, #tpu.memory_space<vmem>>, vector<8x288xf32>
    %cst_125 = arith.constant dense<0.000000e+00> : vector<8x256xf32>
    %128 = tpu.matmul %127, %126, %cst_125 {dimension_numbers = #tpu.dot_dimension_numbers<[1], [0], [0], [1], [0, 0, 1, 1], [], []>} : vector<8x288xf32>, vector<288x256xf32>, vector<8x256xf32> -> vector<8x256xf32>
    %c0_126 = arith.constant 0 : index
    %c0_127 = arith.constant 0 : index
    %129 = vector.load %arg9[%c0_126, %c0_127] : memref<8x1xf32, #tpu.memory_space<vmem>>, vector<8x1xf32>
    %130 = vector.broadcast %129 : vector<8x1xf32> to vector<8x256xf32>
    %131 = arith.addf %128, %130 : vector<8x256xf32>
    %132 = vector.extract_strided_slice %131 {offsets = [0, 0], sizes = [4, 256], strides = [1, 1]} : vector<8x256xf32> to vector<4x256xf32>
    %133 = vector.extract_strided_slice %131 {offsets = [4, 0], sizes = [4, 256], strides = [1, 1]} : vector<8x256xf32> to vector<4x256xf32>
    %c0_128 = arith.constant 0 : index
    %c0_129 = arith.constant 0 : index
    %c0_130 = arith.constant 0 : index
    %134 = vector.load %arg1[%c0_128, %c0_129, %c0_130] : memref<1x4x256xf32, #tpu.memory_space<vmem>>, vector<1x4x256xf32>
    %135 = vector.shape_cast %134 : vector<1x4x256xf32> to vector<4x256xf32>
    %c0_131 = arith.constant 0 : index
    %c0_132 = arith.constant 0 : index
    %136 = vector.load %arg3[%c0_131, %c0_132] : memref<4x2xf32, #tpu.memory_space<vmem>>, vector<4x1xf32>
    %137 = vector.broadcast %136 : vector<4x1xf32> to vector<4x256xf32>
    %138 = arith.subf %135, %137 : vector<4x256xf32>
    %c0_133 = arith.constant 0 : index
    %c1_134 = arith.constant 1 : index
    %139 = vector.load %arg3[%c0_133, %c1_134] : memref<4x2xf32, #tpu.memory_space<vmem>>, vector<4x1xf32>
    %140 = vector.broadcast %139 : vector<4x1xf32> to vector<4x256xf32>
    %141 = arith.mulf %138, %140 : vector<4x256xf32>
    %cst_135 = arith.constant 1.000000e+00 : f32
    %142 = vector.broadcast %cst_135 : f32 to vector<4x256xf32>
    %143 = arith.addf %142, %132 : vector<4x256xf32>
    %144 = arith.mulf %141, %143 : vector<4x256xf32>
    %145 = arith.addf %144, %133 : vector<4x256xf32>
    %cst_136 = arith.constant 0.000000e+00 : f32
    %146 = vector.broadcast %cst_136 : f32 to vector<4x256xf32>
    %147 = arith.maximumf %145, %146 : vector<4x256xf32>
    %cst_137 = arith.constant 0.000000e+00 : f32
    %148 = vector.broadcast %cst_137 : f32 to vector<4x290xf32>
    %c0_138 = arith.constant 0 : index
    %c0_139 = arith.constant 0 : index
    %149 = vector.load %arg17[%c0_138, %c0_139] : memref<4x290xf32, #tpu.memory_space<vmem>>, vector<4x290xf32>
    tpu.vector_store %arg17[%c0_138, %c0_139], %148 {strides = array<i32>} : memref<4x290xf32, #tpu.memory_space<vmem>>, vector<4x290xf32>,
    %c0_140 = arith.constant 0 : index
    %c17_141 = arith.constant 17 : index
    %150 = vector.load %arg17[%c0_140, %c17_141] : memref<4x290xf32, #tpu.memory_space<vmem>>, vector<4x256xf32>
    tpu.vector_store %arg17[%c0_140, %c17_141], %147 {strides = array<i32>} : memref<4x290xf32, #tpu.memory_space<vmem>>, vector<4x256xf32>,
    %c0_142 = arith.constant 0 : index
    %c0_143 = arith.constant 0 : index
    %151 = vector.load %arg17[%c0_142, %c0_143] : memref<4x290xf32, #tpu.memory_space<vmem>>, vector<4x256xf32>
    %c0_144 = arith.constant 0 : index
    %c0_145 = arith.constant 0 : index
    %152 = vector.load %arg5[%c0_144, %c0_145] : memref<3x256xf32, #tpu.memory_space<vmem>>, vector<1x256xf32>
    %153 = vector.broadcast %152 : vector<1x256xf32> to vector<4x256xf32>
    %154 = arith.mulf %151, %153 : vector<4x256xf32>
    %c0_146 = arith.constant 0 : index
    %c0_147 = arith.constant 0 : index
    %c0_148 = arith.constant 0 : index
    %155 = vector.load %arg18[%c0_146, %c0_147, %c0_148] : memref<9x4x256xf32, #tpu.memory_space<vmem>>, vector<1x4x256xf32>
    %156 = vector.shape_cast %155 : vector<1x4x256xf32> to vector<4x256xf32>
    %157 = vector.shape_cast %154 : vector<4x256xf32> to vector<1x4x256xf32>
    tpu.vector_store %arg18[%c0_146, %c0_147, %c0_148], %157 {strides = array<i32>} : memref<9x4x256xf32, #tpu.memory_space<vmem>>, vector<1x4x256xf32>,
    %c0_149 = arith.constant 0 : index
    %c1_150 = arith.constant 1 : index
    %158 = vector.load %arg17[%c0_149, %c1_150] : memref<4x290xf32, #tpu.memory_space<vmem>>, vector<4x256xf32>
    %c1_151 = arith.constant 1 : index
    %c0_152 = arith.constant 0 : index
    %c0_153 = arith.constant 0 : index
    %159 = vector.load %arg18[%c1_151, %c0_152, %c0_153] : memref<9x4x256xf32, #tpu.memory_space<vmem>>, vector<1x4x256xf32>
    %160 = vector.shape_cast %159 : vector<1x4x256xf32> to vector<4x256xf32>
    %161 = vector.shape_cast %158 : vector<4x256xf32> to vector<1x4x256xf32>
    tpu.vector_store %arg18[%c1_151, %c0_152, %c0_153], %161 {strides = array<i32>} : memref<9x4x256xf32, #tpu.memory_space<vmem>>, vector<1x4x256xf32>,
    %c0_154 = arith.constant 0 : index
    %c2_155 = arith.constant 2 : index
    %162 = vector.load %arg17[%c0_154, %c2_155] : memref<4x290xf32, #tpu.memory_space<vmem>>, vector<4x256xf32>
    %c2_156 = arith.constant 2 : index
    %c0_157 = arith.constant 0 : index
    %163 = vector.load %arg5[%c2_156, %c0_157] : memref<3x256xf32, #tpu.memory_space<vmem>>, vector<1x256xf32>
    %164 = vector.broadcast %163 : vector<1x256xf32> to vector<4x256xf32>
    %165 = arith.mulf %162, %164 : vector<4x256xf32>
    %c2_158 = arith.constant 2 : index
    %c0_159 = arith.constant 0 : index
    %c0_160 = arith.constant 0 : index
    %166 = vector.load %arg18[%c2_158, %c0_159, %c0_160] : memref<9x4x256xf32, #tpu.memory_space<vmem>>, vector<1x4x256xf32>
    %167 = vector.shape_cast %166 : vector<1x4x256xf32> to vector<4x256xf32>
    %168 = vector.shape_cast %165 : vector<4x256xf32> to vector<1x4x256xf32>
    tpu.vector_store %arg18[%c2_158, %c0_159, %c0_160], %168 {strides = array<i32>} : memref<9x4x256xf32, #tpu.memory_space<vmem>>, vector<1x4x256xf32>,
    %c0_161 = arith.constant 0 : index
    %c16_162 = arith.constant 16 : index
    %169 = vector.load %arg17[%c0_161, %c16_162] : memref<4x290xf32, #tpu.memory_space<vmem>>, vector<4x256xf32>
    %c0_163 = arith.constant 0 : index
    %c0_164 = arith.constant 0 : index
    %170 = vector.load %arg5[%c0_163, %c0_164] : memref<3x256xf32, #tpu.memory_space<vmem>>, vector<1x256xf32>
    %171 = vector.broadcast %170 : vector<1x256xf32> to vector<4x256xf32>
    %172 = arith.mulf %169, %171 : vector<4x256xf32>
    %c3_165 = arith.constant 3 : index
    %c0_166 = arith.constant 0 : index
    %c0_167 = arith.constant 0 : index
    %173 = vector.load %arg18[%c3_165, %c0_166, %c0_167] : memref<9x4x256xf32, #tpu.memory_space<vmem>>, vector<1x4x256xf32>
    %174 = vector.shape_cast %173 : vector<1x4x256xf32> to vector<4x256xf32>
    %175 = vector.shape_cast %172 : vector<4x256xf32> to vector<1x4x256xf32>
    tpu.vector_store %arg18[%c3_165, %c0_166, %c0_167], %175 {strides = array<i32>} : memref<9x4x256xf32, #tpu.memory_space<vmem>>, vector<1x4x256xf32>,
    %c0_168 = arith.constant 0 : index
    %c17_169 = arith.constant 17 : index
    %176 = vector.load %arg17[%c0_168, %c17_169] : memref<4x290xf32, #tpu.memory_space<vmem>>, vector<4x256xf32>
    %c4_170 = arith.constant 4 : index
    %c0_171 = arith.constant 0 : index
    %c0_172 = arith.constant 0 : index
    %177 = vector.load %arg18[%c4_170, %c0_171, %c0_172] : memref<9x4x256xf32, #tpu.memory_space<vmem>>, vector<1x4x256xf32>
    %178 = vector.shape_cast %177 : vector<1x4x256xf32> to vector<4x256xf32>
    %179 = vector.shape_cast %176 : vector<4x256xf32> to vector<1x4x256xf32>
    tpu.vector_store %arg18[%c4_170, %c0_171, %c0_172], %179 {strides = array<i32>} : memref<9x4x256xf32, #tpu.memory_space<vmem>>, vector<1x4x256xf32>,
    %c0_173 = arith.constant 0 : index
    %c18_174 = arith.constant 18 : index
    %180 = vector.load %arg17[%c0_173, %c18_174] : memref<4x290xf32, #tpu.memory_space<vmem>>, vector<4x256xf32>
    %c2_175 = arith.constant 2 : index
    %c0_176 = arith.constant 0 : index
    %181 = vector.load %arg5[%c2_175, %c0_176] : memref<3x256xf32, #tpu.memory_space<vmem>>, vector<1x256xf32>
    %182 = vector.broadcast %181 : vector<1x256xf32> to vector<4x256xf32>
    %183 = arith.mulf %180, %182 : vector<4x256xf32>
    %c5_177 = arith.constant 5 : index
    %c0_178 = arith.constant 0 : index
    %c0_179 = arith.constant 0 : index
    %184 = vector.load %arg18[%c5_177, %c0_178, %c0_179] : memref<9x4x256xf32, #tpu.memory_space<vmem>>, vector<1x4x256xf32>
    %185 = vector.shape_cast %184 : vector<1x4x256xf32> to vector<4x256xf32>
    %186 = vector.shape_cast %183 : vector<4x256xf32> to vector<1x4x256xf32>
    tpu.vector_store %arg18[%c5_177, %c0_178, %c0_179], %186 {strides = array<i32>} : memref<9x4x256xf32, #tpu.memory_space<vmem>>, vector<1x4x256xf32>,
    %c0_180 = arith.constant 0 : index
    %c32_181 = arith.constant 32 : index
    %187 = vector.load %arg17[%c0_180, %c32_181] : memref<4x290xf32, #tpu.memory_space<vmem>>, vector<4x256xf32>
    %c0_182 = arith.constant 0 : index
    %c0_183 = arith.constant 0 : index
    %188 = vector.load %arg5[%c0_182, %c0_183] : memref<3x256xf32, #tpu.memory_space<vmem>>, vector<1x256xf32>
    %189 = vector.broadcast %188 : vector<1x256xf32> to vector<4x256xf32>
    %190 = arith.mulf %187, %189 : vector<4x256xf32>
    %c6_184 = arith.constant 6 : index
    %c0_185 = arith.constant 0 : index
    %c0_186 = arith.constant 0 : index
    %191 = vector.load %arg18[%c6_184, %c0_185, %c0_186] : memref<9x4x256xf32, #tpu.memory_space<vmem>>, vector<1x4x256xf32>
    %192 = vector.shape_cast %191 : vector<1x4x256xf32> to vector<4x256xf32>
    %193 = vector.shape_cast %190 : vector<4x256xf32> to vector<1x4x256xf32>
    tpu.vector_store %arg18[%c6_184, %c0_185, %c0_186], %193 {strides = array<i32>} : memref<9x4x256xf32, #tpu.memory_space<vmem>>, vector<1x4x256xf32>,
    %c0_187 = arith.constant 0 : index
    %c33_188 = arith.constant 33 : index
    %194 = vector.load %arg17[%c0_187, %c33_188] : memref<4x290xf32, #tpu.memory_space<vmem>>, vector<4x256xf32>
    %c7_189 = arith.constant 7 : index
    %c0_190 = arith.constant 0 : index
    %c0_191 = arith.constant 0 : index
    %195 = vector.load %arg18[%c7_189, %c0_190, %c0_191] : memref<9x4x256xf32, #tpu.memory_space<vmem>>, vector<1x4x256xf32>
    %196 = vector.shape_cast %195 : vector<1x4x256xf32> to vector<4x256xf32>
    %197 = vector.shape_cast %194 : vector<4x256xf32> to vector<1x4x256xf32>
    tpu.vector_store %arg18[%c7_189, %c0_190, %c0_191], %197 {strides = array<i32>} : memref<9x4x256xf32, #tpu.memory_space<vmem>>, vector<1x4x256xf32>,
    %c0_192 = arith.constant 0 : index
    %c34_193 = arith.constant 34 : index
    %198 = vector.load %arg17[%c0_192, %c34_193] : memref<4x290xf32, #tpu.memory_space<vmem>>, vector<4x256xf32>
    %c2_194 = arith.constant 2 : index
    %c0_195 = arith.constant 0 : index
    %199 = vector.load %arg5[%c2_194, %c0_195] : memref<3x256xf32, #tpu.memory_space<vmem>>, vector<1x256xf32>
    %200 = vector.broadcast %199 : vector<1x256xf32> to vector<4x256xf32>
    %201 = arith.mulf %198, %200 : vector<4x256xf32>
    %c8_196 = arith.constant 8 : index
    %c0_197 = arith.constant 0 : index
    %c0_198 = arith.constant 0 : index
    %202 = vector.load %arg18[%c8_196, %c0_197, %c0_198] : memref<9x4x256xf32, #tpu.memory_space<vmem>>, vector<1x4x256xf32>
    %203 = vector.shape_cast %202 : vector<1x4x256xf32> to vector<4x256xf32>
    %204 = vector.shape_cast %201 : vector<4x256xf32> to vector<1x4x256xf32>
    tpu.vector_store %arg18[%c8_196, %c0_197, %c0_198], %204 {strides = array<i32>} : memref<9x4x256xf32, #tpu.memory_space<vmem>>, vector<1x4x256xf32>,
    %c0_199 = arith.constant 0 : index
    %c0_200 = arith.constant 0 : index
    %c0_201 = arith.constant 0 : index
    %205 = vector.load %arg18[%c0_199, %c0_200, %c0_201] : memref<9x4x256xf32, #tpu.memory_space<vmem>>, vector<9x4x256xf32>
    %206 = vector.shape_cast %205 : vector<9x4x256xf32> to vector<36x256xf32>
    %c0_202 = arith.constant 0 : index
    %c0_203 = arith.constant 0 : index
    %207 = vector.load %arg10[%c0_202, %c0_203] : memref<8x36xf32, #tpu.memory_space<vmem>>, vector<8x36xf32>
    %cst_204 = arith.constant dense<0.000000e+00> : vector<8x256xf32>
    %208 = tpu.matmul %207, %206, %cst_204 {dimension_numbers = #tpu.dot_dimension_numbers<[1], [0], [0], [1], [0, 0, 1, 1], [], []>} : vector<8x36xf32>, vector<36x256xf32>, vector<8x256xf32> -> vector<8x256xf32>
    %c0_205 = arith.constant 0 : index
    %c0_206 = arith.constant 0 : index
    %209 = vector.load %arg11[%c0_205, %c0_206] : memref<8x1xf32, #tpu.memory_space<vmem>>, vector<8x1xf32>
    %210 = vector.broadcast %209 : vector<8x1xf32> to vector<8x256xf32>
    %211 = arith.addf %208, %210 : vector<8x256xf32>
    %c0_207 = arith.constant 0 : index
    %c0_208 = arith.constant 0 : index
    %c0_209 = arith.constant 0 : index
    %212 = vector.load %arg12[%c0_207, %c0_208, %c0_209] : memref<1x8x256xf32, #tpu.memory_space<vmem>>, vector<1x8x256xf32>
    %213 = vector.shape_cast %212 : vector<1x8x256xf32> to vector<8x256xf32>
    %214 = vector.shape_cast %211 : vector<8x256xf32> to vector<1x8x256xf32>
    tpu.vector_store %arg12[%c0_207, %c0_208, %c0_209], %214 {strides = array<i32>} : memref<1x8x256xf32, #tpu.memory_space<vmem>>, vector<1x8x256xf32>,
    return
  }
  func.func @transform_0(%arg0: i32) -> (i32, i32, i32) {
    %c0_i32 = arith.constant 0 : i32
    %c0_i32_0 = arith.constant 0 : i32
    %c0_i32_1 = arith.constant 0 : i32
    return %arg0, %c0_i32, %c0_i32_0 : i32, i32, i32
  }
  func.func @transform_1(%arg0: i32) -> (i32, i32, i32) {
    %c0_i32 = arith.constant 0 : i32
    %c0_i32_0 = arith.constant 0 : i32
    %c0_i32_1 = arith.constant 0 : i32
    return %arg0, %c0_i32, %c0_i32_0 : i32, i32, i32
  }
  func.func @transform_2(%arg0: i32) -> (i32, i32) {
    %c0_i32 = arith.constant 0 : i32
    %c0_i32_0 = arith.constant 0 : i32
    %c0_i32_1 = arith.constant 0 : i32
    return %c0_i32, %c0_i32_0 : i32, i32
  }
  func.func @transform_3(%arg0: i32) -> (i32, i32) {
    %c0_i32 = arith.constant 0 : i32
    %c0_i32_0 = arith.constant 0 : i32
    %c0_i32_1 = arith.constant 0 : i32
    return %c0_i32, %c0_i32_0 : i32, i32
  }
  func.func @transform_4(%arg0: i32) -> (i32, i32) {
    %c0_i32 = arith.constant 0 : i32
    %c0_i32_0 = arith.constant 0 : i32
    %c0_i32_1 = arith.constant 0 : i32
    return %c0_i32, %c0_i32_0 : i32, i32
  }
  func.func @transform_5(%arg0: i32) -> (i32, i32) {
    %c0_i32 = arith.constant 0 : i32
    %c0_i32_0 = arith.constant 0 : i32
    %c0_i32_1 = arith.constant 0 : i32
    return %c0_i32, %c0_i32_0 : i32, i32
  }
  func.func @transform_6(%arg0: i32) -> (i32, i32) {
    %c0_i32 = arith.constant 0 : i32
    %c0_i32_0 = arith.constant 0 : i32
    %c0_i32_1 = arith.constant 0 : i32
    return %c0_i32, %c0_i32_0 : i32, i32
  }
  func.func @transform_7(%arg0: i32) -> (i32, i32) {
    %c0_i32 = arith.constant 0 : i32
    %c0_i32_0 = arith.constant 0 : i32
    %c0_i32_1 = arith.constant 0 : i32
    return %c0_i32, %c0_i32_0 : i32, i32
  }
  func.func @transform_8(%arg0: i32) -> (i32, i32) {
    %c0_i32 = arith.constant 0 : i32
    %c0_i32_0 = arith.constant 0 : i32
    %c0_i32_1 = arith.constant 0 : i32
    return %c0_i32, %c0_i32_0 : i32, i32
  }
  func.func @transform_9(%arg0: i32) -> (i32, i32) {
    %c0_i32 = arith.constant 0 : i32
    %c0_i32_0 = arith.constant 0 : i32
    %c0_i32_1 = arith.constant 0 : i32
    return %c0_i32, %c0_i32_0 : i32, i32
  }
  func.func @transform_10(%arg0: i32) -> (i32, i32) {
    %c0_i32 = arith.constant 0 : i32
    %c0_i32_0 = arith.constant 0 : i32
    %c0_i32_1 = arith.constant 0 : i32
    return %c0_i32, %c0_i32_0 : i32, i32
  }
  func.func @transform_11(%arg0: i32) -> (i32, i32, i32) {
    %c0_i32 = arith.constant 0 : i32
    %c0_i32_0 = arith.constant 0 : i32
    %c0_i32_1 = arith.constant 0 : i32
    return %arg0, %c0_i32, %c0_i32_0 : i32, i32, i32
  }
}

module attributes {stable_mosaic.version = 11 : i64} {
  func.func @_final_kernel(%arg0: i32, %arg1: memref<1x8x256xf32, #tpu.memory_space<vmem>>, %arg2: memref<1x8x256xf32, #tpu.memory_space<vmem>>, %arg3: memref<8x8xf32, #tpu.memory_space<vmem>>, %arg4: memref<8x1xf32, #tpu.memory_space<vmem>>, %arg5: memref<1x8x256xf32, #tpu.memory_space<vmem>>) attributes {dimension_semantics = [#tpu.dimension_semantics<parallel>], iteration_bounds = array<i64: 2>, scalar_prefetch = 0 : i64, scratch_operands = 0 : i64, tpu.core_type = #tpu.core_type<tc>, window_params = [{transform_indices = @transform_0, window_bounds = array<i64: 1, 8, 256>}, {transform_indices = @transform_1, window_bounds = array<i64: 1, 8, 256>}, {pipeline_mode = #tpu.pipeline_mode<synchronous>, transform_indices = @transform_2, window_bounds = array<i64: 8, 8>}, {pipeline_mode = #tpu.pipeline_mode<synchronous>, transform_indices = @transform_3, window_bounds = array<i64: 8, 1>}, {transform_indices = @transform_4, window_bounds = array<i64: 1, 8, 256>}]} {
    %c0 = arith.constant 0 : index
    %c0_0 = arith.constant 0 : index
    %c0_1 = arith.constant 0 : index
    %0 = vector.load %arg1[%c0, %c0_0, %c0_1] : memref<1x8x256xf32, #tpu.memory_space<vmem>>, vector<1x8x256xf32>
    %1 = vector.shape_cast %0 : vector<1x8x256xf32> to vector<8x256xf32>
    %c0_2 = arith.constant 0 : index
    %c0_3 = arith.constant 0 : index
    %c0_4 = arith.constant 0 : index
    %2 = vector.load %arg2[%c0_2, %c0_3, %c0_4] : memref<1x8x256xf32, #tpu.memory_space<vmem>>, vector<1x8x256xf32>
    %3 = vector.shape_cast %2 : vector<1x8x256xf32> to vector<8x256xf32>
    %4 = arith.addf %1, %3 : vector<8x256xf32>
    %c0_5 = arith.constant 0 : index
    %c0_6 = arith.constant 0 : index
    %5 = vector.load %arg3[%c0_5, %c0_6] : memref<8x8xf32, #tpu.memory_space<vmem>>, vector<8x8xf32>
    %cst = arith.constant dense<0.000000e+00> : vector<8x256xf32>
    %6 = tpu.matmul %5, %4, %cst {dimension_numbers = #tpu.dot_dimension_numbers<[1], [0], [0], [1], [0, 0, 1, 1], [], []>} : vector<8x8xf32>, vector<8x256xf32>, vector<8x256xf32> -> vector<8x256xf32>
    %c0_7 = arith.constant 0 : index
    %c0_8 = arith.constant 0 : index
    %7 = vector.load %arg4[%c0_7, %c0_8] : memref<8x1xf32, #tpu.memory_space<vmem>>, vector<8x1xf32>
    %8 = vector.broadcast %7 : vector<8x1xf32> to vector<8x256xf32>
    %9 = arith.addf %6, %8 : vector<8x256xf32>
    %cst_9 = arith.constant 0.000000e+00 : f32
    %10 = vector.broadcast %cst_9 : f32 to vector<8x256xf32>
    %11 = arith.cmpf oge, %9, %10 : vector<8x256xf32>
    %cst_10 = arith.constant 0.00999999977 : f32
    %12 = vector.broadcast %cst_10 : f32 to vector<8x256xf32>
    %13 = arith.mulf %12, %9 : vector<8x256xf32>
    %14 = arith.select %11, %9, %13 : vector<8x256xi1>, vector<8x256xf32>
    %c0_11 = arith.constant 0 : index
    %c0_12 = arith.constant 0 : index
    %c0_13 = arith.constant 0 : index
    %15 = vector.load %arg5[%c0_11, %c0_12, %c0_13] : memref<1x8x256xf32, #tpu.memory_space<vmem>>, vector<1x8x256xf32>
    %16 = vector.shape_cast %15 : vector<1x8x256xf32> to vector<8x256xf32>
    %17 = vector.shape_cast %14 : vector<8x256xf32> to vector<1x8x256xf32>
    tpu.vector_store %arg5[%c0_11, %c0_12, %c0_13], %17 {strides = array<i32>} : memref<1x8x256xf32, #tpu.memory_space<vmem>>, vector<1x8x256xf32>,
    return
  }
  func.func @transform_0(%arg0: i32) -> (i32, i32, i32) {
    %c0_i32 = arith.constant 0 : i32
    %c0_i32_0 = arith.constant 0 : i32
    %c0_i32_1 = arith.constant 0 : i32
    return %arg0, %c0_i32, %c0_i32_0 : i32, i32, i32
  }
  func.func @transform_1(%arg0: i32) -> (i32, i32, i32) {
    %c0_i32 = arith.constant 0 : i32
    %c0_i32_0 = arith.constant 0 : i32
    %c0_i32_1 = arith.constant 0 : i32
    return %arg0, %c0_i32, %c0_i32_0 : i32, i32, i32
  }
  func.func @transform_2(%arg0: i32) -> (i32, i32) {
    %c0_i32 = arith.constant 0 : i32
    %c0_i32_0 = arith.constant 0 : i32
    %c0_i32_1 = arith.constant 0 : i32
    return %c0_i32, %c0_i32_0 : i32, i32
  }
  func.func @transform_3(%arg0: i32) -> (i32, i32) {
    %c0_i32 = arith.constant 0 : i32
    %c0_i32_0 = arith.constant 0 : i32
    %c0_i32_1 = arith.constant 0 : i32
    return %c0_i32, %c0_i32_0 : i32, i32
  }
  func.func @transform_4(%arg0: i32) -> (i32, i32, i32) {
    %c0_i32 = arith.constant 0 : i32
    %c0_i32_0 = arith.constant 0 : i32
    %c0_i32_1 = arith.constant 0 : i32
    return %arg0, %c0_i32, %c0_i32_0 : i32, i32, i32
  }
}

</mosaic_0001>

<bundles_post_ra>
// kernel: spade_resnet_block.6
= control target key start
LH: loop header
LB: loop body
LE: loop exit
PB: predicated region body
PF: predicated region fallthrough
CT: control target
= control target key end

     0   :  { %s224_s6 = smov 0   ;;  %s270_s0 = inlined_call_operand.vmem [shape: f32[2,4,256], index: 0, kind: input, shape index: {}]   ;;  %s271_s1 = inlined_call_operand.vmem [shape: f32[4,2], index: 1, kind: output, shape index: {}]  }
   0x1 LB: > { %s230_s7 = sadd.s32 4294967295, %s210_s6   ;;  %p183_p0 = scmp.ge.s32.totalorder %s210_s6, 1  ;;  %s210_s6 = sphi %s224_s6, %s11_s6  }
   0x2   : > { %p82_p1 = scmp.lt.s32.totalorder %s210_s6, 3 }
   0x4   : > { %p83_p2 = pnand %p183_p0, %p82_p1 }
   0x5   : > { %p97_p3 = scmp.lt.s32.totalorder (!%p83_p2), %s230_s7, 1  ;;  %vm106_vm0 = vcmask (!%p83_p2), 1043456   ;;  %p186_p4 = scmp.ne.s32.totalorder (!%p83_p2), %s230_s7, 0 }
   0x6   : > { %86 = sbr.rel (%p83_p2) target bundleno = 325 (0x145), region = 24 }
   0xd   : > { %s98_s8 = scalar_select %p97_p3, %s230_s7, 1 }
   0xe   : > { %vm125_vm1 = vcmask (!%p186_p4), 11264   ;;  %v212_v12 = vmov (!%p186_p4), 0.0  }
   0xf   : > { %s190_s9 = sshll.u32 %s98_s8, 3  ;;  %126 = vst.msk [vmem:[%s271_s1] sm:$0xf] (!%p186_p4), %vm125_vm1, %v212_v12 }
  0x10   : > { %s101_s12 = scalar_lea.vmem %s270_s0, %s190_s9 }
  0x11   : > { %v102_v0 = vld [vmem:[%s101_s12] sm:$0xff] }
  0x12   : > { %v104_v1 = vcombine.high %v102_v0, %v102_v0  ;;  %v107_v2 = vsel %vm106_vm0, %v102_v0, 0.0  ;;  %v112_v3 = vmul.f32 %v102_v0, %v102_v0 }
  0x14   : > { %v108_v4 = vsel %vm106_vm0, %v104_v1, 0.0  ;;  %v114_v5 = vcombine.high %v112_v3, %v112_v3  ;;  %v116_v6 = vsel %vm106_vm0, %v112_v3, 0.0 }
  0x15   : > { %v109_v7 = vadd.f32 %v108_v4, %v107_v2 }
  0x16   : > { %v117_v8 = vsel %vm106_vm0, %v114_v5, 0.0 }
  0x17   : > { %110 = vadd.xlane.f32.xlu0 %v109_v7  ;;  %v118_v9 = vadd.f32 %v117_v8, %v116_v6 }
  0x1b   : > { %119 = vadd.xlane.f32.xlu0 %v118_v9 }
  0xa2   : > { %124 = sbr.rel (%p186_p4) target bundleno = 169 (0xa9), region = 28 }
  0xa4   : > { %v111_v10 = vpop.xlane.xlu0 %110 }
  0xa8   : > { %v120_v11 = vpop.xlane.xlu0 %119 }
  0xa9 PF: > { %v127_v13 = vld [vmem:[%s271_s1] sm:$0xf]  ;;  %vm129_vm2 = vcmask 3072   ;;  %vm133_vm3 = vcmask 11272   ;;  %p187_p5 = scmp.ne.s32.totalorder %s230_s7, 1 }
  0xaa   : > { %v128_v14 = vadd.f32 %v127_v13, %v111_v10  ;;  %s213_s27 = smov (!%p187_p5), 1  }
  0xac   : > { %130 = vst.msk [vmem:[%s271_s1] sm:$0xf] %vm129_vm2, %v128_v14 }
  0xb0   : > { %138 = sbr.rel (%p187_p5) target bundleno = 325 (0x145), region = 32 }
  0xb3   : > { %v131_v15 = vld [vmem:[%s271_s1] sm:$0xf] }
  0xb4   : > { %v132_v16 = vadd.f32 %v131_v15, %v120_v11 }
  0xb6   : > { %134 = vst.msk [vmem:[%s271_s1] sm:$0xf] %vm133_vm3, %v132_v16 }
  0xbd   : > { %v139_v17 = vld [vmem:[%s271_s1] sm:$0xf] }
  0xbe   : > { %v141_v18 = vmul.f32 0.001953125, %v139_v17 }
  0xc0   : > { %v142_v19 = vmul.f32 %v141_v18, %v141_v18  ;;  %148 = vst.msk [vmem:[%s271_s1] sm:$0xf] %vm129_vm2, %v141_v18 }
  0xc2   : > { %144 = vrot.lane.b32.xlu0 %v142_v19, %s213_s27 }
 0x134   : > { %v145_v20 = vpop.permute.xlu0 %144 }
 0x135   : > { %v147_v21 = vsub.f32 %v141_v18, %v145_v20 }
 0x137   : > { %v149_v22 = vadd.f32 1e-05, %v147_v21 }
 0x139   : > { %202 = vrsqrt.f32 %v149_v22 }
 0x143   : > { %v203_v23 = vpop.eup %202 }
 0x144   : > { %151 = vst.msk [vmem:[%s271_s1] sm:$0xf] %vm133_vm3, %v203_v23 }
 0x145 PF: > { %s11_s6 = sadd.s32 1, %s210_s6  }
 0x146   : > { %p8_p6 = scmp.ge.s32.totalorder %s11_s6, 4  }
 0x148   :  { %10 = sbr.rel (!%p8_p6) target bundleno = 1 (0x1), region = 58 }

// kernel: spade_resnet_block.11
= control target key start
LH: loop header
LB: loop body
LE: loop exit
PB: predicated region body
PF: predicated region fallthrough
CT: control target
= control target key end

     0   :  { %s444_s15 = smov 0   ;;  %s470_s0 = inlined_call_operand.vmem [shape: f32[2,8,256], index: 0, kind: input, shape index: {}]   ;;  %s471_s1 = inlined_call_operand.vmem [shape: f32[2,8,256], index: 1, kind: input, shape index: {}]   ;;  %s472_s2 = inlined_call_operand.vmem [shape: f32[8,8], index: 2, kind: input, shape index: {}]   ;;  %s473_s3 = inlined_call_operand.vmem [shape: f32[8,1], index: 3, kind: input, shape index: {}]   ;;  %s474_s4 = inlined_call_operand.vmem [shape: f32[2,8,256], index: 4, kind: output, shape index: {}]  }
   0x1 LB: > { %s381_s16 = sadd.s32 4294967295, %s415_s15   ;;  %p385_p0 = scmp.ge.s32.totalorder %s415_s15, 1  ;;  %s415_s15 = sphi %s444_s15, %s14_s15  }
   0x2   : > { %p172_p1 = scmp.lt.s32.totalorder %s415_s15, 3 }
   0x4   : > { %p173_p2 = pnand %p385_p0, %p172_p1 }
   0x5   : > { %p203_p3 = scmp.lt.s32.totalorder (!%p173_p2), %s381_s16, 1  ;;  %v225_v0 = vld [vmem:[%s473_s3] sm:$0xff] (!%p173_p2)  ;;  %v417_v1 = vmov (!%p173_p2), 0.0   ;;  %v418_v2 = vmov (!%p173_p2), 0   ;;  %vm231_vm0 = vcmask (!%p173_p2), 64512  }
   0x6   : > { %176 = sbr.rel (%p173_p2) target bundleno = 241 (0xf1), region = 36  ;;  %299 = vmatprep.mubr.f32.mxu0 (!%p173_p2), %v417_v1  ;;  %408 = vset.pattern.permute.xlu0 (!%p173_p2), %v418_v2  ;;  %v224_v9 = vld [vmem:[%s472_s2] sm:$0xff] (!%p173_p2) }
   0x7   : > { %228 = vperm.xlu0 (!%p173_p2), %408, %v225_v0  }
   0xd   : > { %s476_s16 = smov (!%p203_p3, %s381_s16), 1 }
   0xe   : > { %s395_s19 = sshll.u32 %s476_s16, 4 }
   0xf   : > { %s207_s22 = scalar_lea.vmem %s470_s0, %s395_s19  ;;  %s212_s25 = scalar_lea.vmem %s471_s1, %s395_s19 }
  0x10   : > { %v219_v3 = vld [vmem:[%s207_s22 + $0x8] sm:$0xff]  ;;  %v218_v5 = vld [vmem:[%s207_s22] sm:$0xff]  ;;  %s217_s30 = scalar_lea.vmem %s474_s4, %s395_s19 }
  0x11   : > { %v221_v4 = vld [vmem:[%s212_s25 + $0x8] sm:$0xff]  ;;  %v220_v7 = vld [vmem:[%s212_s25] sm:$0xff] }
  0x12   : > { %v223_v6 = vadd.f32 %v221_v4, %v219_v3  ;;  %v222_v8 = vadd.f32 %v220_v7, %v218_v5 }
  0x14   : > { %235 = vmatprep.subr.mxu0 %v223_v6 }
  0x15   : > { %236 = vmatpush1.msra.mxu0 %v222_v8 }
  0x16   : > { %392 = vmatmul.mubr.msk.f32.vlgmr.msra.gmra.mrb[0].mxu0 %vm231_vm0, %v224_v9 }
  0x86   : > { %v229_v10 = vpop.permute.xlu0 %228 }
  0xe9   : > { %v301_v11 = vpop.f32.mrb[0].mxu0 }
  0xea   : > { %v302_v12 = vadd.f32 %v301_v11, %v229_v10  ;;  %v303_v13 = vpop.f32.mrb[1].mxu0 }
  0xeb   : > { %v304_v14 = vadd.f32 %v303_v13, %v229_v10 }
  0xec   : > { %vm306_vm1 = vcmp.ge.f32.partialorder %v302_v12, 0.0  ;;  %v308_v15 = vmul.f32 0.01, %v302_v12 }
  0xed   : > { %vm307_vm2 = vcmp.ge.f32.partialorder %v304_v14, 0.0  ;;  %v309_v16 = vmul.f32 0.01, %v304_v14 }
  0xee   : > { %v310_v17 = vsel %vm306_vm1, %v302_v12, %v308_v15 }
  0xef   : > { %312 = vst [vmem:[%s217_s30] sm:$0xff] %v310_v17  ;;  %v311_v18 = vsel %vm307_vm2, %v304_v14, %v309_v16 }
  0xf0   : > { %313 = vst [vmem:[%s217_s30 + $0x8] sm:$0xff] %v311_v18 }
  0xf1 PF: > { %s14_s15 = sadd.s32 1, %s415_s15  }
  0xf2   : > { %p11_p4 = scmp.ge.s32.totalorder %s14_s15, 4  }
  0xf4   :  { %13 = sbr.rel (!%p11_p4) target bundleno = 1 (0x1), region = 69 }

// kernel: spade_resnet_block.8
= control target key start
LH: loop header
LB: loop body
LE: loop exit
PB: predicated region body
PF: predicated region fallthrough
CT: control target
= control target key end

     0   :  { %s2938_s17 = smov 0   ;;  %s3770_s0 = inlined_call_operand.vmem [shape: f32[2,4,256], index: 0, kind: input, shape index: {}]   ;;  %s3771_s1 = inlined_call_operand.vmem [shape: f32[2,8,256], index: 1, kind: input, shape index: {}]   ;;  %s3772_s2 = inlined_call_operand.vmem [shape: f32[4,2], index: 2, kind: input, shape index: {}]   ;;  %s3773_s3 = inlined_call_operand.vmem [shape: f32[3,256], index: 3, kind: input, shape index: {}, may-alias: {3,4}]   ;;  %s3774_s4 = inlined_call_operand.vmem [shape: f32[3,256], index: 4, kind: input, shape index: {}, may-alias: {3,4}]   ;;  %s3775_s5 = inlined_call_operand.vmem [shape: f32[32,72], index: 5, kind: input, shape index: {}]   ;;  %s3776_s6 = inlined_call_operand.vmem [shape: f32[32,1], index: 6, kind: input, shape index: {}]   ;;  %s3777_s7 = inlined_call_operand.vmem [shape: f32[8,288], index: 7, kind: input, shape index: {}]   ;;  %s3778_s8 = inlined_call_operand.vmem [shape: f32[8,1], index: 8, kind: input, shape index: {}]   ;;  %s3779_s9 = inlined_call_operand.vmem [shape: f32[4,36], index: 9, kind: input, shape index: {}]   ;;  %s3780_s10 = inlined_call_operand.vmem [shape: f32[4,1], index: 10, kind: input, shape index: {}]   ;;  %s3781_s11 = inlined_call_operand.vmem [shape: f32[2,4,256], index: 11, kind: output, shape index: {}]  }
   0x1 LB: > { %s2413_s18 = sadd.s32 4294967295, %s2858_s17   ;;  %p2417_p0 = scmp.ge.s32.totalorder %s2858_s17, 1  ;;  %s2858_s17 = sphi %s2938_s17, %s21_s17  }
   0x2   : > { %p347_p1 = scmp.lt.s32.totalorder %s2858_s17, 3 }
   0x4   : > { %p348_p2 = pnand %p2417_p0, %p347_p1 }
   0x5   : > { %p392_p3 = scmp.lt.s32.totalorder (!%p348_p2), %s2413_s18, 1  ;;  %v432_v0 = vlaneseq (!%p348_p2)  ;;  %v2860_v1 = vmov (!%p348_p2), 0.0   ;;  %vm411_vm0 = vcmask (!%p348_p2), 277504   ;;  %v2424_v3 = vld [vmem:[%s3773_s3 + $0x2] ss:$4 sm:$0x3] (!%p348_p2) }
   0x6   : > { %351 = sbr.rel (%p348_p2) target bundleno = 1575 (0x627), region = 64  ;;  %409 = vst [vmem:[#allocation2] sm:$0xff] (!%p348_p2), %v2860_v1  ;;  %872 = vst [vmem:[#allocation4] sm:$0xff] (!%p348_p2), %v2860_v1  ;;  %839 = vmatprep.mubr.f32.mxu0 (!%p348_p2), %v2860_v1  ;;  %s2861_s25 = smov (!%p348_p2), 17   ;;  %vm424_vm1 = vcmask (!%p348_p2), 1047688   ;;  %vm419_vm2 = vcmask (!%p348_p2), 138240  }
   0x7   : > { %875 = vst [vmem:[#allocation4 + $0x18] sm:$0xff] (!%p348_p2), %v2860_v1  ;;  %878 = vst [vmem:[#allocation4 + $0x30] sm:$0xff] (!%p348_p2), %v2860_v1  ;;  %v2955_v2 = vshrl.u32 (!%p348_p2), %v432_v0, 7  ;;  %s2862_s26 = smov (!%p348_p2), 2   ;;  %s2863_s12 = smov (!%p348_p2), 16   ;;  %vm526_vm3 = vcmask (!%p348_p2), 130048  }
   0x8   : > { %881 = vst [vmem:[#allocation4 + $0x48] sm:$0xff] (!%p348_p2), %v2860_v1  ;;  %1972 = vst [vmem:[#allocation6] sm:$0xff] (!%p348_p2), %v2860_v1  ;;  %v512_v10 = vld [vmem:[%s3773_s3] ss:$4 sm:$0x3] (!%p348_p2)  ;;  %s2864_s15 = smov (!%p348_p2), 18  }
   0x9   : > { %412 = vst.msk [vmem:[#allocation2 + $0x10] sm:$0xff] (!%p348_p2), %vm411_vm0, %v2860_v1  ;;  %874 = vst.msk [vmem:[#allocation4 + $0x10] sm:$0xff] (!%p348_p2), %vm411_vm0, %v2860_v1  ;;  %v2972_v4 = vsub.s32 (!%p348_p2), 0, %v2955_v2  ;;  %v2975_v5 = vsub.s32 (!%p348_p2), 1, %v2955_v2  ;;  %s2865_s20 = smov (!%p348_p2), 32   ;;  %s3794_s22 = smov (!%p348_p2), 111  }
   0xa   : > { %877 = vst.msk [vmem:[#allocation4 + $0x28] sm:$0xff] (!%p348_p2), %vm411_vm0, %v2860_v1  ;;  %880 = vst.msk [vmem:[#allocation4 + $0x40] sm:$0xff] (!%p348_p2), %vm411_vm0, %v2860_v1  ;;  %v2425_v13 = vld [vmem:[%s3773_s3 + $0x2] ss:$4 sm:$0x3] (!%p348_p2)  ;;  %s3796_s23 = smov (!%p348_p2), 127  }
   0xb   : > { %883 = vst.msk [vmem:[#allocation4 + $0x58] sm:$0xff] (!%p348_p2), %vm411_vm0, %v2860_v1  ;;  %v475_v7 = vrot.slane (!%p348_p2), %v2424_v3, %v2972_v4  ;;  %v479_v8 = vrot.slane (!%p348_p2), %v2424_v3, %v2975_v5  ;;  %v517_v11 = vrot.slane (!%p348_p2), %v512_v10, %v2972_v4  ;;  %v521_v12 = vrot.slane (!%p348_p2), %v512_v10, %v2975_v5  ;;  %v616_v16 = vld [vmem:[%s3773_s3] ss:$4 sm:$0x3] (!%p348_p2)  ;;  %s3786_s27 = smov (!%p348_p2), 110   ;;  %s3792_s28 = smov (!%p348_p2), 126  }
   0xc   : > { %v579_v14 = vrot.slane (!%p348_p2), %v2425_v13, %v2972_v4  ;;  %v583_v15 = vrot.slane (!%p348_p2), %v2425_v13, %v2975_v5  ;;  %v621_v17 = vrot.slane (!%p348_p2), %v616_v16, %v2972_v4  ;;  %v625_v18 = vrot.slane (!%p348_p2), %v616_v16, %v2975_v5  ;;  %v2426_v19 = vld [vmem:[%s3773_s3 + $0x2] ss:$4 sm:$0x3] (!%p348_p2)  ;;  %s3782_s29 = smov (!%p348_p2), 95   ;;  %s3784_s30 = smov (!%p348_p2), 96   ;;  %v739_v0 = vld [vmem:[%s3776_s6 + $0x8] sm:$0xff] (!%p348_p2) }
   0xd   : > { %s3811_s18 = smov (!%p392_p3, %s2413_s18), 1  ;;  %480 = vrot.lane.b32.xlu1 %v475_v7, %s2862_s26  ;;  %v683_v20 = vrot.slane %v2426_v19, %v2972_v4  ;;  %v687_v21 = vrot.slane %v2426_v19, %v2975_v5  ;;  %vm588_vm4 = vcmask 146432   ;;  %vm484_vm5 = vcmask 15360   ;;  %s3788_s13 = smov 94   ;;  %v738_v62 = vld [vmem:[%s3776_s6] sm:$0xff]  ;;  %v740_v3 = vld [vmem:[%s3776_s6 + $0x10] sm:$0xff] }
   0xe   : > { %s2444_s21 = sshll.u32 %s3811_s18, 4  ;;  %vm630_vm6 = vcmask 261120   ;;  %v2875_v63 = vmov 0   ;;  %vm458_vm7 = vcmask 1039360   ;;  %vm543_vm8 = vcmask 916480   ;;  %s3801_s19 = smov 110  }
   0xf   : > { %s401_s24 = scalar_lea.vmem %s3771_s1, %s2444_s21  ;;  %s2866_s21 = smov 34   ;;  %2607 = vset.pattern.permute.xlu1 %v2875_v63  ;;  %2608 = vset.pattern.permute.xlu0 %v2875_v63  ;;  %vm501_vm9 = vcmask 1031168   ;;  %vm605_vm10 = vcmask 900096   ;;  %vm563_vm11 = vcmask 908288   ;;  %vm3799_vm12 = vcmask 777216  }
  0x10   : > { %v407_v6 = vld [vmem:[%s401_s24] sm:$0xff]  ;;  %v408_v9 = vld [vmem:[%s401_s24 + $0x8] sm:$0xff]  ;;  %s3790_s24 = smov 112   ;;  %vm647_vm13 = vcmask 785408   ;;  %vm3798_vm14 = vcmask 769024   ;;  %vm762_vm15 = vcmask 588800  }
  0x11   : > { %415 = vrot.lane.b32.xlu0 %v407_v6, %s2861_s25  ;;  %482 = vrot.lane.b32.xlu1 %v479_v8, %s2862_s26  ;;  %v741_v6 = vld [vmem:[%s3776_s6 + $0x18] sm:$0xff]  ;;  %v430_v8 = vld [vmem:[%s3773_s3] ss:$4 sm:$0x3]  ;;  %s3802_s14 = smov 96   ;;  %s3803_s16 = smov 95  }
  0x15   : > { %417 = vrot.lane.b32.xlu0 %v408_v9, %s2861_s25  ;;  %524 = vrot.lane.b32.xlu1 %v521_v12, %s2863_s12  ;;  %v435_v12 = vrot.slane %v430_v8, %v2972_v4 }
  0x19   : > { %522 = vrot.lane.b32.xlu0 %v517_v11, %s2863_s12  ;;  %586 = vrot.lane.b32.xlu1 %v583_v15, %s2864_s15  ;;  %v439_v11 = vrot.slane %v430_v8, %v2975_v5  ;;  %v734_v8 = vld [vmem:[%s3775_s5] sm:$0xff] }
  0x1d   : > { %584 = vrot.lane.b32.xlu0 %v579_v14, %s2864_s15  ;;  %628 = vrot.lane.b32.xlu1 %v625_v18, %s2865_s20 }
  0x21   : > { %626 = vrot.lane.b32.xlu0 %v621_v17, %s2865_s20  ;;  %690 = vrot.lane.b32.xlu1 %v687_v21, %s2866_s21 }
  0x25   : > { %688 = vrot.lane.b32.xlu0 %v683_v20, %s2866_s21 }
  0x7f   : > { %v481_v23 = vpop.permute.xlu1 %480 }
  0x83   : > { %v416_v22 = vpop.permute.xlu0 %415  ;;  %v483_v26 = vpop.permute.xlu1 %482 }
  0x84   : > { %425 = vst.msk [vmem:[#allocation2] sm:$0xff] %vm424_vm1, %v416_v22  ;;  %v485_v43 = vsel %vm484_vm5, %v481_v23, %v483_v26 }
  0x87   : > { %v418_v24 = vpop.permute.xlu0 %417  ;;  %v525_v29 = vpop.permute.xlu1 %524 }
  0x88   : > { %v3016_v25 = vsel %vm419_vm2, %v416_v22, %v418_v24  ;;  %427 = vst.msk [vmem:[#allocation2 + $0x10] sm:$0xff] %vm419_vm2, %v418_v24 }
  0x89   : > { %v490_v46 = vmul.f32 %v485_v43, %v3016_v25  ;;  %v443_v17 = vmul.f32 %v439_v11, %v3016_v25  ;;  %v737_v11 = vld [vmem:[%s3775_s5 + $0x18] sm:$0xff] }
  0x8b   : > { %v3019_v27 = vld [vmem:[#allocation2] sm:$0xff]  ;;  %v523_v28 = vpop.permute.xlu0 %522  ;;  %v587_v33 = vpop.permute.xlu1 %586 }
  0x8c   : > { %557 = vrot.lane.b32.xlu0 %v3019_v27, %s3794_s22  ;;  %452 = vrot.lane.b32.xlu1 %v3019_v27, %s3796_s23  ;;  %v531_v30 = vmul.f32 %v523_v28, %v3019_v27  ;;  %v527_v35 = vsel %vm526_vm3, %v523_v28, %v525_v29  ;;  %v489_v44 = vmul.f32 %v481_v23, %v3019_v27 }
  0x8d   : > { %v532_v39 = vmul.f32 %v527_v35, %v3016_v25  ;;  %v442_v18 = vmul.f32 %v3019_v27, %v435_v12 }
  0x8f   : > { %v468_v31 = vld [vmem:[#allocation2 + $0x10] sm:$0xff]  ;;  %v585_v32 = vpop.permute.xlu0 %584  ;;  %v629_v48 = vpop.permute.xlu1 %628 }
  0x90   : > { %537 = vrot.lane.b32.xlu1 %v531_v30, %s3790_s24  ;;  %v2572_v34 = vpack.i.bf16 %v468_v31, %v3016_v25  ;;  %v533_v36 = vmul.f32 %v525_v29, %v468_v31  ;;  %v593_v37 = vmul.f32 %v585_v32, %v3019_v27  ;;  %v589_v38 = vsel %vm588_vm4, %v585_v32, %v587_v33 }
  0x91   : > { %v594_v40 = vmul.f32 %v589_v38, %v3016_v25  ;;  %v595_v41 = vmul.f32 %v587_v33, %v468_v31  ;;  %v491_v45 = vmul.f32 %v483_v26, %v468_v31  ;;  %v637_v54 = vmul.f32 %v629_v48, %v468_v31 }
  0x92   : > { %2573 = vrot.lane.b32.xlu0 %v2572_v34, %s3796_s23  ;;  %v2587_v42 = vpack.i.bf16 %v533_v36, %v532_v39 }
  0x93   : > { %v627_v47 = vpop.permute.xlu0 %626  ;;  %v2592_v49 = vpack.i.bf16 %v595_v41, %v594_v40  ;;  %v2582_v50 = vpack.i.bf16 %v491_v45, %v490_v46  ;;  %v691_v56 = vpop.permute.xlu1 %690 }
  0x94   : > { %599 = vrot.lane.b32.xlu1 %v593_v37, %s3786_s27  ;;  %v631_v51 = vsel %vm630_vm6, %v627_v47, %v629_v48  ;;  %v635_v52 = vmul.f32 %v627_v47, %v3019_v27  ;;  %v698_v59 = vmul.f32 %v691_v56, %v468_v31 }
  0x95   : > { %v636_v53 = vmul.f32 %v631_v51, %v3016_v25 }
  0x96   : > { %2578 = vrot.lane.b32.xlu0 %v2572_v34, %s3794_s22 }
  0x97   : > { %v689_v55 = vpop.permute.xlu0 %688  ;;  %v2602_v57 = vpack.i.bf16 %v637_v54, %v636_v53 }
  0x98   : > { %2588 = vrot.lane.b32.xlu1 %v2587_v42, %s3790_s24  ;;  %v692_v58 = vsel %vm411_vm0, %v689_v55, %v691_v56  ;;  %v696_v61 = vmul.f32 %v689_v55, %v3019_v27  ;;  %s3804_s24 = smov 94  }
  0x99   : > { %v697_v60 = vmul.f32 %v692_v58, %v3016_v25 }
  0x9a   : > { %495 = vrot.lane.b32.xlu0 %v489_v44, %s3792_s28 }
  0x9c   : > { %2593 = vrot.lane.b32.xlu1 %v2592_v49, %s3786_s27 }
  0x9e   : > { %2583 = vrot.lane.b32.xlu0 %v2582_v50, %s3792_s28 }
  0xa0   : > { %2598 = vrot.lane.b32.xlu1 %v2572_v34, %s3782_s29 }
  0xa2   : > { %641 = vrot.lane.b32.xlu0 %v635_v52, %s3784_s30 }
  0xa4   : > { %661 = vrot.lane.b32.xlu1 %v3019_v27, %s3782_s29 }
  0xa6   : > { %2603 = vrot.lane.b32.xlu0 %v2602_v57, %s3784_s30 }
  0xa8   : > { %706 = vrot.lane.b32.xlu1 %v698_v59, %s3788_s13 }
  0xaa   : > { %704 = vrot.lane.b32.xlu0 %v697_v60, %s3788_s13 }
  0xac   : > { %744 = vperm.xlu1 %2607, %v738_v62  }
  0xae   : > { %702 = vrot.lane.b32.xlu0 %v696_v61, %s3788_s13  ;;  %s3800_s13 = smov 112  }
  0xb0   : > { %754 = vperm.xlu1 %2607, %v740_v3  }
  0xb2   : > { %749 = vperm.xlu0 %2608, %v739_v0  }
  0xb4   : > { %759 = vperm.xlu1 %2607, %v741_v6  }
  0xfe   : > { %v453_v7 = vpop.permute.xlu1 %452  ;;  %v558_v9 = vpop.permute.xlu0 %557 }
 0x102   : > { %v538_v10 = vpop.permute.xlu1 %537 }
 0x104   : > { %v2574_v13 = vpop.permute.xlu0 %2573 }
 0x105   : > { %v2576_v14 = vunpack.i.h.bf16 %v2574_v13  ;;  %v2575_v15 = vunpack.i.l.bf16 %v2574_v13 }
 0x106   : > { %v600_v16 = vpop.permute.xlu1 %599 }
 0x107   : > { %v460_v19 = vsel %vm458_vm7, %v2575_v15, %v2576_v14  ;;  %v459_v20 = vsel %vm458_vm7, %v453_v7, %v2575_v15 }
 0x108   : > { %v2579_v21 = vpop.permute.xlu0 %2578  ;;  %v2446_v22 = vpack.c.bf16 %v460_v19, %v443_v17  ;;  %v2448_v23 = vpack.c.bf16 %v459_v20, %v442_v18 }
 0x109   : > { %v2581_v27 = vunpack.i.h.bf16 %v2579_v21  ;;  %v2580_v33 = vunpack.i.l.bf16 %v2579_v21 }
 0x10a   : > { %v2589_v24 = vpop.permute.xlu1 %2588  ;;  %2447 = vmatprep.subr.bf16.mxu0 %v2446_v22 }
 0x10b   : > { %2449 = vmatpush1.bf16.msra.mxu0 %v2448_v23  ;;  %v2591_v28 = vunpack.i.h.bf16 %v2589_v24  ;;  %v2590_v29 = vunpack.i.l.bf16 %v2589_v24  ;;  %v565_v45 = vsel %vm563_vm11, %v2580_v33, %v2581_v27  ;;  %v564_v52 = vsel %vm563_vm11, %v558_v9, %v2580_v33  ;;  %v735_v9 = vld [vmem:[%s3775_s5 + $0x8] sm:$0xff] }
 0x10c   : > { %v496_v26 = vpop.permute.xlu0 %495 }
 0x10d   : > { %v545_v37 = vsel %vm543_vm8, %v2590_v29, %v2591_v28  ;;  %v544_v40 = vsel %vm543_vm8, %v538_v10, %v2590_v29  ;;  %v736_v10 = vld [vmem:[%s3775_s5 + $0x10] sm:$0xff] }
 0x10e   : > { %v2594_v30 = vpop.permute.xlu1 %2593 }
 0x10f   : > { %v2596_v31 = vunpack.i.h.bf16 %v2594_v30  ;;  %v2595_v32 = vunpack.i.l.bf16 %v2594_v30 }
 0x110   : > { %v2584_v25 = vpop.permute.xlu0 %2583 }
 0x111   : > { %v2586_v34 = vunpack.i.h.bf16 %v2584_v25  ;;  %v2585_v35 = vunpack.i.l.bf16 %v2584_v25  ;;  %v607_v41 = vsel %vm605_vm10, %v2595_v32, %v2596_v31  ;;  %v606_v47 = vsel %vm605_vm10, %v600_v16, %v2595_v32 }
 0x112   : > { %v2599_v36 = vpop.permute.xlu1 %2598  ;;  %v2454_v46 = vpack.c.bf16 %v607_v41, %v565_v45  ;;  %v2456_v55 = vpack.c.bf16 %v606_v47, %v564_v52  ;;  %v2432_v45 = vld [vmem:[%s3773_s3 + $0x2] ss:$4 sm:$0x3] }
 0x113   : > { %v503_v38 = vsel %vm501_vm9, %v2585_v35, %v2586_v34  ;;  %v502_v39 = vsel %vm501_vm9, %v496_v26, %v2585_v35  ;;  %v2601_v48 = vunpack.i.h.bf16 %v2599_v36  ;;  %v2600_v49 = vunpack.i.l.bf16 %v2599_v36 }
 0x114   : > { %v642_v42 = vpop.permute.xlu0 %641  ;;  %v2450_v43 = vpack.c.bf16 %v545_v37, %v503_v38  ;;  %v2452_v44 = vpack.c.bf16 %v544_v40, %v502_v39  ;;  %v2431_v37 = vld [vmem:[%s3773_s3 + $0x2] ss:$4 sm:$0x3]  ;;  %v1345_v47 = vrot.slane %v2432_v45, %v2975_v5 }
 0x115   : > { %v669_v58 = vsel %vm3799_vm12, %v2600_v49, %v2601_v48  ;;  %v1062_v40 = vrot.slane %v2431_v37, %v2972_v4  ;;  %v1066_v41 = vrot.slane %v2431_v37, %v2975_v5  ;;  %v1439_v48 = vld [vmem:[%s3773_s3] ss:$4 sm:$0x3] }
 0x116   : > { %2451 = vmatprep.subr.bf16.mxu0 %v2450_v43  ;;  %v662_v50 = vpop.permute.xlu1 %661 }
 0x117   : > { %2453 = vmatpush1.bf16.msra.mxu0 %v2452_v44  ;;  %v668_v56 = vsel %vm3799_vm12, %v662_v50, %v2600_v49  ;;  %v1444_v49 = vrot.slane %v1439_v48, %v2972_v4  ;;  %v1448_v50 = vrot.slane %v1439_v48, %v2975_v5 }
 0x118   : > { %v2604_v51 = vpop.permute.xlu0 %2603  ;;  %2455 = vmatprep.subr.bf16.mxu0 %v2454_v46  ;;  %v1341_v46 = vrot.slane %v2432_v45, %v2972_v4 }
 0x119   : > { %v2606_v53 = vunpack.i.h.bf16 %v2604_v51  ;;  %v2605_v54 = vunpack.i.l.bf16 %v2604_v51  ;;  %v2433_v51 = vld [vmem:[%s3773_s3 + $0x2] ss:$4 sm:$0x3] }
 0x11a   : > { %v707_v0 = vpop.permute.xlu1 %706  ;;  %v1620_v52 = vrot.slane %v2433_v51, %v2972_v4 }
 0x11b   : > { %2457 = vmatpush1.bf16.msra.mxu0 %v2456_v55  ;;  %v649_v57 = vsel %vm647_vm13, %v2605_v54, %v2606_v53  ;;  %v648_v59 = vsel %vm647_vm13, %v642_v42, %v2605_v54  ;;  %v1160_v42 = vld [vmem:[%s3773_s3] ss:$4 sm:$0x3]  ;;  %v1624_v53 = vrot.slane %v2433_v51, %v2975_v5 }
 0x11c   : > { %v705_v60 = vpop.permute.xlu0 %704  ;;  %v2458_v61 = vpack.c.bf16 %v669_v58, %v649_v57  ;;  %v2460_v62 = vpack.c.bf16 %v668_v56, %v648_v59  ;;  %v1165_v43 = vrot.slane %v1160_v42, %v2972_v4  ;;  %v1169_v44 = vrot.slane %v1160_v42, %v2975_v5  ;;  %v944_v55 = vld [vmem:[%s3773_s3] ss:$4 sm:$0x3] }
 0x11d   : > { %v710_v3 = vsel %vm3798_vm14, %v705_v60, %v707_v0  ;;  %v953_v58 = vrot.slane %v944_v55, %v2975_v5 }
 0x11e   : > { %2459 = vmatprep.subr.bf16.mxu0 %v2458_v61 }
 0x11f   : > { %2461 = vmatpush1.bf16.msra.mxu0 %v2460_v62 }
 0x120   : > { %v703_v6 = vpop.permute.xlu0 %702  ;;  %791 = vmatprep.subr.mxu0 %v710_v3 }
 0x121   : > { %v709_v7 = vsel %vm3798_vm14, %v703_v6, %v705_v60 }
 0x123   : > { %792 = vmatpush1.msra.mxu0 %v709_v7 }
 0x124   : > { %2427 = vmatmul.mubr.msk.f32.vlgmr.msra.gmra.mrb[0].mxu0 %vm762_vm15, %v734_v8 }
 0x125   : > { %845 = vmatprep.mubr.f32.mxu0 %v2860_v1 }
 0x128   : > { %2428 = vmatmul.mubr.msk.f32.gmra.mrb[2].mxu0 %vm762_vm15, %v735_v9  ;;  %v949_v9 = vrot.slane %v944_v55, %v2972_v4 }
 0x129   : > { %851 = vmatprep.mubr.f32.mxu0 %v2860_v1 }
 0x12b   : > { %v745_v12 = vpop.permute.xlu1 %744 }
 0x12c   : > { %2429 = vmatmul.mubr.msk.f32.gmra.mrb[4].mxu0 %vm762_vm15, %v736_v10 }
 0x12d   : > { %857 = vmatprep.mubr.f32.mxu0 %v2860_v1 }
 0x12f   : > { %v755_v23 = vpop.permute.xlu1 %754 }
 0x130   : > { %2430 = vmatmul.mubr.msk.f32.gmra.mrb[6].mxu0 %vm762_vm15, %v737_v11  ;;  %vm1982_vm15 = vcmask 1043592  }
 0x131   : > { %1925 = vmatprep.mubr.f32.mxu0 %v2860_v1  ;;  %v750_v17 = vpop.permute.xlu0 %749 }
 0x133   : > { %v760_v25 = vpop.permute.xlu1 %759 }
 0x1f7   : > { %v841_v13 = vpop.f32.mrb[0].mxu0 }
 0x1f8   : > { %v842_v14 = vadd.f32 %v841_v13, %v745_v12  ;;  %v843_v15 = vpop.f32.mrb[1].mxu0 }
 0x1f9   : > { %v844_v16 = vadd.f32 %v843_v15, %v745_v12 }
 0x1fa   : > { %v864_v18 = vmax.f32 %v842_v14, 0.0 }
 0x1fb   : > { %v865_v19 = vmax.f32 %v844_v16, 0.0  ;;  %v847_v20 = vpop.f32.mrb[2].mxu0 }
 0x1fc   : > { %v848_v21 = vadd.f32 %v847_v20, %v750_v17  ;;  %v849_v22 = vpop.f32.mrb[3].mxu0  ;;  %892 = vrot.lane.b32.xlu0 %v864_v18, %s2861_s25 }
 0x1fd   : > { %v850_v24 = vadd.f32 %v849_v22, %v750_v17  ;;  %894 = vrot.lane.b32.xlu1 %v865_v19, %s2861_s25 }
 0x1fe   : > { %v866_v26 = vmax.f32 %v848_v21, 0.0 }
 0x1ff   : > { %v867_v28 = vmax.f32 %v850_v24, 0.0  ;;  %v853_v1 = vpop.f32.mrb[4].mxu0 }
 0x200   : > { %v854_v29 = vadd.f32 %v853_v1, %v755_v23  ;;  %v855_v30 = vpop.f32.mrb[5].mxu0  ;;  %896 = vrot.lane.b32.xlu0 %v866_v26, %s2861_s25 }
 0x201   : > { %v856_v31 = vadd.f32 %v855_v30, %v755_v23  ;;  %898 = vrot.lane.b32.xlu1 %v867_v28, %s2861_s25 }
 0x202   : > { %v868_v32 = vmax.f32 %v854_v29, 0.0 }
 0x203   : > { %v869_v27 = vmax.f32 %v856_v31, 0.0  ;;  %v859_v33 = vpop.f32.mrb[6].mxu0 }
 0x204   : > { %v860_v34 = vadd.f32 %v859_v33, %v760_v25  ;;  %v861_v35 = vpop.f32.mrb[7].mxu0  ;;  %900 = vrot.lane.b32.xlu0 %v868_v32, %s2861_s25 }
 0x205   : > { %v862_v36 = vadd.f32 %v861_v35, %v760_v25  ;;  %902 = vrot.lane.b32.xlu1 %v869_v27, %s2861_s25 }
 0x206   : > { %v870_v38 = vmax.f32 %v860_v34, 0.0 }
 0x207   : > { %v871_v39 = vmax.f32 %v862_v36, 0.0 }
 0x208   : > { %904 = vrot.lane.b32.xlu0 %v870_v38, %s2861_s25 }
 0x209   : > { %906 = vrot.lane.b32.xlu1 %v871_v39, %s2861_s25 }
 0x20c   : > { %1067 = vrot.lane.b32.xlu0 %v1062_v40, %s2862_s26 }
 0x20d   : > { %1069 = vrot.lane.b32.xlu1 %v1066_v41, %s2862_s26 }
 0x210   : > { %1170 = vrot.lane.b32.xlu0 %v1165_v43, %s2863_s12 }
 0x211   : > { %1172 = vrot.lane.b32.xlu1 %v1169_v44, %s2863_s12 }
 0x214   : > { %1346 = vrot.lane.b32.xlu0 %v1341_v46, %s2864_s15 }
 0x215   : > { %1348 = vrot.lane.b32.xlu1 %v1345_v47, %s2864_s15 }
 0x218   : > { %1449 = vrot.lane.b32.xlu0 %v1444_v49, %s2865_s20 }
 0x219   : > { %1451 = vrot.lane.b32.xlu1 %v1448_v50, %s2865_s20 }
 0x21c   : > { %1625 = vrot.lane.b32.xlu0 %v1620_v52, %s2866_s21 }
 0x21d   : > { %1627 = vrot.lane.b32.xlu1 %v1624_v53, %s2866_s21 }
 0x26e   : > { %v893_v54 = vpop.permute.xlu0 %892 }
 0x26f   : > { %924 = vst.msk [vmem:[#allocation4] sm:$0xff] %vm424_vm1, %v893_v54  ;;  %v895_v56 = vpop.permute.xlu1 %894 }
 0x270   : > { %v3158_v57 = vsel %vm419_vm2, %v893_v54, %v895_v56  ;;  %926 = vst.msk [vmem:[#allocation4 + $0x10] sm:$0xff] %vm419_vm2, %v895_v56 }
 0x271   : > { %v957_v62 = vmul.f32 %v953_v58, %v3158_v57 }
 0x272   : > { %v897_v59 = vpop.permute.xlu0 %896 }
 0x273   : > { %927 = vst.msk [vmem:[#allocation4 + $0x18] sm:$0xff] %vm424_vm1, %v897_v59  ;;  %v899_v60 = vpop.permute.xlu1 %898 }
 0x274   : > { %v3164_v61 = vsel %vm419_vm2, %v897_v59, %v899_v60  ;;  %929 = vst.msk [vmem:[#allocation4 + $0x28] sm:$0xff] %vm419_vm2, %v899_v60 }
 0x275   : > { %v959_v0 = vmul.f32 %v953_v58, %v3164_v61 }
 0x276   : > { %v901_v3 = vpop.permute.xlu0 %900  ;;  %v3181_v12 = vld [vmem:[#allocation4] sm:$0xff] }
 0x277   : > { %930 = vst.msk [vmem:[#allocation4 + $0x30] sm:$0xff] %vm424_vm1, %v901_v3  ;;  %v903_v6 = vpop.permute.xlu1 %902  ;;  %v3170_v7 = vld [vmem:[#allocation4 + $0x10] sm:$0xff]  ;;  %v2462_v8 = vpack.c.bf16 %v959_v0, %v957_v62  ;;  %v956_v17 = vmul.f32 %v949_v9, %v3181_v12 }
 0x278   : > { %v3174_v10 = vsel %vm419_vm2, %v901_v3, %v903_v6  ;;  %932 = vst.msk [vmem:[#allocation4 + $0x40] sm:$0xff] %vm419_vm2, %v903_v6  ;;  %v3179_v11 = vpack.i.bf16 %v3170_v7, %v3158_v57 }
 0x279   : > { %2463 = vmatprep.subr.bf16.mxu1 %v2462_v8  ;;  %v961_v22 = vmul.f32 %v953_v58, %v3174_v10 }
 0x27a   : > { %v905_v13 = vpop.permute.xlu0 %904  ;;  %2610 = vrot.lane.b32.xlu0 %v3179_v11, %s3796_s23  ;;  %v3185_v14 = vld [vmem:[#allocation4 + $0x18] sm:$0xff] }
 0x27b   : > { %933 = vst.msk [vmem:[#allocation4 + $0x48] sm:$0xff] %vm424_vm1, %v905_v13  ;;  %v907_v15 = vpop.permute.xlu1 %906  ;;  %v3188_v16 = vld [vmem:[#allocation4 + $0x28] sm:$0xff]  ;;  %v958_v18 = vmul.f32 %v949_v9, %v3185_v14  ;;  %v3217_v29 = vpack.i.bf16 %v3185_v14, %v3181_v12  ;;  %vm1973_vm1 = vcmask 273408  }
 0x27c   : > { %v3193_v19 = vsel %vm419_vm2, %v905_v13, %v907_v15  ;;  %935 = vst.msk [vmem:[#allocation4 + $0x58] sm:$0xff] %vm419_vm2, %v907_v15  ;;  %v3198_v20 = vpack.i.bf16 %v3188_v16, %v3164_v61 }
 0x27d   : > { %v2464_v21 = vpack.c.bf16 %v958_v18, %v956_v17  ;;  %v963_v23 = vmul.f32 %v953_v58, %v3193_v19 }
 0x27e   : > { %v3202_v24 = vpop.permute.xlu0 %1067  ;;  %2615 = vrot.lane.b32.xlu0 %v3179_v11, %s3794_s22  ;;  %2645 = vrot.lane.b32.xlu1 %v3198_v20, %s3796_s23  ;;  %v3223_v32 = vld [vmem:[#allocation4 + $0x30] sm:$0xff] }
 0x27f   : > { %v3208_v26 = vpop.permute.xlu1 %1069  ;;  %2465 = vmatpush1.bf16.msra.mxu1 %v2464_v21  ;;  %v2466_v28 = vpack.c.bf16 %v963_v23, %v961_v22  ;;  %v960_v38 = vmul.f32 %v949_v9, %v3223_v32  ;;  %v3279_v59 = vld [vmem:[#allocation4 + $0x40] sm:$0xff]  ;;  %v1075_v6 = vmul.f32 %v3202_v24, %v3181_v12  ;;  %v1078_v8 = vmul.f32 %v3202_v24, %v3185_v14 }
 0x280   : > { %v3213_v1 = vsel %vm484_vm5, %v3202_v24, %v3208_v26  ;;  %v1080_v30 = vmul.f32 %v3208_v26, %v3188_v16  ;;  %v1077_v31 = vmul.f32 %v3208_v26, %v3170_v7  ;;  %v3288_v0 = vpack.i.bf16 %v3279_v59, %v3174_v10 }
 0x281   : > { %v1079_v25 = vmul.f32 %v3213_v1, %v3164_v61  ;;  %v1076_v27 = vmul.f32 %v3213_v1, %v3158_v57  ;;  %2467 = vmatprep.subr.bf16.mxu1 %v2466_v28  ;;  %v2649_v17 = vpack.i.bf16 %v1078_v8, %v1075_v6  ;;  %v1082_v18 = vmul.f32 %v3213_v1, %v3174_v10 }
 0x282   : > { %v3229_v33 = vpop.permute.xlu0 %1170  ;;  %2620 = vrot.lane.b32.xlu0 %v3217_v29, %s3796_s23  ;;  %2660 = vrot.lane.b32.xlu1 %v3198_v20, %s3794_s22  ;;  %v3235_v34 = vld [vmem:[#allocation4 + $0x48] sm:$0xff] }
 0x283   : > { %v3237_v35 = vpop.permute.xlu1 %1172  ;;  %v2669_v36 = vpack.i.bf16 %v1080_v30, %v1079_v25  ;;  %v2624_v37 = vpack.i.bf16 %v1077_v31, %v1076_v27  ;;  %v962_v39 = vmul.f32 %v949_v9, %v3235_v34  ;;  %v1178_v13 = vmul.f32 %v3229_v33, %v3181_v12 }
 0x284   : > { %v3244_v40 = vsel %vm526_vm3, %v3229_v33, %v3237_v35  ;;  %v1183_v41 = vmul.f32 %v3237_v35, %v3188_v16  ;;  %v1180_v42 = vmul.f32 %v3237_v35, %v3170_v7  ;;  %v1181_v15 = vmul.f32 %v3229_v33, %v3185_v14 }
 0x285   : > { %v2468_v43 = vpack.c.bf16 %v962_v39, %v960_v38  ;;  %v1182_v44 = vmul.f32 %v3244_v40, %v3164_v61  ;;  %v1179_v45 = vmul.f32 %v3244_v40, %v3158_v57  ;;  %v1083_v30 = vmul.f32 %v3208_v26, %v3279_v59 }
 0x286   : > { %v3254_v46 = vpop.permute.xlu0 %1346  ;;  %2670 = vrot.lane.b32.xlu1 %v2669_v36, %s3792_s28  ;;  %2625 = vrot.lane.b32.xlu0 %v2624_v37, %s3792_s28  ;;  %v3332_v25 = vpack.i.bf16 %v3235_v34, %v3223_v32  ;;  %v2654_v37 = vpack.i.bf16 %v1181_v15, %v1178_v13 }
 0x287   : > { %v3258_v47 = vpop.permute.xlu1 %1348  ;;  %2469 = vmatpush1.bf16.msra.mxu1 %v2468_v43  ;;  %v2674_v48 = vpack.i.bf16 %v1183_v41, %v1182_v44  ;;  %v2629_v49 = vpack.i.bf16 %v1180_v42, %v1179_v45  ;;  %v1354_v38 = vmul.f32 %v3254_v46, %v3181_v12  ;;  %v1357_v42 = vmul.f32 %v3254_v46, %v3185_v14 }
 0x288   : > { %v3263_v50 = vsel %vm588_vm4, %v3254_v46, %v3258_v47  ;;  %v1359_v51 = vmul.f32 %v3258_v47, %v3188_v16  ;;  %v1356_v58 = vmul.f32 %v3258_v47, %v3170_v7  ;;  %v1362_v13 = vmul.f32 %v3258_v47, %v3279_v59 }
 0x289   : > { %v1358_v52 = vmul.f32 %v3263_v50, %v3164_v61  ;;  %v1355_v56 = vmul.f32 %v3263_v50, %v3158_v57  ;;  %v1361_v8 = vmul.f32 %v3263_v50, %v3174_v10 }
 0x28a   : > { %v3269_v53 = vpop.permute.xlu0 %1449  ;;  %2675 = vrot.lane.b32.xlu1 %v2674_v48, %s3800_s13  ;;  %2630 = vrot.lane.b32.xlu0 %v2629_v49, %s3800_s13 }
 0x28b   : > { %v3273_v54 = vpop.permute.xlu1 %1451  ;;  %v2679_v55 = vpack.i.bf16 %v1359_v51, %v1358_v52  ;;  %v2639_v3 = vpack.i.bf16 %v1356_v58, %v1355_v56  ;;  %v2699_v52 = vpack.i.bf16 %v1083_v30, %v1082_v18  ;;  %v1185_v56 = vmul.f32 %v3244_v40, %v3174_v10 }
 0x28c   : > { %v1186_v58 = vmul.f32 %v3237_v35, %v3279_v59  ;;  %v1085_v18 = vmul.f32 %v3213_v1, %v3193_v19  ;;  %v1084_v30 = vmul.f32 %v3202_v24, %v3235_v34  ;;  %v1184_v1 = vmul.f32 %v3229_v33, %v3223_v32 }
 0x28e   : > { %v1626_v60 = vpop.permute.xlu0 %1625  ;;  %2635 = vrot.lane.b32.xlu0 %v3217_v29, %s3794_s22  ;;  %2680 = vrot.lane.b32.xlu1 %v2679_v55, %s3801_s19  ;;  %v2664_v55 = vpack.i.bf16 %v1357_v42, %v1354_v38  ;;  %v1459_v42 = vmul.f32 %v3273_v54, %v3170_v7 }
 0x28f   : > { %v3284_v62 = vpop.permute.xlu1 %1627  ;;  %v3316_v23 = vmul.f32 %v1626_v60, %v3223_v32  ;;  %v3319_v28 = vmul.f32 %v1626_v60, %v3235_v34  ;;  %v3343_v39 = vmul.f32 %v1626_v60, %v3181_v12  ;;  %v3346_v41 = vmul.f32 %v1626_v60, %v3185_v14 }
 0x290   : > { %v3296_v9 = vsel %vm411_vm0, %v1626_v60, %v3284_v62  ;;  %v3313_v22 = vmul.f32 %v3284_v62, %v3188_v16  ;;  %v3338_v36 = vmul.f32 %v3284_v62, %v3170_v7  ;;  %v3358_v45 = vmul.f32 %v3284_v62, %v3279_v59  ;;  %v3373_v60 = vld [vmem:[#allocation4 + $0x58] sm:$0xff] }
 0x291   : > { %v3309_v21 = vmul.f32 %v3296_v9, %v3164_v61  ;;  %v3325_v31 = vmul.f32 %v3296_v9, %v3158_v57  ;;  %v3354_v44 = vmul.f32 %v3296_v9, %v3174_v10  ;;  %v2809_v48 = vpack.i.bf16 %v3346_v41, %v3343_v39 }
 0x292   : > { %2685 = vrot.lane.b32.xlu1 %v3288_v0, %s3796_s23  ;;  %2640 = vrot.lane.b32.xlu0 %v2639_v3, %s3801_s19  ;;  %v2844_v49 = vpack.i.bf16 %v3319_v28, %v3316_v23  ;;  %v2704_v3 = vpack.i.bf16 %v1186_v58, %v1185_v56  ;;  %v3379_v6 = vpack.i.bf16 %v3373_v60, %v3193_v19 }
 0x293   : > { %v2804_v27 = vpack.i.bf16 %v3313_v22, %v3309_v21  ;;  %v2794_v43 = vpack.i.bf16 %v3338_v36, %v3325_v31  ;;  %v2834_v51 = vpack.i.bf16 %v3358_v45, %v3354_v44  ;;  %v1086_v15 = vmul.f32 %v3208_v26, %v3373_v60 }
 0x294   : > { %v1189_v7 = vmul.f32 %v3237_v35, %v3373_v60 }
 0x295   : > { %v2744_v38 = vpack.i.bf16 %v1086_v15, %v1085_v18 }
 0x296   : > { %2690 = vrot.lane.b32.xlu1 %v3288_v0, %s3794_s22  ;;  %2650 = vrot.lane.b32.xlu0 %v2649_v17, %s3792_s28  ;;  %v1453_v17 = vsel %vm630_vm6, %v3269_v53, %v3273_v54 }
 0x297   : > { %v1458_v26 = vmul.f32 %v1453_v17, %v3158_v57  ;;  %v1188_v57 = vmul.f32 %v3244_v40, %v3193_v19  ;;  %v1460_v40 = vmul.f32 %v3269_v53, %v3185_v14  ;;  %v1461_v18 = vmul.f32 %v1453_v17, %v3164_v61 }
 0x298   : > { %v1465_v14 = vmul.f32 %v3273_v54, %v3279_v59  ;;  %v1463_v61 = vmul.f32 %v3269_v53, %v3223_v32 }
 0x299   : > { %v2749_v58 = vpack.i.bf16 %v1459_v42, %v1458_v26 }
 0x29a   : > { %2695 = vrot.lane.b32.xlu1 %v3332_v25, %s3796_s23  ;;  %2655 = vrot.lane.b32.xlu0 %v2654_v37, %s3800_s13  ;;  %v2714_v37 = vpack.i.bf16 %v1362_v13, %v1361_v8  ;;  %v2759_v8 = vpack.i.bf16 %v1189_v7, %v1188_v57  ;;  %v1457_v13 = vmul.f32 %v3269_v53, %v3181_v12 }
 0x29b   : > { %v1464_v12 = vmul.f32 %v1453_v17, %v3174_v10  ;;  %v1365_v10 = vmul.f32 %v3258_v47, %v3373_v60  ;;  %v1644_v47 = vmul.f32 %v3284_v62, %v3373_v60  ;;  %v2876_v62 = vmov 1  }
 0x29c   : > { %v2764_v15 = vpack.i.bf16 %v1460_v40, %v1457_v13 }
 0x29e   : > { %2700 = vrot.lane.b32.xlu1 %v2699_v52, %s3792_s28  ;;  %2665 = vrot.lane.b32.xlu0 %v2664_v55, %s3801_s19  ;;  %v1081_v52 = vmul.f32 %v3202_v24, %v3223_v32  ;;  %v1187_v55 = vmul.f32 %v3229_v33, %v3235_v34  ;;  %v1360_v24 = vmul.f32 %v3254_v46, %v3223_v32 }
 0x29f   : > { %v1363_v33 = vmul.f32 %v3254_v46, %v3235_v34  ;;  %v1467_v32 = vmul.f32 %v1453_v17, %v3193_v19 }
 0x2a0   : > { %v2724_v56 = vpack.i.bf16 %v1084_v30, %v1081_v52  ;;  %v1462_v30 = vmul.f32 %v3273_v54, %v3188_v16  ;;  %v1466_v16 = vmul.f32 %v3269_v53, %v3235_v34  ;;  %v1468_v34 = vmul.f32 %v3273_v54, %v3373_v60  ;;  %v1933_v54 = vld [vmem:[%s3772_s2] sm:$0xf] }
 0x2a1   : > { %v2739_v35 = vpack.i.bf16 %v1363_v33, %v1360_v24 }
 0x2a2   : > { %2705 = vrot.lane.b32.xlu1 %v2704_v3, %s3800_s13  ;;  %2720 = vrot.lane.b32.xlu0 %v3379_v6, %s3796_s23  ;;  %v2729_v3 = vpack.i.bf16 %v1187_v55, %v1184_v1  ;;  %v2754_v46 = vpack.i.bf16 %v1462_v30, %v1461_v18  ;;  %v2774_v59 = vpack.i.bf16 %v1466_v16, %v1463_v61 }
 0x2a6   : > { %2710 = vrot.lane.b32.xlu1 %v3332_v25, %s3794_s22  ;;  %2735 = vrot.lane.b32.xlu0 %v3379_v6, %s3794_s22  ;;  %s2443_s22 = sshll.u32 %s3811_s18, 3 }
 0x2a7   : > { %s396_s27 = scalar_lea.vmem %s3770_s0, %s2443_s22  ;;  %s406_s29 = scalar_lea.vmem %s3781_s11, %s2443_s22 }
 0x2aa   : > { %2715 = vrot.lane.b32.xlu1 %v2714_v37, %s3801_s19  ;;  %2745 = vrot.lane.b32.xlu0 %v2744_v38, %s3792_s28  ;;  %v2769_v37 = vpack.i.bf16 %v1465_v14, %v1464_v12  ;;  %v1364_v38 = vmul.f32 %v3263_v50, %v3193_v19  ;;  %v1779_v50 = vld [vmem:[%s3777_s7 + $0x8] sm:$0xff] }
 0x2ab   : > { %1854 = vmatprep.mubr.f32.mxu1 %v1779_v50 }
 0x2ae   : > { %2725 = vrot.lane.b32.xlu1 %v2724_v56, %s3792_s28  ;;  %2750 = vrot.lane.b32.xlu0 %v2749_v58, %s3802_s14 }
 0x2b2   : > { %2730 = vrot.lane.b32.xlu1 %v2729_v3, %s3800_s13  ;;  %2760 = vrot.lane.b32.xlu0 %v2759_v8, %s3800_s13 }
 0x2b6   : > { %2740 = vrot.lane.b32.xlu1 %v2739_v35, %s3801_s19  ;;  %2765 = vrot.lane.b32.xlu0 %v2764_v15, %s3802_s14 }
 0x2ba   : > { %2755 = vrot.lane.b32.xlu1 %v2754_v46, %s3802_s14  ;;  %2780 = vrot.lane.b32.xlu0 %v3179_v11, %s3803_s16  ;;  %v2799_v11 = vpack.i.bf16 %v1365_v10, %v1364_v38 }
 0x2be   : > { %2770 = vrot.lane.b32.xlu1 %v2769_v37, %s3802_s14  ;;  %2790 = vrot.lane.b32.xlu0 %v3217_v29, %s3803_s16  ;;  %v2814_v29 = vpack.i.bf16 %v1468_v34, %v1467_v32 }
 0x2c2   : > { %2775 = vrot.lane.b32.xlu1 %v2774_v59, %s3802_s14  ;;  %2800 = vrot.lane.b32.xlu0 %v2799_v11, %s3801_s19 }
 0x2c6   : > { %2785 = vrot.lane.b32.xlu1 %v3198_v20, %s3803_s16  ;;  %2805 = vrot.lane.b32.xlu0 %v2804_v27, %s3804_s24  ;;  %v1643_v20 = vmul.f32 %v3296_v9, %v3193_v19  ;;  %v1781_v19 = vld [vmem:[%s3778_s8] sm:$0xff] }
 0x2c8   : > { %v2839_v53 = vpack.i.bf16 %v1644_v47, %v1643_v20 }
 0x2ca   : > { %2815 = vrot.lane.b32.xlu0 %v2814_v29, %s3802_s14  ;;  %2795 = vrot.lane.b32.xlu1 %v2794_v43, %s3804_s24 }
 0x2ce   : > { %2820 = vrot.lane.b32.xlu0 %v3288_v0, %s3803_s16  ;;  %2810 = vrot.lane.b32.xlu1 %v2809_v48, %s3804_s24 }
 0x2d2   : > { %2830 = vrot.lane.b32.xlu0 %v3332_v25, %s3803_s16  ;;  %2825 = vrot.lane.b32.xlu1 %v3379_v6, %s3803_s16 }
 0x2d6   : > { %2840 = vrot.lane.b32.xlu0 %v2839_v53, %s3804_s24  ;;  %2835 = vrot.lane.b32.xlu1 %v2834_v51, %s3804_s24 }
 0x2da   : > { %1784 = vperm.xlu0 %2608, %v1781_v19   ;;  %2845 = vrot.lane.b32.xlu1 %v2844_v49, %s3804_s24 }
 0x2de   : > { %1936 = vperm.xlu1 %2607, %v1933_v54   ;;  %2849 = vset.pattern.permute.xlu0 %v2876_v62 }
 0x2df   : > { %1948 = vperm.xlu0 %2849, %v1933_v54  }
 0x2e3   : > { %2850 = vset.pattern.permute.xlu0 %v2875_v63 }
 0x2ec   : > { %v2611_v0 = vpop.permute.xlu0 %2610 }
 0x2ed   : > { %v2613_v9 = vunpack.i.h.bf16 %v2611_v0  ;;  %v2612_v21 = vunpack.i.l.bf16 %v2611_v0 }
 0x2ef   : > { %v1021_v23 = vsel %vm458_vm7, %v2612_v21, %v2613_v9 }
 0x2f0   : > { %v2646_v22 = vpop.permute.xlu1 %2645  ;;  %v3499_v31 = vpop.permute.xlu0 %2615 }
 0x2f1   : > { %v2648_v25 = vunpack.i.h.bf16 %v2646_v22  ;;  %v2647_v27 = vunpack.i.l.bf16 %v2646_v22 }
 0x2f3   : > { %v1023_v28 = vsel %vm458_vm7, %v2647_v27, %v2648_v25 }
 0x2f4   : > { %v3503_v36 = vpop.permute.xlu1 %2660  ;;  %v2621_v39 = vpop.permute.xlu0 %2620  ;;  %v2470_v41 = vpack.c.bf16 %v1023_v28, %v1021_v23 }
 0x2f5   : > { %v2623_v43 = vunpack.i.h.bf16 %v2621_v39  ;;  %v2622_v44 = vunpack.i.l.bf16 %v2621_v39 }
 0x2f6   : > { %2471 = vmatprep.subr.bf16.mxu1 %v2470_v41 }
 0x2f7   : > { %v1020_v63 = vsel %vm458_vm7, %v2622_v44, %v2612_v21  ;;  %v1022_v45 = vsel %vm458_vm7, %v2623_v43, %v2647_v27 }
 0x2f8   : > { %v2671_v48 = vpop.permute.xlu1 %2670  ;;  %v2626_v49 = vpop.permute.xlu0 %2625  ;;  %v2472_v51 = vpack.c.bf16 %v1022_v45, %v1020_v63 }
 0x2f9   : > { %v2673_v3 = vunpack.i.h.bf16 %v2671_v48  ;;  %v2672_v24 = vunpack.i.l.bf16 %v2671_v48  ;;  %v2628_v8 = vunpack.i.h.bf16 %v2626_v49  ;;  %v2627_v33 = vunpack.i.l.bf16 %v2626_v49 }
 0x2fa   : > { %2473 = vmatpush1.bf16.msra.mxu1 %v2472_v51 }
 0x2fb   : > { %v1124_v37 = vsel %vm501_vm9, %v2627_v33, %v2628_v8  ;;  %v1126_v16 = vsel %vm501_vm9, %v2672_v24, %v2673_v3 }
 0x2fc   : > { %v3507_v60 = vpop.permute.xlu1 %2675  ;;  %v3509_v6 = vpop.permute.xlu0 %2630  ;;  %v2478_v47 = vpack.c.bf16 %v1126_v16, %v1124_v37 }
 0x2fd   : > { %v2678_v62 = vunpack.i.h.bf16 %v3507_v60  ;;  %v2677_v0 = vunpack.i.l.bf16 %v3507_v60  ;;  %v2633_v9 = vunpack.i.h.bf16 %v3509_v6  ;;  %v2632_v25 = vunpack.i.l.bf16 %v3509_v6 }
 0x2ff   : > { %v1227_v60 = vsel %vm543_vm8, %v2632_v25, %v2633_v9  ;;  %v1229_v6 = vsel %vm543_vm8, %v2677_v0, %v2678_v62 }
 0x300   : > { %v3511_v17 = vpop.permute.xlu1 %2680  ;;  %v3513_v26 = vpop.permute.xlu0 %2635 }
 0x301   : > { %v2638_v16 = vunpack.i.h.bf16 %v3513_v26 }
 0x304   : > { %v2686_v42 = vpop.permute.xlu1 %2685  ;;  %v3515_v52 = vpop.permute.xlu0 %2640 }
 0x305   : > { %v2688_v13 = vunpack.i.h.bf16 %v2686_v42  ;;  %v2687_v40 = vunpack.i.l.bf16 %v2686_v42  ;;  %v2663_v42 = vunpack.i.h.bf16 %v3503_v36 }
 0x307   : > { %v1025_v38 = vsel %vm458_vm7, %v2687_v40, %v2688_v13  ;;  %v2486_v13 = vpack.c.bf16 %v1229_v6, %v1227_v60 }
 0x308   : > { %v3517_v1 = vpop.permute.xlu1 %2690  ;;  %v2651_v55 = vpop.permute.xlu0 %2650 }
 0x309   : > { %v2653_v14 = vunpack.i.h.bf16 %v2651_v55  ;;  %v2652_v61 = vunpack.i.l.bf16 %v2651_v55  ;;  %v2662_v55 = vunpack.i.l.bf16 %v3503_v36  ;;  %v2692_v62 = vunpack.i.l.bf16 %v3517_v1 }
 0x30b   : > { %v1123_v50 = vsel %vm501_vm9, %v2652_v61, %v2627_v33  ;;  %v1125_v53 = vsel %vm501_vm9, %v2653_v14, %v2672_v24  ;;  %v2637_v14 = vunpack.i.l.bf16 %v3513_v26 }
 0x30c   : > { %v2696_v56 = vpop.permute.xlu1 %2695  ;;  %v3519_v58 = vpop.permute.xlu0 %2655  ;;  %v2480_v28 = vpack.c.bf16 %v1125_v53, %v1123_v50 }
 0x30d   : > { %v2697_v35 = vunpack.i.l.bf16 %v2696_v56  ;;  %v2698_v30 = vunpack.i.h.bf16 %v2696_v56  ;;  %v2658_v43 = vunpack.i.h.bf16 %v3519_v58  ;;  %v2657_v44 = vunpack.i.l.bf16 %v3519_v58 }
 0x30f   : > { %v1024_v59 = vsel %vm458_vm7, %v2697_v35, %v2687_v40  ;;  %v1226_v40 = vsel %vm543_vm8, %v2657_v44, %v2632_v25  ;;  %v1228_v35 = vsel %vm543_vm8, %v2658_v43, %v2677_v0  ;;  %v1301_v25 = vsel %vm563_vm11, %v2638_v16, %v2662_v55 }
 0x310   : > { %v2701_v57 = vpop.permute.xlu1 %2700  ;;  %v3521_v7 = vpop.permute.xlu0 %2665 }
 0x311   : > { %v2703_v19 = vunpack.i.h.bf16 %v2701_v57  ;;  %v2702_v54 = vunpack.i.l.bf16 %v2701_v57  ;;  %v2668_v43 = vunpack.i.h.bf16 %v3521_v7  ;;  %v2667_v44 = vunpack.i.l.bf16 %v3521_v7 }
 0x313   : > { %v1128_v39 = vsel %vm501_vm9, %v2702_v54, %v2703_v19 }
 0x314   : > { %v3523_v15 = vpop.permute.xlu1 %2705  ;;  %v2721_v18 = vpop.permute.xlu0 %2720 }
 0x315   : > { %v2723_v46 = vunpack.i.h.bf16 %v2721_v18  ;;  %v2722_v12 = vunpack.i.l.bf16 %v2721_v18  ;;  %v2708_v56 = vunpack.i.h.bf16 %v3523_v15  ;;  %v2707_v57 = vunpack.i.l.bf16 %v3523_v15 }
 0x316   : > { %v2617_v15 = vunpack.i.l.bf16 %v3499_v31 }
 0x317   : > { %v1027_v10 = vsel %vm458_vm7, %v2722_v12, %v2723_v46  ;;  %v1026_v11 = vsel %vm458_vm7, %v2698_v30, %v2722_v12  ;;  %v2618_v12 = vunpack.i.h.bf16 %v3499_v31  ;;  %v1231_v61 = vsel %vm543_vm8, %v2707_v57, %v2708_v56 }
 0x318   : > { %v3531_v32 = vpop.permute.xlu1 %2710  ;;  %v3533_v34 = vpop.permute.xlu0 %2735  ;;  %v2474_v29 = vpack.c.bf16 %v1027_v10, %v1025_v38  ;;  %v2476_v20 = vpack.c.bf16 %v1026_v11, %v1024_v59  ;;  %v2488_v59 = vpack.c.bf16 %v1228_v35, %v1226_v40  ;;  %v1299_v19 = vsel %vm563_vm11, %v2637_v14, %v2617_v15 }
 0x319   : > { %v2737_v50 = vunpack.i.l.bf16 %v3533_v34  ;;  %v1300_v53 = vsel %vm563_vm11, %v2617_v15, %v2618_v12 }
 0x31a   : > { %2475 = vmatprep.subr.bf16.mxu1 %v2474_v29  ;;  %v1302_v29 = vsel %vm563_vm11, %v2662_v55, %v2663_v42 }
 0x31b   : > { %2477 = vmatpush1.bf16.msra.mxu1 %v2476_v20  ;;  %v2494_v26 = vpack.c.bf16 %v1302_v29, %v1300_v53 }
 0x31c   : > { %v3540_v21 = vpop.permute.xlu1 %2715  ;;  %v2746_v22 = vpop.permute.xlu0 %2745  ;;  %2479 = vmatprep.subr.bf16.mxu1 %v2478_v47  ;;  %v2738_v47 = vunpack.i.h.bf16 %v3533_v34  ;;  %v2643_v34 = vunpack.i.h.bf16 %v3515_v52 }
 0x31d   : > { %v2748_v27 = vunpack.i.h.bf16 %v2746_v22  ;;  %v2747_v23 = vunpack.i.l.bf16 %v2746_v22  ;;  %v2717_v42 = vunpack.i.l.bf16 %v3540_v21 }
 0x31f   : > { %2481 = vmatpush1.bf16.msra.mxu1 %v2480_v28  ;;  %v1130_v41 = vsel %vm501_vm9, %v2747_v23, %v2748_v27  ;;  %v2642_v27 = vunpack.i.l.bf16 %v3515_v52  ;;  %v2712_v28 = vunpack.i.l.bf16 %v3531_v32  ;;  %v2496_v52 = vpack.c.bf16 %v1301_v25, %v1299_v19 }
 0x320   : > { %v2726_v63 = vpop.permute.xlu1 %2725  ;;  %v3547_v45 = vpop.permute.xlu0 %2750  ;;  %v2482_v48 = vpack.c.bf16 %v1130_v41, %v1128_v39  ;;  %v1306_v39 = vsel %vm563_vm11, %v2737_v50, %v2738_v47  ;;  %v2682_v41 = vunpack.i.l.bf16 %v3511_v17 }
 0x321   : > { %v2728_v49 = vunpack.i.h.bf16 %v2726_v63  ;;  %v2727_v51 = vunpack.i.l.bf16 %v2726_v63  ;;  %v1403_v6 = vsel %vm605_vm10, %v2642_v27, %v2643_v34  ;;  %v2752_v35 = vunpack.i.l.bf16 %v3547_v45 }
 0x322   : > { %2483 = vmatprep.subr.bf16.mxu1 %v2482_v48 }
 0x323   : > { %v1127_v58 = vsel %vm501_vm9, %v2727_v51, %v2702_v54  ;;  %v1129_v3 = vsel %vm501_vm9, %v2728_v49, %v2747_v23  ;;  %v2693_v54 = vunpack.i.h.bf16 %v3517_v1  ;;  %v2713_v23 = vunpack.i.h.bf16 %v3531_v32 }
 0x324   : > { %v2731_v24 = vpop.permute.xlu1 %2730  ;;  %v2761_v8 = vpop.permute.xlu0 %2760  ;;  %v2484_v33 = vpack.c.bf16 %v1129_v3, %v1127_v58  ;;  %v2683_v1 = vunpack.i.h.bf16 %v3511_v17  ;;  %v1303_v51 = vsel %vm563_vm11, %v2712_v28, %v2692_v62  ;;  %v2718_v17 = vunpack.i.h.bf16 %v3540_v21 }
 0x325   : > { %v2733_v18 = vunpack.i.h.bf16 %v2731_v24  ;;  %v2732_v30 = vunpack.i.l.bf16 %v2731_v24  ;;  %v2763_v36 = vunpack.i.h.bf16 %v2761_v8  ;;  %v2762_v46 = vunpack.i.l.bf16 %v2761_v8 }
 0x326   : > { %2485 = vmatpush1.bf16.msra.mxu1 %v2484_v33  ;;  %v1304_v49 = vsel %vm563_vm11, %v2692_v62, %v2693_v54  ;;  %v1305_v60 = vsel %vm563_vm11, %v2713_v23, %v2737_v50  ;;  %v1405_v7 = vsel %vm605_vm10, %v2682_v41, %v2683_v1  ;;  %v1402_v3 = vsel %vm605_vm10, %v2667_v44, %v2642_v27 }
 0x327   : > { %2487 = vmatprep.subr.bf16.mxu1 %v2486_v13  ;;  %v1233_v37 = vsel %vm543_vm8, %v2762_v46, %v2763_v36  ;;  %v1230_v31 = vsel %vm543_vm8, %v2732_v30, %v2707_v57  ;;  %v1232_v20 = vsel %vm543_vm8, %v2733_v18, %v2762_v46  ;;  %v2498_v32 = vpack.c.bf16 %v1306_v39, %v1304_v49 }
 0x328   : > { %v3565_v38 = vpop.permute.xlu1 %2740  ;;  %v3567_v10 = vpop.permute.xlu0 %2765  ;;  %v2490_v11 = vpack.c.bf16 %v1233_v37, %v1231_v61  ;;  %v2492_v22 = vpack.c.bf16 %v1232_v20, %v1230_v31  ;;  %v2500_v57 = vpack.c.bf16 %v1305_v60, %v1303_v51  ;;  %v2502_v58 = vpack.c.bf16 %v1405_v7, %v1403_v6 }
 0x329   : > { %v1404_v24 = vsel %vm605_vm10, %v2668_v43, %v2682_v41  ;;  %v2753_v21 = vunpack.i.h.bf16 %v3547_v45  ;;  %v2742_v18 = vunpack.i.l.bf16 %v3565_v38  ;;  %v2743_v30 = vunpack.i.h.bf16 %v3565_v38 }
 0x32a   : > { %2489 = vmatpush1.bf16.msra.mxu1 %v2488_v59  ;;  %v2767_v36 = vunpack.i.l.bf16 %v3567_v10  ;;  %v1407_v46 = vsel %vm605_vm10, %v2717_v42, %v2718_v17  ;;  %v2504_v61 = vpack.c.bf16 %v1404_v24, %v1402_v3  ;;  %v2768_v16 = vunpack.i.h.bf16 %v3567_v10 }
 0x32b   : > { %2491 = vmatprep.subr.bf16.mxu1 %v2490_v11  ;;  %v1406_v29 = vsel %vm605_vm10, %v2742_v18, %v2717_v42  ;;  %v1506_v31 = vsel %vm647_vm13, %v2752_v35, %v2753_v21 }
 0x32c   : > { %v3578_v0 = vpop.permute.xlu1 %2755  ;;  %v3580_v9 = vpop.permute.xlu0 %2780  ;;  %v1505_v50 = vsel %vm647_vm13, %v2767_v36, %v2752_v35 }
 0x32d   : > { %v2758_v8 = vunpack.i.h.bf16 %v3578_v0  ;;  %v2757_v33 = vunpack.i.l.bf16 %v3578_v0  ;;  %v2783_v23 = vunpack.i.h.bf16 %v3580_v9  ;;  %v2782_v28 = vunpack.i.l.bf16 %v3580_v9 }
 0x32e   : > { %2493 = vmatpush1.bf16.msra.mxu1 %v2492_v22 }
 0x32f   : > { %2495 = vmatprep.subr.bf16.mxu1 %v2494_v26  ;;  %v1508_v59 = vsel %vm647_vm13, %v2757_v33, %v2758_v8  ;;  %v1507_v10 = vsel %vm647_vm13, %v2768_v16, %v2757_v33 }
 0x330   : > { %v3592_v63 = vpop.permute.xlu1 %2770  ;;  %v3594_v48 = vpop.permute.xlu0 %2790  ;;  %v2510_v0 = vpack.c.bf16 %v1508_v59, %v1506_v31 }
 0x331   : > { %v2773_v38 = vunpack.i.h.bf16 %v3592_v63  ;;  %v2772_v11 = vunpack.i.l.bf16 %v3592_v63  ;;  %v2793_v7 = vunpack.i.h.bf16 %v3594_v48 }
 0x332   : > { %2497 = vmatpush1.bf16.msra.mxu1 %v2496_v52 }
 0x333   : > { %2499 = vmatprep.subr.bf16.mxu1 %v2498_v32  ;;  %v1510_v1 = vsel %vm647_vm13, %v2772_v11, %v2773_v38  ;;  %v2512_v32 = vpack.c.bf16 %v1507_v10, %v1505_v50 }
 0x334   : > { %v3603_v55 = vpop.permute.xlu1 %2775  ;;  %v2801_v56 = vpop.permute.xlu0 %2800 }
 0x335   : > { %v2803_v13 = vunpack.i.h.bf16 %v2801_v56  ;;  %v2802_v40 = vunpack.i.l.bf16 %v2801_v56  ;;  %v2777_v39 = vunpack.i.l.bf16 %v3603_v55  ;;  %v2778_v41 = vunpack.i.h.bf16 %v3603_v55 }
 0x336   : > { %2501 = vmatpush1.bf16.msra.mxu1 %v2500_v57  ;;  %v2792_v55 = vunpack.i.l.bf16 %v3594_v48  ;;  %v1579_v57 = vsel %vm3799_vm12, %v2782_v28, %v2783_v23  ;;  %v2056_v23 = vld [vmem:[%s3774_s4] ss:$4 sm:$0x3] }
 0x337   : > { %2503 = vmatprep.subr.bf16.mxu1 %v2502_v58  ;;  %v1409_v12 = vsel %vm605_vm10, %v2802_v40, %v2803_v13  ;;  %v1408_v45 = vsel %vm605_vm10, %v2743_v30, %v2802_v40  ;;  %v1509_v56 = vsel %vm647_vm13, %v2777_v39, %v2772_v11  ;;  %v2065_v39 = vrot.slane %v2056_v23, %v2975_v5 }
 0x338   : > { %v3616_v15 = vpop.permute.xlu1 %2785  ;;  %v2806_v14 = vpop.permute.xlu0 %2805  ;;  %v2506_v37 = vpack.c.bf16 %v1409_v12, %v1407_v46  ;;  %v2508_v62 = vpack.c.bf16 %v1408_v45, %v1406_v29  ;;  %v1578_v12 = vsel %vm3799_vm12, %v2792_v55, %v2782_v28  ;;  %v2061_v28 = vrot.slane %v2056_v23, %v2972_v4 }
 0x339   : > { %v2808_v20 = vunpack.i.h.bf16 %v2806_v14  ;;  %v2807_v47 = vunpack.i.l.bf16 %v2806_v14  ;;  %v2788_v53 = vunpack.i.h.bf16 %v3616_v15  ;;  %v2787_v26 = vunpack.i.l.bf16 %v3616_v15 }
 0x33a   : > { %2505 = vmatpush1.bf16.msra.mxu1 %v2504_v61 }
 0x33b   : > { %2507 = vmatprep.subr.bf16.mxu1 %v2506_v37  ;;  %v1684_v44 = vsel %vm3798_vm14, %v2807_v47, %v2808_v20  ;;  %v1581_v42 = vsel %vm3799_vm12, %v2787_v26, %v2788_v53  ;;  %v1580_v48 = vsel %vm3799_vm12, %v2793_v7, %v2787_v26  ;;  %v1932_v7 = vld [vmem:[%s396_s27] sm:$0xff] }
 0x33c   : > { %v2796_v19 = vpop.permute.xlu1 %2795  ;;  %v2816_v54 = vpop.permute.xlu0 %2815  ;;  %v2518_v35 = vpack.c.bf16 %v1581_v42, %v1579_v57  ;;  %v2520_v16 = vpack.c.bf16 %v1580_v48, %v1578_v12 }
 0x33d   : > { %v2798_v22 = vunpack.i.h.bf16 %v2796_v19  ;;  %v2797_v25 = vunpack.i.l.bf16 %v2796_v19  ;;  %v2818_v34 = vunpack.i.h.bf16 %v2816_v54  ;;  %v2817_v27 = vunpack.i.l.bf16 %v2816_v54 }
 0x33e   : > { %2509 = vmatpush1.bf16.msra.mxu1 %v2508_v62  ;;  %v1778_v62 = vld [vmem:[%s3777_s7] sm:$0xff] }
 0x33f   : > { %2511 = vmatprep.subr.bf16.mxu1 %v2510_v0  ;;  %v1682_v43 = vsel %vm3798_vm14, %v2797_v25, %v2798_v22  ;;  %v1512_v63 = vsel %vm647_vm13, %v2817_v27, %v2818_v34  ;;  %v1511_v17 = vsel %vm647_vm13, %v2778_v41, %v2817_v27  ;;  %v1780_v34 = vld [vmem:[%s3777_s7 + $0x10] sm:$0xff]  ;;  %v2851_v27 = vld [vmem:[#allocation6] sm:$0xff]  ;;  %v2139_v41 = vld [vmem:[%s3774_s4] ss:$4 sm:$0x3] }
 0x340   : > { %v2811_v52 = vpop.permute.xlu1 %2810  ;;  %v2821_v49 = vpop.permute.xlu0 %2820  ;;  %v2526_v51 = vpack.c.bf16 %v1684_v44, %v1682_v43  ;;  %v2514_v60 = vpack.c.bf16 %v1512_v63, %v1510_v1  ;;  %v2516_v21 = vpack.c.bf16 %v1511_v17, %v1509_v56  ;;  %v2066_v1 = vcombine.low %v2061_v28, %v2065_v39  ;;  %1974 = vst.msk [vmem:[#allocation6 + $0x8] sm:$0xf] %vm1973_vm1, %v2851_v27 }
 0x341   : > { %v2813_v9 = vunpack.i.h.bf16 %v2811_v52  ;;  %v2812_v6 = vunpack.i.l.bf16 %v2811_v52  ;;  %v2823_v24 = vunpack.i.h.bf16 %v2821_v49  ;;  %v2822_v8 = vunpack.i.l.bf16 %v2821_v49 }
 0x342   : > { %2513 = vmatpush1.bf16.msra.mxu1 %v2512_v32  ;;  %2527 = vmatprep.subr.bf16.mxu0 %v2526_v51  ;;  %v2144_v43 = vrot.slane %v2139_v41, %v2972_v4  ;;  %v2148_v44 = vrot.slane %v2139_v41, %v2975_v5  ;;  %v2877_v52 = vmov 839922192   ;;  %vm1983_vm1 = vcmask 1047556  }
 0x343   : > { %v1681_v58 = vsel %vm3798_vm14, %v2812_v6, %v2797_v25  ;;  %v1683_v3 = vsel %vm3798_vm14, %v2813_v9, %v2807_v47  ;;  %2515 = vmatprep.subr.bf16.mxu1 %v2514_v60  ;;  %v1583_v15 = vsel %vm3799_vm12, %v2822_v8, %v2823_v24  ;;  %2067 = vrot.lane.b32.xlu0 %v2066_v1, %s2863_s12  ;;  %v1939_v49 = vunpack.c.l.s4 %v2877_v52 }
 0x344   : > { %v2528_v33 = vpack.c.bf16 %v1683_v3, %v1681_v58  ;;  %v2826_v13 = vpop.permute.xlu1 %2825  ;;  %v2831_v40 = vpop.permute.xlu0 %2830  ;;  %v2149_v63 = vcombine.low %v2144_v43, %v2148_v44 }
 0x345   : > { %v2828_v18 = vunpack.i.h.bf16 %v2826_v13  ;;  %v2827_v30 = vunpack.i.l.bf16 %v2826_v13  ;;  %v2833_v36 = vunpack.i.h.bf16 %v2831_v40  ;;  %v2832_v46 = vunpack.i.l.bf16 %v2831_v40 }
 0x346   : > { %2517 = vmatpush1.bf16.msra.mxu1 %v2516_v21  ;;  %2529 = vmatpush1.bf16.msra.mxu0 %v2528_v33  ;;  %v1940_v32 = vunpack.c.0.s8 %v1939_v49 }
 0x347   : > { %2519 = vmatprep.subr.bf16.mxu1 %v2518_v35  ;;  %v1585_v14 = vsel %vm3799_vm12, %v2827_v30, %v2828_v18  ;;  %v1582_v59 = vsel %vm3799_vm12, %v2832_v46, %v2822_v8  ;;  %v1584_v38 = vsel %vm3799_vm12, %v2833_v36, %v2827_v30  ;;  %2150 = vrot.lane.b32.xlu0 %v2149_v63, %s2865_s20  ;;  %v2435_v18 = vld [vmem:[%s3774_s4 + $0x2] ss:$4 sm:$0x3]  ;;  %vm1984_vm12 = vmor %vm1983_vm1, %vm1982_vm15 }
 0x348   : > { %v2836_v61 = vpop.permute.xlu1 %2835  ;;  %v2841_v37 = vpop.permute.xlu0 %2840  ;;  %v2522_v45 = vpack.c.bf16 %v1585_v14, %v1583_v15  ;;  %v2524_v53 = vpack.c.bf16 %v1584_v38, %v1582_v59  ;;  %v1943_v51 = vsub.s32 %v1940_v32, %v2955_v2  ;;  %v2027_v46 = vrot.slane %v2435_v18, %v2972_v4  ;;  %v2436_v15 = vld [vmem:[%s3774_s4 + $0x2] ss:$4 sm:$0x3] }
 0x349   : > { %v2838_v11 = vunpack.i.h.bf16 %v2836_v61  ;;  %v2837_v29 = vunpack.i.l.bf16 %v2836_v61  ;;  %v2843_v31 = vunpack.i.h.bf16 %v2841_v37  ;;  %v2842_v20 = vunpack.i.l.bf16 %v2841_v37 }
 0x34a   : > { %2521 = vmatpush1.bf16.msra.mxu1 %v2520_v16  ;;  %v2031_v12 = vrot.slane %v2435_v18, %v2975_v5  ;;  %v2110_v37 = vrot.slane %v2436_v15, %v2972_v4  ;;  %v2114_v16 = vrot.slane %v2436_v15, %v2975_v5 }
 0x34b   : > { %2523 = vmatprep.subr.bf16.mxu1 %v2522_v45  ;;  %v1686_v47 = vsel %vm3798_vm14, %v2837_v29, %v2838_v11  ;;  %v1688_v50 = vsel %vm3798_vm14, %v2842_v20, %v2843_v31  ;;  %v2437_v45 = vld [vmem:[%s3774_s4 + $0x2] ss:$4 sm:$0x3] }
 0x34c   : > { %v2846_v10 = vpop.permute.xlu1 %2845  ;;  %v2530_v26 = vpack.c.bf16 %v1688_v50, %v1686_v47  ;;  %v2032_v61 = vcombine.low %v2027_v46, %v2031_v12  ;;  %v2115_v59 = vcombine.low %v2110_v37, %v2114_v16  ;;  %v2193_v38 = vrot.slane %v2437_v45, %v2972_v4 }
 0x34d   : > { %v2848_v19 = vunpack.i.h.bf16 %v2846_v10  ;;  %v2847_v54 = vunpack.i.l.bf16 %v2846_v10  ;;  %v2197_v11 = vrot.slane %v2437_v45, %v2975_v5 }
 0x34e   : > { %2525 = vmatpush1.bf16.msra.mxu1 %v2524_v53  ;;  %2531 = vmatprep.subr.bf16.mxu0 %v2530_v26 }
 0x34f   : > { %v1685_v0 = vsel %vm3798_vm14, %v2847_v54, %v2837_v29  ;;  %v1687_v22 = vsel %vm3798_vm14, %v2848_v19, %v2842_v20  ;;  %v2198_v29 = vcombine.low %v2193_v38, %v2197_v11  ;;  %vm1986_vm14 = vcmask 134144  }
 0x350   : > { %v2532_v25 = vpack.c.bf16 %v1687_v22, %v1685_v0 }
 0x351   : > { %1855 = vmatmul.mubr.f32.vlgmr.msra.gmra.mrb[0].mxu1 %v1778_v62 }
 0x352   : > { %2533 = vmatpush1.bf16.msra.mxu0 %v2532_v25 }
 0x355   : > { %2434 = vmatmul.mubr.msk.f32.vlgmr.msra.gmra.mrb[8].mxu0 %vm630_vm6, %v1780_v34 }
 0x356   : > { %2334 = vmatprep.mubr.f32.mxu0 %v2851_v27 }
 0x359   : > { %v1785_v60 = vpop.permute.xlu0 %1784 }
 0x35d   : > { %v1937_v9 = vpop.permute.xlu1 %1936 }
 0x35e   : > { %v1944_v42 = vrot.slane %v1937_v9, %v1943_v51  ;;  %v1949_v55 = vpop.permute.xlu0 %1948 }
 0x35f   : > { %v1956_v33 = vrot.slane %v1949_v55, %v1943_v51 }
 0x360   : > { %v1946_v8 = vsub.f32 %v1932_v7, %v1944_v42 }
 0x362   : > { %v1958_v35 = vmul.f32 %v1956_v33, %v1946_v8 }
 0x3b5   : > { %v2068_v19 = vpop.permute.xlu0 %2067 }
 0x3b6   : > { %v2069_v0 = vrot.slane %v2068_v19, 4 }
 0x3b8   : > { %v2070_v28 = vsel %vm526_vm3, %v2069_v0, %v2068_v19  ;;  %vm3809_vm3 = vcmask 769024  }
 0x3b9   : > { %v2151_v1 = vpop.permute.xlu0 %2150 }
 0x3ba   : > { %v2152_v63 = vrot.slane %v2151_v1, 4 }
 0x424   : > { %v1856_v6 = vpop.f32.mrb[0].mxu1 }
 0x425   : > { %v1858_v17 = vpop.f32.mrb[1].mxu1  ;;  %v1857_v56 = vadd.f32 %v1856_v6, %v1785_v60 }
 0x426   : > { %v1859_v57 = vadd.f32 %v1858_v17, %v1785_v60  ;;  %v2153_v60 = vsel %vm630_vm6, %v2152_v63, %v2151_v1 }
 0x428   : > { %v1927_v58 = vpop.f32.mrb[8].mxu0 }
 0x429   : > { %v1928_v3 = vadd.f32 %v1927_v58, %v1857_v56  ;;  %v1929_v24 = vpop.f32.mrb[9].mxu0 }
 0x42a   : > { %v1930_v2 = vadd.f32 %v1929_v24, %v1859_v57 }
 0x42b   : > { %v1959_v13 = vadd.f32 1.0, %v1928_v3 }
 0x42c   : > { %v1960_v40 = vadd.f32 1.0, %v1930_v2  ;;  %v1968_v21 = vcombine.high %v1928_v3, %v1930_v2  ;;  %v2230_v3 = vld [vmem:[%s3780_s10] sm:$0xf] }
 0x42d   : > { %v1989_v2 = vld [vmem:[%s3774_s4] ss:$4 sm:$0x3] }
 0x42e   : > { %v1963_v48 = vcombine.low %v1959_v13, %v1960_v40 }
 0x430   : > { %v1965_v30 = vmul.f32 %v1963_v48, %v1958_v35  ;;  %v1998_v35 = vrot.slane %v1989_v2, %v2975_v5 }
 0x432   : > { %v1970_v36 = vadd.f32 %v1968_v21, %v1965_v30  ;;  %v1994_v21 = vrot.slane %v1989_v2, %v2972_v4 }
 0x434   : > { %v1971_v14 = vmax.f32 %v1970_v36, 0.0  ;;  %v1999_v12 = vcombine.low %v1994_v21, %v1998_v35 }
 0x436   : > { %1976 = vrot.lane.b32.xlu1 %v1971_v14, %s2861_s25  ;;  %s3805_s25 = smov 127  }
 0x43a   : > { %2033 = vrot.lane.b32.xlu1 %v2032_v61, %s2862_s26  ;;  %s3806_s26 = smov 111  }
 0x43e   : > { %2116 = vrot.lane.b32.xlu1 %v2115_v59, %s2864_s15  ;;  %s3807_s15 = smov 126  }
 0x442   : > { %2199 = vrot.lane.b32.xlu1 %v2198_v29, %s2866_s21 }
 0x4a8   : > { %v1977_v31 = vpop.permute.xlu1 %1976 }
 0x4a9   : > { %v1978_v20 = vrot.slane %v1977_v31, 4 }
 0x4ab   : > { %v1979_v47 = vsel %vm419_vm2, %v1978_v20, %v1977_v31  ;;  %1987 = vst.msk [vmem:[#allocation6 + $0x8] sm:$0xf] %vm1986_vm14, %v1978_v20  ;;  %vm3808_vm2 = vcmask 777216  }
 0x4ac   : > { %1985 = vst.msk [vmem:[#allocation6] sm:$0xff] %vm1984_vm12, %v1979_v47  ;;  %v2034_v10 = vpop.permute.xlu1 %2033 }
 0x4ad   : > { %v2035_v26 = vrot.slane %v2034_v10, 4 }
 0x4af   : > { %v2036_v22 = vsel %vm484_vm5, %v2035_v26, %v2034_v10 }
 0x4b0   : > { %v2117_v25 = vpop.permute.xlu1 %2116 }
 0x4b1   : > { %v2118_v39 = vrot.slane %v2117_v25, 4 }
 0x4b2   : > { %v2004_v53 = vld [vmem:[#allocation6 + $0x8] sm:$0xf] }
 0x4b3   : > { %v3701_v50 = vld [vmem:[#allocation6] sm:$0xff]  ;;  %2009 = vrot.lane.b32.xlu1 %v2004_v53, %s3805_s25  ;;  %v2020_v54 = vld [vmem:[#allocation6 + $0x8] sm:$0xf]  ;;  %v2119_v52 = vsel %vm588_vm4, %v2118_v39, %v2117_v25  ;;  %vm2262_vm4 = vcmask 293888  }
 0x4b4   : > { %2007 = vrot.lane.b32.xlu0 %v3701_v50, %s3805_s25  ;;  %v2089_v62 = vld [vmem:[#allocation6 + $0x8] sm:$0xf]  ;;  %v2040_v34 = vmul.f32 %v2035_v26, %v2020_v54  ;;  %v2039_v23 = vmul.f32 %v3701_v50, %v2036_v22  ;;  %v2073_v43 = vmul.f32 %v2070_v28, %v3701_v50  ;;  %v2122_v51 = vmul.f32 %v2119_v52, %v3701_v50  ;;  %v2200_v9 = vpop.permute.xlu1 %2199 }
 0x4b5   : > { %v2055_v27 = vld [vmem:[#allocation6 + $0x8] sm:$0xf]  ;;  %v2156_v17 = vmul.f32 %v2153_v60, %v3701_v50  ;;  %v2201_v42 = vrot.slane %v2200_v9, 4  ;;  %v2001_v4 = vmul.f32 %v3701_v50, %v1999_v12 }
 0x4b6   : > { %v2074_v41 = vmul.f32 %v2069_v0, %v2055_v27  ;;  %v2104_v44 = vld [vmem:[#allocation6 + $0x8] sm:$0xf] }
 0x4b7   : > { %2094 = vrot.lane.b32.xlu1 %v2089_v62, %s3806_s26  ;;  %v2123_v49 = vmul.f32 %v2118_v39, %v2104_v44  ;;  %v2138_v32 = vld [vmem:[#allocation6 + $0x8] sm:$0xf]  ;;  %v2202_v55 = vsel %vm411_vm0, %v2201_v42, %v2200_v9  ;;  %vm2013_vm0 = vcmask 1043456  }
 0x4b8   : > { %2092 = vrot.lane.b32.xlu0 %v3701_v50, %s3806_s26  ;;  %v2157_v6 = vmul.f32 %v2152_v63, %v2138_v32  ;;  %v2172_v7 = vld [vmem:[#allocation6 + $0x8] sm:$0xf]  ;;  %v2205_v58 = vmul.f32 %v2202_v55, %v3701_v50 }
 0x4b9   : > { %v2187_v56 = vld [vmem:[#allocation6 + $0x8] sm:$0xf] }
 0x4ba   : > { %v2206_v57 = vmul.f32 %v2201_v42, %v2187_v56 }
 0x4bb   : > { %2045 = vrot.lane.b32.xlu1 %v2040_v34, %s3807_s15 }
 0x4bc   : > { %2043 = vrot.lane.b32.xlu0 %v2039_v23, %s3807_s15 }
 0x4bf   : > { %2079 = vrot.lane.b32.xlu1 %v2074_v41, %s3800_s13 }
 0x4c0   : > { %2077 = vrot.lane.b32.xlu0 %v2073_v43, %s3800_s13 }
 0x4c3   : > { %2128 = vrot.lane.b32.xlu1 %v2123_v49, %s3801_s19 }
 0x4c4   : > { %2126 = vrot.lane.b32.xlu0 %v2122_v51, %s3801_s19 }
 0x4c7   : > { %2162 = vrot.lane.b32.xlu1 %v2157_v6, %s3802_s14 }
 0x4c8   : > { %2160 = vrot.lane.b32.xlu0 %v2156_v17, %s3802_s14 }
 0x4cb   : > { %2177 = vrot.lane.b32.xlu1 %v2172_v7, %s3803_s16 }
 0x4cc   : > { %2175 = vrot.lane.b32.xlu0 %v3701_v50, %s3803_s16 }
 0x4cf   : > { %2211 = vrot.lane.b32.xlu1 %v2206_v57, %s3804_s24 }
 0x4d0   : > { %2209 = vrot.lane.b32.xlu0 %v2205_v58, %s3804_s24 }
 0x4d4   : > { %2233 = vperm.xlu0 %2850, %v2230_v3  }
 0x525   : > { %v2010_v24 = vpop.permute.xlu1 %2009 }
 0x526   : > { %v2008_v8 = vpop.permute.xlu0 %2007  ;;  %v2012_v40 = vrot.slane %v2010_v24, 4 }
 0x527   : > { %v2011_v48 = vrot.slane %v2008_v8, 4 }
 0x529   : > { %v2095_v33 = vpop.permute.xlu1 %2094  ;;  %v2014_v15 = vsel %vm2013_vm0, %v2011_v48, %v2012_v40 }
 0x52a   : > { %v2093_v13 = vpop.permute.xlu0 %2092  ;;  %v2015_v59 = vsel %vm458_vm7, %v2008_v8, %v2014_v15  ;;  %v2097_v22 = vrot.slane %v2095_v33, 4  ;;  %v2229_v33 = vld [vmem:[%s3779_s9] sm:$0xf] }
 0x52b   : > { %v2245_v20 = vcombine.low %v2001_v4, %v2015_v59  ;;  %v2246_v47 = vcombine.high %v2001_v4, %v2015_v59  ;;  %v2096_v25 = vrot.slane %v2093_v13, 4 }
 0x52d   : > { %v2046_v18 = vpop.permute.xlu1 %2045  ;;  %v2098_v39 = vsel %vm2013_vm0, %v2096_v25, %v2097_v22 }
 0x52e   : > { %v2044_v30 = vpop.permute.xlu0 %2043  ;;  %v2048_v36 = vrot.slane %v2046_v18, 4  ;;  %v2099_v52 = vsel %vm563_vm11, %v2093_v13, %v2098_v39 }
 0x52f   : > { %v2047_v46 = vrot.slane %v2044_v30, 4 }
 0x531   : > { %v2080_v14 = vpop.permute.xlu1 %2079  ;;  %v2049_v16 = vsel %vm2013_vm0, %v2047_v46, %v2048_v36 }
 0x532   : > { %v2082_v61 = vrot.slane %v2080_v14, 4  ;;  %v2078_v37 = vpop.permute.xlu0 %2077  ;;  %v2050_v11 = vsel %vm501_vm9, %v2044_v30, %v2049_v16 }
 0x533   : > { %v2081_v45 = vrot.slane %v2078_v37, 4 }
 0x535   : > { %v2083_v5 = vsel %vm2013_vm0, %v2081_v45, %v2082_v61  ;;  %v2129_v38 = vpop.permute.xlu1 %2128 }
 0x536   : > { %v2084_v29 = vsel %vm543_vm8, %v2078_v37, %v2083_v5  ;;  %v2127_v31 = vpop.permute.xlu0 %2126  ;;  %v2131_v26 = vrot.slane %v2129_v38, 4 }
 0x537   : > { %v2247_v10 = vcombine.low %v2050_v11, %v2084_v29  ;;  %v2248_v53 = vcombine.high %v2050_v11, %v2084_v29  ;;  %v2130_v19 = vrot.slane %v2127_v31, 4 }
 0x539   : > { %v2536_v54 = vpack.c.bf16 %v2247_v10, %v2245_v20  ;;  %v2163_v62 = vpop.permute.xlu1 %2162  ;;  %v2534_v0 = vpack.c.bf16 %v2248_v53, %v2246_v47  ;;  %v2132_v23 = vsel %vm2013_vm0, %v2130_v19, %v2131_v26 }
 0x53a   : > { %v2161_v50 = vpop.permute.xlu0 %2160  ;;  %v2165_v34 = vrot.slane %v2163_v62, 4  ;;  %v2133_v43 = vsel %vm605_vm10, %v2127_v31, %v2132_v23 }
 0x53b   : > { %v2164_v27 = vrot.slane %v2161_v50, 4  ;;  %2535 = vmatprep.subr.bf16.mxu0 %v2534_v0  ;;  %v2249_v51 = vcombine.low %v2099_v52, %v2133_v43  ;;  %v2250_v42 = vcombine.high %v2099_v52, %v2133_v43 }
 0x53c   : > { %2537 = vmatpush1.bf16.msra.mxu0 %v2536_v54 }
 0x53d   : > { %v2178_v28 = vpop.permute.xlu1 %2177  ;;  %v2166_v44 = vsel %vm2013_vm0, %v2164_v27, %v2165_v34 }
 0x53e   : > { %v2180_v1 = vrot.slane %v2178_v28, 4  ;;  %v2176_v41 = vpop.permute.xlu0 %2175  ;;  %v2167_v60 = vsel %vm647_vm13, %v2161_v50, %v2166_v44 }
 0x53f   : > { %v2179_v63 = vrot.slane %v2176_v41, 4 }
 0x541   : > { %v2181_v49 = vsel %vm2013_vm0, %v2179_v63, %v2180_v1  ;;  %v2212_v32 = vpop.permute.xlu1 %2211 }
 0x542   : > { %v2182_v9 = vsel %vm3808_vm2, %v2176_v41, %v2181_v49  ;;  %v2214_v6 = vrot.slane %v2212_v32, 4  ;;  %v2210_v17 = vpop.permute.xlu0 %2209 }
 0x543   : > { %v2251_v7 = vcombine.low %v2167_v60, %v2182_v9  ;;  %v2252_v55 = vcombine.high %v2167_v60, %v2182_v9  ;;  %v2213_v56 = vrot.slane %v2210_v17, 4 }
 0x545   : > { %v2540_v57 = vpack.c.bf16 %v2251_v7, %v2249_v51  ;;  %v2215_v58 = vsel %vm2013_vm0, %v2213_v56, %v2214_v6  ;;  %v2538_v3 = vpack.c.bf16 %v2252_v55, %v2250_v42 }
 0x546   : > { %v2216_v24 = vsel %vm3809_vm3, %v2210_v17, %v2215_v58 }
 0x547   : > { %v2253_v8 = vcombine.high %v2216_v24, %v2216_v24  ;;  %2539 = vmatprep.subr.bf16.mxu0 %v2538_v3 }
 0x548   : > { %2541 = vmatpush1.bf16.msra.mxu0 %v2540_v57 }
 0x549   : > { %2438 = vmatprep.subr.msk.mxu0 %vm2013_vm0, %v2253_v8 }
 0x54c   : > { %2439 = vmatpush1.msk.msra.mxu0 %vm2013_vm0, %v2216_v24 }
 0x54d   : > { %2440 = vmatmul.mubr.msk.f32.vlgmr.msra.gmra.mrb[10].mxu0 %vm2262_vm4, %v2229_v33 }
 0x553   : > { %v2234_v2 = vpop.permute.xlu0 %2233 }
 0x620   : > { %v2336_v13 = vpop.f32.mrb[10].mxu0 }
 0x621   : > { %v2337_v40 = vadd.f32 %v2336_v13, %v2234_v2  ;;  %v2338_v21 = vpop.f32.mrb[11].mxu0 }
 0x622   : > { %v2339_v35 = vadd.f32 %v2338_v21, %v2234_v2 }
 0x624   : > { %v2343_v48 = vcombine.low %v2337_v40, %v2339_v35 }
 0x626   : > { %2345 = vst [vmem:[%s406_s29] sm:$0xff] %v2343_v48 }
 0x627 PF: > { %s21_s17 = sadd.s32 1, %s2858_s17  }
 0x628   : > { %p18_p4 = scmp.ge.s32.totalorder %s21_s17, 4  }
 0x62a   :  { %20 = sbr.rel (!%p18_p4) target bundleno = 1 (0x1), region = 123 }

// kernel: spade_resnet_block.7
= control target key start
LH: loop header
LB: loop body
LE: loop exit
PB: predicated region body
PF: predicated region fallthrough
CT: control target
= control target key end

     0   :  { %s2642_s16 = smov 0   ;;  %s3387_s0 = inlined_call_operand.vmem [shape: f32[2,4,256], index: 0, kind: input, shape index: {}]   ;;  %s3388_s1 = inlined_call_operand.vmem [shape: f32[2,8,256], index: 1, kind: input, shape index: {}]   ;;  %s3389_s2 = inlined_call_operand.vmem [shape: f32[4,2], index: 2, kind: input, shape index: {}]   ;;  %s3390_s3 = inlined_call_operand.vmem [shape: f32[3,256], index: 3, kind: input, shape index: {}]   ;;  %s3391_s4 = inlined_call_operand.vmem [shape: f32[1,256], index: 4, kind: input, shape index: {}]   ;;  %s3392_s5 = inlined_call_operand.vmem [shape: f32[32,72], index: 5, kind: input, shape index: {}]   ;;  %s3393_s6 = inlined_call_operand.vmem [shape: f32[32,1], index: 6, kind: input, shape index: {}]   ;;  %s3394_s7 = inlined_call_operand.vmem [shape: f32[8,288], index: 7, kind: input, shape index: {}]   ;;  %s3395_s8 = inlined_call_operand.vmem [shape: f32[8,1], index: 8, kind: input, shape index: {}]   ;;  %s3396_s9 = inlined_call_operand.vmem [shape: f32[8,4], index: 9, kind: input, shape index: {}]   ;;  %s3397_s10 = inlined_call_operand.vmem [shape: f32[8,1], index: 10, kind: input, shape index: {}]   ;;  %s3398_s11 = inlined_call_operand.vmem [shape: f32[2,8,256], index: 11, kind: output, shape index: {}]  }
   0x1 LB: > { %s2129_s17 = sadd.s32 4294967295, %s2562_s16   ;;  %p2133_p0 = scmp.ge.s32.totalorder %s2562_s16, 1  ;;  %s2562_s16 = sphi %s2642_s16, %s21_s16  }
   0x2   : > { %p347_p1 = scmp.lt.s32.totalorder %s2562_s16, 3 }
   0x4   : > { %p348_p2 = pnand %p2133_p0, %p347_p1 }
   0x5   : > { %p392_p3 = scmp.lt.s32.totalorder (!%p348_p2), %s2129_s17, 1  ;;  %v432_v0 = vlaneseq (!%p348_p2)  ;;  %v2564_v1 = vmov (!%p348_p2), 0.0   ;;  %vm411_vm0 = vcmask (!%p348_p2), 277504   ;;  %v2140_v3 = vld [vmem:[%s3390_s3 + $0x2] ss:$4 sm:$0x3] (!%p348_p2) }
   0x6   : > { %351 = sbr.rel (%p348_p2) target bundleno = 1296 (0x510), region = 64  ;;  %409 = vst [vmem:[#allocation2] sm:$0xff] (!%p348_p2), %v2564_v1  ;;  %872 = vst [vmem:[#allocation4] sm:$0xff] (!%p348_p2), %v2564_v1  ;;  %839 = vmatprep.mubr.f32.mxu0 (!%p348_p2), %v2564_v1  ;;  %s2565_s24 = smov (!%p348_p2), 17   ;;  %vm424_vm1 = vcmask (!%p348_p2), 1047688   ;;  %vm419_vm2 = vcmask (!%p348_p2), 138240  }
   0x7   : > { %875 = vst [vmem:[#allocation4 + $0x18] sm:$0xff] (!%p348_p2), %v2564_v1  ;;  %878 = vst [vmem:[#allocation4 + $0x30] sm:$0xff] (!%p348_p2), %v2564_v1  ;;  %v2658_v2 = vshrl.u32 (!%p348_p2), %v432_v0, 7  ;;  %s2566_s25 = smov (!%p348_p2), 2   ;;  %s2567_s30 = smov (!%p348_p2), 16   ;;  %vm526_vm3 = vcmask (!%p348_p2), 130048  }
   0x8   : > { %881 = vst [vmem:[#allocation4 + $0x48] sm:$0xff] (!%p348_p2), %v2564_v1  ;;  %412 = vst.msk [vmem:[#allocation2 + $0x10] sm:$0xff] (!%p348_p2), %vm411_vm0, %v2564_v1  ;;  %v512_v10 = vld [vmem:[%s3390_s3] ss:$4 sm:$0x3] (!%p348_p2)  ;;  %s2568_s14 = smov (!%p348_p2), 18  }
   0x9   : > { %874 = vst.msk [vmem:[#allocation4 + $0x10] sm:$0xff] (!%p348_p2), %vm411_vm0, %v2564_v1  ;;  %877 = vst.msk [vmem:[#allocation4 + $0x28] sm:$0xff] (!%p348_p2), %vm411_vm0, %v2564_v1  ;;  %v2675_v4 = vsub.s32 (!%p348_p2), 0, %v2658_v2  ;;  %v2678_v5 = vsub.s32 (!%p348_p2), 1, %v2658_v2  ;;  %s2569_s18 = smov (!%p348_p2), 32   ;;  %s2570_s19 = smov (!%p348_p2), 34  }
   0xa   : > { %880 = vst.msk [vmem:[#allocation4 + $0x40] sm:$0xff] (!%p348_p2), %vm411_vm0, %v2564_v1  ;;  %883 = vst.msk [vmem:[#allocation4 + $0x58] sm:$0xff] (!%p348_p2), %vm411_vm0, %v2564_v1  ;;  %v2141_v13 = vld [vmem:[%s3390_s3 + $0x2] ss:$4 sm:$0x3] (!%p348_p2)  ;;  %s2571_s21 = smov (!%p348_p2), 111  }
   0xb   : > { %v475_v7 = vrot.slane (!%p348_p2), %v2140_v3, %v2675_v4  ;;  %v479_v8 = vrot.slane (!%p348_p2), %v2140_v3, %v2678_v5  ;;  %v517_v11 = vrot.slane (!%p348_p2), %v512_v10, %v2675_v4  ;;  %v521_v12 = vrot.slane (!%p348_p2), %v512_v10, %v2678_v5  ;;  %v616_v16 = vld [vmem:[%s3390_s3] ss:$4 sm:$0x3] (!%p348_p2)  ;;  %v2142_v19 = vld [vmem:[%s3390_s3 + $0x2] ss:$4 sm:$0x3] (!%p348_p2) }
   0xc   : > { %v579_v14 = vrot.slane (!%p348_p2), %v2141_v13, %v2675_v4  ;;  %v583_v15 = vrot.slane (!%p348_p2), %v2141_v13, %v2678_v5  ;;  %v621_v17 = vrot.slane (!%p348_p2), %v616_v16, %v2675_v4  ;;  %v625_v18 = vrot.slane (!%p348_p2), %v616_v16, %v2678_v5  ;;  %s2572_s22 = smov (!%p348_p2), 127   ;;  %s3406_s26 = smov (!%p348_p2), 110   ;;  %v738_v62 = vld [vmem:[%s3393_s6] sm:$0xff] (!%p348_p2)  ;;  %v739_v0 = vld [vmem:[%s3393_s6 + $0x8] sm:$0xff] (!%p348_p2)  ;;  %v740_v3 = vld [vmem:[%s3393_s6 + $0x10] sm:$0xff] (!%p348_p2) }
   0xd   : > { %s3414_s17 = smov (!%p392_p3, %s2129_s17), 1  ;;  %480 = vrot.lane.b32.xlu1 %v475_v7, %s2566_s25  ;;  %v683_v20 = vrot.slane %v2142_v19, %v2675_v4  ;;  %v687_v21 = vrot.slane %v2142_v19, %v2678_v5  ;;  %vm588_vm4 = vcmask 146432   ;;  %vm484_vm5 = vcmask 15360   ;;  %s2575_s27 = smov 126  }
   0xe   : > { %s3399_s20 = sshll.u32 %s3414_s17, 4  ;;  %vm630_vm6 = vcmask 261120   ;;  %s3400_s28 = smov 95   ;;  %v2579_v63 = vmov 0   ;;  %vm458_vm7 = vcmask 1039360   ;;  %vm543_vm8 = vcmask 916480  }
   0xf   : > { %s401_s23 = scalar_lea.vmem %s3388_s1, %s3399_s20  ;;  %s3402_s29 = smov 96   ;;  %2312 = vset.pattern.permute.xlu1 %v2579_v63  ;;  %2313 = vset.pattern.permute.xlu0 %v2579_v63  ;;  %vm501_vm9 = vcmask 1031168   ;;  %vm605_vm10 = vcmask 900096   ;;  %vm563_vm11 = vcmask 908288   ;;  %vm667_vm12 = vcmask 777216  }
  0x10   : > { %v407_v6 = vld [vmem:[%s401_s23] sm:$0xff]  ;;  %v408_v9 = vld [vmem:[%s401_s23 + $0x8] sm:$0xff]  ;;  %s2573_s23 = smov 112   ;;  %s3404_s12 = smov 94   ;;  %vm647_vm13 = vcmask 785408   ;;  %vm708_vm14 = vcmask 769024  }
  0x11   : > { %415 = vrot.lane.b32.xlu0 %v407_v6, %s2565_s24  ;;  %482 = vrot.lane.b32.xlu1 %v479_v8, %s2566_s25  ;;  %v741_v6 = vld [vmem:[%s3393_s6 + $0x18] sm:$0xff]  ;;  %v430_v8 = vld [vmem:[%s3390_s3] ss:$4 sm:$0x3]  ;;  %vm762_vm15 = vcmask 588800  }
  0x15   : > { %417 = vrot.lane.b32.xlu0 %v408_v9, %s2565_s24  ;;  %524 = vrot.lane.b32.xlu1 %v521_v12, %s2567_s30  ;;  %v435_v12 = vrot.slane %v430_v8, %v2675_v4 }
  0x19   : > { %522 = vrot.lane.b32.xlu0 %v517_v11, %s2567_s30  ;;  %586 = vrot.lane.b32.xlu1 %v583_v15, %s2568_s14  ;;  %v439_v11 = vrot.slane %v430_v8, %v2678_v5  ;;  %v734_v8 = vld [vmem:[%s3392_s5] sm:$0xff] }
  0x1d   : > { %584 = vrot.lane.b32.xlu0 %v579_v14, %s2568_s14  ;;  %628 = vrot.lane.b32.xlu1 %v625_v18, %s2569_s18 }
  0x21   : > { %626 = vrot.lane.b32.xlu0 %v621_v17, %s2569_s18  ;;  %690 = vrot.lane.b32.xlu1 %v687_v21, %s2570_s19 }
  0x25   : > { %688 = vrot.lane.b32.xlu0 %v683_v20, %s2570_s19 }
  0x7f   : > { %v481_v23 = vpop.permute.xlu1 %480 }
  0x83   : > { %v416_v22 = vpop.permute.xlu0 %415  ;;  %v483_v26 = vpop.permute.xlu1 %482 }
  0x84   : > { %425 = vst.msk [vmem:[#allocation2] sm:$0xff] %vm424_vm1, %v416_v22  ;;  %v485_v43 = vsel %vm484_vm5, %v481_v23, %v483_v26 }
  0x87   : > { %v418_v24 = vpop.permute.xlu0 %417  ;;  %v525_v29 = vpop.permute.xlu1 %524 }
  0x88   : > { %v2721_v25 = vsel %vm419_vm2, %v416_v22, %v418_v24  ;;  %427 = vst.msk [vmem:[#allocation2 + $0x10] sm:$0xff] %vm419_vm2, %v418_v24 }
  0x89   : > { %v490_v46 = vmul.f32 %v485_v43, %v2721_v25  ;;  %v443_v17 = vmul.f32 %v439_v11, %v2721_v25  ;;  %v737_v11 = vld [vmem:[%s3392_s5 + $0x18] sm:$0xff] }
  0x8b   : > { %v2724_v27 = vld [vmem:[#allocation2] sm:$0xff]  ;;  %v523_v28 = vpop.permute.xlu0 %522  ;;  %v587_v33 = vpop.permute.xlu1 %586 }
  0x8c   : > { %557 = vrot.lane.b32.xlu0 %v2724_v27, %s2571_s21  ;;  %452 = vrot.lane.b32.xlu1 %v2724_v27, %s2572_s22  ;;  %v531_v30 = vmul.f32 %v523_v28, %v2724_v27  ;;  %v527_v35 = vsel %vm526_vm3, %v523_v28, %v525_v29  ;;  %v489_v44 = vmul.f32 %v481_v23, %v2724_v27 }
  0x8d   : > { %v532_v39 = vmul.f32 %v527_v35, %v2721_v25  ;;  %v442_v18 = vmul.f32 %v2724_v27, %v435_v12 }
  0x8f   : > { %v468_v31 = vld [vmem:[#allocation2 + $0x10] sm:$0xff]  ;;  %v585_v32 = vpop.permute.xlu0 %584  ;;  %v629_v49 = vpop.permute.xlu1 %628 }
  0x90   : > { %537 = vrot.lane.b32.xlu1 %v531_v30, %s2573_s23  ;;  %v2277_v34 = vpack.i.bf16 %v468_v31, %v2721_v25  ;;  %v533_v36 = vmul.f32 %v525_v29, %v468_v31  ;;  %v593_v37 = vmul.f32 %v585_v32, %v2724_v27  ;;  %v589_v38 = vsel %vm588_vm4, %v585_v32, %v587_v33 }
  0x91   : > { %v594_v40 = vmul.f32 %v589_v38, %v2721_v25  ;;  %v595_v41 = vmul.f32 %v587_v33, %v468_v31  ;;  %v491_v45 = vmul.f32 %v483_v26, %v468_v31  ;;  %v637_v54 = vmul.f32 %v629_v49, %v468_v31 }
  0x92   : > { %2278 = vrot.lane.b32.xlu0 %v2277_v34, %s2572_s22  ;;  %v2292_v42 = vpack.i.bf16 %v533_v36, %v532_v39 }
  0x93   : > { %v2297_v47 = vpack.i.bf16 %v595_v41, %v594_v40  ;;  %v627_v48 = vpop.permute.xlu0 %626  ;;  %v2287_v50 = vpack.i.bf16 %v491_v45, %v490_v46  ;;  %v691_v56 = vpop.permute.xlu1 %690 }
  0x94   : > { %599 = vrot.lane.b32.xlu1 %v593_v37, %s3406_s26  ;;  %v631_v51 = vsel %vm630_vm6, %v627_v48, %v629_v49  ;;  %v635_v52 = vmul.f32 %v627_v48, %v2724_v27  ;;  %v698_v59 = vmul.f32 %v691_v56, %v468_v31 }
  0x95   : > { %v636_v53 = vmul.f32 %v631_v51, %v2721_v25 }
  0x96   : > { %2283 = vrot.lane.b32.xlu0 %v2277_v34, %s2571_s21 }
  0x97   : > { %v689_v55 = vpop.permute.xlu0 %688  ;;  %v2307_v57 = vpack.i.bf16 %v637_v54, %v636_v53 }
  0x98   : > { %2293 = vrot.lane.b32.xlu1 %v2292_v42, %s2573_s23  ;;  %v692_v58 = vsel %vm411_vm0, %v689_v55, %v691_v56  ;;  %v696_v61 = vmul.f32 %v689_v55, %v2724_v27 }
  0x99   : > { %v697_v60 = vmul.f32 %v692_v58, %v2721_v25 }
  0x9a   : > { %495 = vrot.lane.b32.xlu0 %v489_v44, %s2575_s27 }
  0x9c   : > { %2298 = vrot.lane.b32.xlu1 %v2297_v47, %s3406_s26 }
  0x9e   : > { %2288 = vrot.lane.b32.xlu0 %v2287_v50, %s2575_s27 }
  0xa0   : > { %2303 = vrot.lane.b32.xlu1 %v2277_v34, %s3400_s28 }
  0xa2   : > { %641 = vrot.lane.b32.xlu0 %v635_v52, %s3402_s29 }
  0xa4   : > { %661 = vrot.lane.b32.xlu1 %v2724_v27, %s3400_s28 }
  0xa6   : > { %2308 = vrot.lane.b32.xlu0 %v2307_v57, %s3402_s29 }
  0xa8   : > { %706 = vrot.lane.b32.xlu1 %v698_v59, %s3404_s12 }
  0xaa   : > { %704 = vrot.lane.b32.xlu0 %v697_v60, %s3404_s12 }
  0xac   : > { %744 = vperm.xlu1 %2312, %v738_v62  }
  0xae   : > { %702 = vrot.lane.b32.xlu0 %v696_v61, %s3404_s12 }
  0xb0   : > { %754 = vperm.xlu1 %2312, %v740_v3  }
  0xb2   : > { %749 = vperm.xlu0 %2313, %v739_v0  }
  0xb4   : > { %759 = vperm.xlu1 %2312, %v741_v6  }
  0xfe   : > { %v453_v7 = vpop.permute.xlu1 %452  ;;  %v558_v9 = vpop.permute.xlu0 %557 }
 0x102   : > { %v538_v10 = vpop.permute.xlu1 %537 }
 0x104   : > { %v2279_v13 = vpop.permute.xlu0 %2278 }
 0x105   : > { %v2281_v14 = vunpack.i.h.bf16 %v2279_v13  ;;  %v2280_v15 = vunpack.i.l.bf16 %v2279_v13 }
 0x106   : > { %v600_v16 = vpop.permute.xlu1 %599 }
 0x107   : > { %v460_v19 = vsel %vm458_vm7, %v2280_v15, %v2281_v14  ;;  %v459_v20 = vsel %vm458_vm7, %v453_v7, %v2280_v15 }
 0x108   : > { %v2284_v21 = vpop.permute.xlu0 %2283  ;;  %v2159_v22 = vpack.c.bf16 %v460_v19, %v443_v17  ;;  %v2161_v23 = vpack.c.bf16 %v459_v20, %v442_v18 }
 0x109   : > { %v2286_v27 = vunpack.i.h.bf16 %v2284_v21  ;;  %v2285_v33 = vunpack.i.l.bf16 %v2284_v21 }
 0x10a   : > { %v2294_v24 = vpop.permute.xlu1 %2293  ;;  %2160 = vmatprep.subr.bf16.mxu0 %v2159_v22 }
 0x10b   : > { %2162 = vmatpush1.bf16.msra.mxu0 %v2161_v23  ;;  %v2296_v28 = vunpack.i.h.bf16 %v2294_v24  ;;  %v2295_v29 = vunpack.i.l.bf16 %v2294_v24  ;;  %v565_v45 = vsel %vm563_vm11, %v2285_v33, %v2286_v27  ;;  %v564_v52 = vsel %vm563_vm11, %v558_v9, %v2285_v33  ;;  %v735_v9 = vld [vmem:[%s3392_s5 + $0x8] sm:$0xff] }
 0x10c   : > { %v496_v26 = vpop.permute.xlu0 %495 }
 0x10d   : > { %v545_v37 = vsel %vm543_vm8, %v2295_v29, %v2296_v28  ;;  %v544_v40 = vsel %vm543_vm8, %v538_v10, %v2295_v29  ;;  %v736_v10 = vld [vmem:[%s3392_s5 + $0x10] sm:$0xff] }
 0x10e   : > { %v2299_v30 = vpop.permute.xlu1 %2298 }
 0x10f   : > { %v2301_v31 = vunpack.i.h.bf16 %v2299_v30  ;;  %v2300_v32 = vunpack.i.l.bf16 %v2299_v30 }
 0x110   : > { %v2289_v25 = vpop.permute.xlu0 %2288 }
 0x111   : > { %v2291_v34 = vunpack.i.h.bf16 %v2289_v25  ;;  %v2290_v35 = vunpack.i.l.bf16 %v2289_v25  ;;  %v607_v41 = vsel %vm605_vm10, %v2300_v32, %v2301_v31  ;;  %v606_v47 = vsel %vm605_vm10, %v600_v16, %v2300_v32 }
 0x112   : > { %v2304_v36 = vpop.permute.xlu1 %2303  ;;  %v2167_v46 = vpack.c.bf16 %v607_v41, %v565_v45  ;;  %v2169_v55 = vpack.c.bf16 %v606_v47, %v564_v52  ;;  %v2149_v52 = vld [vmem:[%s3390_s3 + $0x2] ss:$4 sm:$0x3] }
 0x113   : > { %v503_v38 = vsel %vm501_vm9, %v2290_v35, %v2291_v34  ;;  %v502_v39 = vsel %vm501_vm9, %v496_v26, %v2290_v35  ;;  %v2306_v48 = vunpack.i.h.bf16 %v2304_v36  ;;  %v2305_v49 = vunpack.i.l.bf16 %v2304_v36 }
 0x114   : > { %v642_v42 = vpop.permute.xlu0 %641  ;;  %v2163_v43 = vpack.c.bf16 %v545_v37, %v503_v38  ;;  %v2165_v44 = vpack.c.bf16 %v544_v40, %v502_v39  ;;  %v2147_v38 = vld [vmem:[%s3390_s3 + $0x2] ss:$4 sm:$0x3] }
 0x115   : > { %v669_v58 = vsel %vm667_vm12, %v2305_v49, %v2306_v48  ;;  %v1062_v41 = vrot.slane %v2147_v38, %v2675_v4 }
 0x116   : > { %2164 = vmatprep.subr.bf16.mxu0 %v2163_v43  ;;  %v662_v50 = vpop.permute.xlu1 %661  ;;  %v1160_v43 = vld [vmem:[%s3390_s3] ss:$4 sm:$0x3] }
 0x117   : > { %2166 = vmatpush1.bf16.msra.mxu0 %v2165_v44  ;;  %v668_v56 = vsel %vm667_vm12, %v662_v50, %v2305_v49  ;;  %v1165_v44 = vrot.slane %v1160_v43, %v2675_v4  ;;  %v1169_v45 = vrot.slane %v1160_v43, %v2678_v5  ;;  %v1439_v49 = vld [vmem:[%s3390_s3] ss:$4 sm:$0x3] }
 0x118   : > { %v2309_v51 = vpop.permute.xlu0 %2308  ;;  %2168 = vmatprep.subr.bf16.mxu0 %v2167_v46  ;;  %v2148_v46 = vld [vmem:[%s3390_s3 + $0x2] ss:$4 sm:$0x3]  ;;  %v1444_v50 = vrot.slane %v1439_v49, %v2675_v4 }
 0x119   : > { %v2311_v53 = vunpack.i.h.bf16 %v2309_v51  ;;  %v2310_v54 = vunpack.i.l.bf16 %v2309_v51  ;;  %v1341_v47 = vrot.slane %v2148_v46, %v2675_v4  ;;  %v1345_v48 = vrot.slane %v2148_v46, %v2678_v5 }
 0x11a   : > { %v707_v0 = vpop.permute.xlu1 %706  ;;  %v1448_v51 = vrot.slane %v1439_v49, %v2678_v5 }
 0x11b   : > { %2170 = vmatpush1.bf16.msra.mxu0 %v2169_v55  ;;  %v649_v57 = vsel %vm647_vm13, %v2310_v54, %v2311_v53  ;;  %v648_v59 = vsel %vm647_vm13, %v642_v42, %v2310_v54  ;;  %v1066_v42 = vrot.slane %v2147_v38, %v2678_v5  ;;  %v1620_v53 = vrot.slane %v2149_v52, %v2675_v4 }
 0x11c   : > { %v705_v60 = vpop.permute.xlu0 %704  ;;  %v2171_v61 = vpack.c.bf16 %v669_v58, %v649_v57  ;;  %v2173_v62 = vpack.c.bf16 %v668_v56, %v648_v59  ;;  %v1624_v54 = vrot.slane %v2149_v52, %v2678_v5  ;;  %v944_v56 = vld [vmem:[%s3390_s3] ss:$4 sm:$0x3] }
 0x11d   : > { %v710_v3 = vsel %vm708_vm14, %v705_v60, %v707_v0  ;;  %v953_v59 = vrot.slane %v944_v56, %v2678_v5 }
 0x11e   : > { %2172 = vmatprep.subr.bf16.mxu0 %v2171_v61 }
 0x11f   : > { %2174 = vmatpush1.bf16.msra.mxu0 %v2173_v62 }
 0x120   : > { %v703_v6 = vpop.permute.xlu0 %702  ;;  %791 = vmatprep.subr.mxu0 %v710_v3 }
 0x121   : > { %v709_v7 = vsel %vm708_vm14, %v703_v6, %v705_v60 }
 0x123   : > { %792 = vmatpush1.msra.mxu0 %v709_v7 }
 0x124   : > { %2143 = vmatmul.mubr.msk.f32.vlgmr.msra.gmra.mrb[0].mxu0 %vm762_vm15, %v734_v8 }
 0x125   : > { %845 = vmatprep.mubr.f32.mxu0 %v2564_v1 }
 0x128   : > { %2144 = vmatmul.mubr.msk.f32.gmra.mrb[2].mxu0 %vm762_vm15, %v735_v9  ;;  %v949_v9 = vrot.slane %v944_v56, %v2675_v4 }
 0x129   : > { %851 = vmatprep.mubr.f32.mxu0 %v2564_v1 }
 0x12b   : > { %v745_v12 = vpop.permute.xlu1 %744 }
 0x12c   : > { %2145 = vmatmul.mubr.msk.f32.gmra.mrb[4].mxu0 %vm762_vm15, %v736_v10 }
 0x12d   : > { %857 = vmatprep.mubr.f32.mxu0 %v2564_v1 }
 0x12f   : > { %v755_v23 = vpop.permute.xlu1 %754 }
 0x130   : > { %2146 = vmatmul.mubr.msk.f32.gmra.mrb[6].mxu0 %vm762_vm15, %v737_v11 }
 0x131   : > { %1925 = vmatprep.mubr.f32.mxu0 %v2564_v1  ;;  %v750_v17 = vpop.permute.xlu0 %749 }
 0x133   : > { %v760_v27 = vpop.permute.xlu1 %759 }
 0x1f7   : > { %v841_v13 = vpop.f32.mrb[0].mxu0 }
 0x1f8   : > { %v842_v14 = vadd.f32 %v841_v13, %v745_v12  ;;  %v843_v15 = vpop.f32.mrb[1].mxu0 }
 0x1f9   : > { %v844_v16 = vadd.f32 %v843_v15, %v745_v12 }
 0x1fa   : > { %v864_v18 = vmax.f32 %v842_v14, 0.0 }
 0x1fb   : > { %v865_v19 = vmax.f32 %v844_v16, 0.0  ;;  %v847_v20 = vpop.f32.mrb[2].mxu0 }
 0x1fc   : > { %v848_v21 = vadd.f32 %v847_v20, %v750_v17  ;;  %v849_v22 = vpop.f32.mrb[3].mxu0  ;;  %892 = vrot.lane.b32.xlu0 %v864_v18, %s2565_s24 }
 0x1fd   : > { %v850_v24 = vadd.f32 %v849_v22, %v750_v17  ;;  %894 = vrot.lane.b32.xlu1 %v865_v19, %s2565_s24 }
 0x1fe   : > { %v866_v26 = vmax.f32 %v848_v21, 0.0 }
 0x1ff   : > { %v867_v28 = vmax.f32 %v850_v24, 0.0  ;;  %v853_v29 = vpop.f32.mrb[4].mxu0 }
 0x200   : > { %v854_v30 = vadd.f32 %v853_v29, %v755_v23  ;;  %v855_v31 = vpop.f32.mrb[5].mxu0  ;;  %896 = vrot.lane.b32.xlu0 %v866_v26, %s2565_s24 }
 0x201   : > { %v856_v32 = vadd.f32 %v855_v31, %v755_v23  ;;  %898 = vrot.lane.b32.xlu1 %v867_v28, %s2565_s24 }
 0x202   : > { %v868_v25 = vmax.f32 %v854_v30, 0.0 }
 0x203   : > { %v869_v33 = vmax.f32 %v856_v32, 0.0  ;;  %v859_v34 = vpop.f32.mrb[6].mxu0 }
 0x204   : > { %v860_v35 = vadd.f32 %v859_v34, %v760_v27  ;;  %v861_v36 = vpop.f32.mrb[7].mxu0  ;;  %900 = vrot.lane.b32.xlu0 %v868_v25, %s2565_s24 }
 0x205   : > { %v862_v37 = vadd.f32 %v861_v36, %v760_v27  ;;  %902 = vrot.lane.b32.xlu1 %v869_v33, %s2565_s24 }
 0x206   : > { %v870_v39 = vmax.f32 %v860_v35, 0.0 }
 0x207   : > { %v871_v40 = vmax.f32 %v862_v37, 0.0 }
 0x208   : > { %904 = vrot.lane.b32.xlu0 %v870_v39, %s2565_s24 }
 0x209   : > { %906 = vrot.lane.b32.xlu1 %v871_v40, %s2565_s24 }
 0x20c   : > { %1067 = vrot.lane.b32.xlu0 %v1062_v41, %s2566_s25 }
 0x20d   : > { %1069 = vrot.lane.b32.xlu1 %v1066_v42, %s2566_s25 }
 0x210   : > { %1170 = vrot.lane.b32.xlu0 %v1165_v44, %s2567_s30 }
 0x211   : > { %1172 = vrot.lane.b32.xlu1 %v1169_v45, %s2567_s30  ;;  %s2156_s30 = sshll.u32 %s3414_s17, 3 }
 0x214   : > { %1346 = vrot.lane.b32.xlu0 %v1341_v47, %s2568_s14 }
 0x215   : > { %1348 = vrot.lane.b32.xlu1 %v1345_v48, %s2568_s14 }
 0x218   : > { %1449 = vrot.lane.b32.xlu0 %v1444_v50, %s2569_s18 }
 0x219   : > { %1451 = vrot.lane.b32.xlu1 %v1448_v51, %s2569_s18  ;;  %s3408_s18 = smov 110  }
 0x21c   : > { %1625 = vrot.lane.b32.xlu0 %v1620_v53, %s2570_s19 }
 0x21d   : > { %1627 = vrot.lane.b32.xlu1 %v1624_v54, %s2570_s19  ;;  %s3409_s19 = smov 96  }
 0x26e   : > { %v893_v55 = vpop.permute.xlu0 %892 }
 0x26f   : > { %924 = vst.msk [vmem:[#allocation4] sm:$0xff] %vm424_vm1, %v893_v55  ;;  %v895_v57 = vpop.permute.xlu1 %894 }
 0x270   : > { %v2863_v58 = vsel %vm419_vm2, %v893_v55, %v895_v57  ;;  %926 = vst.msk [vmem:[#allocation4 + $0x10] sm:$0xff] %vm419_vm2, %v895_v57 }
 0x271   : > { %v957_v0 = vmul.f32 %v953_v59, %v2863_v58 }
 0x272   : > { %v897_v60 = vpop.permute.xlu0 %896 }
 0x273   : > { %927 = vst.msk [vmem:[#allocation4 + $0x18] sm:$0xff] %vm424_vm1, %v897_v60  ;;  %v899_v61 = vpop.permute.xlu1 %898 }
 0x274   : > { %v2869_v62 = vsel %vm419_vm2, %v897_v60, %v899_v61  ;;  %929 = vst.msk [vmem:[#allocation4 + $0x28] sm:$0xff] %vm419_vm2, %v899_v61 }
 0x275   : > { %v959_v3 = vmul.f32 %v953_v59, %v2869_v62 }
 0x276   : > { %v901_v6 = vpop.permute.xlu0 %900  ;;  %v2886_v12 = vld [vmem:[#allocation4] sm:$0xff] }
 0x277   : > { %930 = vst.msk [vmem:[#allocation4 + $0x30] sm:$0xff] %vm424_vm1, %v901_v6  ;;  %v903_v7 = vpop.permute.xlu1 %902  ;;  %v2875_v8 = vld [vmem:[#allocation4 + $0x10] sm:$0xff]  ;;  %v2175_v5 = vpack.c.bf16 %v959_v3, %v957_v0  ;;  %v956_v16 = vmul.f32 %v949_v9, %v2886_v12 }
 0x278   : > { %v2879_v10 = vsel %vm419_vm2, %v901_v6, %v903_v7  ;;  %932 = vst.msk [vmem:[#allocation4 + $0x40] sm:$0xff] %vm419_vm2, %v903_v7  ;;  %v2884_v11 = vpack.i.bf16 %v2875_v8, %v2863_v58 }
 0x279   : > { %2176 = vmatprep.subr.bf16.mxu1 %v2175_v5  ;;  %v961_v21 = vmul.f32 %v953_v59, %v2879_v10 }
 0x27a   : > { %v905_v13 = vpop.permute.xlu0 %904  ;;  %2315 = vrot.lane.b32.xlu0 %v2884_v11, %s2572_s22  ;;  %v2890_v14 = vld [vmem:[#allocation4 + $0x18] sm:$0xff] }
 0x27b   : > { %933 = vst.msk [vmem:[#allocation4 + $0x48] sm:$0xff] %vm424_vm1, %v905_v13  ;;  %v907_v4 = vpop.permute.xlu1 %906  ;;  %v2893_v15 = vld [vmem:[#allocation4 + $0x28] sm:$0xff]  ;;  %v958_v17 = vmul.f32 %v949_v9, %v2890_v14  ;;  %v2922_v29 = vpack.i.bf16 %v2890_v14, %v2886_v12  ;;  %vm1980_vm1 = vcmask 31744  }
 0x27c   : > { %v2898_v18 = vsel %vm419_vm2, %v905_v13, %v907_v4  ;;  %935 = vst.msk [vmem:[#allocation4 + $0x58] sm:$0xff] %vm419_vm2, %v907_v4  ;;  %v2903_v19 = vpack.i.bf16 %v2893_v15, %v2869_v62 }
 0x27d   : > { %v2177_v20 = vpack.c.bf16 %v958_v17, %v956_v16  ;;  %v963_v22 = vmul.f32 %v953_v59, %v2898_v18 }
 0x27e   : > { %v2907_v23 = vpop.permute.xlu0 %1067  ;;  %2320 = vrot.lane.b32.xlu0 %v2884_v11, %s2571_s21  ;;  %2350 = vrot.lane.b32.xlu1 %v2903_v19, %s2572_s22  ;;  %v2928_v32 = vld [vmem:[#allocation4 + $0x30] sm:$0xff] }
 0x27f   : > { %v2913_v24 = vpop.permute.xlu1 %1069  ;;  %2178 = vmatpush1.bf16.msra.mxu1 %v2177_v20  ;;  %v2179_v26 = vpack.c.bf16 %v963_v22, %v961_v21  ;;  %v960_v38 = vmul.f32 %v949_v9, %v2928_v32  ;;  %v2984_v59 = vld [vmem:[#allocation4 + $0x40] sm:$0xff]  ;;  %v1075_v6 = vmul.f32 %v2907_v23, %v2886_v12  ;;  %v1078_v7 = vmul.f32 %v2907_v23, %v2890_v14 }
 0x280   : > { %v2918_v28 = vsel %vm484_vm5, %v2907_v23, %v2913_v24  ;;  %v1080_v30 = vmul.f32 %v2913_v24, %v2893_v15  ;;  %v1077_v31 = vmul.f32 %v2913_v24, %v2875_v8  ;;  %v2993_v0 = vpack.i.bf16 %v2984_v59, %v2879_v10 }
 0x281   : > { %v1079_v25 = vmul.f32 %v2918_v28, %v2869_v62  ;;  %v1076_v27 = vmul.f32 %v2918_v28, %v2863_v58  ;;  %2180 = vmatprep.subr.bf16.mxu1 %v2179_v26  ;;  %v2354_v4 = vpack.i.bf16 %v1078_v7, %v1075_v6  ;;  %v1082_v16 = vmul.f32 %v2918_v28, %v2879_v10 }
 0x282   : > { %v2934_v33 = vpop.permute.xlu0 %1170  ;;  %2325 = vrot.lane.b32.xlu0 %v2922_v29, %s2572_s22  ;;  %2365 = vrot.lane.b32.xlu1 %v2903_v19, %s2571_s21  ;;  %v2940_v34 = vld [vmem:[#allocation4 + $0x48] sm:$0xff]  ;;  %v1083_v26 = vmul.f32 %v2913_v24, %v2984_v59 }
 0x283   : > { %v2942_v35 = vpop.permute.xlu1 %1172  ;;  %v2374_v36 = vpack.i.bf16 %v1080_v30, %v1079_v25  ;;  %v2329_v37 = vpack.i.bf16 %v1077_v31, %v1076_v27  ;;  %v962_v39 = vmul.f32 %v949_v9, %v2940_v34  ;;  %v1178_v9 = vmul.f32 %v2934_v33, %v2886_v12 }
 0x284   : > { %v2949_v40 = vsel %vm526_vm3, %v2934_v33, %v2942_v35  ;;  %v1183_v41 = vmul.f32 %v2942_v35, %v2893_v15  ;;  %v1180_v42 = vmul.f32 %v2942_v35, %v2875_v8  ;;  %v1181_v13 = vmul.f32 %v2934_v33, %v2890_v14 }
 0x285   : > { %v2181_v43 = vpack.c.bf16 %v962_v39, %v960_v38  ;;  %v1182_v44 = vmul.f32 %v2949_v40, %v2869_v62  ;;  %v1179_v45 = vmul.f32 %v2949_v40, %v2863_v58  ;;  %v3037_v31 = vpack.i.bf16 %v2940_v34, %v2928_v32 }
 0x286   : > { %v2959_v46 = vpop.permute.xlu0 %1346  ;;  %2375 = vrot.lane.b32.xlu1 %v2374_v36, %s2575_s27  ;;  %2330 = vrot.lane.b32.xlu0 %v2329_v37, %s2575_s27  ;;  %v2359_v36 = vpack.i.bf16 %v1181_v13, %v1178_v9 }
 0x287   : > { %v2963_v47 = vpop.permute.xlu1 %1348  ;;  %2182 = vmatpush1.bf16.msra.mxu1 %v2181_v43  ;;  %v2379_v48 = vpack.i.bf16 %v1183_v41, %v1182_v44  ;;  %v2334_v49 = vpack.i.bf16 %v1180_v42, %v1179_v45  ;;  %v1354_v37 = vmul.f32 %v2959_v46, %v2886_v12  ;;  %v1357_v41 = vmul.f32 %v2959_v46, %v2890_v14 }
 0x288   : > { %v2968_v50 = vsel %vm588_vm4, %v2959_v46, %v2963_v47  ;;  %v1359_v51 = vmul.f32 %v2963_v47, %v2893_v15  ;;  %v1356_v57 = vmul.f32 %v2963_v47, %v2875_v8  ;;  %v1362_v7 = vmul.f32 %v2963_v47, %v2984_v59 }
 0x289   : > { %v1358_v52 = vmul.f32 %v2968_v50, %v2869_v62  ;;  %v1355_v56 = vmul.f32 %v2968_v50, %v2863_v58  ;;  %v1361_v6 = vmul.f32 %v2968_v50, %v2879_v10 }
 0x28a   : > { %v2974_v53 = vpop.permute.xlu0 %1449  ;;  %2380 = vrot.lane.b32.xlu1 %v2379_v48, %s2573_s23  ;;  %2335 = vrot.lane.b32.xlu0 %v2334_v49, %s2573_s23 }
 0x28b   : > { %v2978_v54 = vpop.permute.xlu1 %1451  ;;  %v2384_v55 = vpack.i.bf16 %v1359_v51, %v1358_v52  ;;  %v2344_v3 = vpack.i.bf16 %v1356_v57, %v1355_v56  ;;  %v2404_v51 = vpack.i.bf16 %v1083_v26, %v1082_v16  ;;  %v2369_v52 = vpack.i.bf16 %v1357_v41, %v1354_v37  ;;  %v3078_v57 = vld [vmem:[#allocation4 + $0x58] sm:$0xff] }
 0x28c   : > { %v1186_v56 = vmul.f32 %v2942_v35, %v2984_v59  ;;  %v1086_v9 = vmul.f32 %v2913_v24, %v3078_v57  ;;  %v1453_v13 = vsel %vm630_vm6, %v2974_v53, %v2978_v54  ;;  %v1084_v16 = vmul.f32 %v2907_v23, %v2940_v34 }
 0x28d   : > { %v2419_v26 = vpack.i.bf16 %v1362_v7, %v1361_v6  ;;  %v1458_v24 = vmul.f32 %v1453_v13, %v2863_v58  ;;  %v1459_v37 = vmul.f32 %v2978_v54, %v2875_v8  ;;  %v1081_v41 = vmul.f32 %v2907_v23, %v2928_v32 }
 0x28e   : > { %v1626_v60 = vpop.permute.xlu0 %1625  ;;  %2340 = vrot.lane.b32.xlu0 %v2922_v29, %s2571_s21  ;;  %2385 = vrot.lane.b32.xlu1 %v2384_v55, %s3408_s18  ;;  %v1185_v55 = vmul.f32 %v2949_v40, %v2879_v10  ;;  %v1360_v23 = vmul.f32 %v2959_v46, %v2928_v32  ;;  %v1457_v6 = vmul.f32 %v2974_v53, %v2886_v12 }
 0x28f   : > { %v2989_v61 = vpop.permute.xlu1 %1627  ;;  %v3021_v21 = vmul.f32 %v1626_v60, %v2928_v32  ;;  %v3024_v22 = vmul.f32 %v1626_v60, %v2940_v34  ;;  %v3048_v38 = vmul.f32 %v1626_v60, %v2886_v12  ;;  %v3051_v39 = vmul.f32 %v1626_v60, %v2890_v14 }
 0x290   : > { %v3001_v5 = vsel %vm411_vm0, %v1626_v60, %v2989_v61  ;;  %v3018_v20 = vmul.f32 %v2989_v61, %v2893_v15  ;;  %v3043_v27 = vmul.f32 %v2989_v61, %v2875_v8  ;;  %v3063_v44 = vmul.f32 %v2989_v61, %v2984_v59 }
 0x291   : > { %v3014_v17 = vmul.f32 %v3001_v5, %v2869_v62  ;;  %v3030_v30 = vmul.f32 %v3001_v5, %v2863_v58  ;;  %v3059_v43 = vmul.f32 %v3001_v5, %v2879_v10  ;;  %v2514_v45 = vpack.i.bf16 %v3051_v39, %v3048_v38 }
 0x292   : > { %2390 = vrot.lane.b32.xlu1 %v2993_v0, %s2572_s22  ;;  %2345 = vrot.lane.b32.xlu0 %v2344_v3, %s3408_s18  ;;  %v2549_v48 = vpack.i.bf16 %v3024_v22, %v3021_v21  ;;  %v2409_v60 = vpack.i.bf16 %v1186_v56, %v1185_v55  ;;  %v3084_v3 = vpack.i.bf16 %v3078_v57, %v2898_v18  ;;  %vm1984_vm0 = vcmask 1043456  }
 0x293   : > { %v2509_v25 = vpack.i.bf16 %v3018_v20, %v3014_v17  ;;  %v2499_v42 = vpack.i.bf16 %v3043_v27, %v3030_v30  ;;  %v2539_v49 = vpack.i.bf16 %v3063_v44, %v3059_v43  ;;  %v2454_v55 = vpack.i.bf16 %v1459_v37, %v1458_v24 }
 0x294   : > { %v1188_v58 = vmul.f32 %v2949_v40, %v2898_v18  ;;  %v1189_v8 = vmul.f32 %v2942_v35, %v3078_v57  ;;  %v1460_v40 = vmul.f32 %v2974_v53, %v2890_v14  ;;  %v1464_v12 = vmul.f32 %v1453_v13, %v2879_v10 }
 0x295   : > { %v1465_v14 = vmul.f32 %v2978_v54, %v2984_v59  ;;  %v1365_v10 = vmul.f32 %v2963_v47, %v3078_v57  ;;  %v1644_v47 = vmul.f32 %v2989_v61, %v3078_v57  ;;  %v2580_v61 = vmov 1  }
 0x296   : > { %2395 = vrot.lane.b32.xlu1 %v2993_v0, %s2571_s21  ;;  %2355 = vrot.lane.b32.xlu0 %v2354_v4, %s2575_s27  ;;  %v1085_v4 = vmul.f32 %v2918_v28, %v2898_v18  ;;  %v1184_v28 = vmul.f32 %v2934_v33, %v2928_v32  ;;  %v2469_v7 = vpack.i.bf16 %v1460_v40, %v1457_v6 }
 0x29a   : > { %2400 = vrot.lane.b32.xlu1 %v3037_v31, %s2572_s22  ;;  %2360 = vrot.lane.b32.xlu0 %v2359_v36, %s2573_s23  ;;  %v2449_v36 = vpack.i.bf16 %v1086_v9, %v1085_v4  ;;  %v1461_v9 = vmul.f32 %v1453_v13, %v2869_v62  ;;  %v1462_v4 = vmul.f32 %v2978_v54, %v2893_v15 }
 0x29b   : > { %v1463_v62 = vmul.f32 %v2974_v53, %v2928_v32  ;;  %v1466_v15 = vmul.f32 %v2974_v53, %v2940_v34  ;;  %v1467_v32 = vmul.f32 %v1453_v13, %v2898_v18 }
 0x29d   : > { %v2479_v59 = vpack.i.bf16 %v1466_v15, %v1463_v62 }
 0x29e   : > { %2405 = vrot.lane.b32.xlu1 %v2404_v51, %s2575_s27  ;;  %2370 = vrot.lane.b32.xlu0 %v2369_v52, %s3408_s18  ;;  %v1187_v51 = vmul.f32 %v2934_v33, %v2940_v34  ;;  %v2429_v52 = vpack.i.bf16 %v1084_v16, %v1081_v41  ;;  %v1363_v33 = vmul.f32 %v2959_v46, %v2940_v34 }
 0x29f   : > { %v2459_v46 = vpack.i.bf16 %v1462_v4, %v1461_v9  ;;  %v2474_v16 = vpack.i.bf16 %v1465_v14, %v1464_v12  ;;  %v1468_v34 = vmul.f32 %v2978_v54, %v3078_v57  ;;  %v1933_v54 = vld [vmem:[%s3389_s2] sm:$0xf] }
 0x2a0   : > { %v2434_v56 = vpack.i.bf16 %v1187_v51, %v1184_v28  ;;  %v2444_v35 = vpack.i.bf16 %v1363_v33, %v1360_v23 }
 0x2a2   : > { %2410 = vrot.lane.b32.xlu1 %v2409_v60, %s2573_s23  ;;  %2425 = vrot.lane.b32.xlu0 %v3084_v3, %s2572_s22  ;;  %v2464_v60 = vpack.i.bf16 %v1189_v8, %v1188_v58  ;;  %s3411_s22 = smov 94  }
 0x2a6   : > { %2415 = vrot.lane.b32.xlu1 %v3037_v31, %s2571_s21  ;;  %2440 = vrot.lane.b32.xlu0 %v3084_v3, %s2571_s21  ;;  %s3410_s21 = smov 95  }
 0x2aa   : > { %2420 = vrot.lane.b32.xlu1 %v2419_v26, %s3408_s18  ;;  %2450 = vrot.lane.b32.xlu0 %v2449_v36, %s2575_s27  ;;  %v1364_v26 = vmul.f32 %v2968_v50, %v2898_v18  ;;  %v1779_v50 = vld [vmem:[%s3394_s7 + $0x8] sm:$0xff] }
 0x2ab   : > { %1854 = vmatprep.mubr.f32.mxu1 %v1779_v50 }
 0x2ae   : > { %2430 = vrot.lane.b32.xlu1 %v2429_v52, %s2575_s27  ;;  %2455 = vrot.lane.b32.xlu0 %v2454_v55, %s3409_s19 }
 0x2b2   : > { %2435 = vrot.lane.b32.xlu1 %v2434_v56, %s2573_s23  ;;  %2465 = vrot.lane.b32.xlu0 %v2464_v60, %s2573_s23  ;;  %s3412_s23 = sshll.u32 %s3414_s17, 4 }
 0x2b3   : > { %s406_s26 = scalar_lea.vmem %s3398_s11, %s3412_s23 }
 0x2b6   : > { %2445 = vrot.lane.b32.xlu1 %v2444_v35, %s3408_s18  ;;  %2470 = vrot.lane.b32.xlu0 %v2469_v7, %s3409_s19 }
 0x2ba   : > { %2460 = vrot.lane.b32.xlu1 %v2459_v46, %s3409_s19  ;;  %2485 = vrot.lane.b32.xlu0 %v2884_v11, %s3410_s21  ;;  %v2504_v11 = vpack.i.bf16 %v1365_v10, %v1364_v26 }
 0x2be   : > { %2475 = vrot.lane.b32.xlu1 %v2474_v16, %s3409_s19  ;;  %2495 = vrot.lane.b32.xlu0 %v2922_v29, %s3410_s21  ;;  %v2519_v29 = vpack.i.bf16 %v1468_v34, %v1467_v32 }
 0x2c2   : > { %2480 = vrot.lane.b32.xlu1 %v2479_v59, %s3409_s19  ;;  %2505 = vrot.lane.b32.xlu0 %v2504_v11, %s3408_s18 }
 0x2c6   : > { %2490 = vrot.lane.b32.xlu1 %v2903_v19, %s3410_s21  ;;  %2510 = vrot.lane.b32.xlu0 %v2509_v25, %s3411_s22  ;;  %v1643_v19 = vmul.f32 %v3001_v5, %v2898_v18  ;;  %v1781_v18 = vld [vmem:[%s3395_s8] sm:$0xff] }
 0x2c8   : > { %v2544_v53 = vpack.i.bf16 %v1644_v47, %v1643_v19 }
 0x2ca   : > { %2520 = vrot.lane.b32.xlu0 %v2519_v29, %s3409_s19  ;;  %2500 = vrot.lane.b32.xlu1 %v2499_v42, %s3411_s22  ;;  %s396_s19 = scalar_lea.vmem %s3387_s0, %s2156_s30 }
 0x2ce   : > { %2525 = vrot.lane.b32.xlu0 %v2993_v0, %s3410_s21  ;;  %2515 = vrot.lane.b32.xlu1 %v2514_v45, %s3411_s22  ;;  %v1972_v0 = vld [vmem:[%s3397_s10] sm:$0xff] }
 0x2d2   : > { %2535 = vrot.lane.b32.xlu0 %v3037_v31, %s3410_s21  ;;  %2530 = vrot.lane.b32.xlu1 %v3084_v3, %s3410_s21 }
 0x2d6   : > { %2545 = vrot.lane.b32.xlu0 %v2544_v53, %s3411_s22  ;;  %2540 = vrot.lane.b32.xlu1 %v2539_v49, %s3411_s22 }
 0x2da   : > { %1784 = vperm.xlu0 %2313, %v1781_v18   ;;  %2550 = vrot.lane.b32.xlu1 %v2549_v48, %s3411_s22 }
 0x2de   : > { %1936 = vperm.xlu1 %2312, %v1933_v54   ;;  %2554 = vset.pattern.permute.xlu0 %v2580_v61 }
 0x2df   : > { %1948 = vperm.xlu0 %2554, %v1933_v54  }
 0x2e2   : > { %1975 = vperm.xlu1 %2312, %v1972_v0  }
 0x2e3   : > { %2555 = vset.pattern.permute.xlu0 %v2579_v63 }
 0x2ec   : > { %v2316_v5 = vpop.permute.xlu0 %2315 }
 0x2ed   : > { %v2318_v17 = vunpack.i.h.bf16 %v2316_v5  ;;  %v2317_v20 = vunpack.i.l.bf16 %v2316_v5 }
 0x2ef   : > { %v1021_v25 = vsel %vm458_vm7, %v2317_v20, %v2318_v17 }
 0x2f0   : > { %v2351_v21 = vpop.permute.xlu1 %2350  ;;  %v3207_v22 = vpop.permute.xlu0 %2320 }
 0x2f1   : > { %v2353_v30 = vunpack.i.h.bf16 %v2351_v21  ;;  %v2352_v31 = vunpack.i.l.bf16 %v2351_v21 }
 0x2f3   : > { %v1023_v27 = vsel %vm458_vm7, %v2352_v31, %v2353_v30 }
 0x2f4   : > { %v3211_v38 = vpop.permute.xlu1 %2365  ;;  %v2326_v39 = vpop.permute.xlu0 %2325  ;;  %v2183_v42 = vpack.c.bf16 %v1023_v27, %v1021_v25 }
 0x2f5   : > { %v2328_v43 = vunpack.i.h.bf16 %v2326_v39  ;;  %v2327_v44 = vunpack.i.l.bf16 %v2326_v39 }
 0x2f6   : > { %2184 = vmatprep.subr.bf16.mxu1 %v2183_v42 }
 0x2f7   : > { %v1020_v63 = vsel %vm458_vm7, %v2327_v44, %v2317_v20  ;;  %v1022_v45 = vsel %vm458_vm7, %v2328_v43, %v2352_v31 }
 0x2f8   : > { %v2376_v48 = vpop.permute.xlu1 %2375  ;;  %v2331_v49 = vpop.permute.xlu0 %2330  ;;  %v2185_v57 = vpack.c.bf16 %v1022_v45, %v1020_v63 }
 0x2f9   : > { %v2378_v56 = vunpack.i.h.bf16 %v2376_v48  ;;  %v2377_v23 = vunpack.i.l.bf16 %v2376_v48  ;;  %v2333_v60 = vunpack.i.h.bf16 %v2331_v49  ;;  %v2332_v33 = vunpack.i.l.bf16 %v2331_v49 }
 0x2fa   : > { %2186 = vmatpush1.bf16.msra.mxu1 %v2185_v57 }
 0x2fb   : > { %v1124_v16 = vsel %vm501_vm9, %v2332_v33, %v2333_v60  ;;  %v1126_v15 = vsel %vm501_vm9, %v2377_v23, %v2378_v56 }
 0x2fc   : > { %v3215_v3 = vpop.permute.xlu1 %2380  ;;  %v3217_v13 = vpop.permute.xlu0 %2335  ;;  %v2191_v47 = vpack.c.bf16 %v1126_v15, %v1124_v16 }
 0x2fd   : > { %v2383_v61 = vunpack.i.h.bf16 %v3215_v3  ;;  %v2382_v0 = vunpack.i.l.bf16 %v3215_v3  ;;  %v2338_v5 = vunpack.i.h.bf16 %v3217_v13  ;;  %v2337_v21 = vunpack.i.l.bf16 %v3217_v13 }
 0x2fe   : > { %v2368_v13 = vunpack.i.h.bf16 %v3211_v38 }
 0x2ff   : > { %v1227_v57 = vsel %vm543_vm8, %v2337_v21, %v2338_v5  ;;  %v1229_v3 = vsel %vm543_vm8, %v2382_v0, %v2383_v61 }
 0x300   : > { %v3219_v36 = vpop.permute.xlu1 %2385  ;;  %v3221_v24 = vpop.permute.xlu0 %2340 }
 0x301   : > { %v2343_v16 = vunpack.i.h.bf16 %v3221_v24 }
 0x304   : > { %v2391_v37 = vpop.permute.xlu1 %2390  ;;  %v3223_v41 = vpop.permute.xlu0 %2345 }
 0x305   : > { %v2393_v6 = vunpack.i.h.bf16 %v2391_v37  ;;  %v2392_v40 = vunpack.i.l.bf16 %v2391_v37  ;;  %v2367_v37 = vunpack.i.l.bf16 %v3211_v38 }
 0x307   : > { %v1025_v26 = vsel %vm458_vm7, %v2392_v40, %v2393_v6 }
 0x308   : > { %v3225_v28 = vpop.permute.xlu1 %2395  ;;  %v2356_v51 = vpop.permute.xlu0 %2355 }
 0x309   : > { %v2358_v14 = vunpack.i.h.bf16 %v2356_v51  ;;  %v2357_v62 = vunpack.i.l.bf16 %v2356_v51 }
 0x30b   : > { %v1123_v50 = vsel %vm501_vm9, %v2357_v62, %v2332_v33  ;;  %v1125_v53 = vsel %vm501_vm9, %v2358_v14, %v2377_v23  ;;  %v2199_v33 = vpack.c.bf16 %v1229_v3, %v1227_v57 }
 0x30c   : > { %v2401_v52 = vpop.permute.xlu1 %2400  ;;  %v3227_v55 = vpop.permute.xlu0 %2360  ;;  %v2193_v25 = vpack.c.bf16 %v1125_v53, %v1123_v50 }
 0x30d   : > { %v2402_v35 = vunpack.i.l.bf16 %v2401_v52  ;;  %v2403_v4 = vunpack.i.h.bf16 %v2401_v52  ;;  %v2363_v42 = vunpack.i.h.bf16 %v3227_v55  ;;  %v2362_v43 = vunpack.i.l.bf16 %v3227_v55 }
 0x30f   : > { %v1024_v59 = vsel %vm458_vm7, %v2402_v35, %v2392_v40  ;;  %v1226_v6 = vsel %vm543_vm8, %v2362_v43, %v2337_v21  ;;  %v1228_v40 = vsel %vm543_vm8, %v2363_v42, %v2382_v0  ;;  %v2347_v21 = vunpack.i.l.bf16 %v3223_v41 }
 0x310   : > { %v2406_v58 = vpop.permute.xlu1 %2405  ;;  %v3229_v8 = vpop.permute.xlu0 %2370 }
 0x311   : > { %v2408_v18 = vunpack.i.h.bf16 %v2406_v58  ;;  %v2407_v54 = vunpack.i.l.bf16 %v2406_v58  ;;  %v2372_v42 = vunpack.i.l.bf16 %v3229_v8 }
 0x313   : > { %v1128_v27 = vsel %vm501_vm9, %v2407_v54, %v2408_v18  ;;  %v2398_v18 = vunpack.i.h.bf16 %v3225_v28 }
 0x314   : > { %v3231_v7 = vpop.permute.xlu1 %2410  ;;  %v2426_v9 = vpop.permute.xlu0 %2425 }
 0x315   : > { %v2428_v46 = vunpack.i.h.bf16 %v2426_v9  ;;  %v2427_v12 = vunpack.i.l.bf16 %v2426_v9  ;;  %v2413_v51 = vunpack.i.h.bf16 %v3231_v7  ;;  %v2412_v52 = vunpack.i.l.bf16 %v3231_v7 }
 0x316   : > { %v2322_v7 = vunpack.i.l.bf16 %v3207_v22 }
 0x317   : > { %v1027_v10 = vsel %vm458_vm7, %v2427_v12, %v2428_v46  ;;  %v1026_v11 = vsel %vm458_vm7, %v2403_v4, %v2427_v12  ;;  %v2323_v46 = vunpack.i.h.bf16 %v3207_v22  ;;  %v2342_v12 = vunpack.i.l.bf16 %v3221_v24 }
 0x318   : > { %v3239_v32 = vpop.permute.xlu1 %2415  ;;  %v3241_v34 = vpop.permute.xlu0 %2440  ;;  %v2187_v29 = vpack.c.bf16 %v1027_v10, %v1025_v26  ;;  %v2189_v19 = vpack.c.bf16 %v1026_v11, %v1024_v59  ;;  %v1231_v14 = vsel %vm543_vm8, %v2412_v52, %v2413_v51  ;;  %v2201_v10 = vpack.c.bf16 %v1228_v40, %v1226_v6 }
 0x319   : > { %v1302_v11 = vsel %vm563_vm11, %v2367_v37, %v2368_v13  ;;  %v1300_v50 = vsel %vm563_vm11, %v2322_v7, %v2323_v46  ;;  %v1299_v53 = vsel %vm563_vm11, %v2342_v12, %v2322_v7 }
 0x31a   : > { %2188 = vmatprep.subr.bf16.mxu1 %v2187_v29  ;;  %v2207_v24 = vpack.c.bf16 %v1302_v11, %v1300_v50 }
 0x31b   : > { %2190 = vmatpush1.bf16.msra.mxu1 %v2189_v19  ;;  %v2443_v19 = vunpack.i.h.bf16 %v3241_v34 }
 0x31c   : > { %v3248_v17 = vpop.permute.xlu1 %2420  ;;  %v2451_v20 = vpop.permute.xlu0 %2450  ;;  %2192 = vmatprep.subr.bf16.mxu1 %v2191_v47  ;;  %v2442_v47 = vunpack.i.l.bf16 %v3241_v34  ;;  %v2348_v34 = vunpack.i.h.bf16 %v3223_v41 }
 0x31d   : > { %v2453_v30 = vunpack.i.h.bf16 %v2451_v20  ;;  %v2452_v31 = vunpack.i.l.bf16 %v2451_v20  ;;  %v1301_v20 = vsel %vm563_vm11, %v2343_v16, %v2367_v37  ;;  %v2422_v3 = vunpack.i.l.bf16 %v3248_v17 }
 0x31e   : > { %v2209_v41 = vpack.c.bf16 %v1301_v20, %v1299_v53  ;;  %v1403_v57 = vsel %vm605_vm10, %v2347_v21, %v2348_v34 }
 0x31f   : > { %2194 = vmatpush1.bf16.msra.mxu1 %v2193_v25  ;;  %v1130_v39 = vsel %vm501_vm9, %v2452_v31, %v2453_v30  ;;  %v2418_v30 = vunpack.i.h.bf16 %v3239_v32  ;;  %v1306_v25 = vsel %vm563_vm11, %v2442_v47, %v2443_v19 }
 0x320   : > { %v2431_v44 = vpop.permute.xlu1 %2430  ;;  %v3255_v63 = vpop.permute.xlu0 %2455  ;;  %v2195_v45 = vpack.c.bf16 %v1130_v39, %v1128_v27  ;;  %v2387_v27 = vunpack.i.l.bf16 %v3219_v36  ;;  %v2373_v39 = vunpack.i.h.bf16 %v3229_v8 }
 0x321   : > { %v2433_v48 = vunpack.i.h.bf16 %v2431_v44  ;;  %v2432_v49 = vunpack.i.l.bf16 %v2431_v44  ;;  %v2457_v6 = vunpack.i.l.bf16 %v3255_v63 }
 0x322   : > { %2196 = vmatprep.subr.bf16.mxu1 %v2195_v45 }
 0x323   : > { %v1127_v55 = vsel %vm501_vm9, %v2432_v49, %v2407_v54  ;;  %v1129_v58 = vsel %vm501_vm9, %v2433_v48, %v2452_v31  ;;  %v2397_v54 = vunpack.i.l.bf16 %v3225_v28  ;;  %v2417_v31 = vunpack.i.l.bf16 %v3239_v32 }
 0x324   : > { %v2436_v56 = vpop.permute.xlu1 %2435  ;;  %v2466_v23 = vpop.permute.xlu0 %2465  ;;  %v2197_v60 = vpack.c.bf16 %v1129_v58, %v1127_v55  ;;  %v2388_v28 = vunpack.i.h.bf16 %v3219_v36  ;;  %v1305_v49 = vsel %vm563_vm11, %v2418_v30, %v2442_v47  ;;  %v2423_v36 = vunpack.i.h.bf16 %v3248_v17 }
 0x325   : > { %v2438_v35 = vunpack.i.h.bf16 %v2436_v56  ;;  %v2437_v9 = vunpack.i.l.bf16 %v2436_v56  ;;  %v2468_v38 = vunpack.i.h.bf16 %v2466_v23  ;;  %v2467_v4 = vunpack.i.l.bf16 %v2466_v23 }
 0x326   : > { %2198 = vmatpush1.bf16.msra.mxu1 %v2197_v60  ;;  %v1304_v45 = vsel %vm563_vm11, %v2397_v54, %v2398_v18  ;;  %v1303_v48 = vsel %vm563_vm11, %v2417_v31, %v2397_v54  ;;  %v1405_v8 = vsel %vm605_vm10, %v2387_v27, %v2388_v28  ;;  %v1402_v55 = vsel %vm605_vm10, %v2372_v42, %v2347_v21 }
 0x327   : > { %2200 = vmatprep.subr.bf16.mxu1 %v2199_v33  ;;  %v1233_v62 = vsel %vm543_vm8, %v2467_v4, %v2468_v38  ;;  %v1230_v22 = vsel %vm543_vm8, %v2437_v9, %v2412_v52  ;;  %v1232_v29 = vsel %vm543_vm8, %v2438_v35, %v2467_v4  ;;  %v2211_v32 = vpack.c.bf16 %v1306_v25, %v1304_v45 }
 0x328   : > { %v3273_v15 = vpop.permute.xlu1 %2445  ;;  %v3275_v26 = vpop.permute.xlu0 %2470  ;;  %v2203_v59 = vpack.c.bf16 %v1233_v62, %v1231_v14  ;;  %v2205_v5 = vpack.c.bf16 %v1232_v29, %v1230_v22  ;;  %v2213_v51 = vpack.c.bf16 %v1305_v49, %v1303_v48  ;;  %v2215_v52 = vpack.c.bf16 %v1405_v8, %v1403_v57 }
 0x329   : > { %v1404_v58 = vsel %vm605_vm10, %v2373_v39, %v2387_v27  ;;  %v2458_v17 = vunpack.i.h.bf16 %v3255_v63  ;;  %v2447_v40 = vunpack.i.l.bf16 %v3273_v15  ;;  %v2448_v35 = vunpack.i.h.bf16 %v3273_v15 }
 0x32a   : > { %2202 = vmatpush1.bf16.msra.mxu1 %v2201_v10  ;;  %v2472_v9 = vunpack.i.l.bf16 %v3275_v26  ;;  %v1407_v38 = vsel %vm605_vm10, %v2422_v3, %v2423_v36  ;;  %v2217_v12 = vpack.c.bf16 %v1404_v58, %v1402_v55  ;;  %v2473_v62 = vunpack.i.h.bf16 %v3275_v26 }
 0x32b   : > { %2204 = vmatprep.subr.bf16.mxu1 %v2203_v59  ;;  %v1406_v59 = vsel %vm605_vm10, %v2447_v40, %v2422_v3  ;;  %v1506_v11 = vsel %vm647_vm13, %v2457_v6, %v2458_v17 }
 0x32c   : > { %v3286_v61 = vpop.permute.xlu1 %2460  ;;  %v3288_v0 = vpop.permute.xlu0 %2485  ;;  %v1505_v19 = vsel %vm647_vm13, %v2472_v9, %v2457_v6 }
 0x32d   : > { %v2463_v56 = vunpack.i.h.bf16 %v3286_v61  ;;  %v2462_v23 = vunpack.i.l.bf16 %v3286_v61  ;;  %v2488_v21 = vunpack.i.h.bf16 %v3288_v0  ;;  %v2487_v30 = vunpack.i.l.bf16 %v3288_v0 }
 0x32e   : > { %2206 = vmatpush1.bf16.msra.mxu1 %v2205_v5 }
 0x32f   : > { %2208 = vmatprep.subr.bf16.mxu1 %v2207_v24  ;;  %v1508_v16 = vsel %vm647_vm13, %v2462_v23, %v2463_v56  ;;  %v1507_v26 = vsel %vm647_vm13, %v2473_v62, %v2462_v23 }
 0x330   : > { %v3300_v43 = vpop.permute.xlu1 %2475  ;;  %v3302_v44 = vpop.permute.xlu0 %2495  ;;  %v2223_v54 = vpack.c.bf16 %v1508_v16, %v1506_v11  ;;  %v2225_v45 = vpack.c.bf16 %v1507_v26, %v1505_v19 }
 0x331   : > { %v2478_v15 = vunpack.i.h.bf16 %v3300_v43  ;;  %v2477_v10 = vunpack.i.l.bf16 %v3300_v43  ;;  %v2498_v3 = vunpack.i.h.bf16 %v3302_v44  ;;  %v2497_v8 = vunpack.i.l.bf16 %v3302_v44 }
 0x332   : > { %2210 = vmatpush1.bf16.msra.mxu1 %v2209_v41 }
 0x333   : > { %2212 = vmatprep.subr.bf16.mxu1 %v2211_v32  ;;  %v1510_v25 = vsel %vm647_vm13, %v2477_v10, %v2478_v15 }
 0x334   : > { %v3311_v13 = vpop.permute.xlu1 %2480  ;;  %v2506_v37 = vpop.permute.xlu0 %2505 }
 0x335   : > { %v2508_v60 = vunpack.i.h.bf16 %v2506_v37  ;;  %v2507_v33 = vunpack.i.l.bf16 %v2506_v37  ;;  %v2482_v31 = vunpack.i.l.bf16 %v3311_v13  ;;  %v2483_v28 = vunpack.i.h.bf16 %v3311_v13 }
 0x336   : > { %2214 = vmatpush1.bf16.msra.mxu1 %v2213_v51  ;;  %v1579_v37 = vsel %vm667_vm12, %v2487_v30, %v2488_v21 }
 0x337   : > { %2216 = vmatprep.subr.bf16.mxu1 %v2215_v52  ;;  %v1409_v4 = vsel %vm605_vm10, %v2507_v33, %v2508_v60  ;;  %v1408_v63 = vsel %vm605_vm10, %v2448_v35, %v2507_v33  ;;  %v1509_v13 = vsel %vm647_vm13, %v2482_v31, %v2477_v10 }
 0x338   : > { %v3324_v46 = vpop.permute.xlu1 %2490  ;;  %v2511_v7 = vpop.permute.xlu0 %2510  ;;  %v2219_v14 = vpack.c.bf16 %v1409_v4, %v1407_v38  ;;  %v2221_v18 = vpack.c.bf16 %v1408_v63, %v1406_v59  ;;  %v1578_v38 = vsel %vm667_vm12, %v2497_v8, %v2487_v30 }
 0x339   : > { %v2513_v22 = vunpack.i.h.bf16 %v2511_v7  ;;  %v2512_v29 = vunpack.i.l.bf16 %v2511_v7  ;;  %v2493_v47 = vunpack.i.h.bf16 %v3324_v46  ;;  %v2492_v50 = vunpack.i.l.bf16 %v3324_v46 }
 0x33a   : > { %2218 = vmatpush1.bf16.msra.mxu1 %v2217_v12 }
 0x33b   : > { %2220 = vmatprep.subr.bf16.mxu1 %v2219_v14  ;;  %v1684_v39 = vsel %vm708_vm14, %v2512_v29, %v2513_v22  ;;  %v1581_v36 = vsel %vm667_vm12, %v2492_v50, %v2493_v47  ;;  %v1580_v44 = vsel %vm667_vm12, %v2498_v3, %v2492_v50 }
 0x33c   : > { %v2501_v24 = vpop.permute.xlu1 %2500  ;;  %v2521_v53 = vpop.permute.xlu0 %2520  ;;  %v2231_v17 = vpack.c.bf16 %v1581_v36, %v1579_v37  ;;  %v2233_v14 = vpack.c.bf16 %v1580_v44, %v1578_v38 }
 0x33d   : > { %v2503_v61 = vunpack.i.h.bf16 %v2501_v24  ;;  %v2502_v5 = vunpack.i.l.bf16 %v2501_v24  ;;  %v2523_v20 = vunpack.i.h.bf16 %v2521_v53  ;;  %v2522_v34 = vunpack.i.l.bf16 %v2521_v53  ;;  %v1778_v53 = vld [vmem:[%s3394_s7] sm:$0xff] }
 0x33e   : > { %2222 = vmatpush1.bf16.msra.mxu1 %v2221_v18 }
 0x33f   : > { %2224 = vmatprep.subr.bf16.mxu1 %v2223_v54  ;;  %v1682_v27 = vsel %vm708_vm14, %v2502_v5, %v2503_v61  ;;  %v1512_v42 = vsel %vm647_vm13, %v2522_v34, %v2523_v20  ;;  %v1511_v57 = vsel %vm647_vm13, %v2483_v28, %v2522_v34  ;;  %v2581_v20 = vmov 839922192  }
 0x340   : > { %v2516_v43 = vpop.permute.xlu1 %2515  ;;  %v2526_v41 = vpop.permute.xlu0 %2525  ;;  %v2239_v32 = vpack.c.bf16 %v1684_v39, %v1682_v27  ;;  %v2227_v48 = vpack.c.bf16 %v1512_v42, %v1510_v25  ;;  %v2229_v33 = vpack.c.bf16 %v1511_v57, %v1509_v13  ;;  %v1939_v34 = vunpack.c.l.s4 %v2581_v20  ;;  %v1932_v42 = vld [vmem:[%s396_s19] sm:$0xff] }
 0x341   : > { %v2518_v0 = vunpack.i.h.bf16 %v2516_v43  ;;  %v2517_v49 = vunpack.i.l.bf16 %v2516_v43  ;;  %v2528_v55 = vunpack.i.h.bf16 %v2526_v41  ;;  %v2527_v58 = vunpack.i.l.bf16 %v2526_v41 }
 0x342   : > { %2226 = vmatpush1.bf16.msra.mxu1 %v2225_v45  ;;  %2240 = vmatprep.subr.bf16.mxu0 %v2239_v32  ;;  %v1940_v21 = vunpack.c.0.s8 %v1939_v34 }
 0x343   : > { %v1681_v51 = vsel %vm708_vm14, %v2517_v49, %v2502_v5  ;;  %v1683_v52 = vsel %vm708_vm14, %v2518_v0, %v2512_v29  ;;  %2228 = vmatprep.subr.bf16.mxu1 %v2227_v48  ;;  %v1583_v4 = vsel %vm667_vm12, %v2527_v58, %v2528_v55  ;;  %v1780_v5 = vld [vmem:[%s3394_s7 + $0x10] sm:$0xff]  ;;  %v1971_v55 = vld [vmem:[%s3396_s9] sm:$0xff] }
 0x344   : > { %v2241_v56 = vpack.c.bf16 %v1683_v52, %v1681_v51  ;;  %v2531_v23 = vpop.permute.xlu1 %2530  ;;  %v2536_v60 = vpop.permute.xlu0 %2535  ;;  %v1943_v30 = vsub.s32 %v1940_v21, %v2658_v2 }
 0x345   : > { %v2533_v6 = vunpack.i.h.bf16 %v2531_v23  ;;  %v2532_v40 = vunpack.i.l.bf16 %v2531_v23  ;;  %v2538_v35 = vunpack.i.h.bf16 %v2536_v60  ;;  %v2537_v9 = vunpack.i.l.bf16 %v2536_v60 }
 0x346   : > { %2230 = vmatpush1.bf16.msra.mxu1 %v2229_v33  ;;  %2242 = vmatpush1.bf16.msra.mxu0 %v2241_v56 }
 0x347   : > { %2232 = vmatprep.subr.bf16.mxu1 %v2231_v17  ;;  %v1585_v46 = vsel %vm667_vm12, %v2532_v40, %v2533_v6  ;;  %v1582_v63 = vsel %vm667_vm12, %v2537_v9, %v2527_v58  ;;  %v1584_v16 = vsel %vm667_vm12, %v2538_v35, %v2532_v40 }
 0x348   : > { %v2541_v7 = vpop.permute.xlu1 %2540  ;;  %v2546_v12 = vpop.permute.xlu0 %2545  ;;  %v2235_v62 = vpack.c.bf16 %v1585_v46, %v1583_v4  ;;  %v2237_v26 = vpack.c.bf16 %v1584_v16, %v1582_v63 }
 0x349   : > { %v2543_v15 = vunpack.i.h.bf16 %v2541_v7  ;;  %v2542_v10 = vunpack.i.l.bf16 %v2541_v7  ;;  %v2548_v59 = vunpack.i.h.bf16 %v2546_v12  ;;  %v2547_v11 = vunpack.i.l.bf16 %v2546_v12 }
 0x34a   : > { %2234 = vmatpush1.bf16.msra.mxu1 %v2233_v14 }
 0x34b   : > { %2236 = vmatprep.subr.bf16.mxu1 %v2235_v62  ;;  %v1686_v22 = vsel %vm708_vm14, %v2542_v10, %v2543_v15  ;;  %v1688_v29 = vsel %vm708_vm14, %v2547_v11, %v2548_v59 }
 0x34c   : > { %v2551_v19 = vpop.permute.xlu1 %2550  ;;  %v2243_v47 = vpack.c.bf16 %v1688_v29, %v1686_v22 }
 0x34d   : > { %v2553_v50 = vunpack.i.h.bf16 %v2551_v19  ;;  %v2552_v24 = vunpack.i.l.bf16 %v2551_v19 }
 0x34e   : > { %2238 = vmatpush1.bf16.msra.mxu1 %v2237_v26  ;;  %2244 = vmatprep.subr.bf16.mxu0 %v2243_v47 }
 0x34f   : > { %v1685_v18 = vsel %vm708_vm14, %v2552_v24, %v2542_v10  ;;  %v1687_v54 = vsel %vm708_vm14, %v2553_v50, %v2547_v11 }
 0x350   : > { %v2245_v61 = vpack.c.bf16 %v1687_v54, %v1685_v18 }
 0x351   : > { %1855 = vmatmul.mubr.f32.vlgmr.msra.gmra.mrb[0].mxu1 %v1778_v53 }
 0x352   : > { %2246 = vmatpush1.bf16.msra.mxu0 %v2245_v61 }
 0x355   : > { %2150 = vmatmul.mubr.msk.f32.vlgmr.msra.gmra.mrb[8].mxu0 %vm630_vm6, %v1780_v5 }
 0x356   : > { %2053 = vmatprep.mubr.f32.mxu0 %v2564_v1 }
 0x359   : > { %v1785_v31 = vpop.permute.xlu0 %1784 }
 0x35d   : > { %v1937_v25 = vpop.permute.xlu1 %1936 }
 0x35e   : > { %v1944_v39 = vrot.slane %v1937_v25, %v1943_v30  ;;  %v1949_v43 = vpop.permute.xlu0 %1948 }
 0x35f   : > { %v1956_v49 = vrot.slane %v1949_v43, %v1943_v30 }
 0x360   : > { %v1946_v0 = vsub.f32 %v1932_v42, %v1944_v39 }
 0x361   : > { %v1976_v58 = vpop.permute.xlu1 %1975 }
 0x362   : > { %v1958_v8 = vmul.f32 %v1956_v49, %v1946_v0 }
 0x424   : > { %v1856_v28 = vpop.f32.mrb[0].mxu1 }
 0x425   : > { %v1858_v27 = vpop.f32.mrb[1].mxu1  ;;  %v1857_v41 = vadd.f32 %v1856_v28, %v1785_v31 }
 0x426   : > { %v1859_v45 = vadd.f32 %v1858_v27, %v1785_v31 }
 0x428   : > { %v1927_v1 = vpop.f32.mrb[8].mxu0 }
 0x429   : > { %v1928_v32 = vadd.f32 %v1927_v1, %v1857_v41  ;;  %v1929_v48 = vpop.f32.mrb[9].mxu0 }
 0x42a   : > { %v1930_v57 = vadd.f32 %v1929_v48, %v1859_v45 }
 0x42b   : > { %v1959_v2 = vadd.f32 1.0, %v1928_v32 }
 0x42c   : > { %v1960_v36 = vadd.f32 1.0, %v1930_v57  ;;  %v1968_v3 = vcombine.high %v1928_v32, %v1930_v57 }
 0x42e   : > { %v1963_v13 = vcombine.low %v1959_v2, %v1960_v36 }
 0x430   : > { %v1965_v37 = vmul.f32 %v1963_v13, %v1958_v8 }
 0x432   : > { %v1970_v51 = vadd.f32 %v1968_v3, %v1965_v37 }
 0x434   : > { %v1979_v52 = vcombine.high %v1970_v51, %v1970_v51 }
 0x436   : > { %2151 = vmatprep.subr.msk.mxu0 %vm1984_vm0, %v1979_v52 }
 0x437   : > { %2152 = vmatpush1.msk.msra.mxu0 %vm1984_vm0, %v1970_v51 }
 0x438   : > { %2153 = vmatmul.mubr.msk.f32.vlgmr.msra.gmra.mrb[10].mxu0 %vm1980_vm1, %v1971_v55 }
 0x50b   : > { %v2055_v56 = vpop.f32.mrb[10].mxu0 }
 0x50c   : > { %v2056_v23 = vadd.f32 %v2055_v56, %v1976_v58  ;;  %v2057_v60 = vpop.f32.mrb[11].mxu0 }
 0x50d   : > { %v2058_v33 = vadd.f32 %v2057_v60, %v1976_v58 }
 0x50e   : > { %2060 = vst [vmem:[%s406_s26] sm:$0xff] %v2056_v23 }
 0x50f   : > { %2061 = vst [vmem:[%s406_s26 + $0x8] sm:$0xff] %v2058_v33 }
 0x510 PF: > { %s21_s16 = sadd.s32 1, %s2562_s16  }
 0x511   : > { %p18_p4 = scmp.ge.s32.totalorder %s21_s16, 4  }
 0x513   :  { %20 = sbr.rel (!%p18_p4) target bundleno = 1 (0x1), region = 114 }

// kernel: spade_resnet_block.10
= control target key start
LH: loop header
LB: loop body
LE: loop exit
PB: predicated region body
PF: predicated region fallthrough
CT: control target
= control target key end

     0   :  { %s2935_s17 = smov 0   ;;  %s3767_s0 = inlined_call_operand.vmem [shape: f32[2,4,256], index: 0, kind: input, shape index: {}]   ;;  %s3768_s1 = inlined_call_operand.vmem [shape: f32[2,8,256], index: 1, kind: input, shape index: {}]   ;;  %s3769_s2 = inlined_call_operand.vmem [shape: f32[4,2], index: 2, kind: input, shape index: {}]   ;;  %s3770_s3 = inlined_call_operand.vmem [shape: f32[3,256], index: 3, kind: input, shape index: {}, may-alias: {3,4}]   ;;  %s3771_s4 = inlined_call_operand.vmem [shape: f32[3,256], index: 4, kind: input, shape index: {}, may-alias: {3,4}]   ;;  %s3772_s5 = inlined_call_operand.vmem [shape: f32[32,72], index: 5, kind: input, shape index: {}]   ;;  %s3773_s6 = inlined_call_operand.vmem [shape: f32[32,1], index: 6, kind: input, shape index: {}]   ;;  %s3774_s7 = inlined_call_operand.vmem [shape: f32[8,288], index: 7, kind: input, shape index: {}]   ;;  %s3775_s8 = inlined_call_operand.vmem [shape: f32[8,1], index: 8, kind: input, shape index: {}]   ;;  %s3776_s9 = inlined_call_operand.vmem [shape: f32[8,36], index: 9, kind: input, shape index: {}]   ;;  %s3777_s10 = inlined_call_operand.vmem [shape: f32[8,1], index: 10, kind: input, shape index: {}]   ;;  %s3778_s11 = inlined_call_operand.vmem [shape: f32[2,8,256], index: 11, kind: output, shape index: {}]  }
   0x1 LB: > { %s2410_s18 = sadd.s32 4294967295, %s2855_s17   ;;  %p2414_p0 = scmp.ge.s32.totalorder %s2855_s17, 1  ;;  %s2855_s17 = sphi %s2935_s17, %s21_s17  }
   0x2   : > { %p347_p1 = scmp.lt.s32.totalorder %s2855_s17, 3 }
   0x4   : > { %p348_p2 = pnand %p2414_p0, %p347_p1 }
   0x5   : > { %p392_p3 = scmp.lt.s32.totalorder (!%p348_p2), %s2410_s18, 1  ;;  %v432_v0 = vlaneseq (!%p348_p2)  ;;  %v2857_v1 = vmov (!%p348_p2), 0.0   ;;  %vm411_vm0 = vcmask (!%p348_p2), 277504   ;;  %v2421_v3 = vld [vmem:[%s3770_s3 + $0x2] ss:$4 sm:$0x3] (!%p348_p2) }
   0x6   : > { %351 = sbr.rel (%p348_p2) target bundleno = 1573 (0x625), region = 64  ;;  %409 = vst [vmem:[#allocation2] sm:$0xff] (!%p348_p2), %v2857_v1  ;;  %872 = vst [vmem:[#allocation4] sm:$0xff] (!%p348_p2), %v2857_v1  ;;  %839 = vmatprep.mubr.f32.mxu0 (!%p348_p2), %v2857_v1  ;;  %s2858_s25 = smov (!%p348_p2), 17   ;;  %vm424_vm1 = vcmask (!%p348_p2), 1047688   ;;  %vm419_vm2 = vcmask (!%p348_p2), 138240  }
   0x7   : > { %875 = vst [vmem:[#allocation4 + $0x18] sm:$0xff] (!%p348_p2), %v2857_v1  ;;  %878 = vst [vmem:[#allocation4 + $0x30] sm:$0xff] (!%p348_p2), %v2857_v1  ;;  %v2952_v2 = vshrl.u32 (!%p348_p2), %v432_v0, 7  ;;  %s2859_s26 = smov (!%p348_p2), 2   ;;  %s2860_s12 = smov (!%p348_p2), 16   ;;  %vm526_vm3 = vcmask (!%p348_p2), 130048  }
   0x8   : > { %881 = vst [vmem:[#allocation4 + $0x48] sm:$0xff] (!%p348_p2), %v2857_v1  ;;  %1972 = vst [vmem:[#allocation6] sm:$0xff] (!%p348_p2), %v2857_v1  ;;  %v512_v10 = vld [vmem:[%s3770_s3] ss:$4 sm:$0x3] (!%p348_p2)  ;;  %s2861_s15 = smov (!%p348_p2), 18  }
   0x9   : > { %412 = vst.msk [vmem:[#allocation2 + $0x10] sm:$0xff] (!%p348_p2), %vm411_vm0, %v2857_v1  ;;  %874 = vst.msk [vmem:[#allocation4 + $0x10] sm:$0xff] (!%p348_p2), %vm411_vm0, %v2857_v1  ;;  %v2969_v4 = vsub.s32 (!%p348_p2), 0, %v2952_v2  ;;  %v2972_v5 = vsub.s32 (!%p348_p2), 1, %v2952_v2  ;;  %s2862_s20 = smov (!%p348_p2), 32   ;;  %s2863_s22 = smov (!%p348_p2), 34  }
   0xa   : > { %877 = vst.msk [vmem:[#allocation4 + $0x28] sm:$0xff] (!%p348_p2), %vm411_vm0, %v2857_v1  ;;  %880 = vst.msk [vmem:[#allocation4 + $0x40] sm:$0xff] (!%p348_p2), %vm411_vm0, %v2857_v1  ;;  %v2422_v13 = vld [vmem:[%s3770_s3 + $0x2] ss:$4 sm:$0x3] (!%p348_p2)  ;;  %s3792_s23 = smov (!%p348_p2), 111  }
   0xb   : > { %883 = vst.msk [vmem:[#allocation4 + $0x58] sm:$0xff] (!%p348_p2), %vm411_vm0, %v2857_v1  ;;  %v475_v7 = vrot.slane (!%p348_p2), %v2421_v3, %v2969_v4  ;;  %v479_v8 = vrot.slane (!%p348_p2), %v2421_v3, %v2972_v5  ;;  %v517_v11 = vrot.slane (!%p348_p2), %v512_v10, %v2969_v4  ;;  %v521_v12 = vrot.slane (!%p348_p2), %v512_v10, %v2972_v5  ;;  %v616_v16 = vld [vmem:[%s3770_s3] ss:$4 sm:$0x3] (!%p348_p2)  ;;  %s3788_s27 = smov (!%p348_p2), 112   ;;  %s3784_s28 = smov (!%p348_p2), 110  }
   0xc   : > { %v579_v14 = vrot.slane (!%p348_p2), %v2422_v13, %v2969_v4  ;;  %v583_v15 = vrot.slane (!%p348_p2), %v2422_v13, %v2972_v5  ;;  %v621_v17 = vrot.slane (!%p348_p2), %v616_v16, %v2969_v4  ;;  %v625_v18 = vrot.slane (!%p348_p2), %v616_v16, %v2972_v5  ;;  %v2423_v19 = vld [vmem:[%s3770_s3 + $0x2] ss:$4 sm:$0x3] (!%p348_p2)  ;;  %s3790_s29 = smov (!%p348_p2), 126   ;;  %s3780_s30 = smov (!%p348_p2), 95   ;;  %v739_v0 = vld [vmem:[%s3773_s6 + $0x8] sm:$0xff] (!%p348_p2) }
   0xd   : > { %s3810_s18 = smov (!%p392_p3, %s2410_s18), 1  ;;  %480 = vrot.lane.b32.xlu1 %v475_v7, %s2859_s26  ;;  %v683_v20 = vrot.slane %v2423_v19, %v2969_v4  ;;  %v687_v21 = vrot.slane %v2423_v19, %v2972_v5  ;;  %vm588_vm4 = vcmask 146432   ;;  %vm484_vm5 = vcmask 15360   ;;  %s3782_s13 = smov 96   ;;  %v738_v62 = vld [vmem:[%s3773_s6] sm:$0xff]  ;;  %v740_v3 = vld [vmem:[%s3773_s6 + $0x10] sm:$0xff] }
   0xe   : > { %s3779_s21 = sshll.u32 %s3810_s18, 4  ;;  %vm630_vm6 = vcmask 261120   ;;  %s3786_s14 = smov 94   ;;  %v2872_v63 = vmov 0   ;;  %vm458_vm7 = vcmask 1039360   ;;  %vm543_vm8 = vcmask 916480  }
   0xf   : > { %s401_s24 = scalar_lea.vmem %s3768_s1, %s3779_s21  ;;  %2604 = vset.pattern.permute.xlu1 %v2872_v63  ;;  %2605 = vset.pattern.permute.xlu0 %v2872_v63  ;;  %vm501_vm9 = vcmask 1031168   ;;  %vm605_vm10 = vcmask 900096   ;;  %vm563_vm11 = vcmask 908288   ;;  %vm3797_vm12 = vcmask 777216   ;;  %s3800_s16 = smov 96  }
  0x10   : > { %v407_v6 = vld [vmem:[%s401_s24] sm:$0xff]  ;;  %v408_v9 = vld [vmem:[%s401_s24 + $0x8] sm:$0xff]  ;;  %s3794_s24 = smov 127   ;;  %vm647_vm13 = vcmask 785408   ;;  %vm3796_vm14 = vcmask 769024   ;;  %vm762_vm15 = vcmask 588800  }
  0x11   : > { %415 = vrot.lane.b32.xlu0 %v407_v6, %s2858_s25  ;;  %482 = vrot.lane.b32.xlu1 %v479_v8, %s2859_s26  ;;  %v741_v6 = vld [vmem:[%s3773_s6 + $0x18] sm:$0xff]  ;;  %v430_v8 = vld [vmem:[%s3770_s3] ss:$4 sm:$0x3]  ;;  %s3801_s19 = smov 95   ;;  %s3802_s21 = smov 94  }
  0x15   : > { %417 = vrot.lane.b32.xlu0 %v408_v9, %s2858_s25  ;;  %524 = vrot.lane.b32.xlu1 %v521_v12, %s2860_s12  ;;  %v435_v12 = vrot.slane %v430_v8, %v2969_v4 }
  0x19   : > { %522 = vrot.lane.b32.xlu0 %v517_v11, %s2860_s12  ;;  %586 = vrot.lane.b32.xlu1 %v583_v15, %s2861_s15  ;;  %v439_v11 = vrot.slane %v430_v8, %v2972_v5  ;;  %v734_v8 = vld [vmem:[%s3772_s5] sm:$0xff] }
  0x1d   : > { %584 = vrot.lane.b32.xlu0 %v579_v14, %s2861_s15  ;;  %628 = vrot.lane.b32.xlu1 %v625_v18, %s2862_s20 }
  0x21   : > { %626 = vrot.lane.b32.xlu0 %v621_v17, %s2862_s20  ;;  %690 = vrot.lane.b32.xlu1 %v687_v21, %s2863_s22 }
  0x25   : > { %688 = vrot.lane.b32.xlu0 %v683_v20, %s2863_s22 }
  0x7f   : > { %v481_v23 = vpop.permute.xlu1 %480 }
  0x83   : > { %v416_v22 = vpop.permute.xlu0 %415  ;;  %v483_v26 = vpop.permute.xlu1 %482 }
  0x84   : > { %425 = vst.msk [vmem:[#allocation2] sm:$0xff] %vm424_vm1, %v416_v22  ;;  %v485_v43 = vsel %vm484_vm5, %v481_v23, %v483_v26 }
  0x87   : > { %v418_v24 = vpop.permute.xlu0 %417  ;;  %v525_v29 = vpop.permute.xlu1 %524 }
  0x88   : > { %v3015_v25 = vsel %vm419_vm2, %v416_v22, %v418_v24  ;;  %427 = vst.msk [vmem:[#allocation2 + $0x10] sm:$0xff] %vm419_vm2, %v418_v24 }
  0x89   : > { %v490_v46 = vmul.f32 %v485_v43, %v3015_v25  ;;  %v443_v17 = vmul.f32 %v439_v11, %v3015_v25  ;;  %v737_v11 = vld [vmem:[%s3772_s5 + $0x18] sm:$0xff] }
  0x8b   : > { %v3018_v27 = vld [vmem:[#allocation2] sm:$0xff]  ;;  %v523_v28 = vpop.permute.xlu0 %522  ;;  %v587_v33 = vpop.permute.xlu1 %586 }
  0x8c   : > { %557 = vrot.lane.b32.xlu0 %v3018_v27, %s3792_s23  ;;  %452 = vrot.lane.b32.xlu1 %v3018_v27, %s3794_s24  ;;  %v531_v30 = vmul.f32 %v523_v28, %v3018_v27  ;;  %v527_v35 = vsel %vm526_vm3, %v523_v28, %v525_v29  ;;  %v489_v44 = vmul.f32 %v481_v23, %v3018_v27 }
  0x8d   : > { %v532_v39 = vmul.f32 %v527_v35, %v3015_v25  ;;  %v442_v18 = vmul.f32 %v3018_v27, %v435_v12 }
  0x8f   : > { %v468_v31 = vld [vmem:[#allocation2 + $0x10] sm:$0xff]  ;;  %v585_v32 = vpop.permute.xlu0 %584  ;;  %v629_v48 = vpop.permute.xlu1 %628 }
  0x90   : > { %537 = vrot.lane.b32.xlu1 %v531_v30, %s3788_s27  ;;  %v2569_v34 = vpack.i.bf16 %v468_v31, %v3015_v25  ;;  %v533_v36 = vmul.f32 %v525_v29, %v468_v31  ;;  %v593_v37 = vmul.f32 %v585_v32, %v3018_v27  ;;  %v589_v38 = vsel %vm588_vm4, %v585_v32, %v587_v33 }
  0x91   : > { %v594_v40 = vmul.f32 %v589_v38, %v3015_v25  ;;  %v595_v41 = vmul.f32 %v587_v33, %v468_v31  ;;  %v491_v45 = vmul.f32 %v483_v26, %v468_v31  ;;  %v637_v54 = vmul.f32 %v629_v48, %v468_v31 }
  0x92   : > { %2570 = vrot.lane.b32.xlu0 %v2569_v34, %s3794_s24  ;;  %v2584_v42 = vpack.i.bf16 %v533_v36, %v532_v39 }
  0x93   : > { %v627_v47 = vpop.permute.xlu0 %626  ;;  %v2589_v49 = vpack.i.bf16 %v595_v41, %v594_v40  ;;  %v2579_v50 = vpack.i.bf16 %v491_v45, %v490_v46  ;;  %v691_v56 = vpop.permute.xlu1 %690 }
  0x94   : > { %599 = vrot.lane.b32.xlu1 %v593_v37, %s3784_s28  ;;  %v631_v51 = vsel %vm630_vm6, %v627_v47, %v629_v48  ;;  %v635_v52 = vmul.f32 %v627_v47, %v3018_v27  ;;  %v698_v59 = vmul.f32 %v691_v56, %v468_v31 }
  0x95   : > { %v636_v53 = vmul.f32 %v631_v51, %v3015_v25 }
  0x96   : > { %2575 = vrot.lane.b32.xlu0 %v2569_v34, %s3792_s23 }
  0x97   : > { %v689_v55 = vpop.permute.xlu0 %688  ;;  %v2599_v57 = vpack.i.bf16 %v637_v54, %v636_v53 }
  0x98   : > { %2585 = vrot.lane.b32.xlu1 %v2584_v42, %s3788_s27  ;;  %v692_v58 = vsel %vm411_vm0, %v689_v55, %v691_v56  ;;  %v696_v61 = vmul.f32 %v689_v55, %v3018_v27  ;;  %s3808_s27 = sshll.u32 %s3810_s18, 4 }
  0x99   : > { %v697_v60 = vmul.f32 %v692_v58, %v3015_v25 }
  0x9a   : > { %495 = vrot.lane.b32.xlu0 %v489_v44, %s3790_s29 }
  0x9c   : > { %2590 = vrot.lane.b32.xlu1 %v2589_v49, %s3784_s28  ;;  %s406_s28 = scalar_lea.vmem %s3778_s11, %s3808_s27 }
  0x9e   : > { %2580 = vrot.lane.b32.xlu0 %v2579_v50, %s3790_s29 }
  0xa0   : > { %2595 = vrot.lane.b32.xlu1 %v2569_v34, %s3780_s30 }
  0xa2   : > { %641 = vrot.lane.b32.xlu0 %v635_v52, %s3782_s13 }
  0xa4   : > { %661 = vrot.lane.b32.xlu1 %v3018_v27, %s3780_s30 }
  0xa6   : > { %2600 = vrot.lane.b32.xlu0 %v2599_v57, %s3782_s13  ;;  %s3798_s13 = smov 112  }
  0xa8   : > { %706 = vrot.lane.b32.xlu1 %v698_v59, %s3786_s14 }
  0xaa   : > { %704 = vrot.lane.b32.xlu0 %v697_v60, %s3786_s14 }
  0xac   : > { %744 = vperm.xlu1 %2604, %v738_v62  }
  0xae   : > { %702 = vrot.lane.b32.xlu0 %v696_v61, %s3786_s14  ;;  %s3799_s14 = smov 110  }
  0xb0   : > { %754 = vperm.xlu1 %2604, %v740_v3  }
  0xb2   : > { %749 = vperm.xlu0 %2605, %v739_v0  }
  0xb4   : > { %759 = vperm.xlu1 %2604, %v741_v6  }
  0xfe   : > { %v453_v7 = vpop.permute.xlu1 %452  ;;  %v558_v9 = vpop.permute.xlu0 %557 }
 0x102   : > { %v538_v10 = vpop.permute.xlu1 %537 }
 0x104   : > { %v2571_v13 = vpop.permute.xlu0 %2570 }
 0x105   : > { %v2573_v14 = vunpack.i.h.bf16 %v2571_v13  ;;  %v2572_v15 = vunpack.i.l.bf16 %v2571_v13 }
 0x106   : > { %v600_v16 = vpop.permute.xlu1 %599 }
 0x107   : > { %v460_v19 = vsel %vm458_vm7, %v2572_v15, %v2573_v14  ;;  %v459_v20 = vsel %vm458_vm7, %v453_v7, %v2572_v15 }
 0x108   : > { %v2576_v21 = vpop.permute.xlu0 %2575  ;;  %v2443_v22 = vpack.c.bf16 %v460_v19, %v443_v17  ;;  %v2445_v23 = vpack.c.bf16 %v459_v20, %v442_v18 }
 0x109   : > { %v2578_v27 = vunpack.i.h.bf16 %v2576_v21  ;;  %v2577_v33 = vunpack.i.l.bf16 %v2576_v21 }
 0x10a   : > { %v2586_v24 = vpop.permute.xlu1 %2585  ;;  %2444 = vmatprep.subr.bf16.mxu0 %v2443_v22 }
 0x10b   : > { %2446 = vmatpush1.bf16.msra.mxu0 %v2445_v23  ;;  %v2588_v28 = vunpack.i.h.bf16 %v2586_v24  ;;  %v2587_v29 = vunpack.i.l.bf16 %v2586_v24  ;;  %v565_v45 = vsel %vm563_vm11, %v2577_v33, %v2578_v27  ;;  %v564_v52 = vsel %vm563_vm11, %v558_v9, %v2577_v33  ;;  %v735_v9 = vld [vmem:[%s3772_s5 + $0x8] sm:$0xff] }
 0x10c   : > { %v496_v26 = vpop.permute.xlu0 %495 }
 0x10d   : > { %v545_v37 = vsel %vm543_vm8, %v2587_v29, %v2588_v28  ;;  %v544_v40 = vsel %vm543_vm8, %v538_v10, %v2587_v29  ;;  %v736_v10 = vld [vmem:[%s3772_s5 + $0x10] sm:$0xff] }
 0x10e   : > { %v2591_v30 = vpop.permute.xlu1 %2590 }
 0x10f   : > { %v2593_v31 = vunpack.i.h.bf16 %v2591_v30  ;;  %v2592_v32 = vunpack.i.l.bf16 %v2591_v30 }
 0x110   : > { %v2581_v25 = vpop.permute.xlu0 %2580 }
 0x111   : > { %v2583_v34 = vunpack.i.h.bf16 %v2581_v25  ;;  %v2582_v35 = vunpack.i.l.bf16 %v2581_v25  ;;  %v607_v41 = vsel %vm605_vm10, %v2592_v32, %v2593_v31  ;;  %v606_v47 = vsel %vm605_vm10, %v600_v16, %v2592_v32 }
 0x112   : > { %v2596_v36 = vpop.permute.xlu1 %2595  ;;  %v2451_v46 = vpack.c.bf16 %v607_v41, %v565_v45  ;;  %v2453_v55 = vpack.c.bf16 %v606_v47, %v564_v52  ;;  %v2429_v45 = vld [vmem:[%s3770_s3 + $0x2] ss:$4 sm:$0x3] }
 0x113   : > { %v503_v38 = vsel %vm501_vm9, %v2582_v35, %v2583_v34  ;;  %v502_v39 = vsel %vm501_vm9, %v496_v26, %v2582_v35  ;;  %v2598_v48 = vunpack.i.h.bf16 %v2596_v36  ;;  %v2597_v49 = vunpack.i.l.bf16 %v2596_v36 }
 0x114   : > { %v642_v42 = vpop.permute.xlu0 %641  ;;  %v2447_v43 = vpack.c.bf16 %v545_v37, %v503_v38  ;;  %v2449_v44 = vpack.c.bf16 %v544_v40, %v502_v39  ;;  %v2428_v37 = vld [vmem:[%s3770_s3 + $0x2] ss:$4 sm:$0x3]  ;;  %v1345_v47 = vrot.slane %v2429_v45, %v2972_v5 }
 0x115   : > { %v669_v58 = vsel %vm3797_vm12, %v2597_v49, %v2598_v48  ;;  %v1062_v40 = vrot.slane %v2428_v37, %v2969_v4  ;;  %v1066_v41 = vrot.slane %v2428_v37, %v2972_v5  ;;  %v1439_v48 = vld [vmem:[%s3770_s3] ss:$4 sm:$0x3] }
 0x116   : > { %2448 = vmatprep.subr.bf16.mxu0 %v2447_v43  ;;  %v662_v50 = vpop.permute.xlu1 %661 }
 0x117   : > { %2450 = vmatpush1.bf16.msra.mxu0 %v2449_v44  ;;  %v668_v56 = vsel %vm3797_vm12, %v662_v50, %v2597_v49  ;;  %v1444_v49 = vrot.slane %v1439_v48, %v2969_v4  ;;  %v1448_v50 = vrot.slane %v1439_v48, %v2972_v5 }
 0x118   : > { %v2601_v51 = vpop.permute.xlu0 %2600  ;;  %2452 = vmatprep.subr.bf16.mxu0 %v2451_v46  ;;  %v1341_v46 = vrot.slane %v2429_v45, %v2969_v4 }
 0x119   : > { %v2603_v53 = vunpack.i.h.bf16 %v2601_v51  ;;  %v2602_v54 = vunpack.i.l.bf16 %v2601_v51  ;;  %v2430_v51 = vld [vmem:[%s3770_s3 + $0x2] ss:$4 sm:$0x3] }
 0x11a   : > { %v707_v0 = vpop.permute.xlu1 %706  ;;  %v1620_v52 = vrot.slane %v2430_v51, %v2969_v4 }
 0x11b   : > { %2454 = vmatpush1.bf16.msra.mxu0 %v2453_v55  ;;  %v649_v57 = vsel %vm647_vm13, %v2602_v54, %v2603_v53  ;;  %v648_v59 = vsel %vm647_vm13, %v642_v42, %v2602_v54  ;;  %v1160_v42 = vld [vmem:[%s3770_s3] ss:$4 sm:$0x3]  ;;  %v1624_v53 = vrot.slane %v2430_v51, %v2972_v5 }
 0x11c   : > { %v705_v60 = vpop.permute.xlu0 %704  ;;  %v2455_v61 = vpack.c.bf16 %v669_v58, %v649_v57  ;;  %v2457_v62 = vpack.c.bf16 %v668_v56, %v648_v59  ;;  %v1165_v43 = vrot.slane %v1160_v42, %v2969_v4  ;;  %v1169_v44 = vrot.slane %v1160_v42, %v2972_v5  ;;  %v944_v55 = vld [vmem:[%s3770_s3] ss:$4 sm:$0x3] }
 0x11d   : > { %v710_v3 = vsel %vm3796_vm14, %v705_v60, %v707_v0  ;;  %v953_v58 = vrot.slane %v944_v55, %v2972_v5 }
 0x11e   : > { %2456 = vmatprep.subr.bf16.mxu0 %v2455_v61 }
 0x11f   : > { %2458 = vmatpush1.bf16.msra.mxu0 %v2457_v62 }
 0x120   : > { %v703_v6 = vpop.permute.xlu0 %702  ;;  %791 = vmatprep.subr.mxu0 %v710_v3 }
 0x121   : > { %v709_v7 = vsel %vm3796_vm14, %v703_v6, %v705_v60 }
 0x123   : > { %792 = vmatpush1.msra.mxu0 %v709_v7 }
 0x124   : > { %2424 = vmatmul.mubr.msk.f32.vlgmr.msra.gmra.mrb[0].mxu0 %vm762_vm15, %v734_v8 }
 0x125   : > { %845 = vmatprep.mubr.f32.mxu0 %v2857_v1 }
 0x128   : > { %2425 = vmatmul.mubr.msk.f32.gmra.mrb[2].mxu0 %vm762_vm15, %v735_v9  ;;  %v949_v9 = vrot.slane %v944_v55, %v2969_v4 }
 0x129   : > { %851 = vmatprep.mubr.f32.mxu0 %v2857_v1 }
 0x12b   : > { %v745_v12 = vpop.permute.xlu1 %744 }
 0x12c   : > { %2426 = vmatmul.mubr.msk.f32.gmra.mrb[4].mxu0 %vm762_vm15, %v736_v10 }
 0x12d   : > { %857 = vmatprep.mubr.f32.mxu0 %v2857_v1 }
 0x12f   : > { %v755_v23 = vpop.permute.xlu1 %754 }
 0x130   : > { %2427 = vmatmul.mubr.msk.f32.gmra.mrb[6].mxu0 %vm762_vm15, %v737_v11  ;;  %vm1982_vm15 = vcmask 1043592  }
 0x131   : > { %1925 = vmatprep.mubr.f32.mxu0 %v2857_v1  ;;  %v750_v17 = vpop.permute.xlu0 %749 }
 0x133   : > { %v760_v25 = vpop.permute.xlu1 %759 }
 0x1f7   : > { %v841_v13 = vpop.f32.mrb[0].mxu0 }
 0x1f8   : > { %v842_v14 = vadd.f32 %v841_v13, %v745_v12  ;;  %v843_v15 = vpop.f32.mrb[1].mxu0 }
 0x1f9   : > { %v844_v16 = vadd.f32 %v843_v15, %v745_v12 }
 0x1fa   : > { %v864_v18 = vmax.f32 %v842_v14, 0.0 }
 0x1fb   : > { %v865_v19 = vmax.f32 %v844_v16, 0.0  ;;  %v847_v20 = vpop.f32.mrb[2].mxu0 }
 0x1fc   : > { %v848_v21 = vadd.f32 %v847_v20, %v750_v17  ;;  %v849_v22 = vpop.f32.mrb[3].mxu0  ;;  %892 = vrot.lane.b32.xlu0 %v864_v18, %s2858_s25 }
 0x1fd   : > { %v850_v24 = vadd.f32 %v849_v22, %v750_v17  ;;  %894 = vrot.lane.b32.xlu1 %v865_v19, %s2858_s25 }
 0x1fe   : > { %v866_v26 = vmax.f32 %v848_v21, 0.0 }
 0x1ff   : > { %v867_v28 = vmax.f32 %v850_v24, 0.0  ;;  %v853_v1 = vpop.f32.mrb[4].mxu0 }
 0x200   : > { %v854_v29 = vadd.f32 %v853_v1, %v755_v23  ;;  %v855_v30 = vpop.f32.mrb[5].mxu0  ;;  %896 = vrot.lane.b32.xlu0 %v866_v26, %s2858_s25 }
 0x201   : > { %v856_v31 = vadd.f32 %v855_v30, %v755_v23  ;;  %898 = vrot.lane.b32.xlu1 %v867_v28, %s2858_s25 }
 0x202   : > { %v868_v32 = vmax.f32 %v854_v29, 0.0 }
 0x203   : > { %v869_v27 = vmax.f32 %v856_v31, 0.0  ;;  %v859_v33 = vpop.f32.mrb[6].mxu0 }
 0x204   : > { %v860_v34 = vadd.f32 %v859_v33, %v760_v25  ;;  %v861_v35 = vpop.f32.mrb[7].mxu0  ;;  %900 = vrot.lane.b32.xlu0 %v868_v32, %s2858_s25 }
 0x205   : > { %v862_v36 = vadd.f32 %v861_v35, %v760_v25  ;;  %902 = vrot.lane.b32.xlu1 %v869_v27, %s2858_s25 }
 0x206   : > { %v870_v38 = vmax.f32 %v860_v34, 0.0 }
 0x207   : > { %v871_v39 = vmax.f32 %v862_v36, 0.0 }
 0x208   : > { %904 = vrot.lane.b32.xlu0 %v870_v38, %s2858_s25 }
 0x209   : > { %906 = vrot.lane.b32.xlu1 %v871_v39, %s2858_s25 }
 0x20c   : > { %1067 = vrot.lane.b32.xlu0 %v1062_v40, %s2859_s26 }
 0x20d   : > { %1069 = vrot.lane.b32.xlu1 %v1066_v41, %s2859_s26 }
 0x210   : > { %1170 = vrot.lane.b32.xlu0 %v1165_v43, %s2860_s12 }
 0x211   : > { %1172 = vrot.lane.b32.xlu1 %v1169_v44, %s2860_s12 }
 0x214   : > { %1346 = vrot.lane.b32.xlu0 %v1341_v46, %s2861_s15 }
 0x215   : > { %1348 = vrot.lane.b32.xlu1 %v1345_v47, %s2861_s15 }
 0x218   : > { %1449 = vrot.lane.b32.xlu0 %v1444_v49, %s2862_s20 }
 0x219   : > { %1451 = vrot.lane.b32.xlu1 %v1448_v50, %s2862_s20 }
 0x21c   : > { %1625 = vrot.lane.b32.xlu0 %v1620_v52, %s2863_s22 }
 0x21d   : > { %1627 = vrot.lane.b32.xlu1 %v1624_v53, %s2863_s22 }
 0x26e   : > { %v893_v54 = vpop.permute.xlu0 %892 }
 0x26f   : > { %924 = vst.msk [vmem:[#allocation4] sm:$0xff] %vm424_vm1, %v893_v54  ;;  %v895_v56 = vpop.permute.xlu1 %894 }
 0x270   : > { %v3157_v57 = vsel %vm419_vm2, %v893_v54, %v895_v56  ;;  %926 = vst.msk [vmem:[#allocation4 + $0x10] sm:$0xff] %vm419_vm2, %v895_v56 }
 0x271   : > { %v957_v62 = vmul.f32 %v953_v58, %v3157_v57 }
 0x272   : > { %v897_v59 = vpop.permute.xlu0 %896 }
 0x273   : > { %927 = vst.msk [vmem:[#allocation4 + $0x18] sm:$0xff] %vm424_vm1, %v897_v59  ;;  %v899_v60 = vpop.permute.xlu1 %898 }
 0x274   : > { %v3163_v61 = vsel %vm419_vm2, %v897_v59, %v899_v60  ;;  %929 = vst.msk [vmem:[#allocation4 + $0x28] sm:$0xff] %vm419_vm2, %v899_v60 }
 0x275   : > { %v959_v0 = vmul.f32 %v953_v58, %v3163_v61 }
 0x276   : > { %v901_v3 = vpop.permute.xlu0 %900  ;;  %v3180_v12 = vld [vmem:[#allocation4] sm:$0xff] }
 0x277   : > { %930 = vst.msk [vmem:[#allocation4 + $0x30] sm:$0xff] %vm424_vm1, %v901_v3  ;;  %v903_v6 = vpop.permute.xlu1 %902  ;;  %v3169_v7 = vld [vmem:[#allocation4 + $0x10] sm:$0xff]  ;;  %v2459_v8 = vpack.c.bf16 %v959_v0, %v957_v62  ;;  %v956_v17 = vmul.f32 %v949_v9, %v3180_v12 }
 0x278   : > { %v3173_v10 = vsel %vm419_vm2, %v901_v3, %v903_v6  ;;  %932 = vst.msk [vmem:[#allocation4 + $0x40] sm:$0xff] %vm419_vm2, %v903_v6  ;;  %v3178_v11 = vpack.i.bf16 %v3169_v7, %v3157_v57 }
 0x279   : > { %2460 = vmatprep.subr.bf16.mxu1 %v2459_v8  ;;  %v961_v22 = vmul.f32 %v953_v58, %v3173_v10 }
 0x27a   : > { %v905_v13 = vpop.permute.xlu0 %904  ;;  %2607 = vrot.lane.b32.xlu0 %v3178_v11, %s3794_s24  ;;  %v3184_v14 = vld [vmem:[#allocation4 + $0x18] sm:$0xff] }
 0x27b   : > { %933 = vst.msk [vmem:[#allocation4 + $0x48] sm:$0xff] %vm424_vm1, %v905_v13  ;;  %v907_v15 = vpop.permute.xlu1 %906  ;;  %v3187_v16 = vld [vmem:[#allocation4 + $0x28] sm:$0xff]  ;;  %v958_v18 = vmul.f32 %v949_v9, %v3184_v14  ;;  %v3216_v29 = vpack.i.bf16 %v3184_v14, %v3180_v12  ;;  %vm1973_vm1 = vcmask 273408  }
 0x27c   : > { %v3192_v19 = vsel %vm419_vm2, %v905_v13, %v907_v15  ;;  %935 = vst.msk [vmem:[#allocation4 + $0x58] sm:$0xff] %vm419_vm2, %v907_v15  ;;  %v3197_v20 = vpack.i.bf16 %v3187_v16, %v3163_v61 }
 0x27d   : > { %v2461_v21 = vpack.c.bf16 %v958_v18, %v956_v17  ;;  %v963_v23 = vmul.f32 %v953_v58, %v3192_v19 }
 0x27e   : > { %v3201_v24 = vpop.permute.xlu0 %1067  ;;  %2612 = vrot.lane.b32.xlu0 %v3178_v11, %s3792_s23  ;;  %2642 = vrot.lane.b32.xlu1 %v3197_v20, %s3794_s24  ;;  %v3222_v32 = vld [vmem:[#allocation4 + $0x30] sm:$0xff] }
 0x27f   : > { %v3207_v26 = vpop.permute.xlu1 %1069  ;;  %2462 = vmatpush1.bf16.msra.mxu1 %v2461_v21  ;;  %v2463_v28 = vpack.c.bf16 %v963_v23, %v961_v22  ;;  %v960_v38 = vmul.f32 %v949_v9, %v3222_v32  ;;  %v3278_v59 = vld [vmem:[#allocation4 + $0x40] sm:$0xff]  ;;  %v1075_v6 = vmul.f32 %v3201_v24, %v3180_v12  ;;  %v1078_v8 = vmul.f32 %v3201_v24, %v3184_v14 }
 0x280   : > { %v3212_v1 = vsel %vm484_vm5, %v3201_v24, %v3207_v26  ;;  %v1080_v30 = vmul.f32 %v3207_v26, %v3187_v16  ;;  %v1077_v31 = vmul.f32 %v3207_v26, %v3169_v7  ;;  %v3287_v0 = vpack.i.bf16 %v3278_v59, %v3173_v10 }
 0x281   : > { %v1079_v25 = vmul.f32 %v3212_v1, %v3163_v61  ;;  %v1076_v27 = vmul.f32 %v3212_v1, %v3157_v57  ;;  %2464 = vmatprep.subr.bf16.mxu1 %v2463_v28  ;;  %v2646_v17 = vpack.i.bf16 %v1078_v8, %v1075_v6  ;;  %v1082_v18 = vmul.f32 %v3212_v1, %v3173_v10 }
 0x282   : > { %v3228_v33 = vpop.permute.xlu0 %1170  ;;  %2617 = vrot.lane.b32.xlu0 %v3216_v29, %s3794_s24  ;;  %2657 = vrot.lane.b32.xlu1 %v3197_v20, %s3792_s23  ;;  %v3234_v34 = vld [vmem:[#allocation4 + $0x48] sm:$0xff] }
 0x283   : > { %v3236_v35 = vpop.permute.xlu1 %1172  ;;  %v2666_v36 = vpack.i.bf16 %v1080_v30, %v1079_v25  ;;  %v2621_v37 = vpack.i.bf16 %v1077_v31, %v1076_v27  ;;  %v962_v39 = vmul.f32 %v949_v9, %v3234_v34  ;;  %v1178_v13 = vmul.f32 %v3228_v33, %v3180_v12 }
 0x284   : > { %v3243_v40 = vsel %vm526_vm3, %v3228_v33, %v3236_v35  ;;  %v1183_v41 = vmul.f32 %v3236_v35, %v3187_v16  ;;  %v1180_v42 = vmul.f32 %v3236_v35, %v3169_v7  ;;  %v1181_v15 = vmul.f32 %v3228_v33, %v3184_v14 }
 0x285   : > { %v2465_v43 = vpack.c.bf16 %v962_v39, %v960_v38  ;;  %v1182_v44 = vmul.f32 %v3243_v40, %v3163_v61  ;;  %v1179_v45 = vmul.f32 %v3243_v40, %v3157_v57  ;;  %v1083_v30 = vmul.f32 %v3207_v26, %v3278_v59 }
 0x286   : > { %v3253_v46 = vpop.permute.xlu0 %1346  ;;  %2667 = vrot.lane.b32.xlu1 %v2666_v36, %s3790_s29  ;;  %2622 = vrot.lane.b32.xlu0 %v2621_v37, %s3790_s29  ;;  %v3331_v25 = vpack.i.bf16 %v3234_v34, %v3222_v32  ;;  %v2651_v37 = vpack.i.bf16 %v1181_v15, %v1178_v13 }
 0x287   : > { %v3257_v47 = vpop.permute.xlu1 %1348  ;;  %2466 = vmatpush1.bf16.msra.mxu1 %v2465_v43  ;;  %v2671_v48 = vpack.i.bf16 %v1183_v41, %v1182_v44  ;;  %v2626_v49 = vpack.i.bf16 %v1180_v42, %v1179_v45  ;;  %v1354_v38 = vmul.f32 %v3253_v46, %v3180_v12  ;;  %v1357_v42 = vmul.f32 %v3253_v46, %v3184_v14 }
 0x288   : > { %v3262_v50 = vsel %vm588_vm4, %v3253_v46, %v3257_v47  ;;  %v1359_v51 = vmul.f32 %v3257_v47, %v3187_v16  ;;  %v1356_v58 = vmul.f32 %v3257_v47, %v3169_v7  ;;  %v1362_v13 = vmul.f32 %v3257_v47, %v3278_v59 }
 0x289   : > { %v1358_v52 = vmul.f32 %v3262_v50, %v3163_v61  ;;  %v1355_v56 = vmul.f32 %v3262_v50, %v3157_v57  ;;  %v1361_v8 = vmul.f32 %v3262_v50, %v3173_v10 }
 0x28a   : > { %v3268_v53 = vpop.permute.xlu0 %1449  ;;  %2672 = vrot.lane.b32.xlu1 %v2671_v48, %s3798_s13  ;;  %2627 = vrot.lane.b32.xlu0 %v2626_v49, %s3798_s13 }
 0x28b   : > { %v3272_v54 = vpop.permute.xlu1 %1451  ;;  %v2676_v55 = vpack.i.bf16 %v1359_v51, %v1358_v52  ;;  %v2636_v3 = vpack.i.bf16 %v1356_v58, %v1355_v56  ;;  %v2696_v52 = vpack.i.bf16 %v1083_v30, %v1082_v18  ;;  %v1185_v56 = vmul.f32 %v3243_v40, %v3173_v10 }
 0x28c   : > { %v1186_v58 = vmul.f32 %v3236_v35, %v3278_v59  ;;  %v1085_v18 = vmul.f32 %v3212_v1, %v3192_v19  ;;  %v1084_v30 = vmul.f32 %v3201_v24, %v3234_v34  ;;  %v1184_v1 = vmul.f32 %v3228_v33, %v3222_v32 }
 0x28e   : > { %v1626_v60 = vpop.permute.xlu0 %1625  ;;  %2632 = vrot.lane.b32.xlu0 %v3216_v29, %s3792_s23  ;;  %2677 = vrot.lane.b32.xlu1 %v2676_v55, %s3799_s14  ;;  %v2661_v55 = vpack.i.bf16 %v1357_v42, %v1354_v38  ;;  %v1459_v42 = vmul.f32 %v3272_v54, %v3169_v7 }
 0x28f   : > { %v3283_v62 = vpop.permute.xlu1 %1627  ;;  %v3315_v23 = vmul.f32 %v1626_v60, %v3222_v32  ;;  %v3318_v28 = vmul.f32 %v1626_v60, %v3234_v34  ;;  %v3342_v39 = vmul.f32 %v1626_v60, %v3180_v12  ;;  %v3345_v41 = vmul.f32 %v1626_v60, %v3184_v14 }
 0x290   : > { %v3295_v9 = vsel %vm411_vm0, %v1626_v60, %v3283_v62  ;;  %v3312_v22 = vmul.f32 %v3283_v62, %v3187_v16  ;;  %v3337_v36 = vmul.f32 %v3283_v62, %v3169_v7  ;;  %v3357_v45 = vmul.f32 %v3283_v62, %v3278_v59  ;;  %v3372_v60 = vld [vmem:[#allocation4 + $0x58] sm:$0xff] }
 0x291   : > { %v3308_v21 = vmul.f32 %v3295_v9, %v3163_v61  ;;  %v3324_v31 = vmul.f32 %v3295_v9, %v3157_v57  ;;  %v3353_v44 = vmul.f32 %v3295_v9, %v3173_v10  ;;  %v2806_v48 = vpack.i.bf16 %v3345_v41, %v3342_v39 }
 0x292   : > { %2682 = vrot.lane.b32.xlu1 %v3287_v0, %s3794_s24  ;;  %2637 = vrot.lane.b32.xlu0 %v2636_v3, %s3799_s14  ;;  %v2841_v49 = vpack.i.bf16 %v3318_v28, %v3315_v23  ;;  %v2701_v3 = vpack.i.bf16 %v1186_v58, %v1185_v56  ;;  %v3378_v6 = vpack.i.bf16 %v3372_v60, %v3192_v19 }
 0x293   : > { %v2801_v27 = vpack.i.bf16 %v3312_v22, %v3308_v21  ;;  %v2791_v43 = vpack.i.bf16 %v3337_v36, %v3324_v31  ;;  %v2831_v51 = vpack.i.bf16 %v3357_v45, %v3353_v44  ;;  %v1086_v15 = vmul.f32 %v3207_v26, %v3372_v60 }
 0x294   : > { %v1189_v7 = vmul.f32 %v3236_v35, %v3372_v60 }
 0x295   : > { %v2741_v38 = vpack.i.bf16 %v1086_v15, %v1085_v18 }
 0x296   : > { %2687 = vrot.lane.b32.xlu1 %v3287_v0, %s3792_s23  ;;  %2647 = vrot.lane.b32.xlu0 %v2646_v17, %s3790_s29  ;;  %v1453_v17 = vsel %vm630_vm6, %v3268_v53, %v3272_v54 }
 0x297   : > { %v1458_v26 = vmul.f32 %v1453_v17, %v3157_v57  ;;  %v1188_v57 = vmul.f32 %v3243_v40, %v3192_v19  ;;  %v1460_v40 = vmul.f32 %v3268_v53, %v3184_v14  ;;  %v1461_v18 = vmul.f32 %v1453_v17, %v3163_v61 }
 0x298   : > { %v1465_v14 = vmul.f32 %v3272_v54, %v3278_v59  ;;  %v1463_v61 = vmul.f32 %v3268_v53, %v3222_v32 }
 0x299   : > { %v2746_v58 = vpack.i.bf16 %v1459_v42, %v1458_v26 }
 0x29a   : > { %2692 = vrot.lane.b32.xlu1 %v3331_v25, %s3794_s24  ;;  %2652 = vrot.lane.b32.xlu0 %v2651_v37, %s3798_s13  ;;  %v2711_v37 = vpack.i.bf16 %v1362_v13, %v1361_v8  ;;  %v2756_v8 = vpack.i.bf16 %v1189_v7, %v1188_v57  ;;  %v1457_v13 = vmul.f32 %v3268_v53, %v3180_v12 }
 0x29b   : > { %v1464_v12 = vmul.f32 %v1453_v17, %v3173_v10  ;;  %v1365_v10 = vmul.f32 %v3257_v47, %v3372_v60  ;;  %v1644_v47 = vmul.f32 %v3283_v62, %v3372_v60  ;;  %v2873_v62 = vmov 1  }
 0x29c   : > { %v2761_v15 = vpack.i.bf16 %v1460_v40, %v1457_v13 }
 0x29e   : > { %2697 = vrot.lane.b32.xlu1 %v2696_v52, %s3790_s29  ;;  %2662 = vrot.lane.b32.xlu0 %v2661_v55, %s3799_s14  ;;  %v1081_v52 = vmul.f32 %v3201_v24, %v3222_v32  ;;  %v1187_v55 = vmul.f32 %v3228_v33, %v3234_v34  ;;  %v1360_v24 = vmul.f32 %v3253_v46, %v3222_v32 }
 0x29f   : > { %v1363_v33 = vmul.f32 %v3253_v46, %v3234_v34  ;;  %v1467_v32 = vmul.f32 %v1453_v17, %v3192_v19 }
 0x2a0   : > { %v2721_v56 = vpack.i.bf16 %v1084_v30, %v1081_v52  ;;  %v1462_v30 = vmul.f32 %v3272_v54, %v3187_v16  ;;  %v1466_v16 = vmul.f32 %v3268_v53, %v3234_v34  ;;  %v1468_v34 = vmul.f32 %v3272_v54, %v3372_v60  ;;  %v1933_v54 = vld [vmem:[%s3769_s2] sm:$0xf] }
 0x2a1   : > { %v2736_v35 = vpack.i.bf16 %v1363_v33, %v1360_v24 }
 0x2a2   : > { %2702 = vrot.lane.b32.xlu1 %v2701_v3, %s3798_s13  ;;  %2717 = vrot.lane.b32.xlu0 %v3378_v6, %s3794_s24  ;;  %v2726_v3 = vpack.i.bf16 %v1187_v55, %v1184_v1  ;;  %v2751_v46 = vpack.i.bf16 %v1462_v30, %v1461_v18  ;;  %v2771_v59 = vpack.i.bf16 %v1466_v16, %v1463_v61 }
 0x2a6   : > { %2707 = vrot.lane.b32.xlu1 %v3331_v25, %s3792_s23  ;;  %2732 = vrot.lane.b32.xlu0 %v3378_v6, %s3792_s23  ;;  %s2440_s23 = sshll.u32 %s3810_s18, 3 }
 0x2aa   : > { %2712 = vrot.lane.b32.xlu1 %v2711_v37, %s3799_s14  ;;  %2742 = vrot.lane.b32.xlu0 %v2741_v38, %s3790_s29  ;;  %v2766_v37 = vpack.i.bf16 %v1465_v14, %v1464_v12  ;;  %v1364_v38 = vmul.f32 %v3262_v50, %v3192_v19  ;;  %v1779_v50 = vld [vmem:[%s3774_s7 + $0x8] sm:$0xff] }
 0x2ab   : > { %1854 = vmatprep.mubr.f32.mxu1 %v1779_v50 }
 0x2ae   : > { %2722 = vrot.lane.b32.xlu1 %v2721_v56, %s3790_s29  ;;  %2747 = vrot.lane.b32.xlu0 %v2746_v58, %s3800_s16 }
 0x2b2   : > { %2727 = vrot.lane.b32.xlu1 %v2726_v3, %s3798_s13  ;;  %2757 = vrot.lane.b32.xlu0 %v2756_v8, %s3798_s13 }
 0x2b6   : > { %2737 = vrot.lane.b32.xlu1 %v2736_v35, %s3799_s14  ;;  %2762 = vrot.lane.b32.xlu0 %v2761_v15, %s3800_s16 }
 0x2ba   : > { %2752 = vrot.lane.b32.xlu1 %v2751_v46, %s3800_s16  ;;  %2777 = vrot.lane.b32.xlu0 %v3178_v11, %s3801_s19  ;;  %v2796_v11 = vpack.i.bf16 %v1365_v10, %v1364_v38 }
 0x2be   : > { %2767 = vrot.lane.b32.xlu1 %v2766_v37, %s3800_s16  ;;  %2787 = vrot.lane.b32.xlu0 %v3216_v29, %s3801_s19  ;;  %v2811_v29 = vpack.i.bf16 %v1468_v34, %v1467_v32 }
 0x2c2   : > { %2772 = vrot.lane.b32.xlu1 %v2771_v59, %s3800_s16  ;;  %2797 = vrot.lane.b32.xlu0 %v2796_v11, %s3799_s14 }
 0x2c6   : > { %2782 = vrot.lane.b32.xlu1 %v3197_v20, %s3801_s19  ;;  %2802 = vrot.lane.b32.xlu0 %v2801_v27, %s3802_s21  ;;  %v1643_v20 = vmul.f32 %v3295_v9, %v3192_v19  ;;  %v1781_v19 = vld [vmem:[%s3775_s8] sm:$0xff] }
 0x2c8   : > { %v2836_v53 = vpack.i.bf16 %v1644_v47, %v1643_v20 }
 0x2ca   : > { %2812 = vrot.lane.b32.xlu0 %v2811_v29, %s3800_s16  ;;  %2792 = vrot.lane.b32.xlu1 %v2791_v43, %s3802_s21 }
 0x2ce   : > { %2817 = vrot.lane.b32.xlu0 %v3287_v0, %s3801_s19  ;;  %2807 = vrot.lane.b32.xlu1 %v2806_v48, %s3802_s21 }
 0x2d2   : > { %2827 = vrot.lane.b32.xlu0 %v3331_v25, %s3801_s19  ;;  %2822 = vrot.lane.b32.xlu1 %v3378_v6, %s3801_s19 }
 0x2d6   : > { %2837 = vrot.lane.b32.xlu0 %v2836_v53, %s3802_s21  ;;  %2832 = vrot.lane.b32.xlu1 %v2831_v51, %s3802_s21 }
 0x2da   : > { %1784 = vperm.xlu0 %2605, %v1781_v19   ;;  %2842 = vrot.lane.b32.xlu1 %v2841_v49, %s3802_s21 }
 0x2de   : > { %1936 = vperm.xlu1 %2604, %v1933_v54   ;;  %2846 = vset.pattern.permute.xlu0 %v2873_v62 }
 0x2df   : > { %1948 = vperm.xlu0 %2846, %v1933_v54  }
 0x2e3   : > { %2847 = vset.pattern.permute.xlu0 %v2872_v63 }
 0x2ec   : > { %v2608_v0 = vpop.permute.xlu0 %2607 }
 0x2ed   : > { %v2610_v9 = vunpack.i.h.bf16 %v2608_v0  ;;  %v2609_v21 = vunpack.i.l.bf16 %v2608_v0 }
 0x2ef   : > { %v1021_v23 = vsel %vm458_vm7, %v2609_v21, %v2610_v9 }
 0x2f0   : > { %v2643_v22 = vpop.permute.xlu1 %2642  ;;  %v3498_v31 = vpop.permute.xlu0 %2612 }
 0x2f1   : > { %v2645_v25 = vunpack.i.h.bf16 %v2643_v22  ;;  %v2644_v27 = vunpack.i.l.bf16 %v2643_v22 }
 0x2f3   : > { %v1023_v28 = vsel %vm458_vm7, %v2644_v27, %v2645_v25 }
 0x2f4   : > { %v3502_v36 = vpop.permute.xlu1 %2657  ;;  %v2618_v39 = vpop.permute.xlu0 %2617  ;;  %v2467_v41 = vpack.c.bf16 %v1023_v28, %v1021_v23 }
 0x2f5   : > { %v2620_v43 = vunpack.i.h.bf16 %v2618_v39  ;;  %v2619_v44 = vunpack.i.l.bf16 %v2618_v39 }
 0x2f6   : > { %2468 = vmatprep.subr.bf16.mxu1 %v2467_v41 }
 0x2f7   : > { %v1020_v63 = vsel %vm458_vm7, %v2619_v44, %v2609_v21  ;;  %v1022_v45 = vsel %vm458_vm7, %v2620_v43, %v2644_v27 }
 0x2f8   : > { %v2668_v48 = vpop.permute.xlu1 %2667  ;;  %v2623_v49 = vpop.permute.xlu0 %2622  ;;  %v2469_v51 = vpack.c.bf16 %v1022_v45, %v1020_v63 }
 0x2f9   : > { %v2670_v3 = vunpack.i.h.bf16 %v2668_v48  ;;  %v2669_v24 = vunpack.i.l.bf16 %v2668_v48  ;;  %v2625_v8 = vunpack.i.h.bf16 %v2623_v49  ;;  %v2624_v33 = vunpack.i.l.bf16 %v2623_v49 }
 0x2fa   : > { %2470 = vmatpush1.bf16.msra.mxu1 %v2469_v51 }
 0x2fb   : > { %v1124_v37 = vsel %vm501_vm9, %v2624_v33, %v2625_v8  ;;  %v1126_v16 = vsel %vm501_vm9, %v2669_v24, %v2670_v3 }
 0x2fc   : > { %v3506_v60 = vpop.permute.xlu1 %2672  ;;  %v3508_v6 = vpop.permute.xlu0 %2627  ;;  %v2475_v47 = vpack.c.bf16 %v1126_v16, %v1124_v37 }
 0x2fd   : > { %v2675_v62 = vunpack.i.h.bf16 %v3506_v60  ;;  %v2674_v0 = vunpack.i.l.bf16 %v3506_v60  ;;  %v2630_v9 = vunpack.i.h.bf16 %v3508_v6  ;;  %v2629_v25 = vunpack.i.l.bf16 %v3508_v6 }
 0x2ff   : > { %v1227_v60 = vsel %vm543_vm8, %v2629_v25, %v2630_v9  ;;  %v1229_v6 = vsel %vm543_vm8, %v2674_v0, %v2675_v62 }
 0x300   : > { %v3510_v17 = vpop.permute.xlu1 %2677  ;;  %v3512_v26 = vpop.permute.xlu0 %2632 }
 0x301   : > { %v2635_v16 = vunpack.i.h.bf16 %v3512_v26 }
 0x304   : > { %v2683_v42 = vpop.permute.xlu1 %2682  ;;  %v3514_v52 = vpop.permute.xlu0 %2637 }
 0x305   : > { %v2685_v13 = vunpack.i.h.bf16 %v2683_v42  ;;  %v2684_v40 = vunpack.i.l.bf16 %v2683_v42  ;;  %v2660_v42 = vunpack.i.h.bf16 %v3502_v36 }
 0x307   : > { %v1025_v38 = vsel %vm458_vm7, %v2684_v40, %v2685_v13  ;;  %v2483_v13 = vpack.c.bf16 %v1229_v6, %v1227_v60 }
 0x308   : > { %v3516_v1 = vpop.permute.xlu1 %2687  ;;  %v2648_v55 = vpop.permute.xlu0 %2647 }
 0x309   : > { %v2650_v14 = vunpack.i.h.bf16 %v2648_v55  ;;  %v2649_v61 = vunpack.i.l.bf16 %v2648_v55  ;;  %v2659_v55 = vunpack.i.l.bf16 %v3502_v36  ;;  %v2689_v62 = vunpack.i.l.bf16 %v3516_v1 }
 0x30b   : > { %v1123_v50 = vsel %vm501_vm9, %v2649_v61, %v2624_v33  ;;  %v1125_v53 = vsel %vm501_vm9, %v2650_v14, %v2669_v24  ;;  %v2634_v14 = vunpack.i.l.bf16 %v3512_v26 }
 0x30c   : > { %v2693_v56 = vpop.permute.xlu1 %2692  ;;  %v3518_v58 = vpop.permute.xlu0 %2652  ;;  %v2477_v28 = vpack.c.bf16 %v1125_v53, %v1123_v50 }
 0x30d   : > { %v2694_v35 = vunpack.i.l.bf16 %v2693_v56  ;;  %v2695_v30 = vunpack.i.h.bf16 %v2693_v56  ;;  %v2655_v43 = vunpack.i.h.bf16 %v3518_v58  ;;  %v2654_v44 = vunpack.i.l.bf16 %v3518_v58 }
 0x30f   : > { %v1024_v59 = vsel %vm458_vm7, %v2694_v35, %v2684_v40  ;;  %v1226_v40 = vsel %vm543_vm8, %v2654_v44, %v2629_v25  ;;  %v1228_v35 = vsel %vm543_vm8, %v2655_v43, %v2674_v0  ;;  %v1301_v25 = vsel %vm563_vm11, %v2635_v16, %v2659_v55 }
 0x310   : > { %v2698_v57 = vpop.permute.xlu1 %2697  ;;  %v3520_v7 = vpop.permute.xlu0 %2662 }
 0x311   : > { %v2700_v19 = vunpack.i.h.bf16 %v2698_v57  ;;  %v2699_v54 = vunpack.i.l.bf16 %v2698_v57  ;;  %v2665_v43 = vunpack.i.h.bf16 %v3520_v7  ;;  %v2664_v44 = vunpack.i.l.bf16 %v3520_v7 }
 0x313   : > { %v1128_v39 = vsel %vm501_vm9, %v2699_v54, %v2700_v19 }
 0x314   : > { %v3522_v15 = vpop.permute.xlu1 %2702  ;;  %v2718_v18 = vpop.permute.xlu0 %2717 }
 0x315   : > { %v2720_v46 = vunpack.i.h.bf16 %v2718_v18  ;;  %v2719_v12 = vunpack.i.l.bf16 %v2718_v18  ;;  %v2705_v56 = vunpack.i.h.bf16 %v3522_v15  ;;  %v2704_v57 = vunpack.i.l.bf16 %v3522_v15 }
 0x316   : > { %v2614_v15 = vunpack.i.l.bf16 %v3498_v31 }
 0x317   : > { %v1027_v10 = vsel %vm458_vm7, %v2719_v12, %v2720_v46  ;;  %v1026_v11 = vsel %vm458_vm7, %v2695_v30, %v2719_v12  ;;  %v2615_v12 = vunpack.i.h.bf16 %v3498_v31  ;;  %v1231_v61 = vsel %vm543_vm8, %v2704_v57, %v2705_v56 }
 0x318   : > { %v3530_v32 = vpop.permute.xlu1 %2707  ;;  %v3532_v34 = vpop.permute.xlu0 %2732  ;;  %v2471_v29 = vpack.c.bf16 %v1027_v10, %v1025_v38  ;;  %v2473_v20 = vpack.c.bf16 %v1026_v11, %v1024_v59  ;;  %v2485_v59 = vpack.c.bf16 %v1228_v35, %v1226_v40  ;;  %v1299_v19 = vsel %vm563_vm11, %v2634_v14, %v2614_v15 }
 0x319   : > { %v2734_v50 = vunpack.i.l.bf16 %v3532_v34  ;;  %v1300_v53 = vsel %vm563_vm11, %v2614_v15, %v2615_v12 }
 0x31a   : > { %2472 = vmatprep.subr.bf16.mxu1 %v2471_v29  ;;  %v1302_v29 = vsel %vm563_vm11, %v2659_v55, %v2660_v42 }
 0x31b   : > { %2474 = vmatpush1.bf16.msra.mxu1 %v2473_v20  ;;  %v2491_v26 = vpack.c.bf16 %v1302_v29, %v1300_v53 }
 0x31c   : > { %v3539_v21 = vpop.permute.xlu1 %2712  ;;  %v2743_v22 = vpop.permute.xlu0 %2742  ;;  %2476 = vmatprep.subr.bf16.mxu1 %v2475_v47  ;;  %v2735_v47 = vunpack.i.h.bf16 %v3532_v34  ;;  %v2640_v34 = vunpack.i.h.bf16 %v3514_v52 }
 0x31d   : > { %v2745_v27 = vunpack.i.h.bf16 %v2743_v22  ;;  %v2744_v23 = vunpack.i.l.bf16 %v2743_v22  ;;  %v2714_v42 = vunpack.i.l.bf16 %v3539_v21 }
 0x31f   : > { %2478 = vmatpush1.bf16.msra.mxu1 %v2477_v28  ;;  %v1130_v41 = vsel %vm501_vm9, %v2744_v23, %v2745_v27  ;;  %v2639_v27 = vunpack.i.l.bf16 %v3514_v52  ;;  %v2709_v28 = vunpack.i.l.bf16 %v3530_v32  ;;  %v2493_v52 = vpack.c.bf16 %v1301_v25, %v1299_v19 }
 0x320   : > { %v2723_v63 = vpop.permute.xlu1 %2722  ;;  %v3546_v45 = vpop.permute.xlu0 %2747  ;;  %v2479_v48 = vpack.c.bf16 %v1130_v41, %v1128_v39  ;;  %v1306_v39 = vsel %vm563_vm11, %v2734_v50, %v2735_v47  ;;  %v2679_v41 = vunpack.i.l.bf16 %v3510_v17 }
 0x321   : > { %v2725_v49 = vunpack.i.h.bf16 %v2723_v63  ;;  %v2724_v51 = vunpack.i.l.bf16 %v2723_v63  ;;  %v1403_v6 = vsel %vm605_vm10, %v2639_v27, %v2640_v34  ;;  %v2749_v35 = vunpack.i.l.bf16 %v3546_v45 }
 0x322   : > { %2480 = vmatprep.subr.bf16.mxu1 %v2479_v48 }
 0x323   : > { %v1127_v58 = vsel %vm501_vm9, %v2724_v51, %v2699_v54  ;;  %v1129_v3 = vsel %vm501_vm9, %v2725_v49, %v2744_v23  ;;  %v2690_v54 = vunpack.i.h.bf16 %v3516_v1  ;;  %v2710_v23 = vunpack.i.h.bf16 %v3530_v32 }
 0x324   : > { %v2728_v24 = vpop.permute.xlu1 %2727  ;;  %v2758_v8 = vpop.permute.xlu0 %2757  ;;  %v2481_v33 = vpack.c.bf16 %v1129_v3, %v1127_v58  ;;  %v2680_v1 = vunpack.i.h.bf16 %v3510_v17  ;;  %v1303_v51 = vsel %vm563_vm11, %v2709_v28, %v2689_v62  ;;  %v2715_v17 = vunpack.i.h.bf16 %v3539_v21 }
 0x325   : > { %v2730_v18 = vunpack.i.h.bf16 %v2728_v24  ;;  %v2729_v30 = vunpack.i.l.bf16 %v2728_v24  ;;  %v2760_v36 = vunpack.i.h.bf16 %v2758_v8  ;;  %v2759_v46 = vunpack.i.l.bf16 %v2758_v8 }
 0x326   : > { %2482 = vmatpush1.bf16.msra.mxu1 %v2481_v33  ;;  %v1304_v49 = vsel %vm563_vm11, %v2689_v62, %v2690_v54  ;;  %v1305_v60 = vsel %vm563_vm11, %v2710_v23, %v2734_v50  ;;  %v1405_v7 = vsel %vm605_vm10, %v2679_v41, %v2680_v1  ;;  %v1402_v3 = vsel %vm605_vm10, %v2664_v44, %v2639_v27 }
 0x327   : > { %2484 = vmatprep.subr.bf16.mxu1 %v2483_v13  ;;  %v1233_v37 = vsel %vm543_vm8, %v2759_v46, %v2760_v36  ;;  %v1230_v31 = vsel %vm543_vm8, %v2729_v30, %v2704_v57  ;;  %v1232_v20 = vsel %vm543_vm8, %v2730_v18, %v2759_v46  ;;  %v2495_v32 = vpack.c.bf16 %v1306_v39, %v1304_v49 }
 0x328   : > { %v3564_v38 = vpop.permute.xlu1 %2737  ;;  %v3566_v10 = vpop.permute.xlu0 %2762  ;;  %v2487_v11 = vpack.c.bf16 %v1233_v37, %v1231_v61  ;;  %v2489_v22 = vpack.c.bf16 %v1232_v20, %v1230_v31  ;;  %v2497_v57 = vpack.c.bf16 %v1305_v60, %v1303_v51  ;;  %v2499_v58 = vpack.c.bf16 %v1405_v7, %v1403_v6 }
 0x329   : > { %v1404_v24 = vsel %vm605_vm10, %v2665_v43, %v2679_v41  ;;  %v2750_v21 = vunpack.i.h.bf16 %v3546_v45  ;;  %v2739_v18 = vunpack.i.l.bf16 %v3564_v38  ;;  %v2740_v30 = vunpack.i.h.bf16 %v3564_v38 }
 0x32a   : > { %2486 = vmatpush1.bf16.msra.mxu1 %v2485_v59  ;;  %v2764_v36 = vunpack.i.l.bf16 %v3566_v10  ;;  %v1407_v46 = vsel %vm605_vm10, %v2714_v42, %v2715_v17  ;;  %v2501_v61 = vpack.c.bf16 %v1404_v24, %v1402_v3  ;;  %v2765_v16 = vunpack.i.h.bf16 %v3566_v10 }
 0x32b   : > { %2488 = vmatprep.subr.bf16.mxu1 %v2487_v11  ;;  %v1406_v29 = vsel %vm605_vm10, %v2739_v18, %v2714_v42  ;;  %v1506_v31 = vsel %vm647_vm13, %v2749_v35, %v2750_v21 }
 0x32c   : > { %v3577_v0 = vpop.permute.xlu1 %2752  ;;  %v3579_v9 = vpop.permute.xlu0 %2777  ;;  %v1505_v50 = vsel %vm647_vm13, %v2764_v36, %v2749_v35 }
 0x32d   : > { %v2755_v8 = vunpack.i.h.bf16 %v3577_v0  ;;  %v2754_v33 = vunpack.i.l.bf16 %v3577_v0  ;;  %v2780_v23 = vunpack.i.h.bf16 %v3579_v9  ;;  %v2779_v28 = vunpack.i.l.bf16 %v3579_v9 }
 0x32e   : > { %2490 = vmatpush1.bf16.msra.mxu1 %v2489_v22 }
 0x32f   : > { %2492 = vmatprep.subr.bf16.mxu1 %v2491_v26  ;;  %v1508_v59 = vsel %vm647_vm13, %v2754_v33, %v2755_v8  ;;  %v1507_v10 = vsel %vm647_vm13, %v2765_v16, %v2754_v33 }
 0x330   : > { %v3591_v63 = vpop.permute.xlu1 %2767  ;;  %v3593_v48 = vpop.permute.xlu0 %2787  ;;  %v2507_v0 = vpack.c.bf16 %v1508_v59, %v1506_v31 }
 0x331   : > { %v2770_v38 = vunpack.i.h.bf16 %v3591_v63  ;;  %v2769_v11 = vunpack.i.l.bf16 %v3591_v63  ;;  %v2790_v7 = vunpack.i.h.bf16 %v3593_v48 }
 0x332   : > { %2494 = vmatpush1.bf16.msra.mxu1 %v2493_v52 }
 0x333   : > { %2496 = vmatprep.subr.bf16.mxu1 %v2495_v32  ;;  %v1510_v1 = vsel %vm647_vm13, %v2769_v11, %v2770_v38  ;;  %v2509_v32 = vpack.c.bf16 %v1507_v10, %v1505_v50 }
 0x334   : > { %v3602_v55 = vpop.permute.xlu1 %2772  ;;  %v2798_v56 = vpop.permute.xlu0 %2797 }
 0x335   : > { %v2800_v13 = vunpack.i.h.bf16 %v2798_v56  ;;  %v2799_v40 = vunpack.i.l.bf16 %v2798_v56  ;;  %v2774_v39 = vunpack.i.l.bf16 %v3602_v55  ;;  %v2775_v41 = vunpack.i.h.bf16 %v3602_v55 }
 0x336   : > { %2498 = vmatpush1.bf16.msra.mxu1 %v2497_v57  ;;  %v2789_v55 = vunpack.i.l.bf16 %v3593_v48  ;;  %v1579_v57 = vsel %vm3797_vm12, %v2779_v28, %v2780_v23  ;;  %v2056_v23 = vld [vmem:[%s3771_s4] ss:$4 sm:$0x3] }
 0x337   : > { %2500 = vmatprep.subr.bf16.mxu1 %v2499_v58  ;;  %v1409_v12 = vsel %vm605_vm10, %v2799_v40, %v2800_v13  ;;  %v1408_v45 = vsel %vm605_vm10, %v2740_v30, %v2799_v40  ;;  %v1509_v56 = vsel %vm647_vm13, %v2774_v39, %v2769_v11  ;;  %v2065_v39 = vrot.slane %v2056_v23, %v2972_v5 }
 0x338   : > { %v3615_v15 = vpop.permute.xlu1 %2782  ;;  %v2803_v14 = vpop.permute.xlu0 %2802  ;;  %v2503_v37 = vpack.c.bf16 %v1409_v12, %v1407_v46  ;;  %v2505_v62 = vpack.c.bf16 %v1408_v45, %v1406_v29  ;;  %v1578_v12 = vsel %vm3797_vm12, %v2789_v55, %v2779_v28  ;;  %v2061_v28 = vrot.slane %v2056_v23, %v2969_v4 }
 0x339   : > { %v2805_v20 = vunpack.i.h.bf16 %v2803_v14  ;;  %v2804_v47 = vunpack.i.l.bf16 %v2803_v14  ;;  %v2785_v53 = vunpack.i.h.bf16 %v3615_v15  ;;  %v2784_v26 = vunpack.i.l.bf16 %v3615_v15 }
 0x33a   : > { %2502 = vmatpush1.bf16.msra.mxu1 %v2501_v61 }
 0x33b   : > { %2504 = vmatprep.subr.bf16.mxu1 %v2503_v37  ;;  %v1684_v44 = vsel %vm3796_vm14, %v2804_v47, %v2805_v20  ;;  %v1581_v42 = vsel %vm3797_vm12, %v2784_v26, %v2785_v53  ;;  %v1580_v48 = vsel %vm3797_vm12, %v2790_v7, %v2784_v26 }
 0x33c   : > { %v2793_v19 = vpop.permute.xlu1 %2792  ;;  %v2813_v54 = vpop.permute.xlu0 %2812  ;;  %v2515_v35 = vpack.c.bf16 %v1581_v42, %v1579_v57  ;;  %v2517_v16 = vpack.c.bf16 %v1580_v48, %v1578_v12 }
 0x33d   : > { %v2795_v22 = vunpack.i.h.bf16 %v2793_v19  ;;  %v2794_v25 = vunpack.i.l.bf16 %v2793_v19  ;;  %v2815_v34 = vunpack.i.h.bf16 %v2813_v54  ;;  %v2814_v27 = vunpack.i.l.bf16 %v2813_v54 }
 0x33e   : > { %2506 = vmatpush1.bf16.msra.mxu1 %v2505_v62  ;;  %v1778_v62 = vld [vmem:[%s3774_s7] sm:$0xff] }
 0x33f   : > { %2508 = vmatprep.subr.bf16.mxu1 %v2507_v0  ;;  %v1682_v43 = vsel %vm3796_vm14, %v2794_v25, %v2795_v22  ;;  %v1512_v63 = vsel %vm647_vm13, %v2814_v27, %v2815_v34  ;;  %v1511_v17 = vsel %vm647_vm13, %v2775_v41, %v2814_v27  ;;  %v1780_v34 = vld [vmem:[%s3774_s7 + $0x10] sm:$0xff]  ;;  %v2848_v27 = vld [vmem:[#allocation6] sm:$0xff]  ;;  %v2139_v41 = vld [vmem:[%s3771_s4] ss:$4 sm:$0x3] }
 0x340   : > { %v2808_v52 = vpop.permute.xlu1 %2807  ;;  %v2818_v49 = vpop.permute.xlu0 %2817  ;;  %v2523_v51 = vpack.c.bf16 %v1684_v44, %v1682_v43  ;;  %v2511_v60 = vpack.c.bf16 %v1512_v63, %v1510_v1  ;;  %v2513_v21 = vpack.c.bf16 %v1511_v17, %v1509_v56  ;;  %v2066_v1 = vcombine.low %v2061_v28, %v2065_v39  ;;  %1974 = vst.msk [vmem:[#allocation6 + $0x8] sm:$0xf] %vm1973_vm1, %v2848_v27 }
 0x341   : > { %v2810_v9 = vunpack.i.h.bf16 %v2808_v52  ;;  %v2809_v6 = vunpack.i.l.bf16 %v2808_v52  ;;  %v2820_v24 = vunpack.i.h.bf16 %v2818_v49  ;;  %v2819_v8 = vunpack.i.l.bf16 %v2818_v49 }
 0x342   : > { %2510 = vmatpush1.bf16.msra.mxu1 %v2509_v32  ;;  %2524 = vmatprep.subr.bf16.mxu0 %v2523_v51  ;;  %v2144_v43 = vrot.slane %v2139_v41, %v2969_v4  ;;  %v2148_v44 = vrot.slane %v2139_v41, %v2972_v5  ;;  %v2874_v52 = vmov 839922192   ;;  %vm1983_vm1 = vcmask 1047556  }
 0x343   : > { %v1681_v58 = vsel %vm3796_vm14, %v2809_v6, %v2794_v25  ;;  %v1683_v3 = vsel %vm3796_vm14, %v2810_v9, %v2804_v47  ;;  %2512 = vmatprep.subr.bf16.mxu1 %v2511_v60  ;;  %v1583_v15 = vsel %vm3797_vm12, %v2819_v8, %v2820_v24  ;;  %2067 = vrot.lane.b32.xlu0 %v2066_v1, %s2860_s12  ;;  %v1939_v49 = vunpack.c.l.s4 %v2874_v52  ;;  %s396_s12 = scalar_lea.vmem %s3767_s0, %s2440_s23 }
 0x344   : > { %v2525_v33 = vpack.c.bf16 %v1683_v3, %v1681_v58  ;;  %v2823_v13 = vpop.permute.xlu1 %2822  ;;  %v2828_v40 = vpop.permute.xlu0 %2827  ;;  %v2149_v63 = vcombine.low %v2144_v43, %v2148_v44  ;;  %v1932_v7 = vld [vmem:[%s396_s12] sm:$0xff] }
 0x345   : > { %v2825_v18 = vunpack.i.h.bf16 %v2823_v13  ;;  %v2824_v30 = vunpack.i.l.bf16 %v2823_v13  ;;  %v2830_v36 = vunpack.i.h.bf16 %v2828_v40  ;;  %v2829_v46 = vunpack.i.l.bf16 %v2828_v40 }
 0x346   : > { %2514 = vmatpush1.bf16.msra.mxu1 %v2513_v21  ;;  %2526 = vmatpush1.bf16.msra.mxu0 %v2525_v33  ;;  %v1940_v32 = vunpack.c.0.s8 %v1939_v49 }
 0x347   : > { %2516 = vmatprep.subr.bf16.mxu1 %v2515_v35  ;;  %v1585_v14 = vsel %vm3797_vm12, %v2824_v30, %v2825_v18  ;;  %v1582_v59 = vsel %vm3797_vm12, %v2829_v46, %v2819_v8  ;;  %v1584_v38 = vsel %vm3797_vm12, %v2830_v36, %v2824_v30  ;;  %2150 = vrot.lane.b32.xlu0 %v2149_v63, %s2862_s20  ;;  %v2432_v18 = vld [vmem:[%s3771_s4 + $0x2] ss:$4 sm:$0x3]  ;;  %vm1984_vm12 = vmor %vm1983_vm1, %vm1982_vm15 }
 0x348   : > { %v2833_v61 = vpop.permute.xlu1 %2832  ;;  %v2838_v37 = vpop.permute.xlu0 %2837  ;;  %v2519_v45 = vpack.c.bf16 %v1585_v14, %v1583_v15  ;;  %v2521_v53 = vpack.c.bf16 %v1584_v38, %v1582_v59  ;;  %v1943_v51 = vsub.s32 %v1940_v32, %v2952_v2  ;;  %v2027_v46 = vrot.slane %v2432_v18, %v2969_v4  ;;  %v2433_v15 = vld [vmem:[%s3771_s4 + $0x2] ss:$4 sm:$0x3] }
 0x349   : > { %v2835_v11 = vunpack.i.h.bf16 %v2833_v61  ;;  %v2834_v29 = vunpack.i.l.bf16 %v2833_v61  ;;  %v2840_v31 = vunpack.i.h.bf16 %v2838_v37  ;;  %v2839_v20 = vunpack.i.l.bf16 %v2838_v37 }
 0x34a   : > { %2518 = vmatpush1.bf16.msra.mxu1 %v2517_v16  ;;  %v2031_v12 = vrot.slane %v2432_v18, %v2972_v5  ;;  %v2110_v37 = vrot.slane %v2433_v15, %v2969_v4  ;;  %v2114_v16 = vrot.slane %v2433_v15, %v2972_v5 }
 0x34b   : > { %2520 = vmatprep.subr.bf16.mxu1 %v2519_v45  ;;  %v1686_v47 = vsel %vm3796_vm14, %v2834_v29, %v2835_v11  ;;  %v1688_v50 = vsel %vm3796_vm14, %v2839_v20, %v2840_v31  ;;  %v2434_v45 = vld [vmem:[%s3771_s4 + $0x2] ss:$4 sm:$0x3] }
 0x34c   : > { %v2843_v10 = vpop.permute.xlu1 %2842  ;;  %v2527_v26 = vpack.c.bf16 %v1688_v50, %v1686_v47  ;;  %v2032_v61 = vcombine.low %v2027_v46, %v2031_v12  ;;  %v2115_v59 = vcombine.low %v2110_v37, %v2114_v16  ;;  %v2193_v38 = vrot.slane %v2434_v45, %v2969_v4 }
 0x34d   : > { %v2845_v19 = vunpack.i.h.bf16 %v2843_v10  ;;  %v2844_v54 = vunpack.i.l.bf16 %v2843_v10  ;;  %v2197_v11 = vrot.slane %v2434_v45, %v2972_v5 }
 0x34e   : > { %2522 = vmatpush1.bf16.msra.mxu1 %v2521_v53  ;;  %2528 = vmatprep.subr.bf16.mxu0 %v2527_v26 }
 0x34f   : > { %v1685_v0 = vsel %vm3796_vm14, %v2844_v54, %v2834_v29  ;;  %v1687_v22 = vsel %vm3796_vm14, %v2845_v19, %v2839_v20  ;;  %v2198_v29 = vcombine.low %v2193_v38, %v2197_v11  ;;  %vm1986_vm14 = vcmask 134144  }
 0x350   : > { %v2529_v25 = vpack.c.bf16 %v1687_v22, %v1685_v0 }
 0x351   : > { %1855 = vmatmul.mubr.f32.vlgmr.msra.gmra.mrb[0].mxu1 %v1778_v62 }
 0x352   : > { %2530 = vmatpush1.bf16.msra.mxu0 %v2529_v25 }
 0x355   : > { %2431 = vmatmul.mubr.msk.f32.vlgmr.msra.gmra.mrb[8].mxu0 %vm630_vm6, %v1780_v34 }
 0x356   : > { %2334 = vmatprep.mubr.f32.mxu0 %v2848_v27 }
 0x359   : > { %v1785_v60 = vpop.permute.xlu0 %1784 }
 0x35d   : > { %v1937_v9 = vpop.permute.xlu1 %1936 }
 0x35e   : > { %v1944_v42 = vrot.slane %v1937_v9, %v1943_v51  ;;  %v1949_v55 = vpop.permute.xlu0 %1948 }
 0x35f   : > { %v1956_v33 = vrot.slane %v1949_v55, %v1943_v51 }
 0x360   : > { %v1946_v8 = vsub.f32 %v1932_v7, %v1944_v42 }
 0x362   : > { %v1958_v35 = vmul.f32 %v1956_v33, %v1946_v8 }
 0x3b5   : > { %v2068_v19 = vpop.permute.xlu0 %2067 }
 0x3b6   : > { %v2069_v0 = vrot.slane %v2068_v19, 4 }
 0x3b8   : > { %v2070_v28 = vsel %vm526_vm3, %v2069_v0, %v2068_v19  ;;  %vm3807_vm3 = vcmask 769024  }
 0x3b9   : > { %v2151_v1 = vpop.permute.xlu0 %2150 }
 0x3ba   : > { %v2152_v63 = vrot.slane %v2151_v1, 4 }
 0x424   : > { %v1856_v6 = vpop.f32.mrb[0].mxu1 }
 0x425   : > { %v1858_v17 = vpop.f32.mrb[1].mxu1  ;;  %v1857_v56 = vadd.f32 %v1856_v6, %v1785_v60 }
 0x426   : > { %v1859_v57 = vadd.f32 %v1858_v17, %v1785_v60  ;;  %v2153_v60 = vsel %vm630_vm6, %v2152_v63, %v2151_v1 }
 0x428   : > { %v1927_v58 = vpop.f32.mrb[8].mxu0 }
 0x429   : > { %v1928_v3 = vadd.f32 %v1927_v58, %v1857_v56  ;;  %v1929_v24 = vpop.f32.mrb[9].mxu0 }
 0x42a   : > { %v1930_v13 = vadd.f32 %v1929_v24, %v1859_v57 }
 0x42b   : > { %v1959_v2 = vadd.f32 1.0, %v1928_v3 }
 0x42c   : > { %v1960_v40 = vadd.f32 1.0, %v1930_v13  ;;  %v1968_v21 = vcombine.high %v1928_v3, %v1930_v13  ;;  %v2230_v3 = vld [vmem:[%s3777_s10] sm:$0xff] }
 0x42d   : > { %v1989_v13 = vld [vmem:[%s3771_s4] ss:$4 sm:$0x3] }
 0x42e   : > { %v1963_v48 = vcombine.low %v1959_v2, %v1960_v40 }
 0x430   : > { %v1965_v30 = vmul.f32 %v1963_v48, %v1958_v35  ;;  %v1998_v35 = vrot.slane %v1989_v13, %v2972_v5 }
 0x432   : > { %v1970_v36 = vadd.f32 %v1968_v21, %v1965_v30  ;;  %v1994_v21 = vrot.slane %v1989_v13, %v2969_v4 }
 0x434   : > { %v1971_v14 = vmax.f32 %v1970_v36, 0.0  ;;  %v1999_v12 = vcombine.low %v1994_v21, %v1998_v35 }
 0x436   : > { %1976 = vrot.lane.b32.xlu1 %v1971_v14, %s2858_s25  ;;  %s3803_s25 = smov 127  }
 0x43a   : > { %2033 = vrot.lane.b32.xlu1 %v2032_v61, %s2859_s26  ;;  %s3804_s26 = smov 111  }
 0x43e   : > { %2116 = vrot.lane.b32.xlu1 %v2115_v59, %s2861_s15  ;;  %s3805_s15 = smov 126  }
 0x442   : > { %2199 = vrot.lane.b32.xlu1 %v2198_v29, %s2863_s22 }
 0x4a8   : > { %v1977_v31 = vpop.permute.xlu1 %1976 }
 0x4a9   : > { %v1978_v20 = vrot.slane %v1977_v31, 4 }
 0x4ab   : > { %v1979_v47 = vsel %vm419_vm2, %v1978_v20, %v1977_v31  ;;  %1987 = vst.msk [vmem:[#allocation6 + $0x8] sm:$0xf] %vm1986_vm14, %v1978_v20  ;;  %vm3806_vm2 = vcmask 777216  }
 0x4ac   : > { %1985 = vst.msk [vmem:[#allocation6] sm:$0xff] %vm1984_vm12, %v1979_v47  ;;  %v2034_v10 = vpop.permute.xlu1 %2033 }
 0x4ad   : > { %v2035_v26 = vrot.slane %v2034_v10, 4 }
 0x4af   : > { %v2036_v22 = vsel %vm484_vm5, %v2035_v26, %v2034_v10 }
 0x4b0   : > { %v2117_v25 = vpop.permute.xlu1 %2116 }
 0x4b1   : > { %v2118_v39 = vrot.slane %v2117_v25, 4 }
 0x4b2   : > { %v2004_v53 = vld [vmem:[#allocation6 + $0x8] sm:$0xf] }
 0x4b3   : > { %v3698_v50 = vld [vmem:[#allocation6] sm:$0xff]  ;;  %2009 = vrot.lane.b32.xlu1 %v2004_v53, %s3803_s25  ;;  %v2020_v54 = vld [vmem:[#allocation6 + $0x8] sm:$0xf]  ;;  %v2119_v52 = vsel %vm588_vm4, %v2118_v39, %v2117_v25  ;;  %vm2262_vm4 = vcmask 293888  }
 0x4b4   : > { %2007 = vrot.lane.b32.xlu0 %v3698_v50, %s3803_s25  ;;  %v2089_v62 = vld [vmem:[#allocation6 + $0x8] sm:$0xf]  ;;  %v2040_v34 = vmul.f32 %v2035_v26, %v2020_v54  ;;  %v2039_v23 = vmul.f32 %v3698_v50, %v2036_v22  ;;  %v2073_v43 = vmul.f32 %v2070_v28, %v3698_v50  ;;  %v2122_v51 = vmul.f32 %v2119_v52, %v3698_v50  ;;  %v2200_v9 = vpop.permute.xlu1 %2199 }
 0x4b5   : > { %v2055_v27 = vld [vmem:[#allocation6 + $0x8] sm:$0xf]  ;;  %v2156_v17 = vmul.f32 %v2153_v60, %v3698_v50  ;;  %v2201_v42 = vrot.slane %v2200_v9, 4  ;;  %v2001_v4 = vmul.f32 %v3698_v50, %v1999_v12 }
 0x4b6   : > { %v2074_v41 = vmul.f32 %v2069_v0, %v2055_v27  ;;  %v2104_v44 = vld [vmem:[#allocation6 + $0x8] sm:$0xf] }
 0x4b7   : > { %2094 = vrot.lane.b32.xlu1 %v2089_v62, %s3804_s26  ;;  %v2123_v49 = vmul.f32 %v2118_v39, %v2104_v44  ;;  %v2138_v32 = vld [vmem:[#allocation6 + $0x8] sm:$0xf]  ;;  %v2202_v55 = vsel %vm411_vm0, %v2201_v42, %v2200_v9  ;;  %vm2013_vm0 = vcmask 1043456  }
 0x4b8   : > { %2092 = vrot.lane.b32.xlu0 %v3698_v50, %s3804_s26  ;;  %v2157_v6 = vmul.f32 %v2152_v63, %v2138_v32  ;;  %v2172_v7 = vld [vmem:[#allocation6 + $0x8] sm:$0xf]  ;;  %v2205_v58 = vmul.f32 %v2202_v55, %v3698_v50 }
 0x4b9   : > { %v2187_v56 = vld [vmem:[#allocation6 + $0x8] sm:$0xf] }
 0x4ba   : > { %v2206_v57 = vmul.f32 %v2201_v42, %v2187_v56 }
 0x4bb   : > { %2045 = vrot.lane.b32.xlu1 %v2040_v34, %s3805_s15 }
 0x4bc   : > { %2043 = vrot.lane.b32.xlu0 %v2039_v23, %s3805_s15 }
 0x4bf   : > { %2079 = vrot.lane.b32.xlu1 %v2074_v41, %s3798_s13 }
 0x4c0   : > { %2077 = vrot.lane.b32.xlu0 %v2073_v43, %s3798_s13 }
 0x4c3   : > { %2128 = vrot.lane.b32.xlu1 %v2123_v49, %s3799_s14 }
 0x4c4   : > { %2126 = vrot.lane.b32.xlu0 %v2122_v51, %s3799_s14 }
 0x4c7   : > { %2162 = vrot.lane.b32.xlu1 %v2157_v6, %s3800_s16 }
 0x4c8   : > { %2160 = vrot.lane.b32.xlu0 %v2156_v17, %s3800_s16 }
 0x4cb   : > { %2177 = vrot.lane.b32.xlu1 %v2172_v7, %s3801_s19 }
 0x4cc   : > { %2175 = vrot.lane.b32.xlu0 %v3698_v50, %s3801_s19 }
 0x4cf   : > { %2211 = vrot.lane.b32.xlu1 %v2206_v57, %s3802_s21 }
 0x4d0   : > { %2209 = vrot.lane.b32.xlu0 %v2205_v58, %s3802_s21 }
 0x4d4   : > { %2233 = vperm.xlu0 %2847, %v2230_v3  }
 0x525   : > { %v2010_v24 = vpop.permute.xlu1 %2009 }
 0x526   : > { %v2008_v8 = vpop.permute.xlu0 %2007  ;;  %v2012_v40 = vrot.slane %v2010_v24, 4 }
 0x527   : > { %v2011_v48 = vrot.slane %v2008_v8, 4 }
 0x529   : > { %v2095_v33 = vpop.permute.xlu1 %2094  ;;  %v2014_v15 = vsel %vm2013_vm0, %v2011_v48, %v2012_v40 }
 0x52a   : > { %v2093_v2 = vpop.permute.xlu0 %2092  ;;  %v2015_v59 = vsel %vm458_vm7, %v2008_v8, %v2014_v15  ;;  %v2097_v22 = vrot.slane %v2095_v33, 4  ;;  %v2229_v33 = vld [vmem:[%s3776_s9] sm:$0xff] }
 0x52b   : > { %v2245_v20 = vcombine.low %v2001_v4, %v2015_v59  ;;  %v2246_v47 = vcombine.high %v2001_v4, %v2015_v59  ;;  %v2096_v25 = vrot.slane %v2093_v2, 4 }
 0x52d   : > { %v2046_v18 = vpop.permute.xlu1 %2045  ;;  %v2098_v39 = vsel %vm2013_vm0, %v2096_v25, %v2097_v22 }
 0x52e   : > { %v2044_v30 = vpop.permute.xlu0 %2043  ;;  %v2048_v36 = vrot.slane %v2046_v18, 4  ;;  %v2099_v52 = vsel %vm563_vm11, %v2093_v2, %v2098_v39 }
 0x52f   : > { %v2047_v46 = vrot.slane %v2044_v30, 4 }
 0x531   : > { %v2080_v14 = vpop.permute.xlu1 %2079  ;;  %v2049_v16 = vsel %vm2013_vm0, %v2047_v46, %v2048_v36 }
 0x532   : > { %v2082_v61 = vrot.slane %v2080_v14, 4  ;;  %v2078_v37 = vpop.permute.xlu0 %2077  ;;  %v2050_v11 = vsel %vm501_vm9, %v2044_v30, %v2049_v16 }
 0x533   : > { %v2081_v45 = vrot.slane %v2078_v37, 4 }
 0x535   : > { %v2083_v5 = vsel %vm2013_vm0, %v2081_v45, %v2082_v61  ;;  %v2129_v38 = vpop.permute.xlu1 %2128 }
 0x536   : > { %v2084_v29 = vsel %vm543_vm8, %v2078_v37, %v2083_v5  ;;  %v2127_v31 = vpop.permute.xlu0 %2126  ;;  %v2131_v26 = vrot.slane %v2129_v38, 4 }
 0x537   : > { %v2247_v10 = vcombine.low %v2050_v11, %v2084_v29  ;;  %v2248_v53 = vcombine.high %v2050_v11, %v2084_v29  ;;  %v2130_v19 = vrot.slane %v2127_v31, 4 }
 0x539   : > { %v2533_v54 = vpack.c.bf16 %v2247_v10, %v2245_v20  ;;  %v2163_v62 = vpop.permute.xlu1 %2162  ;;  %v2531_v0 = vpack.c.bf16 %v2248_v53, %v2246_v47  ;;  %v2132_v23 = vsel %vm2013_vm0, %v2130_v19, %v2131_v26 }
 0x53a   : > { %v2161_v50 = vpop.permute.xlu0 %2160  ;;  %v2165_v34 = vrot.slane %v2163_v62, 4  ;;  %v2133_v43 = vsel %vm605_vm10, %v2127_v31, %v2132_v23 }
 0x53b   : > { %v2164_v27 = vrot.slane %v2161_v50, 4  ;;  %2532 = vmatprep.subr.bf16.mxu0 %v2531_v0  ;;  %v2249_v51 = vcombine.low %v2099_v52, %v2133_v43  ;;  %v2250_v42 = vcombine.high %v2099_v52, %v2133_v43 }
 0x53c   : > { %2534 = vmatpush1.bf16.msra.mxu0 %v2533_v54 }
 0x53d   : > { %v2178_v28 = vpop.permute.xlu1 %2177  ;;  %v2166_v44 = vsel %vm2013_vm0, %v2164_v27, %v2165_v34 }
 0x53e   : > { %v2180_v1 = vrot.slane %v2178_v28, 4  ;;  %v2176_v41 = vpop.permute.xlu0 %2175  ;;  %v2167_v60 = vsel %vm647_vm13, %v2161_v50, %v2166_v44 }
 0x53f   : > { %v2179_v63 = vrot.slane %v2176_v41, 4 }
 0x541   : > { %v2181_v49 = vsel %vm2013_vm0, %v2179_v63, %v2180_v1  ;;  %v2212_v32 = vpop.permute.xlu1 %2211 }
 0x542   : > { %v2182_v9 = vsel %vm3806_vm2, %v2176_v41, %v2181_v49  ;;  %v2214_v6 = vrot.slane %v2212_v32, 4  ;;  %v2210_v17 = vpop.permute.xlu0 %2209 }
 0x543   : > { %v2251_v7 = vcombine.low %v2167_v60, %v2182_v9  ;;  %v2252_v55 = vcombine.high %v2167_v60, %v2182_v9  ;;  %v2213_v56 = vrot.slane %v2210_v17, 4 }
 0x545   : > { %v2537_v57 = vpack.c.bf16 %v2251_v7, %v2249_v51  ;;  %v2215_v58 = vsel %vm2013_vm0, %v2213_v56, %v2214_v6  ;;  %v2535_v3 = vpack.c.bf16 %v2252_v55, %v2250_v42 }
 0x546   : > { %v2216_v24 = vsel %vm3807_vm3, %v2210_v17, %v2215_v58 }
 0x547   : > { %v2253_v8 = vcombine.high %v2216_v24, %v2216_v24  ;;  %2536 = vmatprep.subr.bf16.mxu0 %v2535_v3 }
 0x548   : > { %2538 = vmatpush1.bf16.msra.mxu0 %v2537_v57 }
 0x549   : > { %2435 = vmatprep.subr.msk.mxu0 %vm2013_vm0, %v2253_v8 }
 0x54c   : > { %2436 = vmatpush1.msk.msra.mxu0 %vm2013_vm0, %v2216_v24 }
 0x54d   : > { %2437 = vmatmul.mubr.msk.f32.vlgmr.msra.gmra.mrb[10].mxu0 %vm2262_vm4, %v2229_v33 }
 0x553   : > { %v2234_v13 = vpop.permute.xlu0 %2233 }
 0x620   : > { %v2336_v2 = vpop.f32.mrb[10].mxu0 }
 0x621   : > { %v2337_v40 = vadd.f32 %v2336_v2, %v2234_v13  ;;  %v2338_v21 = vpop.f32.mrb[11].mxu0 }
 0x622   : > { %v2339_v35 = vadd.f32 %v2338_v21, %v2234_v13 }
 0x623   : > { %2341 = vst [vmem:[%s406_s28] sm:$0xff] %v2337_v40 }
 0x624   : > { %2342 = vst [vmem:[%s406_s28 + $0x8] sm:$0xff] %v2339_v35 }
 0x625 PF: > { %s21_s17 = sadd.s32 1, %s2855_s17  }
 0x626   : > { %p18_p4 = scmp.ge.s32.totalorder %s21_s17, 4  }
 0x628   :  { %20 = sbr.rel (!%p18_p4) target bundleno = 1 (0x1), region = 123 }

</bundles_post_ra>
